<compile_context>
chip_gen: v7x
topology: tpu7x:2x2x1
jax: 0.10.0
libtpu: 0.0.40
codegen_flags: <defaults>
</compile_context>

<pallas_src>
import functools

import jax
import jax.numpy as jnp
from jax.experimental import pallas as pl
from jax.experimental.pallas import tpu as pltpu

MAX_TB = 512  # upper bound on the batch tile (rows per grid step)
NFEAT = 256   # packed input width: 128 board features + 3 counts + zero pad
NOUT = 128    # lane-dense output width (column 0 holds the network output)


# -----------------------------------------------------------------------------
# Kernel math (shared by the Pallas kernel and the matched pure-JAX check)
# -----------------------------------------------------------------------------
def _forward_math(x, w1, w2b, w3, fc, cw, bias):
    """x    : (TB, 256) bf16  cols 0:128 board (CHW flatten), 128:131 counts
       w1   : (128, 1152) bf16 dense-unrolled conv1 (CHW in -> HWC out)
       w2b  : (768, 512)  bf16 conv2 output-row-band matrix (HWC in -> HWC out)
       w3   : (1024, 256) bf16 dense-unrolled conv3 (HWC in -> CHW out)
       fc   : (640, 128)  bf16 [fc1_board; fc2; fc3; fc4] (zero-padded to 128)
       cw   : (8, 128)    f32  rows 0..2 = fc1 count weights
       bias : (8, 1152)   f32  rows: b1(HWC), b2 band(HWC), b3(CHW),
                                      fb1, fb2, fb3, fb4, 0
       returns (TB, 128) f32, column 0 is the prediction."""
    f32 = jnp.float32
    bf16 = jnp.bfloat16

    xb = x[:, :128]                               # board features (bf16, exact)

    # conv1 (dense-unrolled) -> HWC-flattened (6,6,32) activations
    h1 = jnp.tanh(jnp.dot(xb, w1, preferred_element_type=f32)
                  + bias[0:1, :1152])
    h1 = h1.astype(bf16)                          # (TB, 1152)

    # conv2 as two output-row-band matmuls on 128-aligned static slices of h1.
    # Band a: input spatial rows 0..3 -> output rows 0..1; band b: rows 2..5
    # -> output rows 2..3.  Both bands share the same (768, 512) weight slab.
    b2 = bias[1:2, :512]
    h2a = jnp.tanh(jnp.dot(h1[:, 0:768], w2b, preferred_element_type=f32) + b2)
    h2b = jnp.tanh(jnp.dot(h1[:, 384:1152], w2b, preferred_element_type=f32) + b2)

    # conv3 consumes the two bands via split-K (no concatenate needed);
    # output flatten is CHW(64,2,2) == PyTorch view(1,-1).
    h3 = jnp.tanh(jnp.dot(h2a.astype(bf16), w3[0:512],
                          preferred_element_type=f32)
                  + jnp.dot(h2b.astype(bf16), w3[512:1024],
                            preferred_element_type=f32)
                  + bias[2:3, :256])              # (TB, 256) f32

    # fc1 count contribution: exact f32 on the VPU (three broadcast FMAs).
    cnt = x[:, 128:256].astype(f32)               # counts are exact in bf16
    ccontrib = (cnt[:, 0:1] * cw[0:1, :]
                + cnt[:, 1:2] * cw[1:2, :]
                + cnt[:, 2:3] * cw[2:3, :])       # (TB, 128) f32

    # fc tail on the MXU in bf16 (f32 accumulation, f32 biases).
    h = jnp.tanh(jnp.dot(h3.astype(bf16), fc[0:256], preferred_element_type=f32)
                 + ccontrib + bias[3:4, :128])
    h = jnp.tanh(jnp.dot(h.astype(bf16), fc[256:384], preferred_element_type=f32)
                 + bias[4:5, :128])
    h = jnp.tanh(jnp.dot(h.astype(bf16), fc[384:512], preferred_element_type=f32)
                 + bias[5:6, :128])
    out = (jnp.dot(h.astype(bf16), fc[512:640], preferred_element_type=f32)
           + bias[6:7, :128])
    return out


def nnet_kernel(x_ref, w1_ref, w2b_ref, w3_ref, fc_ref, cw_ref, bias_ref,
                out_ref):
    out_ref[...] = _forward_math(
        x_ref[...], w1_ref[...], w2b_ref[...], w3_ref[...],
        fc_ref[...], cw_ref[...], bias_ref[...]).astype(out_ref.dtype)


# -----------------------------------------------------------------------------
# Parameters (PyTorch-default-style init) and one-time weight preparation
# -----------------------------------------------------------------------------
def init_params(key):
    ks = jax.random.split(key, 14)

    def u(k, shape, fan_in):
        bound = 1.0 / float(fan_in) ** 0.5
        return jax.random.uniform(k, shape, jnp.float32, -bound, bound)

    return {
        "w1": u(ks[0], (32, 2, 3, 3), 2 * 9),   "b1": u(ks[1], (32,), 2 * 9),
        "w2": u(ks[2], (64, 32, 3, 3), 32 * 9), "b2": u(ks[3], (64,), 32 * 9),
        "w3": u(ks[4], (64, 64, 3, 3), 64 * 9), "b3": u(ks[5], (64,), 64 * 9),
        "fw1": u(ks[6], (128, 259), 259),       "fb1": u(ks[7], (128,), 259),
        "fw2": u(ks[8], (64, 128), 128),        "fb2": u(ks[9], (64,), 128),
        "fw3": u(ks[10], (32, 64), 64),         "fb3": u(ks[11], (32,), 64),
        "fw4": u(ks[12], (1, 32), 32),          "fb4": u(ks[13], (1,), 32),
    }


def _conv_as_dense(w, in_chw, in_order="CHW", out_order="CHW"):
    """Unroll a 3x3 VALID conv (OIHW weight) into a dense matrix mapping the
    flattened input (in `in_order`) to the flattened output (in `out_order`)."""
    c, h, wd = in_chw
    n = c * h * wd
    eye = jnp.eye(n, dtype=jnp.float32)
    if in_order == "CHW":
        x = eye.reshape(n, c, h, wd)
    else:  # "HWC"
        x = eye.reshape(n, h, wd, c).transpose(0, 3, 1, 2)
    y = jax.lax.conv_general_dilated(
        x, w.astype(jnp.float32), window_strides=(1, 1), padding="VALID",
        dimension_numbers=("NCHW", "OIHW", "NCHW"))
    if out_order == "HWC":
        y = y.transpose(0, 2, 3, 1)
    return y.reshape(n, -1)


def prepare_params(p):
    """Hoisted, one-time weight prep: dense-unrolled convs + packed slabs."""
    f32 = jnp.float32

    # conv1: CHW(2,8,8) in (matches board flatten) -> HWC(6,6,32) out
    w1d = _conv_as_dense(p["w1"], (2, 8, 8), "CHW", "HWC")    # (128, 1152)
    # conv2 band: HWC(4,6,32) input window -> HWC(2,4,64) output band
    w2b = _conv_as_dense(p["w2"], (32, 4, 6), "HWC", "HWC")   # (768, 512)
    # conv3: HWC(4,4,64) in -> CHW(64,2,2) out (matches PyTorch view(1,-1))
    w3d = _conv_as_dense(p["w3"], (64, 4, 4), "HWC", "CHW")   # (1024, 256)

    def pad2(a, rows, cols):
        out = jnp.zeros((rows, cols), f32)
        return out.at[:a.shape[0], :a.shape[1]].set(a.astype(f32))

    fc = jnp.concatenate([
        p["fw1"][:, :256].T.astype(f32),          # (256,128) fc1 board part
        pad2(p["fw2"].T, 128, 128),               # (128,128) fc2
        pad2(p["fw3"].T, 128, 128),               # (128,128) fc3
        pad2(p["fw4"].T, 128, 128),               # (128,128) fc4
    ], axis=0).astype(jnp.bfloat16)               # (640, 128) bf16 (MXU-native)

    # fc1 count weights stay f32 (used on the VPU; exact).
    cw = jnp.zeros((8, 128), f32).at[:3, :].set(p["fw1"][:, 256:].T.astype(f32))

    def pad_row(v, n=1152):
        return jnp.zeros((n,), f32).at[:v.shape[0]].set(v.astype(f32))

    bias = jnp.stack([
        jnp.tile(p["b1"].astype(f32), 36),        # conv1 bias, HWC flatten
        pad_row(jnp.tile(p["b2"], 8)),            # conv2 band bias, HWC (512)
        pad_row(jnp.repeat(p["b3"], 4)),          # conv3 bias, CHW (256)
        pad_row(p["fb1"]), pad_row(p["fb2"]),
        pad_row(p["fb3"]), pad_row(p["fb4"]),
        jnp.zeros((1152,), f32),
    ], axis=0)                                    # (8, 1152) f32

    return {
        "w1d": w1d.astype(jnp.bfloat16),
        "w2b": w2b.astype(jnp.bfloat16),
        "w3d": w3d.astype(jnp.bfloat16),
        "fc": fc,          # bf16
        "cw": cw,          # f32 (count path stays exact)
        "bias": bias,      # f32
    }


def _pack_inputs(boards, counts):
    """(B,2,8,8) boards + (B,3) counts -> (B,256) bf16 (values exact in bf16)."""
    b = boards.shape[0]
    xb = boards.reshape(b, 128).astype(jnp.float32)        # CHW flatten
    cnt = counts.reshape(b, 3).astype(jnp.float32)
    x = jnp.concatenate([xb, cnt], axis=1)                 # (B, 131)
    x = jnp.pad(x, ((0, 0), (0, NFEAT - 131)))
    return x.astype(jnp.bfloat16)


def _pick_tb(bsz):
    """Largest batch tile (multiple of 128, <= MAX_TB) that still yields >=2
    grid steps when possible, so both v7x TensorCores get work."""
    half = (bsz // 2) // 128 * 128
    return int(max(128, min(MAX_TB, half)))


# -----------------------------------------------------------------------------
# Batched forward via pallas_call
# -----------------------------------------------------------------------------
@functools.partial(jax.jit, static_argnames=("tb",))
def _nnet_forward_pallas_jit(boards, counts, prep, tb):
    bsz = boards.shape[0]
    x = _pack_inputs(boards, counts)
    pb = pl.cdiv(bsz, tb) * tb
    if pb != bsz:
        x = jnp.pad(x, ((0, pb - bsz), (0, 0)))

    grid_spec = pltpu.PrefetchScalarGridSpec(
        num_scalar_prefetch=0,
        grid=(pb // tb,),
        in_specs=[
            pl.BlockSpec((tb, NFEAT), lambda i: (i, 0)),    # packed board+count
            pl.BlockSpec((128, 1152), lambda i: (0, 0)),    # conv1 dense (resident)
            pl.BlockSpec((768, 512), lambda i: (0, 0)),     # conv2 band (resident)
            pl.BlockSpec((1024, 256), lambda i: (0, 0)),    # conv3 dense (resident)
            pl.BlockSpec((640, 128), lambda i: (0, 0)),     # fc slab bf16 (resident)
            pl.BlockSpec((8, 128), lambda i: (0, 0)),       # fc1 count weights f32
            pl.BlockSpec((8, 1152), lambda i: (0, 0)),      # bias slab f32
        ],
        out_specs=pl.BlockSpec((tb, NOUT), lambda i: (i, 0)),
    )
    out = pl.pallas_call(
        nnet_kernel,
        out_shape=jax.ShapeDtypeStruct((pb, NOUT), jnp.float32),
        grid_spec=grid_spec,
        compiler_params=pltpu.CompilerParams(
            dimension_semantics=("parallel",),          # 2 TCs on v7x
            vmem_limit_bytes=32 * 1024 * 1024),         # safe on v5e/v6e/v7x
    )(x, prep["w1d"], prep["w2b"], prep["w3d"], prep["fc"], prep["cw"],
      prep["bias"])
    return out[:bsz, :1]                                # (B, 1)


def nnet_forward_pallas(boards, counts, prep, tb=None):
    if tb is None:
        tb = _pick_tb(boards.shape[0])
    return _nnet_forward_pallas_jit(boards, counts, prep, tb)


# -----------------------------------------------------------------------------
# References for validation
# -----------------------------------------------------------------------------
def nnet_forward_ref(boards, counts, p):
    """Pure-JAX f32 reference mirroring the PyTorch forward, batched."""
    x = boards.astype(jnp.float32)
    for w, b in ((p["w1"], p["b1"]), (p["w2"], p["b2"]), (p["w3"], p["b3"])):
        x = jax.lax.conv_general_dilated(
            x, w, window_strides=(1, 1), padding="VALID",
            dimension_numbers=("NCHW", "OIHW", "NCHW"))
        x = jnp.tanh(x + b[None, :, None, None])
    h = jnp.concatenate(
        [x.reshape(x.shape[0], -1), counts.reshape(-1, 3).astype(jnp.float32)],
        axis=1)                                            # (B, 259)
    h = jnp.tanh(h @ p["fw1"].T + p["fb1"])
    h = jnp.tanh(h @ p["fw2"].T + p["fb2"])
    h = jnp.tanh(h @ p["fw3"].T + p["fb3"])
    return h @ p["fw4"].T + p["fb4"]                       # (B, 1)


def nnet_forward_matched(boards, counts, prep):
    """Identical math to the kernel, run through XLA: tight structural check."""
    x = _pack_inputs(boards, counts)
    out = _forward_math(x, prep["w1d"], prep["w2b"], prep["w3d"],
                        prep["fc"], prep["cw"], prep["bias"])
    return out[:, :1]


if __name__ == "__main__":
    key = jax.random.PRNGKey(0)
    k_board, k_params = jax.random.split(key)

    B = 512   # picks tb=256 -> 2 grid steps; each row is an independent board
    raw = jax.random.randint(k_board, (B, 8, 8), -1, 2)    # values in {-1, 0, 1}
    board_a = (raw == 1).astype(jnp.float32)
    board_b = (raw == -1).astype(jnp.float32)
    boards = jnp.stack([board_a, board_b], axis=1)         # (B, 2, 8, 8)
    a_count = board_a.sum(axis=(1, 2))
    b_count = board_b.sum(axis=(1, 2))
    counts = jnp.stack([a_count, b_count, a_count + b_count], axis=1)  # (B, 3)

    params = init_params(k_params)
    prep = prepare_params(params)          # one-time, hoisted weight prep

    out = nnet_forward_pallas(boards, counts, prep)
    out = jax.block_until_ready(out)
    assert out.shape == (B, 1)

    # Tight structural check: kernel vs the identical bf16-conv/bf16-fc math.
    matched = nnet_forward_matched(boards, counts, prep)
    assert jnp.allclose(out, matched, atol=1e-3, rtol=1e-3), float(
        jnp.max(jnp.abs(out - matched)))

    # Semantic check vs the f32 PyTorch-equivalent reference; tolerance sized
    # for bf16 conv AND fc weights (count path stays exact f32).  Real
    # regressions are caught by the tight matched check above.
    ref = nnet_forward_ref(boards, counts, params)
    assert jnp.allclose(out, ref, atol=2e-2), float(jnp.max(jnp.abs(out - ref)))

    print("KERNEL_OK")
</pallas_src>

<mosaic_0001>
module attributes {stable_mosaic.version = 11 : i64} {
  func.func @nnet_kernel(%arg0: i32, %arg1: memref<256x256xbf16, #tpu.memory_space<vmem>>, %arg2: memref<128x1152xbf16, #tpu.memory_space<vmem>>, %arg3: memref<768x512xbf16, #tpu.memory_space<vmem>>, %arg4: memref<1024x256xbf16, #tpu.memory_space<vmem>>, %arg5: memref<640x128xbf16, #tpu.memory_space<vmem>>, %arg6: memref<8x128xf32, #tpu.memory_space<vmem>>, %arg7: memref<8x1152xf32, #tpu.memory_space<vmem>>, %arg8: memref<256x128xf32, #tpu.memory_space<vmem>>) attributes {dimension_semantics = [#tpu.dimension_semantics<parallel>], iteration_bounds = array<i64: 2>, scalar_prefetch = 0 : i64, scratch_operands = 0 : i64, tpu.core_type = #tpu.core_type<tc>, window_params = [{transform_indices = @transform_0, window_bounds = array<i64: 256, 256>}, {pipeline_mode = #tpu.pipeline_mode<synchronous>, transform_indices = @transform_1, window_bounds = array<i64: 128, 1152>}, {pipeline_mode = #tpu.pipeline_mode<synchronous>, transform_indices = @transform_2, window_bounds = array<i64: 768, 512>}, {pipeline_mode = #tpu.pipeline_mode<synchronous>, transform_indices = @transform_3, window_bounds = array<i64: 1024, 256>}, {pipeline_mode = #tpu.pipeline_mode<synchronous>, transform_indices = @transform_4, window_bounds = array<i64: 640, 128>}, {pipeline_mode = #tpu.pipeline_mode<synchronous>, transform_indices = @transform_5, window_bounds = array<i64: 8, 128>}, {pipeline_mode = #tpu.pipeline_mode<synchronous>, transform_indices = @transform_6, window_bounds = array<i64: 8, 1152>}, {transform_indices = @transform_7, window_bounds = array<i64: 256, 128>}]} {
    %c0 = arith.constant 0 : index
    %c0_0 = arith.constant 0 : index
    %0 = vector.load %arg1[%c0, %c0_0] : memref<256x256xbf16, #tpu.memory_space<vmem>>, vector<256x256xbf16>
    %c0_1 = arith.constant 0 : index
    %c0_2 = arith.constant 0 : index
    %1 = vector.load %arg2[%c0_1, %c0_2] : memref<128x1152xbf16, #tpu.memory_space<vmem>>, vector<128x1152xbf16>
    %c0_3 = arith.constant 0 : index
    %c0_4 = arith.constant 0 : index
    %2 = vector.load %arg3[%c0_3, %c0_4] : memref<768x512xbf16, #tpu.memory_space<vmem>>, vector<768x512xbf16>
    %c0_5 = arith.constant 0 : index
    %c0_6 = arith.constant 0 : index
    %3 = vector.load %arg4[%c0_5, %c0_6] : memref<1024x256xbf16, #tpu.memory_space<vmem>>, vector<1024x256xbf16>
    %c0_7 = arith.constant 0 : index
    %c0_8 = arith.constant 0 : index
    %4 = vector.load %arg5[%c0_7, %c0_8] : memref<640x128xbf16, #tpu.memory_space<vmem>>, vector<640x128xbf16>
    %c0_9 = arith.constant 0 : index
    %c0_10 = arith.constant 0 : index
    %5 = vector.load %arg6[%c0_9, %c0_10] : memref<8x128xf32, #tpu.memory_space<vmem>>, vector<8x128xf32>
    %c0_11 = arith.constant 0 : index
    %c0_12 = arith.constant 0 : index
    %6 = vector.load %arg7[%c0_11, %c0_12] : memref<8x1152xf32, #tpu.memory_space<vmem>>, vector<8x1152xf32>
    %7 = vector.extract_strided_slice %0 {offsets = [0, 0], sizes = [256, 128], strides = [1, 1]} : vector<256x256xbf16> to vector<256x128xbf16>
    %cst = arith.constant dense<0.000000e+00> : vector<256x1152xf32>
    %8 = tpu.matmul %7, %1, %cst {dimension_numbers = #tpu.dot_dimension_numbers<[1], [0], [0], [1], [0, 0, 1, 1], [], []>} : vector<256x128xbf16>, vector<128x1152xbf16>, vector<256x1152xf32> -> vector<256x1152xf32>
    %9 = vector.extract_strided_slice %6 {offsets = [0, 0], sizes = [1, 1152], strides = [1, 1]} : vector<8x1152xf32> to vector<1x1152xf32>
    %10 = vector.broadcast %9 : vector<1x1152xf32> to vector<256x1152xf32>
    %11 = arith.addf %8, %10 : vector<256x1152xf32>
    %12 = math.tanh %11 : vector<256x1152xf32>
    %13 = arith.truncf %12 : vector<256x1152xf32> to vector<256x1152xbf16>
    %14 = vector.extract_strided_slice %6 {offsets = [1, 0], sizes = [1, 512], strides = [1, 1]} : vector<8x1152xf32> to vector<1x512xf32>
    %15 = vector.extract_strided_slice %13 {offsets = [0, 0], sizes = [256, 768], strides = [1, 1]} : vector<256x1152xbf16> to vector<256x768xbf16>
    %cst_13 = arith.constant dense<0.000000e+00> : vector<256x512xf32>
    %16 = tpu.matmul %15, %2, %cst_13 {dimension_numbers = #tpu.dot_dimension_numbers<[1], [0], [0], [1], [0, 0, 1, 1], [], []>} : vector<256x768xbf16>, vector<768x512xbf16>, vector<256x512xf32> -> vector<256x512xf32>
    %17 = vector.broadcast %14 : vector<1x512xf32> to vector<256x512xf32>
    %18 = arith.addf %16, %17 : vector<256x512xf32>
    %19 = math.tanh %18 : vector<256x512xf32>
    %20 = vector.extract_strided_slice %13 {offsets = [0, 384], sizes = [256, 768], strides = [1, 1]} : vector<256x1152xbf16> to vector<256x768xbf16>
    %cst_14 = arith.constant dense<0.000000e+00> : vector<256x512xf32>
    %21 = tpu.matmul %20, %2, %cst_14 {dimension_numbers = #tpu.dot_dimension_numbers<[1], [0], [0], [1], [0, 0, 1, 1], [], []>} : vector<256x768xbf16>, vector<768x512xbf16>, vector<256x512xf32> -> vector<256x512xf32>
    %22 = vector.broadcast %14 : vector<1x512xf32> to vector<256x512xf32>
    %23 = arith.addf %21, %22 : vector<256x512xf32>
    %24 = math.tanh %23 : vector<256x512xf32>
    %25 = arith.truncf %19 : vector<256x512xf32> to vector<256x512xbf16>
    %26 = vector.extract_strided_slice %3 {offsets = [0, 0], sizes = [512, 256], strides = [1, 1]} : vector<1024x256xbf16> to vector<512x256xbf16>
    %cst_15 = arith.constant dense<0.000000e+00> : vector<256x256xf32>
    %27 = tpu.matmul %25, %26, %cst_15 {dimension_numbers = #tpu.dot_dimension_numbers<[1], [0], [0], [1], [0, 0, 1, 1], [], []>} : vector<256x512xbf16>, vector<512x256xbf16>, vector<256x256xf32> -> vector<256x256xf32>
    %28 = arith.truncf %24 : vector<256x512xf32> to vector<256x512xbf16>
    %29 = vector.extract_strided_slice %3 {offsets = [512, 0], sizes = [512, 256], strides = [1, 1]} : vector<1024x256xbf16> to vector<512x256xbf16>
    %cst_16 = arith.constant dense<0.000000e+00> : vector<256x256xf32>
    %30 = tpu.matmul %28, %29, %cst_16 {dimension_numbers = #tpu.dot_dimension_numbers<[1], [0], [0], [1], [0, 0, 1, 1], [], []>} : vector<256x512xbf16>, vector<512x256xbf16>, vector<256x256xf32> -> vector<256x256xf32>
    %31 = arith.addf %27, %30 : vector<256x256xf32>
    %32 = vector.extract_strided_slice %6 {offsets = [2, 0], sizes = [1, 256], strides = [1, 1]} : vector<8x1152xf32> to vector<1x256xf32>
    %33 = vector.broadcast %32 : vector<1x256xf32> to vector<256x256xf32>
    %34 = arith.addf %31, %33 : vector<256x256xf32>
    %35 = math.tanh %34 : vector<256x256xf32>
    %36 = vector.extract_strided_slice %0 {offsets = [0, 128], sizes = [256, 128], strides = [1, 1]} : vector<256x256xbf16> to vector<256x128xbf16>
    %37 = arith.extf %36 : vector<256x128xbf16> to vector<256x128xf32>
    %38 = vector.extract_strided_slice %37 {offsets = [0, 0], sizes = [256, 1], strides = [1, 1]} : vector<256x128xf32> to vector<256x1xf32>
    %39 = vector.extract_strided_slice %5 {offsets = [0, 0], sizes = [1, 128], strides = [1, 1]} : vector<8x128xf32> to vector<1x128xf32>
    %40 = vector.broadcast %38 : vector<256x1xf32> to vector<256x128xf32>
    %41 = vector.broadcast %39 : vector<1x128xf32> to vector<256x128xf32>
    %42 = arith.mulf %40, %41 : vector<256x128xf32>
    %43 = vector.extract_strided_slice %37 {offsets = [0, 1], sizes = [256, 1], strides = [1, 1]} : vector<256x128xf32> to vector<256x1xf32>
    %44 = vector.extract_strided_slice %5 {offsets = [1, 0], sizes = [1, 128], strides = [1, 1]} : vector<8x128xf32> to vector<1x128xf32>
    %45 = vector.broadcast %43 : vector<256x1xf32> to vector<256x128xf32>
    %46 = vector.broadcast %44 : vector<1x128xf32> to vector<256x128xf32>
    %47 = arith.mulf %45, %46 : vector<256x128xf32>
    %48 = arith.addf %42, %47 : vector<256x128xf32>
    %49 = vector.extract_strided_slice %37 {offsets = [0, 2], sizes = [256, 1], strides = [1, 1]} : vector<256x128xf32> to vector<256x1xf32>
    %50 = vector.extract_strided_slice %5 {offsets = [2, 0], sizes = [1, 128], strides = [1, 1]} : vector<8x128xf32> to vector<1x128xf32>
    %51 = vector.broadcast %49 : vector<256x1xf32> to vector<256x128xf32>
    %52 = vector.broadcast %50 : vector<1x128xf32> to vector<256x128xf32>
    %53 = arith.mulf %51, %52 : vector<256x128xf32>
    %54 = arith.addf %48, %53 : vector<256x128xf32>
    %55 = arith.truncf %35 : vector<256x256xf32> to vector<256x256xbf16>
    %56 = vector.extract_strided_slice %4 {offsets = [0, 0], sizes = [256, 128], strides = [1, 1]} : vector<640x128xbf16> to vector<256x128xbf16>
    %cst_17 = arith.constant dense<0.000000e+00> : vector<256x128xf32>
    %57 = tpu.matmul %55, %56, %cst_17 {dimension_numbers = #tpu.dot_dimension_numbers<[1], [0], [0], [1], [0, 0, 1, 1], [], []>} : vector<256x256xbf16>, vector<256x128xbf16>, vector<256x128xf32> -> vector<256x128xf32>
    %58 = arith.addf %57, %54 : vector<256x128xf32>
    %59 = vector.extract_strided_slice %6 {offsets = [3, 0], sizes = [1, 128], strides = [1, 1]} : vector<8x1152xf32> to vector<1x128xf32>
    %60 = vector.broadcast %59 : vector<1x128xf32> to vector<256x128xf32>
    %61 = arith.addf %58, %60 : vector<256x128xf32>
    %62 = math.tanh %61 : vector<256x128xf32>
    %63 = arith.truncf %62 : vector<256x128xf32> to vector<256x128xbf16>
    %64 = vector.extract_strided_slice %4 {offsets = [256, 0], sizes = [128, 128], strides = [1, 1]} : vector<640x128xbf16> to vector<128x128xbf16>
    %cst_18 = arith.constant dense<0.000000e+00> : vector<256x128xf32>
    %65 = tpu.matmul %63, %64, %cst_18 {dimension_numbers = #tpu.dot_dimension_numbers<[1], [0], [0], [1], [0, 0, 1, 1], [], []>} : vector<256x128xbf16>, vector<128x128xbf16>, vector<256x128xf32> -> vector<256x128xf32>
    %66 = vector.extract_strided_slice %6 {offsets = [4, 0], sizes = [1, 128], strides = [1, 1]} : vector<8x1152xf32> to vector<1x128xf32>
    %67 = vector.broadcast %66 : vector<1x128xf32> to vector<256x128xf32>
    %68 = arith.addf %65, %67 : vector<256x128xf32>
    %69 = math.tanh %68 : vector<256x128xf32>
    %70 = arith.truncf %69 : vector<256x128xf32> to vector<256x128xbf16>
    %71 = vector.extract_strided_slice %4 {offsets = [384, 0], sizes = [128, 128], strides = [1, 1]} : vector<640x128xbf16> to vector<128x128xbf16>
    %cst_19 = arith.constant dense<0.000000e+00> : vector<256x128xf32>
    %72 = tpu.matmul %70, %71, %cst_19 {dimension_numbers = #tpu.dot_dimension_numbers<[1], [0], [0], [1], [0, 0, 1, 1], [], []>} : vector<256x128xbf16>, vector<128x128xbf16>, vector<256x128xf32> -> vector<256x128xf32>
    %73 = vector.extract_strided_slice %6 {offsets = [5, 0], sizes = [1, 128], strides = [1, 1]} : vector<8x1152xf32> to vector<1x128xf32>
    %74 = vector.broadcast %73 : vector<1x128xf32> to vector<256x128xf32>
    %75 = arith.addf %72, %74 : vector<256x128xf32>
    %76 = math.tanh %75 : vector<256x128xf32>
    %77 = arith.truncf %76 : vector<256x128xf32> to vector<256x128xbf16>
    %78 = vector.extract_strided_slice %4 {offsets = [512, 0], sizes = [128, 128], strides = [1, 1]} : vector<640x128xbf16> to vector<128x128xbf16>
    %cst_20 = arith.constant dense<0.000000e+00> : vector<256x128xf32>
    %79 = tpu.matmul %77, %78, %cst_20 {dimension_numbers = #tpu.dot_dimension_numbers<[1], [0], [0], [1], [0, 0, 1, 1], [], []>} : vector<256x128xbf16>, vector<128x128xbf16>, vector<256x128xf32> -> vector<256x128xf32>
    %80 = vector.extract_strided_slice %6 {offsets = [6, 0], sizes = [1, 128], strides = [1, 1]} : vector<8x1152xf32> to vector<1x128xf32>
    %81 = vector.broadcast %80 : vector<1x128xf32> to vector<256x128xf32>
    %82 = arith.addf %79, %81 : vector<256x128xf32>
    %c0_21 = arith.constant 0 : index
    %c0_22 = arith.constant 0 : index
    %83 = vector.load %arg8[%c0_21, %c0_22] : memref<256x128xf32, #tpu.memory_space<vmem>>, vector<256x128xf32>
    tpu.vector_store %arg8[%c0_21, %c0_22], %82 {strides = array<i32>} : memref<256x128xf32, #tpu.memory_space<vmem>>, vector<256x128xf32>,
    return
  }
  func.func @transform_0(%arg0: i32) -> (i32, i32) {
    %c0_i32 = arith.constant 0 : i32
    %c0_i32_0 = arith.constant 0 : i32
    return %arg0, %c0_i32 : i32, i32
  }
  func.func @transform_1(%arg0: i32) -> (i32, i32) {
    %c0_i32 = arith.constant 0 : i32
    %c0_i32_0 = arith.constant 0 : i32
    %c0_i32_1 = arith.constant 0 : i32
    return %c0_i32, %c0_i32_0 : i32, i32
  }
  func.func @transform_2(%arg0: i32) -> (i32, i32) {
    %c0_i32 = arith.constant 0 : i32
    %c0_i32_0 = arith.constant 0 : i32
    %c0_i32_1 = arith.constant 0 : i32
    return %c0_i32, %c0_i32_0 : i32, i32
  }
  func.func @transform_3(%arg0: i32) -> (i32, i32) {
    %c0_i32 = arith.constant 0 : i32
    %c0_i32_0 = arith.constant 0 : i32
    %c0_i32_1 = arith.constant 0 : i32
    return %c0_i32, %c0_i32_0 : i32, i32
  }
  func.func @transform_4(%arg0: i32) -> (i32, i32) {
    %c0_i32 = arith.constant 0 : i32
    %c0_i32_0 = arith.constant 0 : i32
    %c0_i32_1 = arith.constant 0 : i32
    return %c0_i32, %c0_i32_0 : i32, i32
  }
  func.func @transform_5(%arg0: i32) -> (i32, i32) {
    %c0_i32 = arith.constant 0 : i32
    %c0_i32_0 = arith.constant 0 : i32
    %c0_i32_1 = arith.constant 0 : i32
    return %c0_i32, %c0_i32_0 : i32, i32
  }
  func.func @transform_6(%arg0: i32) -> (i32, i32) {
    %c0_i32 = arith.constant 0 : i32
    %c0_i32_0 = arith.constant 0 : i32
    %c0_i32_1 = arith.constant 0 : i32
    return %c0_i32, %c0_i32_0 : i32, i32
  }
  func.func @transform_7(%arg0: i32) -> (i32, i32) {
    %c0_i32 = arith.constant 0 : i32
    %c0_i32_0 = arith.constant 0 : i32
    return %arg0, %c0_i32 : i32, i32
  }
}

</mosaic_0001>

<bundles_post_ra>
// kernel: _nnet_forward_pallas_jit.1
= control target key start
LH: loop header
LB: loop body
LE: loop exit
PB: predicated region body
PF: predicated region fallthrough
CT: control target
= control target key end

     0   :  { %12 = vsyncpa [#allocation3], 0  ;;  %s18746_s0 = inlined_call_operand.vmem [shape: bf16[512,256], index: 0, kind: input, shape index: {}]   ;;  %s18747_s1 = inlined_call_operand.hbm [shape: bf16[128,1152], index: 1, kind: input, shape index: {}]   ;;  %s18748_s2 = inlined_call_operand.vmem [shape: bf16[768,512], index: 2, kind: input, shape index: {}]   ;;  %s18749_s3 = inlined_call_operand.vmem [shape: bf16[1024,256], index: 3, kind: input, shape index: {}]   ;;  %s18750_s4 = inlined_call_operand.hbm [shape: bf16[640,128], index: 4, kind: input, shape index: {}]   ;;  %s18751_s5 = inlined_call_operand.vmem [shape: f32[8,128], index: 5, kind: input, shape index: {}]   ;;  %s18752_s6 = inlined_call_operand.hbm [shape: f32[8,1152], index: 6, kind: input, shape index: {}]   ;;  %s18753_s7 = inlined_call_operand.vmem [shape: f32[512,128], index: 7, kind: output, shape index: {}]  }
   0x1   :  { %13 = vsyncpa [#allocation5], 0  ;;  %s14438_s24 = smov 0  }
   0x2 LB: > { %s14388_s25 = smov [#allocation4]   ;;  %s9850_s27 = sadd.s32 4294967295, %s14386_s24   ;;  %s14386_s24 = sphi %s14438_s24, %s19_s24  }
   0x3   : > { %s233_s26 = sshll.u32 %s14388_s25, 4  ;;  %p9852_p0 = scmp.ge.s32.totalorder %s14386_s24, 1  ;;  %s14456_s26 = int_to_ptr.vmem [resolvable:$true] %s233_s26 }
   0x4   : > { %p202_p1 = scmp.lt.s32.totalorder %s14386_s24, 3  ;;  %p14448_p2 = scmp.eq.s32.totalorder %s9850_s27, 0 }
   0x5   : > { %s14389_s30 = smov [#allocation2]   ;;  %s14390_s10 = smov [#allocation6]  }
   0x6   : > { %s18954_s28 = scalar_select %p14448_p2, 1, 0 }
   0x7   : > { %p14452_p3 = pnand %p9852_p0, %p202_p1  ;;  %s214_s8 = sshll.u32 %s14389_s30, 4  ;;  %s14460_s8 = int_to_ptr.vmem [resolvable:$true] %s214_s8 }
   0x8   : > { %s14468_s11 = sshll.u32 %s14390_s10, 4  ;;  %s14288_s14 = scalar_lea.hbm %s18750_s4, 5120  ;;  %s251_s11 = int_to_ptr.vmem [resolvable:$true] %s14468_s11 }
   0x9   : > { %s18955_s29 = scalar_select %p14452_p3, 1, 0 }
   0xa   : > { %p11705_p4 = pneg %p14452_p3  ;;  %p14289_p6 = scmp.ne.s32.totalorder %s18750_s4, %s14288_s14 }
   0xb   : > { %p14295_p10 = scmp.lt.u32.totalorder %s14288_s14, %s18750_s4 }
   0xc   : > { %p14464_p5 = pnand %p14448_p2, %p11705_p4 }
   0xe   : > { %p14478_p7 = pneg %p14464_p5 }
  0x10   : > { %p14291_p8 = pnand %p14478_p7, %p14289_p6 }
  0x12   : > { %p14292_p9 = pneg %p14291_p8 }
  0x14   : > { %p14297_p11 = pnand %p14295_p10, %p14292_p9 }
  0x16   : > { %14300 = shalt.err (!%p14297_p11)
}
  0x17   : > { %s14301_s20 = scalar_lea.vmem %s14456_s26, 5120  ;;  %p14309_p1 = scmp.lt.s32.totalorder %s14456_s26, %s14456_s26 }
  0x18   : > { %p14302_p12 = scmp.ne.s32.totalorder %s14456_s26, %s14301_s20  ;;  %p14310_p4 = scmp.lt.s32.totalorder %s14301_s20, %s14301_s20 }
  0x1a   : > { %p14304_p13 = pnand %p14302_p12, %p14478_p7  ;;  %p14311_p6 = por %p14310_p4, %p14309_p1 }
  0x1c   : > { %p14305_p0 = pneg %p14304_p13 }
  0x1e   : > { %p14312_p8 = pnand %p14311_p6, %p14305_p0 }
  0x20   : > { %14315 = shalt.err (!%p14312_p8)
}
  0x21   : > { %s14391_s21 = smov 64   ;;  %s14392_s22 = smov 4  }
  0x22   : > { %11711 = dma.hbm_to_vmem [thread:$0]  (!%p14464_p5), %s18750_s4, 5120, %s14456_s26, [#allocation5], %s14391_s21, %s14391_s21, %s14392_s22  }
  0x23   : > { %s14316_s12 = scalar_lea.hbm %s18747_s1, 9216 }
  0x24   : > { %p14317_p9 = scmp.ne.s32.totalorder %s18747_s1, %s14316_s12  ;;  %p14323_p12 = scmp.lt.u32.totalorder %s14316_s12, %s18747_s1 }
  0x26   : > { %p14319_p10 = pnand %p14317_p9, %p14478_p7 }
  0x28   : > { %p14320_p11 = pneg %p14319_p10 }
  0x2a   : > { %p14325_p13 = pnand %p14323_p12, %p14320_p11 }
  0x2c   : > { %14328 = shalt.err (!%p14325_p13)
}
  0x2d   : > { %s14329_s26 = scalar_lea.vmem %s14460_s8, 9216  ;;  %p14337_p6 = scmp.lt.s32.totalorder %s14460_s8, %s14460_s8 }
  0x2e   : > { %p14330_p0 = scmp.ne.s32.totalorder %s14460_s8, %s14329_s26  ;;  %p14338_p8 = scmp.lt.s32.totalorder %s14329_s26, %s14329_s26 }
  0x30   : > { %p14332_p1 = pnand %p14330_p0, %p14478_p7  ;;  %p14339_p9 = por %p14338_p8, %p14337_p6 }
  0x32   : > { %p14333_p4 = pneg %p14332_p1 }
  0x34   : > { %p14340_p10 = pnand %p14339_p9, %p14333_p4 }
  0x36   : > { %14343 = shalt.err (!%p14340_p10)
}
  0x37   : > { %s14393_s18 = smov 576   ;;  %s14394_s19 = smov 36  }
  0x38   : > { %11708 = dma.hbm_to_vmem [thread:$0]  (!%p14464_p5), %s18747_s1, 9216, %s14460_s8, [#allocation3], %s14393_s18, %s14393_s18, %s14394_s19  }
  0x39   : > { %s14344_s25 = scalar_lea.hbm %s18752_s6, 1152 }
  0x3a   : > { %p14345_p11 = scmp.ne.s32.totalorder %s18752_s6, %s14344_s25  ;;  %p14351_p0 = scmp.lt.u32.totalorder %s14344_s25, %s18752_s6 }
  0x3c   : > { %p14347_p12 = pnand %p14345_p11, %p14478_p7 }
  0x3e   : > { %p14348_p13 = pneg %p14347_p12 }
  0x40   : > { %p14353_p1 = pnand %p14351_p0, %p14348_p13 }
  0x42   : > { %14356 = shalt.err (!%p14353_p1)
}
  0x43   : > { %s14357_s14 = scalar_lea.vmem %s251_s11, 1152  ;;  %p14365_p9 = scmp.lt.s32.totalorder %s251_s11, %s251_s11 }
  0x44   : > { %p14358_p4 = scmp.ne.s32.totalorder %s251_s11, %s14357_s14  ;;  %p14366_p10 = scmp.lt.s32.totalorder %s14357_s14, %s14357_s14 }
  0x46   : > { %p14360_p6 = pnand %p14358_p4, %p14478_p7  ;;  %p14367_p2 = por %p14366_p10, %p14365_p9 }
  0x48   : > { %p14361_p8 = pneg %p14360_p6 }
  0x4a   : > { %p14368_p3 = pnand %p14367_p2, %p14361_p8 }
  0x4c   : > { %14371 = shalt.err (!%p14368_p3)
}
  0x4d   : > { %11714 = dma.hbm_to_vmem [thread:$0]  (!%p14464_p5), %s18752_s6, 1152, %s251_s11, [#allocation5]  }
  0x4e   : > { %p18958_p11 = scmp.ne.s32.totalorder %s18955_s29, 0 }
  0x50   : > { %273 = sbr.rel (%p18958_p11) target bundleno = 2902 (0xb56), region = 48 }
  0x57   : > { %p18959_p12 = scmp.ne.s32.totalorder %s18954_s28, 0 }
  0x59   : > { %14377 = dma.done.wait (%p18959_p12), [#allocation3], 9216  }
  0x5a   : > { %14379 = vsyncadd (%p18959_p12), [#allocation3], 4294958080 }
  0x5b   : > { %14381 = dma.done.wait (%p18959_p12), [#allocation5], 6272  }
  0x5c   : > { %14383 = vsyncadd (%p18959_p12), [#allocation5], 4294961024  ;;  %v18760_v0 = vmov 0   ;;  %v12009_v1 = vld [vmem:[#allocation2 + $0x4] ss:$36 sps:$4 sm:$0xff]   ;;  %s9861_s28 = sshll.u32 %s9850_s27, 5 }
  0x5d   : > { %1382 = vmatprep.mubr.bf16.mxu0 %v18760_v0  ;;  %1655 = vmatprep.mubr.bf16.mxu1 %v18760_v0  ;;  %v12011_v2 = vld [vmem:[#allocation2] ss:$36 sps:$4 sm:$0xff]   ;;  %v12012_v3 = vld [vmem:[#allocation2 + $0x4c] ss:$36 sps:$4 sm:$0xff]   ;;  %v12015_v5 = vld [vmem:[#allocation2 + $0x94] ss:$36 sps:$4 sm:$0xff]  }
  0x5e   : > { %11745 = vset.pattern.permute.xlu1 %v18760_v0  ;;  %1350 = vmatprep.subr.bf16.mxu0 %v12009_v1  ;;  %v12014_v4 = vld [vmem:[#allocation2 + $0x48] ss:$36 sps:$4 sm:$0xff]   ;;  %v12017_v6 = vld [vmem:[#allocation2 + $0x90] ss:$36 sps:$4 sm:$0xff]   ;;  %v12018_v7 = vld [vmem:[#allocation2 + $0xdc] ss:$36 sps:$4 sm:$0xff]  }
  0x5f   : > { %1351 = vmatpush1.bf16.msra.mxu0 %v12011_v2  ;;  %v12020_v8 = vld [vmem:[#allocation2 + $0xd8] ss:$36 sps:$4 sm:$0xff]   ;;  %v12021_v9 = vld [vmem:[#allocation2 + $0x124] ss:$36 sps:$4 sm:$0xff]   ;;  %v12036_v11 = vld [vmem:[#allocation2 + $0xc] ss:$36 sps:$4 sm:$0xff]  }
  0x60   : > { %1352 = vmatprep.subr.bf16.mxu0 %v12012_v3  ;;  %v12034_v10 = vld [vmem:[#allocation2 + $0x8] ss:$36 sps:$4 sm:$0xff]   ;;  %p315_p2 = scmp.lt.s32.totalorder %s9861_s28, 63  ;;  %10717 = vmatprep.subr.bf16.mxu1 %v12036_v11  ;;  %v12038_v12 = vld [vmem:[#allocation2 + $0x54] ss:$36 sps:$4 sm:$0xff]  }
  0x61   : > { %v12023_v13 = vld [vmem:[#allocation2 + $0x120] ss:$36 sps:$4 sm:$0xff]   ;;  %10725 = vmatpush1.bf16.msra.mxu1 %v12034_v10  ;;  %v12040_v14 = vld [vmem:[#allocation2 + $0x50] ss:$36 sps:$4 sm:$0xff]   ;;  %v12026_v17 = vld [vmem:[#allocation2 + $0x168] ss:$36 sps:$4 sm:$0xff]  }
  0x62   : > { %v12024_v15 = vld [vmem:[#allocation2 + $0x16c] ss:$36 sps:$4 sm:$0xff]   ;;  %10718 = vmatprep.subr.bf16.mxu1 %v12038_v12  ;;  %v12041_v16 = vld [vmem:[#allocation2 + $0x9c] ss:$36 sps:$4 sm:$0xff]   ;;  %s19407_s28 = smov (!%p315_p2, %s9861_s28), 63 }
  0x63   : > { %1353 = vmatpush1.bf16.msra.mxu0 %v12014_v4  ;;  %v12027_v18 = vld [vmem:[#allocation2 + $0x1b4] ss:$36 sps:$4 sm:$0xff]   ;;  %v12045_v20 = vld [vmem:[#allocation2 + $0xe4] ss:$36 sps:$4 sm:$0xff]   ;;  %s10316_s27 = sshll.u32 %s19407_s28, 3 }
  0x64   : > { %1354 = vmatprep.subr.bf16.mxu0 %v12015_v5  ;;  %v12044_v19 = vld [vmem:[#allocation2 + $0x98] ss:$36 sps:$4 sm:$0xff]   ;;  %v12029_v21 = vld [vmem:[#allocation2 + $0x1b0] ss:$36 sps:$4 sm:$0xff]   ;;  %v12047_v22 = vld [vmem:[#allocation2 + $0xe0] ss:$36 sps:$4 sm:$0xff]   ;;  %s14564_s11 = scalar_lea.vmem %s18746_s0, %s10316_s27  ;;  %s18677_s16 = scalar_lea.vmem %s18753_s7, %s10316_s27 }
  0x65   : > { %10726 = vmatpush1.bf16.msra.mxu1 %v12040_v14  ;;  %v12030_v23 = vld [vmem:[#allocation2 + $0x1fc] ss:$36 sps:$4 sm:$0xff]   ;;  %v12048_v24 = vld [vmem:[#allocation2 + $0x12c] ss:$36 sps:$4 sm:$0xff]   ;;  %v12052_v29 = vld [vmem:[#allocation2 + $0x174] ss:$36 sps:$4 sm:$0xff]  }
  0x66   : > { %10719 = vmatprep.subr.bf16.mxu1 %v12041_v16  ;;  %v12032_v25 = vld [vmem:[#allocation2 + $0x1f8] ss:$36 sps:$4 sm:$0xff]   ;;  %v328_v26 = vld [vmem:[%s14564_s11] sm:$0xff]  ;;  %v329_v27 = vld [vmem:[%s14564_s11 + $0x8] sm:$0xff] }
  0x67   : > { %1355 = vmatpush1.bf16.msra.mxu0 %v12017_v6  ;;  %v12051_v28 = vld [vmem:[#allocation2 + $0x128] ss:$36 sps:$4 sm:$0xff]   ;;  %v14568_v30 = vcombine.low %v328_v26, %v329_v27  ;;  %v12054_v31 = vld [vmem:[#allocation2 + $0x170] ss:$36 sps:$4 sm:$0xff]   ;;  %v12055_v32 = vld [vmem:[#allocation2 + $0x1bc] ss:$36 sps:$4 sm:$0xff]  }
  0x68   : > { %1356 = vmatprep.subr.bf16.mxu0 %v12018_v7  ;;  %v330_v33 = vld [vmem:[%s14564_s11 + $0x10] sm:$0xff]  ;;  %v331_v34 = vld [vmem:[%s14564_s11 + $0x18] sm:$0xff]  ;;  %v12059_v36 = vld [vmem:[#allocation2 + $0x204] ss:$36 sps:$4 sm:$0xff]  }
  0x69   : > { %10727 = vmatpush1.bf16.msra.mxu1 %v12044_v19  ;;  %v12058_v35 = vld [vmem:[#allocation2 + $0x1b8] ss:$36 sps:$4 sm:$0xff]   ;;  %v14574_v37 = vcombine.low %v330_v33, %v331_v34  ;;  %v14576_v38 = vld [vmem:[#allocation2 + $0x200] ss:$36 sps:$4 sm:$0xff]   ;;  %v345_v40 = vld [vmem:[%s14564_s11 + $0x88] sm:$0xff] }
  0x6a   : > { %10720 = vmatprep.subr.bf16.mxu1 %v12045_v20  ;;  %v344_v39 = vld [vmem:[%s14564_s11 + $0x80] sm:$0xff]  ;;  %v333_v43 = vld [vmem:[%s14564_s11 + $0x28] sm:$0xff]  ;;  %v12069_v45 = vld [vmem:[#allocation2 + $0x18] ss:$36 sps:$4 sm:$0xff]  }
  0x6b   : > { %1357 = vmatpush1.bf16.msra.mxu0 %v12020_v8  ;;  %v12071_v41 = vld [vmem:[#allocation2 + $0x1c] ss:$36 sps:$4 sm:$0xff]   ;;  %v14584_v44 = vcombine.low %v344_v39, %v345_v40  ;;  %v346_v47 = vld [vmem:[%s14564_s11 + $0x90] sm:$0xff]  ;;  %v12075_v48 = vld [vmem:[#allocation2 + $0x64] ss:$36 sps:$4 sm:$0xff]  }
  0x6c   : > { %1358 = vmatprep.subr.bf16.mxu0 %v12021_v9  ;;  %v332_v42 = vld [vmem:[%s14564_s11 + $0x20] sm:$0xff]  ;;  %v347_v49 = vld [vmem:[%s14564_s11 + $0x98] sm:$0xff]  ;;  %v334_v51 = vld [vmem:[%s14564_s11 + $0x30] sm:$0xff] }
  0x6d   : > { %10728 = vmatpush1.bf16.msra.mxu1 %v12047_v22  ;;  %v14587_v46 = vcombine.low %v332_v42, %v333_v43  ;;  %v12073_v50 = vld [vmem:[#allocation2 + $0x60] ss:$36 sps:$4 sm:$0xff]   ;;  %v335_v52 = vld [vmem:[%s14564_s11 + $0x38] sm:$0xff]  ;;  %v12079_v53 = vld [vmem:[#allocation2 + $0xac] ss:$36 sps:$4 sm:$0xff]   ;;  %v14597_v54 = vcombine.low %v346_v47, %v347_v49 }
  0x6e   : > { %10721 = vmatprep.subr.bf16.mxu1 %v12048_v24  ;;  %v12077_v55 = vld [vmem:[#allocation2 + $0xa8] ss:$36 sps:$4 sm:$0xff]   ;;  %v12082_v56 = vld [vmem:[#allocation2 + $0xf4] ss:$36 sps:$4 sm:$0xff]   ;;  %v14599_v57 = vcombine.low %v334_v51, %v335_v52  ;;  %v348_v58 = vld [vmem:[%s14564_s11 + $0xa0] sm:$0xff] }
  0x6f   : > { %1359 = vmatpush1.bf16.msra.mxu0 %v12023_v13  ;;  %v349_v59 = vld [vmem:[%s14564_s11 + $0xa8] sm:$0xff]  ;;  %v12080_v60 = vld [vmem:[#allocation2 + $0xf0] ss:$36 sps:$4 sm:$0xff]   ;;  %v336_v61 = vld [vmem:[%s14564_s11 + $0x40] sm:$0xff] }
  0x70   : > { %1360 = vmatprep.subr.bf16.mxu0 %v12024_v15  ;;  %v337_v62 = vld [vmem:[%s14564_s11 + $0x48] sm:$0xff]  ;;  %v12086_v63 = vld [vmem:[#allocation2 + $0x13c] ss:$36 sps:$4 sm:$0xff]   ;;  %v14609_v1 = vcombine.low %v348_v58, %v349_v59  ;;  %v12099_v3 = vld [vmem:[#allocation2 + $0x14] ss:$36 sps:$4 sm:$0xff]  }
  0x71   : > { %10729 = vmatpush1.bf16.msra.mxu1 %v12051_v28  ;;  %v12084_v2 = vld [vmem:[#allocation2 + $0x138] ss:$36 sps:$4 sm:$0xff]   ;;  %v12089_v4 = vld [vmem:[#allocation2 + $0x184] ss:$36 sps:$4 sm:$0xff]   ;;  %v14611_v5 = vcombine.low %v336_v61, %v337_v62  ;;  %v350_v6 = vld [vmem:[%s14564_s11 + $0xb0] sm:$0xff] }
  0x72   : > { %10722 = vmatprep.subr.bf16.mxu1 %v12052_v29  ;;  %v351_v7 = vld [vmem:[%s14564_s11 + $0xb8] sm:$0xff]  ;;  %v12087_v8 = vld [vmem:[#allocation2 + $0x180] ss:$36 sps:$4 sm:$0xff]   ;;  %v338_v9 = vld [vmem:[%s14564_s11 + $0x50] sm:$0xff] }
  0x73   : > { %1361 = vmatpush1.bf16.msra.mxu0 %v12026_v17  ;;  %v12091_v13 = vld [vmem:[#allocation2 + $0x1c8] ss:$36 sps:$4 sm:$0xff]   ;;  %v342_v26 = vld [vmem:[%s14564_s11 + $0x70] sm:$0xff]  ;;  %v343_v27 = vld [vmem:[%s14564_s11 + $0x78] sm:$0xff] }
  0x74   : > { %1362 = vmatprep.subr.bf16.mxu0 %v12027_v18  ;;  %v353_v17 = vld [vmem:[%s14564_s11 + $0xc8] sm:$0xff]  ;;  %v12094_v18 = vld [vmem:[#allocation2 + $0x210] ss:$36 sps:$4 sm:$0xff]  }
  0x75   : > { %10730 = vmatpush1.bf16.msra.mxu1 %v12054_v31  ;;  %v358_v34 = vld [vmem:[%s14564_s11 + $0xf0] sm:$0xff] }
  0x76   : > { %10723 = vmatprep.subr.bf16.mxu1 %v12055_v32  ;;  %v12108_v39 = vld [vmem:[%s18748_s2 + $0x24] ss:$16 sps:$4 sm:$0xff]   ;;  %v12106_v40 = vld [vmem:[%s18748_s2 + $0x20] ss:$16 sps:$4 sm:$0xff]  }
  0x77   : > { %1363 = vmatpush1.bf16.msra.mxu0 %v12029_v21  ;;  %v341_v21 = vld [vmem:[%s14564_s11 + $0x68] sm:$0xff]  ;;  %v12112_v42 = vld [vmem:[%s18748_s2 + $0x40] ss:$16 sps:$4 sm:$0xff]   ;;  %v12120_v43 = vld [vmem:[%s18748_s2 + $0x64] ss:$16 sps:$4 sm:$0xff]  }
  0x78   : > { %1364 = vmatprep.subr.bf16.mxu0 %v12030_v23  ;;  %v12126_v47 = vld [vmem:[%s18748_s2 + $0x84] ss:$16 sps:$4 sm:$0xff]   ;;  %v12136_v52 = vld [vmem:[%s18748_s2 + $0xc0] ss:$16 sps:$4 sm:$0xff]  }
  0x79   : > { %10731 = vmatpush1.bf16.msra.mxu1 %v12058_v35  ;;  %v12132_v49 = vld [vmem:[%s18748_s2 + $0xa4] ss:$16 sps:$4 sm:$0xff]   ;;  %v12146_v58 = vld [vmem:[%s18748_s2 + $0x100] ss:$16 sps:$4 sm:$0xff]  }
  0x7a   : > { %10724 = vmatprep.subr.bf16.mxu1 %v12059_v36  ;;  %v12138_v51 = vld [vmem:[%s18748_s2 + $0xc4] ss:$16 sps:$4 sm:$0xff]   ;;  %v12152_v62 = vld [vmem:[%s18748_s2 + $0x140] ss:$16 sps:$4 sm:$0xff]  }
  0x7b   : > { %1365 = vmatpush1.bf16.msra.mxu0 %v12032_v25  ;;  %v355_v25 = vld [vmem:[%s14564_s11 + $0xd8] sm:$0xff]  ;;  %v12151_v59 = vld [vmem:[%s18748_s2 + $0x124] ss:$16 sps:$4 sm:$0xff]  }
  0x7c   : > { %1543 = vmatprep.subr.bf16.mxu0 %v12036_v11  ;;  %v12093_v11 = vld [vmem:[#allocation2 + $0x1cc] ss:$36 sps:$4 sm:$0xff]   ;;  %v12154_v61 = vld [vmem:[%s18748_s2 + $0x144] ss:$16 sps:$4 sm:$0xff]  }
  0x7d   : > { %10732 = vmatpush1.bf16.msra.mxu1 %v14576_v38 }
  0x7e   : > { %1383 = vmatmul.mubr.bf16.vlgmr.msra.gmra.mrb[0].mxu0 %v14568_v30  ;;  %1929 = vmatprep.subr.bf16.mxu1 %v12071_v41  ;;  %v12114_v41 = vld [vmem:[%s18748_s2 + $0x44] ss:$16 sps:$4 sm:$0xff]  }
  0x7f   : > { %1544 = vmatpush1.bf16.msra.mxu0 %v12034_v10  ;;  %1392 = vmatprep.mubr.bf16.mxu0 %v18760_v0  ;;  %v339_v10 = vld [vmem:[%s14564_s11 + $0x58] sm:$0xff] }
  0x80   : > { %1545 = vmatprep.subr.bf16.mxu0 %v12038_v12  ;;  %1656 = vmatmul.mubr.bf16.vlgmr.msra.gmra.mrb[0].mxu1 %v14584_v44  ;;  %v14622_v12 = vcombine.low %v350_v6, %v351_v7  ;;  %v14624_v15 = vcombine.low %v338_v9, %v339_v10  ;;  %v12164_v6 = vld [vmem:[%s18748_s2 + $0x1a4] ss:$16 sps:$4 sm:$0xff]   ;;  %v12162_v9 = vld [vmem:[%s18748_s2 + $0x1a0] ss:$16 sps:$4 sm:$0xff]  }
  0x81   : > { %1665 = vmatprep.mubr.bf16.mxu1 %v18760_v0  ;;  %1930 = vmatpush1.bf16.msra.mxu1 %v12069_v45  ;;  %v12118_v45 = vld [vmem:[%s18748_s2 + $0x60] ss:$16 sps:$4 sm:$0xff]   ;;  %v12167_v10 = vld [vmem:[%s18748_s2 + $0x1c4] ss:$16 sps:$4 sm:$0xff]  }
  0x82   : > { %1931 = vmatprep.subr.bf16.mxu1 %v12075_v48  ;;  %v12124_v48 = vld [vmem:[%s18748_s2 + $0x80] ss:$16 sps:$4 sm:$0xff]  }
  0x83   : > { %1546 = vmatpush1.bf16.msra.mxu0 %v12040_v14  ;;  %v12096_v14 = vld [vmem:[#allocation2 + $0x214] ss:$36 sps:$4 sm:$0xff]  }
  0x84   : > { %1547 = vmatprep.subr.bf16.mxu0 %v12041_v16  ;;  %v352_v16 = vld [vmem:[%s14564_s11 + $0xc0] sm:$0xff]  ;;  %v12097_v7 = vld [vmem:[#allocation2 + $0x10] ss:$36 sps:$4 sm:$0xff]  }
  0x85   : > { %1932 = vmatpush1.bf16.msra.mxu1 %v12073_v50  ;;  %v12130_v50 = vld [vmem:[%s18748_s2 + $0xa0] ss:$16 sps:$4 sm:$0xff]  }
  0x86   : > { %1393 = vmatmul.mubr.bf16.gmra.mrb[4].mxu0 %v14574_v37  ;;  %1933 = vmatprep.subr.bf16.mxu1 %v12079_v53  ;;  %v12144_v53 = vld [vmem:[%s18748_s2 + $0xe4] ss:$16 sps:$4 sm:$0xff]  }
  0x87   : > { %1402 = vmatprep.mubr.bf16.mxu0 %v18760_v0  ;;  %1548 = vmatpush1.bf16.msra.mxu0 %v12044_v19  ;;  %v340_v19 = vld [vmem:[%s14564_s11 + $0x60] sm:$0xff] }
  0x88   : > { %1549 = vmatprep.subr.bf16.mxu0 %v12045_v20  ;;  %1666 = vmatmul.mubr.bf16.gmra.mrb[4].mxu1 %v14597_v54  ;;  %v12102_v20 = vld [vmem:[%s18748_s2 + $0x4] ss:$16 sps:$4 sm:$0xff]   ;;  %v14639_v23 = vcombine.low %v340_v19, %v341_v21  ;;  %v12169_v19 = vld [vmem:[%s18748_s2 + $0x1e0] ss:$16 sps:$4 sm:$0xff]   ;;  %v12115_v21 = vld [vmem:[#allocation2 + $0xe8] ss:$36 sps:$4 sm:$0xff]  }
  0x89   : > { %1675 = vmatprep.mubr.bf16.mxu1 %v18760_v0  ;;  %1934 = vmatpush1.bf16.msra.mxu1 %v12077_v55  ;;  %v12142_v55 = vld [vmem:[%s18748_s2 + $0xe0] ss:$16 sps:$4 sm:$0xff]  }
  0x8a   : > { %1935 = vmatprep.subr.bf16.mxu1 %v12082_v56  ;;  %v12148_v56 = vld [vmem:[%s18748_s2 + $0x104] ss:$16 sps:$4 sm:$0xff]  }
  0x8b   : > { %1550 = vmatpush1.bf16.msra.mxu0 %v12047_v22  ;;  %v14637_v22 = vcombine.low %v352_v16, %v353_v17  ;;  %v12171_v16 = vld [vmem:[%s18748_s2 + $0x1e4] ss:$16 sps:$4 sm:$0xff]  }
  0x8c   : > { %1551 = vmatprep.subr.bf16.mxu0 %v12048_v24  ;;  %v354_v24 = vld [vmem:[%s14564_s11 + $0xd0] sm:$0xff]  ;;  %v12109_v17 = vld [vmem:[#allocation2 + $0xa0] ss:$36 sps:$4 sm:$0xff]  }
  0x8d   : > { %1936 = vmatpush1.bf16.msra.mxu1 %v12080_v60  ;;  %v12149_v60 = vld [vmem:[%s18748_s2 + $0x120] ss:$16 sps:$4 sm:$0xff]  }
  0x8e   : > { %1403 = vmatmul.mubr.bf16.gmra.mrb[8].mxu0 %v14587_v46  ;;  %1937 = vmatprep.subr.bf16.mxu1 %v12086_v63  ;;  %v12158_v63 = vld [vmem:[%s18748_s2 + $0x164] ss:$16 sps:$4 sm:$0xff]  }
  0x8f   : > { %1412 = vmatprep.mubr.bf16.mxu0 %v18760_v0  ;;  %1552 = vmatpush1.bf16.msra.mxu0 %v12051_v28  ;;  %v14649_v28 = vcombine.low %v354_v24, %v355_v25  ;;  %v12123_v24 = vld [vmem:[#allocation2 + $0x134] ss:$36 sps:$4 sm:$0xff]  }
  0x90   : > { %1553 = vmatprep.subr.bf16.mxu0 %v12052_v29  ;;  %1676 = vmatmul.mubr.bf16.gmra.mrb[8].mxu1 %v14609_v1  ;;  %v14651_v29 = vcombine.low %v342_v26, %v343_v27  ;;  %v12121_v25 = vld [vmem:[#allocation2 + $0x130] ss:$36 sps:$4 sm:$0xff]   ;;  %v12129_v26 = vld [vmem:[#allocation2 + $0x17c] ss:$36 sps:$4 sm:$0xff]  }
  0x91   : > { %1685 = vmatprep.mubr.bf16.mxu1 %v18760_v0  ;;  %1938 = vmatpush1.bf16.msra.mxu1 %v12084_v2  ;;  %v12156_v2 = vld [vmem:[%s18748_s2 + $0x160] ss:$16 sps:$4 sm:$0xff]   ;;  %v12127_v27 = vld [vmem:[#allocation2 + $0x178] ss:$36 sps:$4 sm:$0xff]  }
  0x92   : > { %1939 = vmatprep.subr.bf16.mxu1 %v12089_v4  ;;  %v12159_v4 = vld [vmem:[%s18748_s2 + $0x180] ss:$16 sps:$4 sm:$0xff]  }
  0x93   : > { %1554 = vmatpush1.bf16.msra.mxu0 %v12054_v31  ;;  %v356_v31 = vld [vmem:[%s14564_s11 + $0xe0] sm:$0xff] }
  0x94   : > { %1555 = vmatprep.subr.bf16.mxu0 %v12055_v32  ;;  %v357_v32 = vld [vmem:[%s14564_s11 + $0xe8] sm:$0xff] }
  0x95   : > { %1940 = vmatpush1.bf16.msra.mxu1 %v12087_v8  ;;  %v14659_v33 = vcombine.low %v356_v31, %v357_v32  ;;  %v12105_v8 = vld [vmem:[#allocation2 + $0x5c] ss:$36 sps:$4 sm:$0xff]   ;;  %v12135_v31 = vld [vmem:[#allocation2 + $0x1c4] ss:$36 sps:$4 sm:$0xff]  }
  0x96   : > { %1413 = vmatmul.mubr.bf16.gmra.mrb[12].mxu0 %v14599_v57  ;;  %1941 = vmatprep.subr.bf16.mxu1 %v12093_v11  ;;  %v12103_v11 = vld [vmem:[#allocation2 + $0x58] ss:$36 sps:$4 sm:$0xff]   ;;  %v12133_v32 = vld [vmem:[#allocation2 + $0x1c0] ss:$36 sps:$4 sm:$0xff]  }
  0x97   : > { %1422 = vmatprep.mubr.bf16.mxu0 %v18760_v0  ;;  %1556 = vmatpush1.bf16.msra.mxu0 %v12058_v35  ;;  %v359_v35 = vld [vmem:[%s14564_s11 + $0xf8] sm:$0xff] }
  0x98   : > { %1557 = vmatprep.subr.bf16.mxu0 %v12059_v36  ;;  %1686 = vmatmul.mubr.bf16.gmra.mrb[12].mxu1 %v14622_v12  ;;  %v14667_v36 = vcombine.low %v358_v34, %v359_v35  ;;  %v12141_v34 = vld [vmem:[#allocation2 + $0x20c] ss:$36 sps:$4 sm:$0xff]  }
  0x99   : > { %1695 = vmatprep.mubr.bf16.mxu1 %v18760_v0  ;;  %1942 = vmatpush1.bf16.msra.mxu1 %v12091_v13  ;;  %v12111_v13 = vld [vmem:[#allocation2 + $0xa4] ss:$36 sps:$4 sm:$0xff]  }
  0x9a   : > { %1943 = vmatprep.subr.bf16.mxu1 %v12096_v14  ;;  %v12165_v14 = vld [vmem:[%s18748_s2 + $0x1c0] ss:$16 sps:$4 sm:$0xff]   ;;  %v12139_v35 = vld [vmem:[#allocation2 + $0x208] ss:$36 sps:$4 sm:$0xff]  }
  0x9b   : > { %1558 = vmatpush1.bf16.msra.mxu0 %v14576_v38  ;;  %v12100_v38 = vld [vmem:[%s18748_s2] ss:$16 sps:$4 sm:$0xff]  }
  0x9c   : > { %1736 = vmatprep.subr.bf16.mxu0 %v12099_v3  ;;  %v12161_v3 = vld [vmem:[%s18748_s2 + $0x184] ss:$16 sps:$4 sm:$0xff]  }
  0x9d   : > { %1944 = vmatpush1.bf16.msra.mxu1 %v12094_v18  ;;  %v12117_v18 = vld [vmem:[#allocation2 + $0xec] ss:$36 sps:$4 sm:$0xff]  }
  0x9e   : > { %1423 = vmatmul.mubr.bf16.gmra.mrb[16].mxu0 %v14611_v5  ;;  %3691 = vmatprep.subr.bf16.mxu1 %v12102_v20  ;;  %v12176_v20 = vld [vmem:[%s18748_s2 + $0x204] ss:$16 sps:$4 sm:$0xff]  }
  0x9f   : > { %1432 = vmatprep.mubr.bf16.mxu0 %v18760_v0 }
  0xa0   : > { %1696 = vmatmul.mubr.bf16.gmra.mrb[16].mxu1 %v14637_v22 }
  0xa1   : > { %1705 = vmatprep.mubr.bf16.mxu1 %v18760_v0 }
  0xa6   : > { %1433 = vmatmul.mubr.bf16.gmra.mrb[20].mxu0 %v14624_v15 }
  0xa7   : > { %1442 = vmatprep.mubr.bf16.mxu0 %v18760_v0 }
  0xa8   : > { %1706 = vmatmul.mubr.bf16.gmra.mrb[20].mxu1 %v14649_v28 }
  0xa9   : > { %1715 = vmatprep.mubr.bf16.mxu1 %v18760_v0 }
  0xae   : > { %1443 = vmatmul.mubr.bf16.gmra.mrb[24].mxu0 %v14639_v23 }
  0xaf   : > { %1452 = vmatprep.mubr.bf16.mxu0 %v18760_v0 }
  0xb0   : > { %1716 = vmatmul.mubr.bf16.gmra.mrb[24].mxu1 %v14659_v33 }
  0xb1   : > { %1725 = vmatprep.mubr.bf16.mxu1 %v18760_v0 }
  0xb6   : > { %1453 = vmatmul.mubr.bf16.gmra.mrb[28].mxu0 %v14651_v29 }
  0xb7   : > { %1462 = vmatprep.mubr.bf16.mxu0 %v18760_v0 }
  0xb8   : > { %1726 = vmatmul.mubr.bf16.gmra.mrb[28].mxu1 %v14667_v36 }
  0xb9   : > { %1961 = vmatprep.mubr.bf16.mxu1 %v18760_v0 }
  0xbe   : > { %1463 = vmatmul.mubr.bf16.gmra.mrb[32].mxu0 %v14584_v44 }
  0xbf   : > { %1472 = vmatprep.mubr.bf16.mxu0 %v18760_v0 }
  0xc0   : > { %1962 = vmatmul.mubr.bf16.vlgmr.msra.gmra.mrb[32].mxu1 %v14568_v30 }
  0xc1   : > { %1971 = vmatprep.mubr.bf16.mxu1 %v18760_v0  ;;  %3692 = vmatpush1.bf16.msra.mxu1 %v12100_v38  ;;  %v12145_v38 = vld [vmem:[#allocation2 + $0x20] ss:$36 sps:$4 sm:$0xff]  }
  0xc2   : > { %3693 = vmatprep.subr.bf16.mxu1 %v12108_v39  ;;  %v12155_v39 = vld [vmem:[#allocation2 + $0x68] ss:$36 sps:$4 sm:$0xff]  }
  0xc5   : > { %3694 = vmatpush1.bf16.msra.mxu1 %v12106_v40  ;;  %v12168_v40 = vld [vmem:[#allocation2 + $0xb0] ss:$36 sps:$4 sm:$0xff]  }
  0xc6   : > { %1473 = vmatmul.mubr.bf16.gmra.mrb[36].mxu0 %v14597_v54  ;;  %3695 = vmatprep.subr.bf16.mxu1 %v12114_v41  ;;  %v850_v41 = vlaneseq }
  0xc7   : > { %1482 = vmatprep.mubr.bf16.mxu0 %v18760_v0 }
  0xc8   : > { %1972 = vmatmul.mubr.bf16.gmra.mrb[36].mxu1 %v14574_v37 }
  0xc9   : > { %1981 = vmatprep.mubr.bf16.mxu1 %v18760_v0  ;;  %3696 = vmatpush1.bf16.msra.mxu1 %v12112_v42  ;;  %v12172_v42 = vld [vmem:[#allocation2 + $0xf8] ss:$36 sps:$4 sm:$0xff]  }
  0xca   : > { %3697 = vmatprep.subr.bf16.mxu1 %v12120_v43  ;;  %v14831_v43 = vshrl.u32 %v850_v41, 7 }
  0xcc   : > { %18960 = vst [vmem:[#allocation9_spill] sm:$0xff] %v14831_v43 }
  0xcd   : > { %3698 = vmatpush1.bf16.msra.mxu1 %v12118_v45  ;;  %v12173_v45 = vld [vmem:[#allocation2 + $0x140] ss:$36 sps:$4 sm:$0xff]  }
  0xce   : > { %1483 = vmatmul.mubr.bf16.gmra.mrb[40].mxu0 %v14609_v1  ;;  %3699 = vmatprep.subr.bf16.mxu1 %v12126_v47  ;;  %v14835_v47 = vsub.s32 0, %v14831_v43  ;;  %v847_v43 = vld [vmem:[#allocation6 + $0x30] sm:$0xff] }
  0xcf   : > { %1492 = vmatprep.mubr.bf16.mxu0 %v18760_v0 }
  0xd0   : > { %1982 = vmatmul.mubr.bf16.gmra.mrb[40].mxu1 %v14587_v46  ;;  %18961 = vst [vmem:[#allocation10_spill] sm:$0xff] %v14835_v47 }
  0xd1   : > { %1991 = vmatprep.mubr.bf16.mxu1 %v18760_v0  ;;  %3700 = vmatpush1.bf16.msra.mxu1 %v12124_v48  ;;  %v841_v48 = vld [vmem:[#allocation6] sm:$0xff] }
  0xd2   : > { %3701 = vmatprep.subr.bf16.mxu1 %v12132_v49  ;;  %v842_v49 = vld [vmem:[#allocation6 + $0x8] sm:$0xff] }
  0xd5   : > { %3702 = vmatpush1.bf16.msra.mxu1 %v12130_v50  ;;  %v12180_v50 = vld [vmem:[#allocation2 + $0x188] ss:$36 sps:$4 sm:$0xff]  }
  0xd6   : > { %1493 = vmatmul.mubr.bf16.gmra.mrb[44].mxu0 %v14622_v12  ;;  %3703 = vmatprep.subr.bf16.mxu1 %v12138_v51  ;;  %v14839_v51 = vrot.slane %v841_v48, %v14835_v47 }
  0xd7   : > { %1502 = vmatprep.mubr.bf16.mxu0 %v18760_v0 }
  0xd8   : > { %1992 = vmatmul.mubr.bf16.gmra.mrb[44].mxu1 %v14599_v57 }
  0xd9   : > { %2001 = vmatprep.mubr.bf16.mxu1 %v18760_v0  ;;  %3704 = vmatpush1.bf16.msra.mxu1 %v12136_v52  ;;  %v14842_v52 = vrot.slane %v842_v49, %v14835_v47 }
  0xda   : > { %3705 = vmatprep.subr.bf16.mxu1 %v12144_v53  ;;  %v12187_v53 = vld [vmem:[#allocation2 + $0x1d0] ss:$36 sps:$4 sm:$0xff]  }
  0xdd   : > { %3706 = vmatpush1.bf16.msra.mxu1 %v12142_v55 }
  0xde   : > { %1503 = vmatmul.mubr.bf16.gmra.mrb[48].mxu0 %v14637_v22  ;;  %3707 = vmatprep.subr.bf16.mxu1 %v12148_v56 }
  0xdf   : > { %1512 = vmatprep.mubr.bf16.mxu0 %v18760_v0 }
  0xe0   : > { %2002 = vmatmul.mubr.bf16.gmra.mrb[48].mxu1 %v14611_v5 }
  0xe1   : > { %2011 = vmatprep.mubr.bf16.mxu1 %v18760_v0  ;;  %3708 = vmatpush1.bf16.msra.mxu1 %v12146_v58 }
  0xe2   : > { %3709 = vmatprep.subr.bf16.mxu1 %v12151_v59 }
  0xe5   : > { %3710 = vmatpush1.bf16.msra.mxu1 %v12149_v60 }
  0xe6   : > { %1513 = vmatmul.mubr.bf16.gmra.mrb[52].mxu0 %v14649_v28  ;;  %3711 = vmatprep.subr.bf16.mxu1 %v12154_v61 }
  0xe7   : > { %1522 = vmatprep.mubr.bf16.mxu0 %v18760_v0 }
  0xe8   : > { %2012 = vmatmul.mubr.bf16.gmra.mrb[52].mxu1 %v14624_v15 }
  0xe9   : > { %2021 = vmatprep.mubr.bf16.mxu1 %v18760_v0  ;;  %3712 = vmatpush1.bf16.msra.mxu1 %v12152_v62 }
  0xea   : > { %3713 = vmatprep.subr.bf16.mxu1 %v12158_v63  ;;  %v12194_v63 = vld [vmem:[#allocation2 + $0x218] ss:$36 sps:$4 sm:$0xff]  }
  0xed   : > { %3714 = vmatpush1.bf16.msra.mxu1 %v12156_v2 }
  0xee   : > { %1523 = vmatmul.mubr.bf16.gmra.mrb[56].mxu0 %v14659_v33  ;;  %3715 = vmatprep.subr.bf16.mxu1 %v12161_v3  ;;  %v843_v3 = vld [vmem:[#allocation6 + $0x10] sm:$0xff] }
  0xef   : > { %1532 = vmatprep.mubr.bf16.mxu0 %v18760_v0 }
  0xf0   : > { %2022 = vmatmul.mubr.bf16.gmra.mrb[56].mxu1 %v14639_v23 }
  0xf1   : > { %2031 = vmatprep.mubr.bf16.mxu1 %v18760_v0  ;;  %3716 = vmatpush1.bf16.msra.mxu1 %v12159_v4  ;;  %v12206_v4 = vld [vmem:[%s18748_s2 + $0xc] ss:$16 sps:$4 sm:$0xff]  }
  0xf2   : > { %3717 = vmatprep.subr.bf16.mxu1 %v12164_v6 }
  0xf5   : > { %3718 = vmatpush1.bf16.msra.mxu1 %v12162_v9 }
  0xf6   : > { %1533 = vmatmul.mubr.bf16.gmra.mrb[60].mxu0 %v14667_v36  ;;  %3719 = vmatprep.subr.bf16.mxu1 %v12167_v10 }
  0xf7   : > { %1575 = vmatprep.mubr.bf16.mxu0 %v18760_v0 }
  0xf8   : > { %2032 = vmatmul.mubr.bf16.gmra.mrb[60].mxu1 %v14651_v29 }
  0xf9   : > { %2041 = vmatprep.mubr.bf16.mxu1 %v18760_v0  ;;  %3720 = vmatpush1.bf16.msra.mxu1 %v12165_v14 }
  0xfa   : > { %3721 = vmatprep.subr.bf16.mxu1 %v12171_v16 }
  0xfd   : > { %3722 = vmatpush1.bf16.msra.mxu1 %v12169_v19 }
  0xfe   : > { %1576 = vmatmul.mubr.bf16.vlgmr.msra.gmra.mrb[64].mxu0 %v14568_v30  ;;  %3884 = vmatprep.subr.bf16.mxu1 %v12176_v20 }
  0xff   : > { %1737 = vmatpush1.bf16.msra.mxu0 %v12097_v7  ;;  %1585 = vmatprep.mubr.bf16.mxu0 %v18760_v0  ;;  %v844_v7 = vld [vmem:[#allocation6 + $0x18] sm:$0xff] }
 0x100   : > { %1738 = vmatprep.subr.bf16.mxu0 %v12105_v8  ;;  %2042 = vmatmul.mubr.bf16.gmra.mrb[64].mxu1 %v14584_v44 }
 0x101   : > { %2051 = vmatprep.mubr.bf16.mxu1 %v18760_v0 }
 0x103   : > { %1739 = vmatpush1.bf16.msra.mxu0 %v12103_v11 }
 0x104   : > { %1740 = vmatprep.subr.bf16.mxu0 %v12111_v13  ;;  %v14857_v13 = vrot.slane %v843_v3, %v14835_v47 }
 0x106   : > { %1586 = vmatmul.mubr.bf16.gmra.mrb[68].mxu0 %v14574_v37 }
 0x107   : > { %1595 = vmatprep.mubr.bf16.mxu0 %v18760_v0  ;;  %1741 = vmatpush1.bf16.msra.mxu0 %v12109_v17  ;;  %v14861_v17 = vrot.slane %v844_v7, %v14835_v47 }
 0x108   : > { %1742 = vmatprep.subr.bf16.mxu0 %v12117_v18  ;;  %2052 = vmatmul.mubr.bf16.gmra.mrb[68].mxu1 %v14597_v54 }
 0x109   : > { %2061 = vmatprep.mubr.bf16.mxu1 %v18760_v0 }
 0x10b   : > { %1743 = vmatpush1.bf16.msra.mxu0 %v12115_v21 }
 0x10c   : > { %1744 = vmatprep.subr.bf16.mxu0 %v12123_v24 }
 0x10e   : > { %1596 = vmatmul.mubr.bf16.gmra.mrb[72].mxu0 %v14587_v46 }
 0x10f   : > { %1605 = vmatprep.mubr.bf16.mxu0 %v18760_v0  ;;  %1745 = vmatpush1.bf16.msra.mxu0 %v12121_v25 }
 0x110   : > { %1746 = vmatprep.subr.bf16.mxu0 %v12129_v26  ;;  %2062 = vmatmul.mubr.bf16.gmra.mrb[72].mxu1 %v14609_v1 }
 0x111   : > { %2071 = vmatprep.mubr.bf16.mxu1 %v18760_v0 }
 0x113   : > { %1747 = vmatpush1.bf16.msra.mxu0 %v12127_v27 }
 0x114   : > { %1748 = vmatprep.subr.bf16.mxu0 %v12135_v31 }
 0x116   : > { %1606 = vmatmul.mubr.bf16.gmra.mrb[76].mxu0 %v14599_v57 }
 0x117   : > { %1615 = vmatprep.mubr.bf16.mxu0 %v18760_v0  ;;  %1749 = vmatpush1.bf16.msra.mxu0 %v12133_v32 }
 0x118   : > { %1750 = vmatprep.subr.bf16.mxu0 %v12141_v34  ;;  %2072 = vmatmul.mubr.bf16.gmra.mrb[76].mxu1 %v14622_v12 }
 0x119   : > { %2081 = vmatprep.mubr.bf16.mxu1 %v18760_v0 }
 0x11b   : > { %1751 = vmatpush1.bf16.msra.mxu0 %v12139_v35 }
 0x11c   : > { %10525 = vmatprep.subr.bf16.mxu0 %v12145_v38 }
 0x11e   : > { %1616 = vmatmul.mubr.bf16.gmra.mrb[80].mxu0 %v14611_v5 }
 0x11f   : > { %1625 = vmatprep.mubr.bf16.mxu0 %v18760_v0 }
 0x120   : > { %2082 = vmatmul.mubr.bf16.gmra.mrb[80].mxu1 %v14637_v22 }
 0x121   : > { %2091 = vmatprep.mubr.bf16.mxu1 %v18760_v0 }
 0x126   : > { %1626 = vmatmul.mubr.bf16.gmra.mrb[84].mxu0 %v14624_v15 }
 0x127   : > { %1635 = vmatprep.mubr.bf16.mxu0 %v18760_v0 }
 0x128   : > { %2092 = vmatmul.mubr.bf16.gmra.mrb[84].mxu1 %v14649_v28 }
 0x129   : > { %2101 = vmatprep.mubr.bf16.mxu1 %v18760_v0 }
 0x12e   : > { %1636 = vmatmul.mubr.bf16.gmra.mrb[88].mxu0 %v14639_v23 }
 0x12f   : > { %1645 = vmatprep.mubr.bf16.mxu0 %v18760_v0 }
 0x130   : > { %2102 = vmatmul.mubr.bf16.gmra.mrb[88].mxu1 %v14659_v33 }
 0x131   : > { %2111 = vmatprep.mubr.bf16.mxu1 %v18760_v0 }
 0x136   : > { %1646 = vmatmul.mubr.bf16.gmra.mrb[92].mxu0 %v14651_v29 }
 0x137   : > { %1768 = vmatprep.mubr.bf16.mxu0 %v18760_v0 }
 0x138   : > { %2112 = vmatmul.mubr.bf16.gmra.mrb[92].mxu1 %v14667_v36 }
 0x13e   : > { %1769 = vmatmul.mubr.bf16.vlgmr.msra.gmra.mrb[96].mxu0 %v14568_v30 }
 0x13f   : > { %10526 = vmatpush3.bf16.msra.mxu0 %v12145_v38  ;;  %1778 = vmatprep.mubr.bf16.mxu0 %v18760_v0 }
 0x140   : > { %10527 = vmatprep.subr.bf16.mxu0 %v12155_v39 }
 0x143   : > { %10528 = vmatpush3.bf16.msra.mxu0 %v12155_v39 }
 0x144   : > { %10529 = vmatprep.subr.bf16.mxu0 %v12168_v40 }
 0x146   : > { %1779 = vmatmul.mubr.bf16.gmra.mrb[100].mxu0 %v14574_v37 }
 0x147   : > { %1788 = vmatprep.mubr.bf16.mxu0 %v18760_v0  ;;  %10530 = vmatpush3.bf16.msra.mxu0 %v12168_v40 }
 0x148   : > { %10531 = vmatprep.subr.bf16.mxu0 %v12172_v42 }
 0x14b   : > { %10532 = vmatpush3.bf16.msra.mxu0 %v12172_v42 }
 0x14c   : > { %10533 = vmatprep.subr.bf16.mxu0 %v12173_v45 }
 0x14e   : > { %1789 = vmatmul.mubr.bf16.gmra.mrb[104].mxu0 %v14587_v46 }
 0x14f   : > { %1798 = vmatprep.mubr.bf16.mxu0 %v18760_v0  ;;  %10534 = vmatpush3.bf16.msra.mxu0 %v12173_v45  ;;  %v12174_v45 = vld [vmem:[%s18748_s2 + $0x200] ss:$16 sps:$4 sm:$0xff]  }
 0x150   : > { %10535 = vmatprep.subr.bf16.mxu0 %v12180_v50 }
 0x151   : > { %v1384_v55 = vpop.f32.mrb[0].mxu0 }
 0x152   : > { %v1385_v56 = vadd.f32 %v1384_v55, %v14839_v51  ;;  %v1386_v58 = vpop.f32.mrb[1].mxu0 }
 0x153   : > { %v1387_v59 = vadd.f32 %v1386_v58, %v14842_v52  ;;  %v1388_v60 = vpop.f32.mrb[2].mxu0  ;;  %10536 = vmatpush3.bf16.msra.mxu0 %v12180_v50  ;;  %v1657_v20 = vpop.f32.mrb[0].mxu1  ;;  %v12179_v50 = vld [vmem:[%s18748_s2 + $0x224] ss:$16 sps:$4 sm:$0xff]  }
 0x154   : > { %12649 = vtanh.f32 %v1385_v56  ;;  %v1389_v61 = vadd.f32 %v1388_v60, %v14839_v51  ;;  %v1390_v62 = vpop.f32.mrb[3].mxu0  ;;  %10537 = vmatprep.subr.bf16.mxu0 %v12187_v53  ;;  %v1658_v24 = vadd.f32 %v1657_v20, %v14857_v13  ;;  %v1659_v25 = vpop.f32.mrb[1].mxu1  ;;  %v12177_v60 = vld [vmem:[%s18748_s2 + $0x220] ss:$16 sps:$4 sm:$0xff]  }
 0x155   : > { %12651 = vtanh.f32 %v1387_v59  ;;  %v1391_v2 = vadd.f32 %v1390_v62, %v14842_v52  ;;  %v1660_v27 = vadd.f32 %v1659_v25, %v14861_v17  ;;  %v1661_v31 = vpop.f32.mrb[2].mxu1  ;;  %v12181_v20 = vld [vmem:[%s18748_s2 + $0x240] ss:$16 sps:$4 sm:$0xff]  }
 0x156   : > { %12653 = vtanh.f32 %v1389_v61  ;;  %1799 = vmatmul.mubr.bf16.gmra.mrb[108].mxu0 %v14599_v57  ;;  %v1662_v38 = vadd.f32 %v1661_v31, %v14857_v13  ;;  %v1663_v39 = vpop.f32.mrb[3].mxu1 }
 0x157   : > { %12655 = vtanh.f32 %v1391_v2  ;;  %1808 = vmatprep.mubr.bf16.mxu0 %v18760_v0  ;;  %10538 = vmatpush3.bf16.msra.mxu0 %v12187_v53  ;;  %v1664_v56 = vadd.f32 %v1663_v39, %v14861_v17 }
 0x158   : > { %10539 = vmatprep.subr.bf16.mxu0 %v12194_v63 }
 0x159   : > { %v1394_v6 = vpop.f32.mrb[4].mxu0 }
 0x15a   : > { %v1395_v8 = vadd.f32 %v1394_v6, %v14839_v51  ;;  %v1396_v9 = vpop.f32.mrb[5].mxu0 }
 0x15b   : > { %v1397_v10 = vadd.f32 %v1396_v9, %v14842_v52  ;;  %v1398_v11 = vpop.f32.mrb[6].mxu0  ;;  %10540 = vmatpush3.bf16.msra.mxu0 %v12194_v63  ;;  %v1667_v61 = vpop.f32.mrb[4].mxu1  ;;  %v12183_v63 = vld [vmem:[%s18748_s2 + $0x244] ss:$16 sps:$4 sm:$0xff]  }
 0x15c   : > { %12657 = vtanh.f32 %v1395_v8  ;;  %v1399_v14 = vadd.f32 %v1398_v11, %v14839_v51  ;;  %v1400_v16 = vpop.f32.mrb[7].mxu0  ;;  %4270 = vmatprep.subr.bf16.mxu0 %v12206_v4  ;;  %v1668_v2 = vadd.f32 %v1667_v61, %v14857_v13  ;;  %v1669_v3 = vpop.f32.mrb[5].mxu1 }
 0x15d   : > { %12659 = vtanh.f32 %v1397_v10  ;;  %v1401_v18 = vadd.f32 %v1400_v16, %v14842_v52  ;;  %v1670_v6 = vadd.f32 %v1669_v3, %v14861_v17  ;;  %v1671_v7 = vpop.f32.mrb[6].mxu1 }
 0x15e   : > { %v12650_v19 = vpop.eup %12649  ;;  %12661 = vtanh.f32 %v1399_v14  ;;  %1809 = vmatmul.mubr.bf16.gmra.mrb[112].mxu0 %v14611_v5  ;;  %v1672_v11 = vadd.f32 %v1671_v7, %v14857_v13  ;;  %v1673_v14 = vpop.f32.mrb[7].mxu1 }
 0x15f   : > { %v12652_v21 = vpop.eup %12651  ;;  %12663 = vtanh.f32 %v1401_v18  ;;  %1818 = vmatprep.mubr.bf16.mxu0 %v18760_v0 }
 0x160   : > { %v12654_v26 = vpop.eup %12653  ;;  %12665 = vtanh.f32 %v1658_v24 }
 0x161   : > { %v12656_v32 = vpop.eup %12655  ;;  %v1404_v34 = vpop.f32.mrb[8].mxu0  ;;  %v14868_v35 = vpack.c.bf16 %v12654_v26, %v12650_v19  ;;  %12667 = vtanh.f32 %v1660_v27  ;;  %v12186_v26 = vld [vmem:[%s18748_s2 + $0x264] ss:$16 sps:$4 sm:$0xff]  }
 0x162   : > { %v1405_v40 = vadd.f32 %v1404_v34, %v14839_v51  ;;  %v1406_v41 = vpop.f32.mrb[9].mxu0  ;;  %v14872_v42 = vpack.c.bf16 %v12656_v32, %v12652_v21  ;;  %12669 = vtanh.f32 %v1662_v38  ;;  %v1674_v34 = vadd.f32 %v1673_v14, %v14861_v17 }
 0x163   : > { %v1407_v48 = vadd.f32 %v1406_v41, %v14842_v52  ;;  %v1408_v49 = vpop.f32.mrb[10].mxu0  ;;  %v12184_v41 = vld [vmem:[%s18748_s2 + $0x260] ss:$16 sps:$4 sm:$0xff]  }
 0x164   : > { %12671 = vtanh.f32 %v1405_v40  ;;  %v1409_v53 = vadd.f32 %v1408_v49, %v14839_v51  ;;  %v1410_v55 = vpop.f32.mrb[11].mxu0  ;;  %3723 = vmatprep.mubr.bf16.mxu1 %v14872_v42 }
 0x165   : > { %12673 = vtanh.f32 %v1407_v48  ;;  %v1411_v58 = vadd.f32 %v1410_v55, %v14842_v52  ;;  %3724 = vmatmul.mubr.bf16.vlgmr.msra.gmra.mrb[96].mxu1 %v14868_v35 }
 0x166   : > { %v12658_v59 = vpop.eup %12657  ;;  %12675 = vtanh.f32 %v1409_v53  ;;  %1819 = vmatmul.mubr.bf16.gmra.mrb[116].mxu0 %v14624_v15  ;;  %3885 = vmatpush1.bf16.msra.mxu1 %v12174_v45  ;;  %v1677_v45 = vpop.f32.mrb[8].mxu1 }
 0x167   : > { %v12660_v62 = vpop.eup %12659  ;;  %12677 = vtanh.f32 %v1411_v58  ;;  %1828 = vmatprep.mubr.bf16.mxu0 %v18760_v0  ;;  %3886 = vmatprep.subr.bf16.mxu1 %v12179_v50  ;;  %v12190_v50 = vld [vmem:[%s18748_s2 + $0x284] ss:$16 sps:$4 sm:$0xff]   ;;  %v1678_v53 = vadd.f32 %v1677_v45, %v14857_v13  ;;  %v1679_v55 = vpop.f32.mrb[9].mxu1 }
 0x168   : > { %v12662_v4 = vpop.eup %12661  ;;  %12679 = vtanh.f32 %v1664_v56  ;;  %v1680_v58 = vadd.f32 %v1679_v55, %v14861_v17  ;;  %v12197_v45 = vld [vmem:[%s18748_s2 + $0x2c4] ss:$16 sps:$4 sm:$0xff]  }
 0x169   : > { %v12664_v8 = vpop.eup %12663  ;;  %v1414_v9 = vpop.f32.mrb[12].mxu0  ;;  %v14896_v10 = vpack.c.bf16 %v12662_v4, %v12658_v59  ;;  %12681 = vtanh.f32 %v1668_v2 }
 0x16a   : > { %v1415_v16 = vadd.f32 %v1414_v9, %v14839_v51  ;;  %v1416_v18 = vpop.f32.mrb[13].mxu0  ;;  %v14900_v19 = vpack.c.bf16 %v12664_v8, %v12660_v62  ;;  %3887 = vmatpush1.bf16.msra.mxu1 %v12177_v60  ;;  %12683 = vtanh.f32 %v1670_v6  ;;  %v12666_v21 = vpop.eup %12665  ;;  %v12188_v8 = vld [vmem:[%s18748_s2 + $0x280] ss:$16 sps:$4 sm:$0xff]  }
 0x16b   : > { %v1417_v24 = vadd.f32 %v1416_v18, %v14842_v52  ;;  %v1418_v25 = vpop.f32.mrb[14].mxu0  ;;  %3888 = vmatprep.subr.bf16.mxu1 %v12183_v63  ;;  %12685 = vtanh.f32 %v1672_v11  ;;  %v12668_v27 = vpop.eup %12667 }
 0x16c   : > { %12687 = vtanh.f32 %v1415_v16  ;;  %v1419_v31 = vadd.f32 %v1418_v25, %v14839_v51  ;;  %v1420_v32 = vpop.f32.mrb[15].mxu0  ;;  %3733 = vmatprep.mubr.bf16.mxu1 %v14900_v19  ;;  %v12670_v38 = vpop.eup %12669  ;;  %v12193_v16 = vld [vmem:[%s18748_s2 + $0x2a4] ss:$16 sps:$4 sm:$0xff]  }
 0x16d   : > { %12689 = vtanh.f32 %v1417_v24  ;;  %v1421_v39 = vadd.f32 %v1420_v32, %v14842_v52  ;;  %3734 = vmatmul.mubr.bf16.gmra.mrb[100].mxu1 %v14896_v10  ;;  %v14918_v48 = vpack.c.bf16 %v12670_v38, %v12666_v21  ;;  %v1681_v59 = vpop.f32.mrb[10].mxu1 }
 0x16e   : > { %v12672_v40 = vpop.eup %12671  ;;  %12691 = vtanh.f32 %v1419_v31  ;;  %1829 = vmatmul.mubr.bf16.gmra.mrb[120].mxu0 %v14639_v23  ;;  %3889 = vmatpush1.bf16.msra.mxu1 %v12181_v20  ;;  %v1682_v63 = vadd.f32 %v1681_v59, %v14857_v13  ;;  %v1683_v2 = vpop.f32.mrb[11].mxu1 }
 0x16f   : > { %v12674_v49 = vpop.eup %12673  ;;  %12693 = vtanh.f32 %v1421_v39  ;;  %1838 = vmatprep.mubr.bf16.mxu0 %v18760_v0  ;;  %3890 = vmatprep.subr.bf16.mxu1 %v12186_v26  ;;  %v1684_v25 = vadd.f32 %v1683_v2, %v14861_v17 }
 0x170   : > { %v12676_v56 = vpop.eup %12675  ;;  %12695 = vtanh.f32 %v1674_v34  ;;  %v1687_v34 = vpop.f32.mrb[12].mxu1 }
 0x171   : > { %v12678_v60 = vpop.eup %12677  ;;  %v1424_v61 = vpop.f32.mrb[16].mxu0  ;;  %v14926_v62 = vpack.c.bf16 %v12676_v56, %v12672_v40  ;;  %12697 = vtanh.f32 %v1678_v53  ;;  %v1688_v40 = vadd.f32 %v1687_v34, %v14857_v13 }
 0x172   : > { %v12680_v3 = vpop.eup %12679  ;;  %v1425_v4 = vadd.f32 %v1424_v61, %v14839_v51  ;;  %v1426_v6 = vpop.f32.mrb[17].mxu0  ;;  %v14930_v7 = vpack.c.bf16 %v12678_v60, %v12674_v49  ;;  %3891 = vmatpush1.bf16.msra.mxu1 %v12184_v41  ;;  %12699 = vtanh.f32 %v1680_v58 }
 0x173   : > { %v12682_v9 = vpop.eup %12681  ;;  %v1427_v11 = vadd.f32 %v1426_v6, %v14842_v52  ;;  %v1428_v14 = vpop.f32.mrb[18].mxu0  ;;  %3892 = vmatprep.subr.bf16.mxu1 %v12190_v50  ;;  %12701 = vtanh.f32 %v1682_v63  ;;  %v14939_v18 = vpack.c.bf16 %v12680_v3, %v12668_v27  ;;  %v12191_v27 = vld [vmem:[%s18748_s2 + $0x2a0] ss:$16 sps:$4 sm:$0xff]  }
 0x174   : > { %v12684_v20 = vpop.eup %12683  ;;  %12703 = vtanh.f32 %v1425_v4  ;;  %v1429_v21 = vadd.f32 %v1428_v14, %v14839_v51  ;;  %v1430_v24 = vpop.f32.mrb[19].mxu0  ;;  %3743 = vmatprep.mubr.bf16.mxu1 %v14930_v7  ;;  %v12195_v4 = vld [vmem:[%s18748_s2 + $0x2c0] ss:$16 sps:$4 sm:$0xff]  }
 0x175   : > { %v12686_v26 = vpop.eup %12685  ;;  %12705 = vtanh.f32 %v1427_v11  ;;  %v1431_v31 = vadd.f32 %v1430_v24, %v14842_v52  ;;  %3744 = vmatmul.mubr.bf16.gmra.mrb[104].mxu1 %v14926_v62  ;;  %v1689_v41 = vpop.f32.mrb[13].mxu1  ;;  %v12200_v11 = vld [vmem:[%s18748_s2 + $0x2e4] ss:$16 sps:$4 sm:$0xff]  }
 0x176   : > { %v12688_v32 = vpop.eup %12687  ;;  %12707 = vtanh.f32 %v1429_v21  ;;  %1839 = vmatmul.mubr.bf16.gmra.mrb[124].mxu0 %v14651_v29  ;;  %3893 = vmatpush1.bf16.msra.mxu1 %v12188_v8  ;;  %v14950_v38 = vpack.c.bf16 %v12686_v26, %v12682_v9  ;;  %v1690_v50 = vadd.f32 %v1689_v41, %v14861_v17  ;;  %v1691_v53 = vpop.f32.mrb[14].mxu1 }
 0x177   : > { %v12690_v39 = vpop.eup %12689  ;;  %12709 = vtanh.f32 %v1431_v31  ;;  %1848 = vmatprep.mubr.bf16.mxu0 %v18760_v0  ;;  %3894 = vmatprep.subr.bf16.mxu1 %v12193_v16  ;;  %v1692_v59 = vadd.f32 %v1691_v53, %v14857_v13  ;;  %v1693_v60 = vpop.f32.mrb[15].mxu1 }
 0x178   : > { %v12692_v49 = vpop.eup %12691  ;;  %12711 = vtanh.f32 %v1684_v25  ;;  %v1694_v25 = vadd.f32 %v1693_v60, %v14861_v17 }
 0x179   : > { %v12694_v55 = vpop.eup %12693  ;;  %v1434_v56 = vpop.f32.mrb[20].mxu0  ;;  %v14958_v58 = vpack.c.bf16 %v12692_v49, %v12688_v32  ;;  %12713 = vtanh.f32 %v1688_v40 }
 0x17a   : > { %v12696_v61 = vpop.eup %12695  ;;  %v1435_v63 = vadd.f32 %v1434_v56, %v14839_v51  ;;  %v1436_v2 = vpop.f32.mrb[21].mxu0  ;;  %v14962_v3 = vpack.c.bf16 %v12694_v55, %v12690_v39  ;;  %3895 = vmatpush1.bf16.msra.mxu1 %v12191_v27  ;;  %12715 = vtanh.f32 %v1690_v50  ;;  %v12198_v27 = vld [vmem:[%s18748_s2 + $0x2e0] ss:$16 sps:$4 sm:$0xff]  }
 0x17b   : > { %v12698_v6 = vpop.eup %12697  ;;  %v1437_v8 = vadd.f32 %v1436_v2, %v14842_v52  ;;  %v1438_v9 = vpop.f32.mrb[22].mxu0  ;;  %12717 = vtanh.f32 %v1692_v59  ;;  %3896 = vmatprep.subr.bf16.mxu1 %v12197_v45  ;;  %v14971_v14 = vpack.c.bf16 %v12696_v61, %v12684_v20  ;;  %v12203_v45 = vld [vmem:[%s18748_s2 + $0x304] ss:$16 sps:$4 sm:$0xff]  }
 0x17c   : > { %v12700_v16 = vpop.eup %12699  ;;  %12719 = vtanh.f32 %v1435_v63  ;;  %v1439_v21 = vadd.f32 %v1438_v9, %v14839_v51  ;;  %v1440_v24 = vpop.f32.mrb[23].mxu0  ;;  %3753 = vmatprep.mubr.bf16.mxu1 %v14962_v3 }
 0x17d   : > { %v12702_v26 = vpop.eup %12701  ;;  %12721 = vtanh.f32 %v1437_v8  ;;  %v1441_v31 = vadd.f32 %v1440_v24, %v14842_v52  ;;  %3754 = vmatmul.mubr.bf16.gmra.mrb[108].mxu1 %v14958_v58  ;;  %v1697_v20 = vpop.f32.mrb[16].mxu1  ;;  %v12201_v8 = vld [vmem:[%s18748_s2 + $0x300] ss:$16 sps:$4 sm:$0xff]   ;;  %v12212_v24 = vld [vmem:[%s18748_s2 + $0x324] ss:$16 sps:$4 sm:$0xff]  }
 0x17e   : > { %v12704_v32 = vpop.eup %12703  ;;  %12723 = vtanh.f32 %v1439_v21  ;;  %1849 = vmatmul.mubr.bf16.gmra.mrb[128].mxu0 %v14584_v44  ;;  %3897 = vmatpush1.bf16.msra.mxu1 %v12195_v4  ;;  %v14982_v34 = vpack.c.bf16 %v12702_v26, %v12698_v6  ;;  %v1698_v40 = vadd.f32 %v1697_v20, %v14857_v13  ;;  %v1699_v41 = vpop.f32.mrb[17].mxu1 }
 0x17f   : > { %v12706_v39 = vpop.eup %12705  ;;  %12725 = vtanh.f32 %v1441_v31  ;;  %1858 = vmatprep.mubr.bf16.mxu0 %v18760_v0  ;;  %3898 = vmatprep.subr.bf16.mxu1 %v12200_v11  ;;  %v1700_v50 = vadd.f32 %v1699_v41, %v14861_v17  ;;  %v1701_v53 = vpop.f32.mrb[18].mxu1  ;;  %v12210_v41 = vld [vmem:[%s18748_s2 + $0x320] ss:$16 sps:$4 sm:$0xff]  }
 0x180   : > { %18962 = vst [vmem:[#allocation11_spill] sm:$0xff] %v14982_v34  ;;  %v12708_v49 = vpop.eup %12707  ;;  %12727 = vtanh.f32 %v1694_v25  ;;  %v1702_v60 = vadd.f32 %v1701_v53, %v14857_v13  ;;  %v1703_v61 = vpop.f32.mrb[19].mxu1 }
 0x181   : > { %v12710_v55 = vpop.eup %12709  ;;  %v1444_v56 = vpop.f32.mrb[24].mxu0  ;;  %v14990_v59 = vpack.c.bf16 %v12708_v49, %v12704_v32  ;;  %12729 = vtanh.f32 %v1698_v40  ;;  %v1704_v20 = vadd.f32 %v1703_v61, %v14861_v17 }
 0x182   : > { %v12712_v63 = vpop.eup %12711  ;;  %v1445_v2 = vadd.f32 %v1444_v56, %v14839_v51  ;;  %v1446_v4 = vpop.f32.mrb[25].mxu0  ;;  %v14994_v6 = vpack.c.bf16 %v12710_v55, %v12706_v39  ;;  %12731 = vtanh.f32 %v1700_v50  ;;  %3899 = vmatpush1.bf16.msra.mxu1 %v12198_v27  ;;  %v12221_v55 = vld [vmem:[%s18748_s2 + $0x344] ss:$16 sps:$4 sm:$0xff]  }
 0x183   : > { %v12714_v9 = vpop.eup %12713  ;;  %v1447_v11 = vadd.f32 %v1446_v4, %v14842_v52  ;;  %v1448_v21 = vpop.f32.mrb[26].mxu0  ;;  %12733 = vtanh.f32 %v1702_v60  ;;  %3900 = vmatprep.subr.bf16.mxu1 %v12203_v45  ;;  %v15003_v25 = vpack.c.bf16 %v12712_v63, %v12700_v16 }
 0x184   : > { %v12716_v26 = vpop.eup %12715  ;;  %12735 = vtanh.f32 %v1445_v2  ;;  %v1449_v31 = vadd.f32 %v1448_v21, %v14839_v51  ;;  %v1450_v32 = vpop.f32.mrb[27].mxu0  ;;  %3763 = vmatprep.mubr.bf16.mxu1 %v14994_v6 }
 0x185   : > { %v12718_v27 = vpop.eup %12717  ;;  %12737 = vtanh.f32 %v1447_v11  ;;  %v1451_v39 = vadd.f32 %v1450_v32, %v14842_v52  ;;  %3764 = vmatmul.mubr.bf16.gmra.mrb[112].mxu1 %v14990_v59  ;;  %v1707_v16 = vpop.f32.mrb[20].mxu1  ;;  %v12219_v32 = vld [vmem:[%s18748_s2 + $0x340] ss:$16 sps:$4 sm:$0xff]  }
 0x186   : > { %v12720_v40 = vpop.eup %12719  ;;  %12739 = vtanh.f32 %v1449_v31  ;;  %1859 = vmatmul.mubr.bf16.gmra.mrb[132].mxu0 %v14597_v54  ;;  %3901 = vmatpush1.bf16.msra.mxu1 %v12201_v8  ;;  %v15014_v45 = vpack.c.bf16 %v12718_v27, %v12714_v9  ;;  %v1708_v50 = vadd.f32 %v1707_v16, %v14857_v13  ;;  %v1709_v53 = vpop.f32.mrb[21].mxu1 }
 0x187   : > { %v12722_v49 = vpop.eup %12721  ;;  %12741 = vtanh.f32 %v1451_v39  ;;  %1868 = vmatprep.mubr.bf16.mxu0 %v18760_v0  ;;  %3902 = vmatprep.subr.bf16.mxu1 %v12212_v24  ;;  %v1710_v60 = vadd.f32 %v1709_v53, %v14861_v17  ;;  %v1711_v61 = vpop.f32.mrb[22].mxu1 }
 0x188   : > { %18963 = vst [vmem:[#allocation12_spill] sm:$0xff] %v15014_v45  ;;  %v12724_v56 = vpop.eup %12723  ;;  %12743 = vtanh.f32 %v1704_v20  ;;  %v1712_v8 = vadd.f32 %v1711_v61, %v14857_v13  ;;  %v1713_v9 = vpop.f32.mrb[23].mxu1  ;;  %v12225_v61 = vld [vmem:[%s18748_s2 + $0x360] ss:$16 sps:$4 sm:$0xff]  }
 0x189   : > { %v12726_v63 = vpop.eup %12725  ;;  %v1454_v2 = vpop.f32.mrb[28].mxu0  ;;  %v15022_v4 = vpack.c.bf16 %v12724_v56, %v12720_v40  ;;  %12745 = vtanh.f32 %v1708_v50  ;;  %v12227_v40 = vld [vmem:[%s18748_s2 + $0x364] ss:$16 sps:$4 sm:$0xff]   ;;  %v1714_v53 = vadd.f32 %v1713_v9, %v14861_v17 }
 0x18a   : > { %v12728_v11 = vpop.eup %12727  ;;  %v1455_v21 = vadd.f32 %v1454_v2, %v14839_v51  ;;  %v1456_v24 = vpop.f32.mrb[29].mxu0  ;;  %v15026_v31 = vpack.c.bf16 %v12726_v63, %v12722_v49  ;;  %12747 = vtanh.f32 %v1710_v60  ;;  %3903 = vmatpush1.bf16.msra.mxu1 %v12210_v41 }
 0x18b   : > { %v12730_v20 = vpop.eup %12729  ;;  %v1457_v27 = vadd.f32 %v1456_v24, %v14842_v52  ;;  %v1458_v39 = vpop.f32.mrb[30].mxu0  ;;  %12749 = vtanh.f32 %v1712_v8  ;;  %3904 = vmatprep.subr.bf16.mxu1 %v12221_v55  ;;  %v15035_v16 = vpack.c.bf16 %v12728_v11, %v12716_v26  ;;  %v12233_v11 = vld [vmem:[%s18748_s2 + $0x384] ss:$16 sps:$4 sm:$0xff]  }
 0x18c   : > { %v12732_v49 = vpop.eup %12731  ;;  %12751 = vtanh.f32 %v1455_v21  ;;  %v1459_v41 = vadd.f32 %v1458_v39, %v14839_v51  ;;  %v1460_v50 = vpop.f32.mrb[31].mxu0  ;;  %3773 = vmatprep.mubr.bf16.mxu1 %v15026_v31 }
 0x18d   : > { %18964 = vst [vmem:[#allocation13_spill] sm:$0xff] %v15035_v16  ;;  %v12734_v56 = vpop.eup %12733  ;;  %12753 = vtanh.f32 %v1457_v27  ;;  %v1461_v60 = vadd.f32 %v1460_v50, %v14842_v52  ;;  %3774 = vmatmul.mubr.bf16.gmra.mrb[116].mxu1 %v15022_v4  ;;  %v1717_v26 = vpop.f32.mrb[24].mxu1 }
 0x18e   : > { %v12736_v55 = vpop.eup %12735  ;;  %12755 = vtanh.f32 %v1459_v41  ;;  %1869 = vmatmul.mubr.bf16.gmra.mrb[136].mxu0 %v14609_v1  ;;  %3905 = vmatpush1.bf16.msra.mxu1 %v12219_v32  ;;  %v15046_v63 = vpack.c.bf16 %v12734_v56, %v12730_v20  ;;  %v1718_v8 = vadd.f32 %v1717_v26, %v14857_v13  ;;  %v1719_v9 = vpop.f32.mrb[25].mxu1 }
 0x18f   : > { %v12738_v2 = vpop.eup %12737  ;;  %12757 = vtanh.f32 %v1461_v60  ;;  %1878 = vmatprep.mubr.bf16.mxu0 %v18760_v0  ;;  %3906 = vmatprep.subr.bf16.mxu1 %v12227_v40  ;;  %v1720_v24 = vadd.f32 %v1719_v9, %v14861_v17  ;;  %v1721_v32 = vpop.f32.mrb[26].mxu1 }
 0x190   : > { %18965 = vst [vmem:[#allocation14_spill] sm:$0xff] %v15046_v63  ;;  %v12740_v21 = vpop.eup %12739  ;;  %12759 = vtanh.f32 %v1714_v53  ;;  %v1722_v41 = vadd.f32 %v1721_v32, %v14857_v13  ;;  %v1723_v50 = vpop.f32.mrb[27].mxu1  ;;  %v12231_v53 = vld [vmem:[%s18748_s2 + $0x380] ss:$16 sps:$4 sm:$0xff]  }
 0x191   : > { %v12742_v27 = vpop.eup %12741  ;;  %v1464_v20 = vpop.f32.mrb[32].mxu0  ;;  %v15054_v39 = vpack.c.bf16 %v12740_v21, %v12736_v55  ;;  %12761 = vtanh.f32 %v1718_v8  ;;  %v12239_v8 = vld [vmem:[%s18748_s2 + $0x3a4] ss:$16 sps:$4 sm:$0xff]  }
 0x192   : > { %v12744_v56 = vpop.eup %12743  ;;  %v1465_v40 = vadd.f32 %v1464_v20, %v14839_v51  ;;  %v1466_v60 = vpop.f32.mrb[33].mxu0  ;;  %v15058_v26 = vpack.c.bf16 %v12742_v27, %v12738_v2  ;;  %12763 = vtanh.f32 %v1720_v24  ;;  %3907 = vmatpush1.bf16.msra.mxu1 %v12225_v61  ;;  %v1724_v27 = vadd.f32 %v1723_v50, %v14861_v17 }
 0x193   : > { %v12746_v9 = vpop.eup %12745  ;;  %v1467_v55 = vadd.f32 %v1466_v60, %v14842_v52  ;;  %v1468_v21 = vpop.f32.mrb[34].mxu0  ;;  %12765 = vtanh.f32 %v1722_v41  ;;  %3908 = vmatprep.subr.bf16.mxu1 %v12233_v11  ;;  %v15067_v32 = vpack.c.bf16 %v12744_v56, %v12732_v49  ;;  %v12237_v56 = vld [vmem:[%s18748_s2 + $0x3a0] ss:$16 sps:$4 sm:$0xff]  }
 0x194   : > { %v12748_v2 = vpop.eup %12747  ;;  %12767 = vtanh.f32 %v1465_v40  ;;  %v1469_v61 = vadd.f32 %v1468_v21, %v14839_v51  ;;  %v1470_v24 = vpop.f32.mrb[35].mxu0  ;;  %3783 = vmatprep.mubr.bf16.mxu1 %v15058_v26  ;;  %v12245_v21 = vld [vmem:[%s18748_s2 + $0x3c4] ss:$16 sps:$4 sm:$0xff]  }
 0x195   : > { %18966 = vst [vmem:[#allocation15_spill] sm:$0xff] %v15067_v32  ;;  %v12750_v20 = vpop.eup %12749  ;;  %12769 = vtanh.f32 %v1467_v55  ;;  %v1471_v41 = vadd.f32 %v1470_v24, %v14842_v52  ;;  %3784 = vmatmul.mubr.bf16.gmra.mrb[120].mxu1 %v15054_v39  ;;  %v1727_v49 = vpop.f32.mrb[28].mxu1 }
 0x196   : > { %v12752_v11 = vpop.eup %12751  ;;  %12771 = vtanh.f32 %v1469_v61  ;;  %1879 = vmatmul.mubr.bf16.gmra.mrb[140].mxu0 %v14622_v12  ;;  %3909 = vmatpush1.bf16.msra.mxu1 %v12231_v53  ;;  %v15078_v40 = vpack.c.bf16 %v12750_v20, %v12746_v9  ;;  %v1728_v50 = vadd.f32 %v1727_v49, %v14857_v13  ;;  %v1729_v55 = vpop.f32.mrb[29].mxu1 }
 0x197   : > { %v12754_v60 = vpop.eup %12753  ;;  %12773 = vtanh.f32 %v1471_v41  ;;  %1888 = vmatprep.mubr.bf16.mxu0 %v18760_v0  ;;  %3910 = vmatprep.subr.bf16.mxu1 %v12239_v8  ;;  %v1730_v53 = vadd.f32 %v1729_v55, %v14861_v17  ;;  %v1731_v24 = vpop.f32.mrb[30].mxu1  ;;  %v848_v0 = vld [vmem:[#allocation6 + $0x38] sm:$0xff] }
 0x198   : > { %18967 = vst [vmem:[#allocation16_spill] sm:$0xff] %v15078_v40  ;;  %v12756_v61 = vpop.eup %12755  ;;  %12775 = vtanh.f32 %v1724_v27  ;;  %v1732_v41 = vadd.f32 %v1731_v24, %v14857_v13  ;;  %v1733_v49 = vpop.f32.mrb[31].mxu1  ;;  %v12243_v27 = vld [vmem:[%s18748_s2 + $0x3c0] ss:$16 sps:$4 sm:$0xff]  }
 0x199   : > { %v12758_v9 = vpop.eup %12757  ;;  %v1474_v20 = vpop.f32.mrb[36].mxu0  ;;  %v15086_v40 = vpack.c.bf16 %v12756_v61, %v12752_v11  ;;  %12777 = vtanh.f32 %v1728_v50  ;;  %v15097_v61 = vrot.slane %v847_v43, %v14835_v47 }
 0x19a   : > { %v12760_v8 = vpop.eup %12759  ;;  %v1475_v63 = vadd.f32 %v1474_v20, %v14839_v51  ;;  %v1476_v32 = vpop.f32.mrb[37].mxu0  ;;  %v15090_v45 = vpack.c.bf16 %v12758_v9, %v12754_v60  ;;  %12779 = vtanh.f32 %v1730_v53  ;;  %3911 = vmatpush1.bf16.msra.mxu1 %v12237_v56  ;;  %v12251_v60 = vld [vmem:[%s18748_s2 + $0x3e4] ss:$16 sps:$4 sm:$0xff]   ;;  %v15108_v20 = vrot.slane %v848_v0, %v14835_v47 }
 0x19b   : > { %18968 = vst [vmem:[#allocation17_spill] sm:$0xff] %v15086_v40  ;;  %v12762_v55 = vpop.eup %12761  ;;  %v1477_v11 = vadd.f32 %v1476_v32, %v14842_v52  ;;  %v1478_v50 = vpop.f32.mrb[38].mxu0  ;;  %12781 = vtanh.f32 %v1732_v41  ;;  %3912 = vmatprep.subr.bf16.mxu1 %v12245_v21  ;;  %v15102_v24 = vpack.c.bf16 %v12760_v8, %v12748_v2  ;;  %v1734_v32 = vadd.f32 %v1733_v49, %v14861_v17  ;;  %v12249_v41 = vld [vmem:[%s18748_s2 + $0x3e0] ss:$16 sps:$4 sm:$0xff]  }
 0x19c   : > { %18969 = vst [vmem:[#allocation18_spill] sm:$0xff] %v15090_v45  ;;  %v12764_v56 = vpop.eup %12763  ;;  %12783 = vtanh.f32 %v1475_v63  ;;  %v1479_v53 = vadd.f32 %v1478_v50, %v14839_v51  ;;  %v1480_v9 = vpop.f32.mrb[39].mxu0  ;;  %3793 = vmatprep.mubr.bf16.mxu1 %v15090_v45  ;;  %v18972_v8 = vmov 0  }
 0x19d   : > { %18970 = vst [vmem:[#allocation19_spill] sm:$0xff] %v15102_v24  ;;  %v12766_v43 = vpop.eup %12765  ;;  %12785 = vtanh.f32 %v1477_v11  ;;  %v1481_v21 = vadd.f32 %v1480_v9, %v14842_v52  ;;  %3794 = vmatmul.mubr.bf16.gmra.mrb[124].mxu1 %v15086_v40  ;;  %v1963_v63 = vpop.f32.mrb[32].mxu1 }
 0x19e   : > { %v12768_v2 = vpop.eup %12767  ;;  %12787 = vtanh.f32 %v1479_v53  ;;  %1889 = vmatmul.mubr.bf16.gmra.mrb[144].mxu0 %v14637_v22  ;;  %3913 = vmatpush1.bf16.msra.mxu1 %v12243_v27  ;;  %v15116_v49 = vpack.c.bf16 %v12766_v43, %v12762_v55  ;;  %v1964_v11 = vadd.f32 %v1963_v63, %v15097_v61  ;;  %v1965_v50 = vpop.f32.mrb[33].mxu1  ;;  %v12275_v53 = vld [vmem:[%s18748_s2 + $0x404] ss:$16 sps:$4 sm:$0xff]  }
 0x19f   : > { %v12770_v0 = vpop.eup %12769  ;;  %12789 = vtanh.f32 %v1481_v21  ;;  %1898 = vmatprep.mubr.bf16.mxu0 %v18972_v8  ;;  %3914 = vmatprep.subr.bf16.mxu1 %v12251_v60  ;;  %v1966_v27 = vadd.f32 %v1965_v50, %v15108_v20  ;;  %v1967_v24 = vpop.f32.mrb[34].mxu1 }
 0x1a0   : > { %18971 = vst [vmem:[#allocation20_spill] sm:$0xff] %v15116_v49  ;;  %v12772_v9 = vpop.eup %12771  ;;  %12791 = vtanh.f32 %v1734_v32  ;;  %v1968_v21 = vadd.f32 %v1967_v24, %v15097_v61  ;;  %v1969_v49 = vpop.f32.mrb[35].mxu1 }
 0x1a1   : > { %v12774_v40 = vpop.eup %12773  ;;  %v1484_v55 = vpop.f32.mrb[40].mxu0  ;;  %v15124_v43 = vpack.c.bf16 %v12772_v9, %v12768_v2  ;;  %12793 = vtanh.f32 %v1964_v11 }
 0x1a2   : > { %v12776_v63 = vpop.eup %12775  ;;  %v1485_v60 = vadd.f32 %v1484_v55, %v14839_v51  ;;  %v1486_v16 = vpop.f32.mrb[41].mxu0  ;;  %v15128_v34 = vpack.c.bf16 %v12774_v40, %v12770_v0  ;;  %12795 = vtanh.f32 %v1966_v27  ;;  %3915 = vmatpush1.bf16.msra.mxu1 %v12249_v41  ;;  %v1970_v40 = vadd.f32 %v1969_v49, %v15108_v20 }
 0x1a3   : > { %18973 = vst [vmem:[#allocation21_spill] sm:$0xff] %v15124_v43  ;;  %v12778_v32 = vpop.eup %12777  ;;  %v1487_v50 = vadd.f32 %v1486_v16, %v14842_v52  ;;  %v1488_v45 = vpop.f32.mrb[42].mxu0  ;;  %12797 = vtanh.f32 %v1968_v21  ;;  %4077 = vmatprep.subr.bf16.mxu1 %v12275_v53  ;;  %v15131_v2 = vpack.c.bf16 %v12776_v63, %v12764_v56 }
 0x1a4   : > { %v12780_v11 = vpop.eup %12779  ;;  %12799 = vtanh.f32 %v1485_v60  ;;  %v1489_v24 = vadd.f32 %v1488_v45, %v14839_v51  ;;  %v1490_v9 = vpop.f32.mrb[43].mxu0  ;;  %3803 = vmatprep.mubr.bf16.mxu1 %v15128_v34 }
 0x1a5   : > { %18974 = vst [vmem:[#allocation22_spill] sm:$0xff] %v15131_v2  ;;  %v12782_v0 = vpop.eup %12781  ;;  %12801 = vtanh.f32 %v1487_v50  ;;  %v1491_v41 = vadd.f32 %v1490_v9, %v14842_v52  ;;  %3804 = vmatmul.mubr.bf16.gmra.mrb[128].mxu1 %v15124_v43  ;;  %v1973_v56 = vpop.f32.mrb[36].mxu1 }
 0x1a6   : > { %v12784_v16 = vpop.eup %12783  ;;  %12803 = vtanh.f32 %v1489_v24  ;;  %1899 = vmatmul.mubr.bf16.gmra.mrb[148].mxu0 %v14649_v28  ;;  %v15139_v53 = vpack.c.bf16 %v12782_v0, %v12778_v32  ;;  %v1974_v45 = vadd.f32 %v1973_v56, %v15097_v61  ;;  %v1975_v49 = vpop.f32.mrb[37].mxu1 }
 0x1a7   : > { %v12786_v27 = vpop.eup %12785  ;;  %12805 = vtanh.f32 %v1491_v41  ;;  %1908 = vmatprep.mubr.bf16.mxu0 %v18972_v8  ;;  %v1976_v21 = vadd.f32 %v1975_v49, %v15108_v20  ;;  %v1977_v63 = vpop.f32.mrb[38].mxu1 }
 0x1a8   : > { %18975 = vst [vmem:[#allocation23_spill] sm:$0xff] %v15139_v53  ;;  %v12788_v55 = vpop.eup %12787  ;;  %12807 = vtanh.f32 %v1970_v40  ;;  %v1978_v32 = vadd.f32 %v1977_v63, %v15097_v61  ;;  %v1979_v9 = vpop.f32.mrb[39].mxu1 }
 0x1a9   : > { %v12790_v60 = vpop.eup %12789  ;;  %v1494_v50 = vpop.f32.mrb[44].mxu0  ;;  %v15144_v24 = vpack.c.bf16 %v12788_v55, %v12784_v16  ;;  %12809 = vtanh.f32 %v1974_v45  ;;  %v1980_v63 = vadd.f32 %v1979_v9, %v15108_v20 }
 0x1aa   : > { %v12792_v0 = vpop.eup %12791  ;;  %v1495_v41 = vadd.f32 %v1494_v50, %v14839_v51  ;;  %v1496_v53 = vpop.f32.mrb[45].mxu0  ;;  %v15148_v2 = vpack.c.bf16 %v12790_v60, %v12786_v27  ;;  %12811 = vtanh.f32 %v1976_v21 }
 0x1ab   : > { %18976 = vst [vmem:[#allocation24_spill] sm:$0xff] %v15144_v24  ;;  %v12794_v56 = vpop.eup %12793  ;;  %v1497_v40 = vadd.f32 %v1496_v53, %v14842_v52  ;;  %v1498_v49 = vpop.f32.mrb[46].mxu0  ;;  %12813 = vtanh.f32 %v1978_v32  ;;  %v15151_v43 = vpack.c.bf16 %v12792_v0, %v12780_v11 }
 0x1ac   : > { %v12796_v16 = vpop.eup %12795  ;;  %12815 = vtanh.f32 %v1495_v41  ;;  %v1499_v45 = vadd.f32 %v1498_v49, %v14839_v51  ;;  %v1500_v55 = vpop.f32.mrb[47].mxu0  ;;  %3813 = vmatprep.mubr.bf16.mxu1 %v15148_v2 }
 0x1ad   : > { %18977 = vst [vmem:[#allocation25_spill] sm:$0xff] %v15151_v43  ;;  %v12798_v50 = vpop.eup %12797  ;;  %12817 = vtanh.f32 %v1497_v40  ;;  %v1501_v27 = vadd.f32 %v1500_v55, %v14842_v52  ;;  %3814 = vmatmul.mubr.bf16.gmra.mrb[132].mxu1 %v15144_v24  ;;  %v1983_v11 = vpop.f32.mrb[40].mxu1 }
 0x1ae   : > { %v12800_v53 = vpop.eup %12799  ;;  %12819 = vtanh.f32 %v1499_v45  ;;  %1909 = vmatmul.mubr.bf16.gmra.mrb[152].mxu0 %v14659_v33  ;;  %v15159_v21 = vpack.c.bf16 %v12798_v50, %v12794_v56  ;;  %v1984_v32 = vadd.f32 %v1983_v11, %v15097_v61  ;;  %v1985_v9 = vpop.f32.mrb[41].mxu1 }
 0x1af   : > { %v12802_v60 = vpop.eup %12801  ;;  %12821 = vtanh.f32 %v1501_v27  ;;  %1918 = vmatprep.mubr.bf16.mxu0 %v18972_v8  ;;  %v1986_v41 = vadd.f32 %v1985_v9, %v15108_v20  ;;  %v1987_v40 = vpop.f32.mrb[42].mxu1 }
 0x1b0   : > { %18978 = vst [vmem:[#allocation26_spill] sm:$0xff] %v15159_v21  ;;  %v12804_v0 = vpop.eup %12803  ;;  %12823 = vtanh.f32 %v1980_v63  ;;  %v1988_v56 = vadd.f32 %v1987_v40, %v15097_v61  ;;  %v1989_v50 = vpop.f32.mrb[43].mxu1 }
 0x1b1   : > { %v12806_v49 = vpop.eup %12805  ;;  %v1504_v55 = vpop.f32.mrb[48].mxu0  ;;  %v15164_v45 = vpack.c.bf16 %v12804_v0, %v12800_v53  ;;  %12825 = vtanh.f32 %v1984_v32  ;;  %v1990_v40 = vadd.f32 %v1989_v50, %v15108_v20 }
 0x1b2   : > { %v12808_v21 = vpop.eup %12807  ;;  %v1505_v27 = vadd.f32 %v1504_v55, %v14839_v51  ;;  %v1506_v8 = vpop.f32.mrb[49].mxu0  ;;  %v15168_v43 = vpack.c.bf16 %v12806_v49, %v12802_v60  ;;  %12827 = vtanh.f32 %v1986_v41 }
 0x1b3   : > { %v12810_v11 = vpop.eup %12809  ;;  %v1507_v63 = vadd.f32 %v1506_v8, %v14842_v52  ;;  %v1508_v9 = vpop.f32.mrb[50].mxu0  ;;  %12829 = vtanh.f32 %v1988_v56  ;;  %v15171_v24 = vpack.c.bf16 %v12808_v21, %v12796_v16 }
 0x1b4   : > { %v12812_v53 = vpop.eup %12811  ;;  %12831 = vtanh.f32 %v1505_v27  ;;  %v1509_v32 = vadd.f32 %v1508_v9, %v14839_v51  ;;  %v1510_v0 = vpop.f32.mrb[51].mxu0  ;;  %3823 = vmatprep.mubr.bf16.mxu1 %v15168_v43 }
 0x1b5   : > { %18979 = vst [vmem:[#allocation27_spill] sm:$0xff] %v15171_v24  ;;  %v12814_v55 = vpop.eup %12813  ;;  %12833 = vtanh.f32 %v1507_v63  ;;  %v1511_v60 = vadd.f32 %v1510_v0, %v14842_v52  ;;  %3824 = vmatmul.mubr.bf16.gmra.mrb[136].mxu1 %v15164_v45  ;;  %v1993_v16 = vpop.f32.mrb[44].mxu1 }
 0x1b6   : > { %v12816_v8 = vpop.eup %12815  ;;  %12835 = vtanh.f32 %v1509_v32  ;;  %1919 = vmatmul.mubr.bf16.gmra.mrb[156].mxu0 %v14667_v36  ;;  %v15179_v21 = vpack.c.bf16 %v12814_v55, %v12810_v11  ;;  %v1994_v49 = vadd.f32 %v1993_v16, %v15097_v61  ;;  %v1995_v56 = vpop.f32.mrb[45].mxu1 }
 0x1b7   : > { %v12818_v41 = vpop.eup %12817  ;;  %12837 = vtanh.f32 %v1511_v60  ;;  %10541 = vmatprep.mubr.bf16.mxu0 %v14568_v30  ;;  %v1996_v27 = vadd.f32 %v1995_v56, %v15108_v20  ;;  %v1997_v63 = vpop.f32.mrb[46].mxu1 }
 0x1b8   : > { %18980 = vst [vmem:[#allocation28_spill] sm:$0xff] %v15179_v21  ;;  %v12820_v50 = vpop.eup %12819  ;;  %12839 = vtanh.f32 %v1990_v40  ;;  %v1998_v11 = vadd.f32 %v1997_v63, %v15097_v61  ;;  %v1999_v55 = vpop.f32.mrb[47].mxu1 }
 0x1b9   : > { %v12822_v9 = vpop.eup %12821  ;;  %v1514_v0 = vpop.f32.mrb[52].mxu0  ;;  %v15184_v32 = vpack.c.bf16 %v12820_v50, %v12816_v8  ;;  %12841 = vtanh.f32 %v1994_v49  ;;  %v12204_v8 = vld [vmem:[%s18748_s2 + $0x8] ss:$16 sps:$4 sm:$0xff]  }
 0x1ba   : > { %v12824_v24 = vpop.eup %12823  ;;  %v1515_v60 = vadd.f32 %v1514_v0, %v14839_v51  ;;  %v1516_v30 = vpop.f32.mrb[53].mxu0  ;;  %v15188_v21 = vpack.c.bf16 %v12822_v9, %v12818_v41  ;;  %12843 = vtanh.f32 %v1996_v27  ;;  %v12209_v41 = vld [vmem:[%s18748_s2 + $0x2c] ss:$16 sps:$4 sm:$0xff]   ;;  %v2000_v27 = vadd.f32 %v1999_v55, %v15108_v20  ;;  %v12207_v55 = vld [vmem:[%s18748_s2 + $0x28] ss:$16 sps:$4 sm:$0xff]  }
 0x1bb   : > { %18981 = vst [vmem:[#allocation29_spill] sm:$0xff] %v15184_v32  ;;  %v12826_v16 = vpop.eup %12825  ;;  %v1517_v40 = vadd.f32 %v1516_v30, %v14842_v52  ;;  %v1518_v56 = vpop.f32.mrb[54].mxu0  ;;  %12845 = vtanh.f32 %v1998_v11  ;;  %v15194_v49 = vpack.c.bf16 %v12824_v24, %v12812_v53 }
 0x1bc   : > { %18982 = vst [vmem:[#allocation30_spill] sm:$0xff] %v15188_v21  ;;  %v12828_v50 = vpop.eup %12827  ;;  %12847 = vtanh.f32 %v1515_v60  ;;  %v1519_v63 = vadd.f32 %v1518_v56, %v14839_v51  ;;  %v1520_v0 = vpop.f32.mrb[55].mxu0  ;;  %3833 = vmatprep.mubr.bf16.mxu1 %v15188_v21 }
 0x1bd   : > { %18983 = vst [vmem:[#allocation31_spill] sm:$0xff] %v15194_v49  ;;  %v12830_v9 = vpop.eup %12829  ;;  %12849 = vtanh.f32 %v1517_v40  ;;  %v1521_v30 = vadd.f32 %v1520_v0, %v14842_v52  ;;  %3834 = vmatmul.mubr.bf16.gmra.mrb[140].mxu1 %v15184_v32  ;;  %v2003_v53 = vpop.f32.mrb[48].mxu1 }
 0x1be   : > { %v12832_v24 = vpop.eup %12831  ;;  %12851 = vtanh.f32 %v1519_v63  ;;  %10542 = vmatmul.mubr.bf16.vlgmr.msra.gmra.mrb[160].mxu0 %v14574_v37  ;;  %v15205_v11 = vpack.c.bf16 %v12830_v9, %v12826_v16  ;;  %v2004_v40 = vadd.f32 %v2003_v53, %v15097_v61  ;;  %v2005_v56 = vpop.f32.mrb[49].mxu1  ;;  %v12215_v37 = vld [vmem:[%s18748_s2 + $0x4c] ss:$16 sps:$4 sm:$0xff]  }
 0x1bf   : > { %v12834_v60 = vpop.eup %12833  ;;  %12853 = vtanh.f32 %v1521_v30  ;;  %4271 = vmatpush1.bf16.msra.mxu0 %v12204_v8  ;;  %10545 = vmatprep.mubr.bf16.mxu0 %v14587_v46  ;;  %v2006_v16 = vadd.f32 %v2005_v56, %v15108_v20  ;;  %v2007_v63 = vpop.f32.mrb[50].mxu1 }
 0x1c0   : > { %18984 = vst [vmem:[#allocation32_spill] sm:$0xff] %v15205_v11  ;;  %v12836_v0 = vpop.eup %12835  ;;  %4272 = vmatprep.subr.bf16.mxu0 %v12209_v41  ;;  %12855 = vtanh.f32 %v2000_v27  ;;  %v2008_v46 = vadd.f32 %v2007_v63, %v15097_v61  ;;  %v2009_v49 = vpop.f32.mrb[51].mxu1 }
 0x1c1   : > { %v12838_v8 = vpop.eup %12837  ;;  %v1524_v9 = vpop.f32.mrb[56].mxu0  ;;  %v15216_v30 = vpack.c.bf16 %v12836_v0, %v12832_v24  ;;  %12857 = vtanh.f32 %v2004_v40  ;;  %v12213_v24 = vld [vmem:[%s18748_s2 + $0x48] ss:$16 sps:$4 sm:$0xff]  }
 0x1c2   : > { %v12840_v53 = vpop.eup %12839  ;;  %v1525_v11 = vadd.f32 %v1524_v9, %v14839_v51  ;;  %v1526_v41 = vpop.f32.mrb[57].mxu0  ;;  %v15220_v32 = vpack.c.bf16 %v12838_v8, %v12834_v60  ;;  %12859 = vtanh.f32 %v2006_v16  ;;  %v12218_v60 = vld [vmem:[%s18748_s2 + $0x6c] ss:$16 sps:$4 sm:$0xff]  }
 0x1c3   : > { %v12842_v21 = vpop.eup %12841  ;;  %v1527_v27 = vadd.f32 %v1526_v41, %v14842_v52  ;;  %v1528_v56 = vpop.f32.mrb[58].mxu0  ;;  %4273 = vmatpush1.bf16.msra.mxu0 %v12207_v55  ;;  %12861 = vtanh.f32 %v2008_v46  ;;  %v15226_v40 = vpack.c.bf16 %v12840_v53, %v12828_v50  ;;  %v2010_v55 = vadd.f32 %v2009_v49, %v15108_v20  ;;  %v12216_v49 = vld [vmem:[%s18748_s2 + $0x68] ss:$16 sps:$4 sm:$0xff]  }
 0x1c4   : > { %v12844_v0 = vpop.eup %12843  ;;  %12863 = vtanh.f32 %v1525_v11  ;;  %v1529_v63 = vadd.f32 %v1528_v56, %v14839_v51  ;;  %v1530_v9 = vpop.f32.mrb[59].mxu0  ;;  %3843 = vmatprep.mubr.bf16.mxu1 %v15220_v32  ;;  %4274 = vmatprep.subr.bf16.mxu0 %v12215_v37 }
 0x1c5   : > { %18985 = vst [vmem:[#allocation33_spill] sm:$0xff] %v15226_v40  ;;  %v12846_v16 = vpop.eup %12845  ;;  %12865 = vtanh.f32 %v1527_v27  ;;  %v1531_v8 = vadd.f32 %v1530_v9, %v14842_v52  ;;  %3844 = vmatmul.mubr.bf16.gmra.mrb[144].mxu1 %v15216_v30  ;;  %v2013_v11 = vpop.f32.mrb[52].mxu1 }
 0x1c6   : > { %v12848_v50 = vpop.eup %12847  ;;  %12867 = vtanh.f32 %v1529_v63  ;;  %10546 = vmatmul.mubr.bf16.gmra.mrb[164].mxu0 %v14599_v57  ;;  %v15237_v46 = vpack.c.bf16 %v12846_v16, %v12842_v21  ;;  %v2014_v53 = vadd.f32 %v2013_v11, %v15097_v61  ;;  %v2015_v41 = vpop.f32.mrb[53].mxu1  ;;  %v12224_v57 = vld [vmem:[%s18748_s2 + $0x8c] ss:$16 sps:$4 sm:$0xff]  }
 0x1c7   : > { %v12850_v37 = vpop.eup %12849  ;;  %12869 = vtanh.f32 %v1531_v8  ;;  %4275 = vmatpush1.bf16.msra.mxu0 %v12213_v24  ;;  %10549 = vmatprep.mubr.bf16.mxu0 %v14611_v5  ;;  %v2016_v21 = vadd.f32 %v2015_v41, %v15108_v20  ;;  %v2017_v56 = vpop.f32.mrb[54].mxu1 }
 0x1c8   : > { %18986 = vst [vmem:[#allocation34_spill] sm:$0xff] %v15237_v46  ;;  %v12852_v27 = vpop.eup %12851  ;;  %4276 = vmatprep.subr.bf16.mxu0 %v12218_v60  ;;  %12871 = vtanh.f32 %v2010_v55  ;;  %v2018_v5 = vadd.f32 %v2017_v56, %v15097_v61  ;;  %v2019_v16 = vpop.f32.mrb[55].mxu1 }
 0x1c9   : > { %v12854_v24 = vpop.eup %12853  ;;  %v1534_v63 = vpop.f32.mrb[60].mxu0  ;;  %v15248_v9 = vpack.c.bf16 %v12852_v27, %v12848_v50  ;;  %12873 = vtanh.f32 %v2014_v53  ;;  %v12222_v50 = vld [vmem:[%s18748_s2 + $0x88] ss:$16 sps:$4 sm:$0xff]  }
 0x1ca   : > { %v12856_v8 = vpop.eup %12855  ;;  %v1535_v11 = vadd.f32 %v1534_v63, %v14839_v51  ;;  %v1536_v60 = vpop.f32.mrb[61].mxu0  ;;  %v15252_v40 = vpack.c.bf16 %v12854_v24, %v12850_v37  ;;  %12875 = vtanh.f32 %v2016_v21  ;;  %v12230_v37 = vld [vmem:[%s18748_s2 + $0xac] ss:$16 sps:$4 sm:$0xff]  }
 0x1cb   : > { %v12858_v46 = vpop.eup %12857  ;;  %v1537_v55 = vadd.f32 %v1536_v60, %v14842_v52  ;;  %v1538_v41 = vpop.f32.mrb[62].mxu0  ;;  %4277 = vmatpush1.bf16.msra.mxu0 %v12216_v49  ;;  %12877 = vtanh.f32 %v2018_v5  ;;  %v15258_v53 = vpack.c.bf16 %v12856_v8, %v12844_v0  ;;  %v2020_v49 = vadd.f32 %v2019_v16, %v15108_v20  ;;  %v12228_v16 = vld [vmem:[%s18748_s2 + $0xa8] ss:$16 sps:$4 sm:$0xff]  }
 0x1cc   : > { %v12860_v27 = vpop.eup %12859  ;;  %12879 = vtanh.f32 %v1535_v11  ;;  %v1539_v56 = vadd.f32 %v1538_v41, %v14839_v51  ;;  %v1540_v63 = vpop.f32.mrb[63].mxu0  ;;  %3853 = vmatprep.mubr.bf16.mxu1 %v15252_v40  ;;  %4278 = vmatprep.subr.bf16.mxu0 %v12224_v57 }
 0x1cd   : > { %18987 = vst [vmem:[#allocation35_spill] sm:$0xff] %v15258_v53  ;;  %v12862_v21 = vpop.eup %12861  ;;  %12881 = vtanh.f32 %v1537_v55  ;;  %v1541_v24 = vadd.f32 %v1540_v63, %v14842_v52  ;;  %3854 = vmatmul.mubr.bf16.gmra.mrb[148].mxu1 %v15248_v9  ;;  %v2023_v51 = vpop.f32.mrb[56].mxu1 }
 0x1ce   : > { %v12864_v0 = vpop.eup %12863  ;;  %12883 = vtanh.f32 %v1539_v56  ;;  %10550 = vmatmul.mubr.bf16.gmra.mrb[168].mxu0 %v14624_v15  ;;  %v15269_v5 = vpack.c.bf16 %v12862_v21, %v12858_v46  ;;  %v2024_v52 = vadd.f32 %v2023_v51, %v15097_v61  ;;  %v2025_v8 = vpop.f32.mrb[57].mxu1  ;;  %v12236_v15 = vld [vmem:[%s18748_s2 + $0xcc] ss:$16 sps:$4 sm:$0xff]  }
 0x1cf   : > { %v12866_v57 = vpop.eup %12865  ;;  %12885 = vtanh.f32 %v1541_v24  ;;  %4279 = vmatpush1.bf16.msra.mxu0 %v12222_v50  ;;  %10553 = vmatprep.mubr.bf16.mxu0 %v14639_v23  ;;  %v2026_v46 = vadd.f32 %v2025_v8, %v15108_v20  ;;  %v2027_v60 = vpop.f32.mrb[58].mxu1 }
 0x1d0   : > { %18988 = vst [vmem:[#allocation36_spill] sm:$0xff] %v15269_v5  ;;  %v12868_v11 = vpop.eup %12867  ;;  %4280 = vmatprep.subr.bf16.mxu0 %v12230_v37  ;;  %12887 = vtanh.f32 %v2020_v49  ;;  %v2028_v23 = vadd.f32 %v2027_v60, %v15097_v61  ;;  %v2029_v56 = vpop.f32.mrb[59].mxu1 }
 0x1d1   : > { %v12870_v55 = vpop.eup %12869  ;;  %v1577_v41 = vpop.f32.mrb[64].mxu0  ;;  %v15280_v50 = vpack.c.bf16 %v12868_v11, %v12864_v0  ;;  %12889 = vtanh.f32 %v2024_v52  ;;  %v12234_v0 = vld [vmem:[%s18748_s2 + $0xc8] ss:$16 sps:$4 sm:$0xff]  }
 0x1d2   : > { %v12872_v63 = vpop.eup %12871  ;;  %v1578_v21 = vadd.f32 %v1577_v41, %v14857_v13  ;;  %v1579_v37 = vpop.f32.mrb[65].mxu0  ;;  %v15284_v24 = vpack.c.bf16 %v12870_v55, %v12866_v57  ;;  %12891 = vtanh.f32 %v2026_v46  ;;  %v12242_v57 = vld [vmem:[%s18748_s2 + $0xec] ss:$16 sps:$4 sm:$0xff]  }
 0x1d3   : > { %v12874_v51 = vpop.eup %12873  ;;  %v1580_v49 = vadd.f32 %v1579_v37, %v14861_v17  ;;  %v1581_v8 = vpop.f32.mrb[66].mxu0  ;;  %4281 = vmatpush1.bf16.msra.mxu0 %v12228_v16  ;;  %12893 = vtanh.f32 %v2028_v23  ;;  %v15290_v52 = vpack.c.bf16 %v12872_v63, %v12860_v27  ;;  %v2030_v16 = vadd.f32 %v2029_v56, %v15108_v20  ;;  %v12240_v56 = vld [vmem:[%s18748_s2 + $0xe8] ss:$16 sps:$4 sm:$0xff]  }
 0x1d4   : > { %v12876_v11 = vpop.eup %12875  ;;  %12895 = vtanh.f32 %v1578_v21  ;;  %v1582_v60 = vadd.f32 %v1581_v8, %v14857_v13  ;;  %v1583_v41 = vpop.f32.mrb[67].mxu0  ;;  %3863 = vmatprep.mubr.bf16.mxu1 %v15284_v24  ;;  %4282 = vmatprep.subr.bf16.mxu0 %v12236_v15 }
 0x1d5   : > { %18989 = vst [vmem:[#allocation37_spill] sm:$0xff] %v15290_v52  ;;  %v12878_v46 = vpop.eup %12877  ;;  %12897 = vtanh.f32 %v1580_v49  ;;  %v1584_v55 = vadd.f32 %v1583_v41, %v14861_v17  ;;  %3864 = vmatmul.mubr.bf16.gmra.mrb[152].mxu1 %v15280_v50  ;;  %v2033_v23 = vpop.f32.mrb[60].mxu1 }
 0x1d6   : > { %v12880_v27 = vpop.eup %12879  ;;  %12899 = vtanh.f32 %v1582_v60  ;;  %10554 = vmatmul.mubr.bf16.gmra.mrb[172].mxu0 %v14651_v29  ;;  %v15301_v63 = vpack.c.bf16 %v12878_v46, %v12874_v51  ;;  %v2034_v21 = vadd.f32 %v2033_v23, %v15097_v61  ;;  %v2035_v37 = vpop.f32.mrb[61].mxu1  ;;  %v12248_v29 = vld [vmem:[%s18748_s2 + $0x10c] ss:$16 sps:$4 sm:$0xff]  }
 0x1d7   : > { %v12882_v15 = vpop.eup %12881  ;;  %12901 = vtanh.f32 %v1584_v55  ;;  %4283 = vmatpush1.bf16.msra.mxu0 %v12234_v0  ;;  %10557 = vmatprep.mubr.bf16.mxu0 %v14584_v44  ;;  %v2036_v51 = vadd.f32 %v2035_v37, %v15108_v20  ;;  %v2037_v8 = vpop.f32.mrb[62].mxu1 }
 0x1d8   : > { %18990 = vst [vmem:[#allocation38_spill] sm:$0xff] %v15301_v63  ;;  %v12884_v49 = vpop.eup %12883  ;;  %4284 = vmatprep.subr.bf16.mxu0 %v12242_v57  ;;  %12903 = vtanh.f32 %v2030_v16  ;;  %v2038_v44 = vadd.f32 %v2037_v8, %v15097_v61  ;;  %v2039_v46 = vpop.f32.mrb[63].mxu1 }
 0x1d9   : > { %v12886_v0 = vpop.eup %12885  ;;  %v1587_v60 = vpop.f32.mrb[68].mxu0  ;;  %v15312_v41 = vpack.c.bf16 %v12884_v49, %v12880_v27  ;;  %12905 = vtanh.f32 %v2034_v21  ;;  %v12246_v27 = vld [vmem:[%s18748_s2 + $0x108] ss:$16 sps:$4 sm:$0xff]  }
 0x1da   : > { %v12888_v55 = vpop.eup %12887  ;;  %v1588_v23 = vadd.f32 %v1587_v60, %v14857_v13  ;;  %v1589_v57 = vpop.f32.mrb[69].mxu0  ;;  %v15316_v52 = vpack.c.bf16 %v12886_v0, %v12882_v15  ;;  %12907 = vtanh.f32 %v2036_v51  ;;  %v12254_v15 = vld [vmem:[%s18748_s2 + $0x12c] ss:$16 sps:$4 sm:$0xff]  }
 0x1db   : > { %v12890_v53 = vpop.eup %12889  ;;  %v1590_v16 = vadd.f32 %v1589_v57, %v14861_v17  ;;  %v1591_v37 = vpop.f32.mrb[70].mxu0  ;;  %4285 = vmatpush1.bf16.msra.mxu0 %v12240_v56  ;;  %12909 = vtanh.f32 %v2038_v44  ;;  %v15322_v21 = vpack.c.bf16 %v12888_v55, %v12876_v11  ;;  %v2040_v56 = vadd.f32 %v2039_v46, %v15108_v20  ;;  %v12252_v46 = vld [vmem:[%s18748_s2 + $0x128] ss:$16 sps:$4 sm:$0xff]  }
 0x1dc   : > { %v12892_v49 = vpop.eup %12891  ;;  %12911 = vtanh.f32 %v1588_v23  ;;  %v1592_v8 = vadd.f32 %v1591_v37, %v14857_v13  ;;  %v1593_v60 = vpop.f32.mrb[71].mxu0  ;;  %3873 = vmatprep.mubr.bf16.mxu1 %v15316_v52  ;;  %4286 = vmatprep.subr.bf16.mxu0 %v12248_v29 }
 0x1dd   : > { %18991 = vst [vmem:[#allocation39_spill] sm:$0xff] %v15322_v21  ;;  %v12894_v51 = vpop.eup %12893  ;;  %12913 = vtanh.f32 %v1590_v16  ;;  %v1594_v0 = vadd.f32 %v1593_v60, %v14861_v17  ;;  %3874 = vmatmul.mubr.bf16.gmra.mrb[156].mxu1 %v15312_v41  ;;  %v2043_v44 = vpop.f32.mrb[64].mxu1 }
 0x1de   : > { %v12896_v11 = vpop.eup %12895  ;;  %12915 = vtanh.f32 %v1592_v8  ;;  %10558 = vmatmul.mubr.bf16.gmra.mrb[176].mxu0 %v14597_v54  ;;  %v15333_v55 = vpack.c.bf16 %v12894_v51, %v12890_v53  ;;  %v2044_v23 = vadd.f32 %v2043_v44, %v15097_v61  ;;  %v2045_v57 = vpop.f32.mrb[65].mxu1  ;;  %v12257_v54 = vld [vmem:[%s18748_s2 + $0x14c] ss:$16 sps:$4 sm:$0xff]  }
 0x1df   : > { %v12898_v29 = vpop.eup %12897  ;;  %12917 = vtanh.f32 %v1594_v0  ;;  %4287 = vmatpush1.bf16.msra.mxu0 %v12246_v27  ;;  %10561 = vmatprep.mubr.bf16.mxu0 %v14609_v1  ;;  %v2046_v53 = vadd.f32 %v2045_v57, %v15108_v20  ;;  %v2047_v37 = vpop.f32.mrb[66].mxu1 }
 0x1e0   : > { %18992 = vst [vmem:[#allocation40_spill] sm:$0xff] %v15333_v55  ;;  %v12900_v16 = vpop.eup %12899  ;;  %4288 = vmatprep.subr.bf16.mxu0 %v12254_v15  ;;  %12919 = vtanh.f32 %v2040_v56  ;;  %v2048_v1 = vadd.f32 %v2047_v37, %v15097_v61  ;;  %v2049_v51 = vpop.f32.mrb[67].mxu1  ;;  %v12273_v56 = vld [vmem:[%s18748_s2 + $0x400] ss:$16 sps:$4 sm:$0xff]  }
 0x1e1   : > { %v12902_v27 = vpop.eup %12901  ;;  %v1597_v8 = vpop.f32.mrb[72].mxu0  ;;  %v15344_v60 = vpack.c.bf16 %v12900_v16, %v12896_v11  ;;  %12921 = vtanh.f32 %v2044_v23  ;;  %v12255_v23 = vld [vmem:[%s18748_s2 + $0x148] ss:$16 sps:$4 sm:$0xff]  }
 0x1e2   : > { %v12904_v0 = vpop.eup %12903  ;;  %v1598_v44 = vadd.f32 %v1597_v8, %v14857_v13  ;;  %v1599_v15 = vpop.f32.mrb[73].mxu0  ;;  %v15348_v21 = vpack.c.bf16 %v12902_v27, %v12898_v29  ;;  %12923 = vtanh.f32 %v2046_v53  ;;  %v12260_v53 = vld [vmem:[%s18748_s2 + $0x16c] ss:$16 sps:$4 sm:$0xff]   ;;  %v2050_v8 = vadd.f32 %v2049_v51, %v15108_v20 }
 0x1e3   : > { %v12906_v57 = vpop.eup %12905  ;;  %v1600_v55 = vadd.f32 %v1599_v15, %v14861_v17  ;;  %v1601_v11 = vpop.f32.mrb[74].mxu0  ;;  %4289 = vmatpush1.bf16.msra.mxu0 %v12252_v46  ;;  %12925 = vtanh.f32 %v2048_v1  ;;  %v15357_v16 = vpack.c.bf16 %v12904_v0, %v12892_v49  ;;  %v12281_v46 = vld [vmem:[%s18748_s2 + $0x424] ss:$16 sps:$4 sm:$0xff]  }
 0x1e4   : > { %v12908_v37 = vpop.eup %12907  ;;  %12927 = vtanh.f32 %v1598_v44  ;;  %v1602_v29 = vadd.f32 %v1601_v11, %v14857_v13  ;;  %v1603_v27 = vpop.f32.mrb[75].mxu0  ;;  %3916 = vmatprep.mubr.bf16.mxu1 %v15348_v21  ;;  %4290 = vmatprep.subr.bf16.mxu0 %v12257_v54  ;;  %v12279_v54 = vld [vmem:[%s18748_s2 + $0x420] ss:$16 sps:$4 sm:$0xff]  }
 0x1e5   : > { %18993 = vst [vmem:[#allocation41_spill] sm:$0xff] %v15357_v16  ;;  %v12910_v49 = vpop.eup %12909  ;;  %12929 = vtanh.f32 %v1600_v55  ;;  %v1604_v1 = vadd.f32 %v1603_v27, %v14861_v17  ;;  %3917 = vmatmul.mubr.bf16.vlgmr.msra.gmra.mrb[96].mxu1 %v15344_v60  ;;  %v2053_v44 = vpop.f32.mrb[68].mxu1  ;;  %v12258_v55 = vld [vmem:[%s18748_s2 + $0x168] ss:$16 sps:$4 sm:$0xff]  }
 0x1e6   : > { %v12912_v0 = vpop.eup %12911  ;;  %12931 = vtanh.f32 %v1602_v29  ;;  %10562 = vmatmul.mubr.bf16.gmra.mrb[180].mxu0 %v14622_v12  ;;  %4078 = vmatpush1.bf16.msra.mxu1 %v12273_v56  ;;  %v15374_v15 = vpack.c.bf16 %v12910_v49, %v12906_v57  ;;  %v12287_v12 = vld [vmem:[%s18748_s2 + $0x444] ss:$16 sps:$4 sm:$0xff]   ;;  %v2054_v51 = vadd.f32 %v2053_v44, %v15097_v61  ;;  %v2055_v56 = vpop.f32.mrb[69].mxu1  ;;  %v12263_v57 = vld [vmem:[%s18748_s2 + $0x18c] ss:$16 sps:$4 sm:$0xff]  }
 0x1e7   : > { %v12914_v11 = vpop.eup %12913  ;;  %12933 = vtanh.f32 %v1604_v1  ;;  %4291 = vmatpush1.bf16.msra.mxu0 %v12255_v23  ;;  %10565 = vmatprep.mubr.bf16.mxu0 %v14637_v22  ;;  %v2056_v23 = vadd.f32 %v2055_v56, %v15108_v20  ;;  %v2057_v27 = vpop.f32.mrb[70].mxu1 }
 0x1e8   : > { %18994 = vst [vmem:[#allocation42_spill] sm:$0xff] %v15374_v15  ;;  %v12916_v29 = vpop.eup %12915  ;;  %4292 = vmatprep.subr.bf16.mxu0 %v12260_v53  ;;  %4079 = vmatprep.subr.bf16.mxu1 %v12281_v46  ;;  %12935 = vtanh.f32 %v2050_v8  ;;  %v2058_v16 = vadd.f32 %v2057_v27, %v15097_v61  ;;  %v2059_v44 = vpop.f32.mrb[71].mxu1  ;;  %v12285_v46 = vld [vmem:[%s18748_s2 + $0x440] ss:$16 sps:$4 sm:$0xff]  }
 0x1e9   : > { %v12918_v49 = vpop.eup %12917  ;;  %v1607_v22 = vpop.f32.mrb[76].mxu0  ;;  %v15388_v1 = vpack.c.bf16 %v12916_v29, %v12912_v0  ;;  %12937 = vtanh.f32 %v2054_v51  ;;  %v12261_v51 = vld [vmem:[%s18748_s2 + $0x188] ss:$16 sps:$4 sm:$0xff]  }
 0x1ea   : > { %v12920_v15 = vpop.eup %12919  ;;  %v1608_v53 = vadd.f32 %v1607_v22, %v14857_v13  ;;  %v1609_v63 = vpop.f32.mrb[77].mxu0  ;;  %v15392_v5 = vpack.c.bf16 %v12918_v49, %v12914_v11  ;;  %4080 = vmatpush1.bf16.msra.mxu1 %v12279_v54  ;;  %12939 = vtanh.f32 %v2056_v23 }
 0x1eb   : > { %v12922_v8 = vpop.eup %12921  ;;  %v1610_v0 = vadd.f32 %v1609_v63, %v14861_v17  ;;  %v1611_v56 = vpop.f32.mrb[78].mxu0  ;;  %4293 = vmatpush1.bf16.msra.mxu0 %v12258_v55  ;;  %4081 = vmatprep.subr.bf16.mxu1 %v12287_v12  ;;  %12941 = vtanh.f32 %v2058_v16  ;;  %v15401_v29 = vpack.c.bf16 %v12920_v15, %v12908_v37  ;;  %v12266_v63 = vld [vmem:[%s18748_s2 + $0x1ac] ss:$16 sps:$4 sm:$0xff]   ;;  %v12293_v55 = vld [vmem:[%s18748_s2 + $0x464] ss:$16 sps:$4 sm:$0xff]   ;;  %v2060_v16 = vadd.f32 %v2059_v44, %v15108_v20 }
 0x1ec   : > { %v12924_v11 = vpop.eup %12923  ;;  %12943 = vtanh.f32 %v1608_v53  ;;  %v1612_v54 = vadd.f32 %v1611_v56, %v14857_v13  ;;  %v1613_v27 = vpop.f32.mrb[79].mxu0  ;;  %3926 = vmatprep.mubr.bf16.mxu1 %v15392_v5  ;;  %4294 = vmatprep.subr.bf16.mxu0 %v12263_v57  ;;  %v12291_v57 = vld [vmem:[%s18748_s2 + $0x460] ss:$16 sps:$4 sm:$0xff]   ;;  %v12264_v44 = vld [vmem:[%s18748_s2 + $0x1a8] ss:$16 sps:$4 sm:$0xff]  }
 0x1ed   : > { %18995 = vst [vmem:[#allocation43_spill] sm:$0xff] %v15401_v29  ;;  %v12926_v37 = vpop.eup %12925  ;;  %12945 = vtanh.f32 %v1610_v0  ;;  %v1614_v15 = vadd.f32 %v1613_v27, %v14861_v17  ;;  %3927 = vmatmul.mubr.bf16.gmra.mrb[100].mxu1 %v15388_v1  ;;  %v2063_v23 = vpop.f32.mrb[72].mxu1 }
 0x1ee   : > { %v12928_v12 = vpop.eup %12927  ;;  %12947 = vtanh.f32 %v1612_v54  ;;  %10566 = vmatmul.mubr.bf16.gmra.mrb[184].mxu0 %v14649_v28  ;;  %4082 = vmatpush1.bf16.msra.mxu1 %v12285_v46  ;;  %v15418_v49 = vpack.c.bf16 %v12926_v37, %v12922_v8  ;;  %v12299_v28 = vld [vmem:[%s18748_s2 + $0x484] ss:$16 sps:$4 sm:$0xff]   ;;  %v2064_v53 = vadd.f32 %v2063_v23, %v15097_v61  ;;  %v2065_v46 = vpop.f32.mrb[73].mxu1  ;;  %v12269_v8 = vld [vmem:[%s18748_s2 + $0x1cc] ss:$16 sps:$4 sm:$0xff]  }
 0x1ef   : > { %v12930_v22 = vpop.eup %12929  ;;  %12949 = vtanh.f32 %v1614_v15  ;;  %4295 = vmatpush1.bf16.msra.mxu0 %v12261_v51  ;;  %10569 = vmatprep.mubr.bf16.mxu0 %v14659_v33  ;;  %v2066_v56 = vadd.f32 %v2065_v46, %v15108_v20  ;;  %v2067_v51 = vpop.f32.mrb[74].mxu1 }
 0x1f0   : > { %18996 = vst [vmem:[#allocation44_spill] sm:$0xff] %v15418_v49  ;;  %v12932_v0 = vpop.eup %12931  ;;  %4296 = vmatprep.subr.bf16.mxu0 %v12266_v63  ;;  %4083 = vmatprep.subr.bf16.mxu1 %v12293_v55  ;;  %12951 = vtanh.f32 %v2060_v16  ;;  %v2068_v37 = vadd.f32 %v2067_v51, %v15097_v61  ;;  %v2069_v15 = vpop.f32.mrb[75].mxu1  ;;  %v12297_v55 = vld [vmem:[%s18748_s2 + $0x480] ss:$16 sps:$4 sm:$0xff]  }
 0x1f1   : > { %v12934_v54 = vpop.eup %12933  ;;  %v1617_v33 = vpop.f32.mrb[80].mxu0  ;;  %v15432_v27 = vpack.c.bf16 %v12932_v0, %v12928_v12  ;;  %12953 = vtanh.f32 %v2064_v53  ;;  %v12267_v53 = vld [vmem:[%s18748_s2 + $0x1c8] ss:$16 sps:$4 sm:$0xff]  }
 0x1f2   : > { %v12936_v23 = vpop.eup %12935  ;;  %v1618_v63 = vadd.f32 %v1617_v33, %v14857_v13  ;;  %v1619_v29 = vpop.f32.mrb[81].mxu0  ;;  %v15436_v49 = vpack.c.bf16 %v12934_v54, %v12930_v22  ;;  %4084 = vmatpush1.bf16.msra.mxu1 %v12291_v57  ;;  %12955 = vtanh.f32 %v2066_v56 }
 0x1f3   : > { %v12938_v16 = vpop.eup %12937  ;;  %v1620_v12 = vadd.f32 %v1619_v29, %v14861_v17  ;;  %v1621_v46 = vpop.f32.mrb[82].mxu0  ;;  %4297 = vmatpush1.bf16.msra.mxu0 %v12264_v44  ;;  %4085 = vmatprep.subr.bf16.mxu1 %v12299_v28  ;;  %12957 = vtanh.f32 %v2068_v37  ;;  %v15445_v0 = vpack.c.bf16 %v12936_v23, %v12924_v11  ;;  %v12272_v29 = vld [vmem:[%s18748_s2 + $0x1ec] ss:$16 sps:$4 sm:$0xff]   ;;  %v2070_v44 = vadd.f32 %v2069_v15, %v15108_v20  ;;  %v12305_v28 = vld [vmem:[%s18748_s2 + $0x4a4] ss:$16 sps:$4 sm:$0xff]  }
 0x1f4   : > { %v12940_v22 = vpop.eup %12939  ;;  %12959 = vtanh.f32 %v1618_v63  ;;  %v1622_v57 = vadd.f32 %v1621_v46, %v14857_v13  ;;  %v1623_v51 = vpop.f32.mrb[83].mxu0  ;;  %3936 = vmatprep.mubr.bf16.mxu1 %v15436_v49  ;;  %4298 = vmatprep.subr.bf16.mxu0 %v12269_v8  ;;  %v12303_v8 = vld [vmem:[%s18748_s2 + $0x4a0] ss:$16 sps:$4 sm:$0xff]   ;;  %v12270_v23 = vld [vmem:[%s18748_s2 + $0x1e8] ss:$16 sps:$4 sm:$0xff]  }
 0x1f5   : > { %18997 = vst [vmem:[#allocation45_spill] sm:$0xff] %v15445_v0  ;;  %v12942_v11 = vpop.eup %12941  ;;  %12961 = vtanh.f32 %v1620_v12  ;;  %v1624_v56 = vadd.f32 %v1623_v51, %v14861_v17  ;;  %3937 = vmatmul.mubr.bf16.gmra.mrb[104].mxu1 %v15432_v27  ;;  %v2073_v33 = vpop.f32.mrb[76].mxu1 }
 0x1f6   : > { %v12944_v54 = vpop.eup %12943  ;;  %12963 = vtanh.f32 %v1622_v57  ;;  %10570 = vmatmul.mubr.bf16.gmra.mrb[188].mxu0 %v14667_v36  ;;  %4086 = vmatpush1.bf16.msra.mxu1 %v12297_v55  ;;  %v15462_v37 = vpack.c.bf16 %v12942_v11, %v12938_v16  ;;  %v2074_v63 = vadd.f32 %v2073_v33, %v15097_v61  ;;  %v2075_v36 = vpop.f32.mrb[77].mxu1  ;;  %v12311_v55 = vld [vmem:[%s18748_s2 + $0x4c4] ss:$16 sps:$4 sm:$0xff]   ;;  %v12278_v16 = vld [vmem:[%s18748_s2 + $0x20c] ss:$16 sps:$4 sm:$0xff]  }
 0x1f7   : > { %v12946_v15 = vpop.eup %12945  ;;  %12965 = vtanh.f32 %v1624_v56  ;;  %4299 = vmatpush1.bf16.msra.mxu0 %v12267_v53  ;;  %4302 = vmatprep.mubr.bf16.mxu0 %v14872_v42  ;;  %v2076_v42 = vadd.f32 %v2075_v36, %v15108_v20  ;;  %v2077_v46 = vpop.f32.mrb[78].mxu1 }
 0x1f8   : > { %18998 = vst [vmem:[#allocation46_spill] sm:$0xff] %v15462_v37  ;;  %v12948_v12 = vpop.eup %12947  ;;  %4300 = vmatprep.subr.bf16.mxu0 %v12272_v29  ;;  %12967 = vtanh.f32 %v2070_v44  ;;  %4087 = vmatprep.subr.bf16.mxu1 %v12305_v28  ;;  %v2078_v11 = vadd.f32 %v2077_v46, %v15097_v61  ;;  %v2079_v56 = vpop.f32.mrb[79].mxu1  ;;  %v12309_v44 = vld [vmem:[%s18748_s2 + $0x4c0] ss:$16 sps:$4 sm:$0xff]  }
 0x1f9   : > { %v12950_v53 = vpop.eup %12949  ;;  %v1627_v57 = vpop.f32.mrb[84].mxu0  ;;  %v15476_v51 = vpack.c.bf16 %v12948_v12, %v12944_v54  ;;  %12969 = vtanh.f32 %v2074_v63  ;;  %v12276_v63 = vld [vmem:[%s18748_s2 + $0x208] ss:$16 sps:$4 sm:$0xff]  }
 0x1fa   : > { %v12952_v33 = vpop.eup %12951  ;;  %v1628_v29 = vadd.f32 %v1627_v57, %v14857_v13  ;;  %v1629_v0 = vpop.f32.mrb[85].mxu0  ;;  %v15480_v37 = vpack.c.bf16 %v12950_v53, %v12946_v15  ;;  %4088 = vmatpush1.bf16.msra.mxu1 %v12303_v8  ;;  %12971 = vtanh.f32 %v2076_v42  ;;  %v12315_v57 = vld [vmem:[%s18748_s2 + $0x4e0] ss:$16 sps:$4 sm:$0xff]  }
 0x1fb   : > { %v12954_v28 = vpop.eup %12953  ;;  %v1630_v54 = vadd.f32 %v1629_v0, %v14861_v17  ;;  %v1631_v36 = vpop.f32.mrb[86].mxu0  ;;  %4301 = vmatpush1.bf16.msra.mxu0 %v12270_v23  ;;  %12973 = vtanh.f32 %v2078_v11  ;;  %4089 = vmatprep.subr.bf16.mxu1 %v12311_v55  ;;  %v15489_v12 = vpack.c.bf16 %v12952_v33, %v12940_v22  ;;  %v12284_v0 = vld [vmem:[%s18748_s2 + $0x22c] ss:$16 sps:$4 sm:$0xff]   ;;  %v2080_v23 = vadd.f32 %v2079_v56, %v15108_v20  ;;  %v12317_v55 = vld [vmem:[%s18748_s2 + $0x4e4] ss:$16 sps:$4 sm:$0xff]  }
 0x1fc   : > { %v12956_v15 = vpop.eup %12955  ;;  %12975 = vtanh.f32 %v1628_v29  ;;  %v1632_v8 = vadd.f32 %v1631_v36, %v14857_v13  ;;  %v1633_v42 = vpop.f32.mrb[87].mxu0  ;;  %3946 = vmatprep.mubr.bf16.mxu1 %v15480_v37  ;;  %4463 = vmatprep.subr.bf16.mxu0 %v12278_v16  ;;  %v12282_v33 = vld [vmem:[%s18748_s2 + $0x228] ss:$16 sps:$4 sm:$0xff]  }
 0x1fd   : > { %18999 = vst [vmem:[#allocation47_spill] sm:$0xff] %v15489_v12  ;;  %v12958_v22 = vpop.eup %12957  ;;  %12977 = vtanh.f32 %v1630_v54  ;;  %v1634_v46 = vadd.f32 %v1633_v42, %v14861_v17  ;;  %3947 = vmatmul.mubr.bf16.gmra.mrb[108].mxu1 %v15476_v51  ;;  %v2083_v16 = vpop.f32.mrb[80].mxu1 }
 0x1fe   : > { %v12960_v53 = vpop.eup %12959  ;;  %12979 = vtanh.f32 %v1632_v8  ;;  %4303 = vmatmul.mubr.bf16.vlgmr.msra.gmra.mrb[192].mxu0 %v14868_v35  ;;  %4090 = vmatpush1.bf16.msra.mxu1 %v12309_v44  ;;  %v15506_v11 = vpack.c.bf16 %v12958_v22, %v12954_v28  ;;  %v2084_v29 = vadd.f32 %v2083_v16, %v15097_v61  ;;  %v2085_v35 = vpop.f32.mrb[81].mxu1  ;;  %v12323_v44 = vld [vmem:[%s18748_s2 + $0x504] ss:$16 sps:$4 sm:$0xff]   ;;  %v12290_v28 = vld [vmem:[%s18748_s2 + $0x24c] ss:$16 sps:$4 sm:$0xff]  }
 0x1ff   : > { %v12962_v56 = vpop.eup %12961  ;;  %12981 = vtanh.f32 %v1634_v46  ;;  %4312 = vmatprep.mubr.bf16.mxu0 %v14900_v19  ;;  %4464 = vmatpush1.bf16.msra.mxu0 %v12276_v63  ;;  %v2086_v19 = vadd.f32 %v2085_v35, %v15108_v20  ;;  %v2087_v36 = vpop.f32.mrb[82].mxu1 }
 0x200   : > { %19000 = vst [vmem:[#allocation48_spill] sm:$0xff] %v15506_v11  ;;  %v12964_v54 = vpop.eup %12963  ;;  %4465 = vmatprep.subr.bf16.mxu0 %v12284_v0  ;;  %12983 = vtanh.f32 %v2080_v23  ;;  %4091 = vmatprep.subr.bf16.mxu1 %v12317_v55  ;;  %v2088_v22 = vadd.f32 %v2087_v36, %v15097_v61  ;;  %v2089_v46 = vpop.f32.mrb[83].mxu1  ;;  %v12321_v23 = vld [vmem:[%s18748_s2 + $0x500] ss:$16 sps:$4 sm:$0xff]  }
 0x201   : > { %v12966_v63 = vpop.eup %12965  ;;  %v1637_v8 = vpop.f32.mrb[88].mxu0  ;;  %v15520_v42 = vpack.c.bf16 %v12964_v54, %v12960_v53  ;;  %12985 = vtanh.f32 %v2084_v29  ;;  %v12288_v29 = vld [vmem:[%s18748_s2 + $0x248] ss:$16 sps:$4 sm:$0xff]  }
 0x202   : > { %v12968_v16 = vpop.eup %12967  ;;  %v1638_v0 = vadd.f32 %v1637_v8, %v14857_v13  ;;  %v1639_v12 = vpop.f32.mrb[89].mxu0  ;;  %v15524_v11 = vpack.c.bf16 %v12966_v63, %v12962_v56  ;;  %12987 = vtanh.f32 %v2086_v19  ;;  %4092 = vmatpush1.bf16.msra.mxu1 %v12315_v57  ;;  %v12327_v8 = vld [vmem:[%s18748_s2 + $0x520] ss:$16 sps:$4 sm:$0xff]  }
 0x203   : > { %v12970_v55 = vpop.eup %12969  ;;  %v1640_v53 = vadd.f32 %v1639_v12, %v14861_v17  ;;  %v1641_v35 = vpop.f32.mrb[90].mxu0  ;;  %4466 = vmatpush1.bf16.msra.mxu0 %v12282_v33  ;;  %12989 = vtanh.f32 %v2088_v22  ;;  %4093 = vmatprep.subr.bf16.mxu1 %v12323_v44  ;;  %v15533_v54 = vpack.c.bf16 %v12968_v16, %v12956_v15  ;;  %v12296_v12 = vld [vmem:[%s18748_s2 + $0x26c] ss:$16 sps:$4 sm:$0xff]   ;;  %v2090_v33 = vadd.f32 %v2089_v46, %v15108_v20  ;;  %v12329_v44 = vld [vmem:[%s18748_s2 + $0x524] ss:$16 sps:$4 sm:$0xff]  }
 0x204   : > { %v12972_v56 = vpop.eup %12971  ;;  %12991 = vtanh.f32 %v1638_v0  ;;  %v1642_v57 = vadd.f32 %v1641_v35, %v14857_v13  ;;  %v1643_v19 = vpop.f32.mrb[91].mxu0  ;;  %3956 = vmatprep.mubr.bf16.mxu1 %v15524_v11  ;;  %4467 = vmatprep.subr.bf16.mxu0 %v12290_v28  ;;  %v12294_v16 = vld [vmem:[%s18748_s2 + $0x268] ss:$16 sps:$4 sm:$0xff]  }
 0x205   : > { %19001 = vst [vmem:[#allocation49_spill] sm:$0xff] %v15533_v54  ;;  %v12974_v15 = vpop.eup %12973  ;;  %12993 = vtanh.f32 %v1640_v53  ;;  %v1644_v36 = vadd.f32 %v1643_v19, %v14861_v17  ;;  %3957 = vmatmul.mubr.bf16.gmra.mrb[112].mxu1 %v15520_v42  ;;  %v2093_v28 = vpop.f32.mrb[84].mxu1 }
 0x206   : > { %v12976_v63 = vpop.eup %12975  ;;  %12995 = vtanh.f32 %v1642_v57  ;;  %4313 = vmatmul.mubr.bf16.gmra.mrb[196].mxu0 %v14896_v10  ;;  %4094 = vmatpush1.bf16.msra.mxu1 %v12321_v23  ;;  %v15550_v22 = vpack.c.bf16 %v12974_v15, %v12970_v55  ;;  %v2094_v0 = vadd.f32 %v2093_v28, %v15097_v61  ;;  %v2095_v10 = vpop.f32.mrb[85].mxu1  ;;  %v12335_v23 = vld [vmem:[%s18748_s2 + $0x544] ss:$16 sps:$4 sm:$0xff]   ;;  %v12302_v55 = vld [vmem:[%s18748_s2 + $0x28c] ss:$16 sps:$4 sm:$0xff]  }
 0x207   : > { %v12978_v46 = vpop.eup %12977  ;;  %12997 = vtanh.f32 %v1644_v36  ;;  %4322 = vmatprep.mubr.bf16.mxu0 %v14930_v7  ;;  %4468 = vmatpush1.bf16.msra.mxu0 %v12288_v29  ;;  %v2096_v7 = vadd.f32 %v2095_v10, %v15108_v20  ;;  %v2097_v35 = vpop.f32.mrb[86].mxu1 }
 0x208   : > { %19002 = vst [vmem:[#allocation50_spill] sm:$0xff] %v15550_v22  ;;  %v12980_v53 = vpop.eup %12979  ;;  %4469 = vmatprep.subr.bf16.mxu0 %v12296_v12  ;;  %12999 = vtanh.f32 %v2090_v33  ;;  %4095 = vmatprep.subr.bf16.mxu1 %v12329_v44  ;;  %v2098_v15 = vadd.f32 %v2097_v35, %v15097_v61  ;;  %v2099_v36 = vpop.f32.mrb[87].mxu1  ;;  %v12333_v33 = vld [vmem:[%s18748_s2 + $0x540] ss:$16 sps:$4 sm:$0xff]  }
 0x209   : > { %v12982_v29 = vpop.eup %12981  ;;  %v1647_v57 = vpop.f32.mrb[92].mxu0  ;;  %v15564_v19 = vpack.c.bf16 %v12980_v53, %v12976_v63  ;;  %13001 = vtanh.f32 %v2094_v0  ;;  %v845_v0 = vld [vmem:[#allocation6 + $0x20] sm:$0xff]  ;;  %v12300_v53 = vld [vmem:[%s18748_s2 + $0x288] ss:$16 sps:$4 sm:$0xff]  }
 0x20a   : > { %v12984_v28 = vpop.eup %12983  ;;  %v1648_v12 = vadd.f32 %v1647_v57, %v14857_v13  ;;  %v1649_v54 = vpop.f32.mrb[93].mxu0  ;;  %v15568_v22 = vpack.c.bf16 %v12982_v29, %v12978_v46  ;;  %13003 = vtanh.f32 %v2096_v7  ;;  %4096 = vmatpush1.bf16.msra.mxu1 %v12327_v8  ;;  %v846_v29 = vld [vmem:[#allocation6 + $0x28] sm:$0xff] }
 0x20b   : > { %v12986_v44 = vpop.eup %12985  ;;  %v1650_v63 = vadd.f32 %v1649_v54, %v14861_v17  ;;  %v1651_v10 = vpop.f32.mrb[94].mxu0  ;;  %4470 = vmatpush1.bf16.msra.mxu0 %v12294_v16  ;;  %13005 = vtanh.f32 %v2098_v15  ;;  %4097 = vmatprep.subr.bf16.mxu1 %v12335_v23  ;;  %v15577_v46 = vpack.c.bf16 %v12984_v28, %v12972_v56  ;;  %v12308_v54 = vld [vmem:[%s18748_s2 + $0x2ac] ss:$16 sps:$4 sm:$0xff]   ;;  %v2100_v16 = vadd.f32 %v2099_v36, %v15108_v20  ;;  %v12341_v56 = vld [vmem:[%s18748_s2 + $0x564] ss:$16 sps:$4 sm:$0xff]  }
 0x20c   : > { %v12988_v7 = vpop.eup %12987  ;;  %13007 = vtanh.f32 %v1648_v12  ;;  %v1652_v8 = vadd.f32 %v1651_v10, %v14857_v13  ;;  %v1653_v35 = vpop.f32.mrb[95].mxu0  ;;  %3966 = vmatprep.mubr.bf16.mxu1 %v15568_v22  ;;  %4471 = vmatprep.subr.bf16.mxu0 %v12302_v55  ;;  %v15592_v55 = vrot.slane %v845_v0, %v14835_v47  ;;  %v12339_v36 = vld [vmem:[%s18748_s2 + $0x560] ss:$16 sps:$4 sm:$0xff]  }
 0x20d   : > { %19003 = vst [vmem:[#allocation51_spill] sm:$0xff] %v15577_v46  ;;  %v12990_v23 = vpop.eup %12989  ;;  %13009 = vtanh.f32 %v1650_v63  ;;  %v1654_v57 = vadd.f32 %v1653_v35, %v14861_v17  ;;  %3967 = vmatmul.mubr.bf16.gmra.mrb[116].mxu1 %v15564_v19  ;;  %v2103_v15 = vpop.f32.mrb[88].mxu1  ;;  %v15601_v17 = vrot.slane %v846_v29, %v14835_v47 }
 0x20e   : > { %v12992_v13 = vpop.eup %12991  ;;  %13011 = vtanh.f32 %v1652_v8  ;;  %4323 = vmatmul.mubr.bf16.gmra.mrb[200].mxu0 %v14926_v62  ;;  %4098 = vmatpush1.bf16.msra.mxu1 %v12333_v33  ;;  %v15597_v28 = vpack.c.bf16 %v12990_v23, %v12986_v44  ;;  %v12306_v62 = vld [vmem:[%s18748_s2 + $0x2a8] ss:$16 sps:$4 sm:$0xff]   ;;  %v2104_v33 = vadd.f32 %v2103_v15, %v15097_v61  ;;  %v2105_v63 = vpop.f32.mrb[89].mxu1  ;;  %v12344_v44 = vld [vmem:[%s18748_s2 + $0x584] ss:$16 sps:$4 sm:$0xff]  }
 0x20f   : > { %v12994_v12 = vpop.eup %12993  ;;  %13013 = vtanh.f32 %v1654_v57  ;;  %4332 = vmatprep.mubr.bf16.mxu0 %v14962_v3  ;;  %4472 = vmatpush1.bf16.msra.mxu0 %v12300_v53  ;;  %v12314_v3 = vld [vmem:[%s18748_s2 + $0x2cc] ss:$16 sps:$4 sm:$0xff]   ;;  %v2106_v0 = vadd.f32 %v2105_v63, %v15108_v20  ;;  %v2107_v53 = vpop.f32.mrb[90].mxu1 }
 0x210   : > { %19004 = vst [vmem:[#allocation52_spill] sm:$0xff] %v15597_v28  ;;  %v12996_v10 = vpop.eup %12995  ;;  %4473 = vmatprep.subr.bf16.mxu0 %v12308_v54  ;;  %13015 = vtanh.f32 %v2100_v16  ;;  %4099 = vmatprep.subr.bf16.mxu1 %v12341_v56  ;;  %v2108_v23 = vadd.f32 %v2107_v53, %v15097_v61  ;;  %v2109_v57 = vpop.f32.mrb[91].mxu1  ;;  %v12342_v16 = vld [vmem:[%s18748_s2 + $0x580] ss:$16 sps:$4 sm:$0xff]  }
 0x211   : > { %v12998_v8 = vpop.eup %12997  ;;  %v1770_v35 = vpop.f32.mrb[96].mxu0  ;;  %v15614_v29 = vpack.c.bf16 %v12996_v10, %v12992_v13  ;;  %13017 = vtanh.f32 %v2104_v33  ;;  %v12312_v33 = vld [vmem:[%s18748_s2 + $0x2c8] ss:$16 sps:$4 sm:$0xff]  }
 0x212   : > { %v13000_v15 = vpop.eup %12999  ;;  %v1771_v54 = vadd.f32 %v1770_v35, %v15592_v55  ;;  %v1772_v46 = vpop.f32.mrb[97].mxu0  ;;  %v15618_v28 = vpack.c.bf16 %v12998_v8, %v12994_v12  ;;  %13019 = vtanh.f32 %v2106_v0  ;;  %4100 = vmatpush1.bf16.msra.mxu1 %v12339_v36  ;;  %v12348_v35 = vld [vmem:[%s18748_s2 + $0x5a0] ss:$16 sps:$4 sm:$0xff]  }
 0x213   : > { %v13002_v56 = vpop.eup %13001  ;;  %v1773_v13 = vadd.f32 %v1772_v46, %v15601_v17  ;;  %v1774_v63 = vpop.f32.mrb[98].mxu0  ;;  %4474 = vmatpush1.bf16.msra.mxu0 %v12306_v62  ;;  %13021 = vtanh.f32 %v2108_v23  ;;  %4101 = vmatprep.subr.bf16.mxu1 %v12344_v44  ;;  %v15627_v10 = vpack.c.bf16 %v13000_v15, %v12988_v7  ;;  %v12320_v46 = vld [vmem:[%s18748_s2 + $0x2ec] ss:$16 sps:$4 sm:$0xff]   ;;  %v2110_v62 = vadd.f32 %v2109_v57, %v15108_v20  ;;  %v12350_v44 = vld [vmem:[%s18748_s2 + $0x5a4] ss:$16 sps:$4 sm:$0xff]  }
 0x214   : > { %v13004_v12 = vpop.eup %13003  ;;  %13023 = vtanh.f32 %v1771_v54  ;;  %v1775_v36 = vadd.f32 %v1774_v63, %v15592_v55  ;;  %v1776_v0 = vpop.f32.mrb[99].mxu0  ;;  %3976 = vmatprep.mubr.bf16.mxu1 %v15618_v28  ;;  %4475 = vmatprep.subr.bf16.mxu0 %v12314_v3  ;;  %v12318_v15 = vld [vmem:[%s18748_s2 + $0x2e8] ss:$16 sps:$4 sm:$0xff]  }
 0x215   : > { %19005 = vst [vmem:[#allocation53_spill] sm:$0xff] %v15627_v10  ;;  %v13006_v7 = vpop.eup %13005  ;;  %13025 = vtanh.f32 %v1773_v13  ;;  %v1777_v53 = vadd.f32 %v1776_v0, %v15601_v17  ;;  %3977 = vmatmul.mubr.bf16.gmra.mrb[120].mxu1 %v15614_v29  ;;  %v2113_v3 = vpop.f32.mrb[92].mxu1 }
 0x216   : > { %v13008_v8 = vpop.eup %13007  ;;  %13027 = vtanh.f32 %v1775_v36  ;;  %4333 = vmatmul.mubr.bf16.gmra.mrb[204].mxu0 %v14958_v58  ;;  %4102 = vmatpush1.bf16.msra.mxu1 %v12342_v16  ;;  %v15644_v23 = vpack.c.bf16 %v13006_v7, %v13002_v56  ;;  %v2114_v54 = vadd.f32 %v2113_v3, %v15097_v61  ;;  %v2115_v58 = vpop.f32.mrb[93].mxu1  ;;  %v12353_v16 = vld [vmem:[%s18748_s2 + $0x5c4] ss:$16 sps:$4 sm:$0xff]   ;;  %v12326_v56 = vld [vmem:[%s18748_s2 + $0x30c] ss:$16 sps:$4 sm:$0xff]  }
 0x217   : > { %v13010_v57 = vpop.eup %13009  ;;  %13029 = vtanh.f32 %v1777_v53  ;;  %4342 = vmatprep.mubr.bf16.mxu0 %v14994_v6  ;;  %4476 = vmatpush1.bf16.msra.mxu0 %v12312_v33  ;;  %v2116_v6 = vadd.f32 %v2115_v58, %v15108_v20  ;;  %v2117_v63 = vpop.f32.mrb[94].mxu1 }
 0x218   : > { %19006 = vst [vmem:[#allocation54_spill] sm:$0xff] %v15644_v23  ;;  %v13012_v13 = vpop.eup %13011  ;;  %4477 = vmatprep.subr.bf16.mxu0 %v12320_v46  ;;  %13031 = vtanh.f32 %v2110_v62  ;;  %4103 = vmatprep.subr.bf16.mxu1 %v12350_v44  ;;  %v2118_v7 = vadd.f32 %v2117_v63, %v15097_v61  ;;  %v2119_v53 = vpop.f32.mrb[95].mxu1 }
 0x219   : > { %v13014_v33 = vpop.eup %13013  ;;  %v1780_v36 = vpop.f32.mrb[100].mxu0  ;;  %v15658_v0 = vpack.c.bf16 %v13012_v13, %v13008_v8  ;;  %13033 = vtanh.f32 %v2114_v54  ;;  %v12324_v8 = vld [vmem:[%s18748_s2 + $0x308] ss:$16 sps:$4 sm:$0xff]  }
 0x21a   : > { %v13016_v3 = vpop.eup %13015  ;;  %v1781_v46 = vadd.f32 %v1780_v36, %v15592_v55  ;;  %v1782_v10 = vpop.f32.mrb[101].mxu0  ;;  %v15662_v23 = vpack.c.bf16 %v13014_v33, %v13010_v57  ;;  %13035 = vtanh.f32 %v2116_v6  ;;  %4104 = vmatpush1.bf16.msra.mxu1 %v12348_v35  ;;  %v2120_v35 = vadd.f32 %v2119_v53, %v15108_v20  ;;  %v12330_v33 = vld [vmem:[%s18748_s2 + $0x328] ss:$16 sps:$4 sm:$0xff]  }
 0x21b   : > { %v13018_v62 = vpop.eup %13017  ;;  %v1783_v58 = vadd.f32 %v1782_v10, %v15601_v17  ;;  %v1784_v44 = vpop.f32.mrb[102].mxu0  ;;  %4478 = vmatpush1.bf16.msra.mxu0 %v12318_v15  ;;  %13037 = vtanh.f32 %v2118_v7  ;;  %4105 = vmatprep.subr.bf16.mxu1 %v12353_v16  ;;  %v15668_v61 = vpack.c.bf16 %v13016_v3, %v13004_v12  ;;  %v12332_v10 = vld [vmem:[%s18748_s2 + $0x32c] ss:$16 sps:$4 sm:$0xff]   ;;  %v12351_v15 = vld [vmem:[%s18748_s2 + $0x5c0] ss:$16 sps:$4 sm:$0xff]  }
 0x21c   : > { %v13020_v54 = vpop.eup %13019  ;;  %13039 = vtanh.f32 %v1781_v46  ;;  %v1785_v57 = vadd.f32 %v1784_v44, %v15592_v55  ;;  %v1786_v13 = vpop.f32.mrb[103].mxu0  ;;  %3986 = vmatprep.mubr.bf16.mxu1 %v15662_v23  ;;  %4479 = vmatprep.subr.bf16.mxu0 %v12326_v56  ;;  %v12359_v56 = vld [vmem:[%s18748_s2 + $0x5e4] ss:$16 sps:$4 sm:$0xff]   ;;  %v12338_v7 = vld [vmem:[%s18748_s2 + $0x34c] ss:$16 sps:$4 sm:$0xff]  }
 0x21d   : > { %19007 = vst [vmem:[#allocation55_spill] sm:$0xff] %v15668_v61  ;;  %v13022_v12 = vpop.eup %13021  ;;  %13041 = vtanh.f32 %v1783_v58  ;;  %v1787_v16 = vadd.f32 %v1786_v13, %v15601_v17  ;;  %3987 = vmatmul.mubr.bf16.gmra.mrb[124].mxu1 %v15658_v0 }
 0x21e   : > { %v13024_v6 = vpop.eup %13023  ;;  %13043 = vtanh.f32 %v1785_v57  ;;  %3996 = vmatprep.mubr.bf16.mxu1 %v14939_v18  ;;  %4343 = vmatmul.mubr.bf16.gmra.mrb[208].mxu0 %v14990_v59  ;;  %v15686_v20 = vpack.c.bf16 %v13022_v12, %v13018_v62  ;;  %v12357_v59 = vld [vmem:[%s18748_s2 + $0x5e0] ss:$16 sps:$4 sm:$0xff]  }
 0x21f   : > { %v13026_v63 = vpop.eup %13025  ;;  %13045 = vtanh.f32 %v1787_v16  ;;  %4352 = vmatprep.mubr.bf16.mxu0 %v15026_v31  ;;  %4480 = vmatpush1.bf16.msra.mxu0 %v12324_v8 }
 0x220   : > { %19008 = vst [vmem:[#allocation56_spill] sm:$0xff] %v15686_v20  ;;  %v13028_v36 = vpop.eup %13027  ;;  %4481 = vmatprep.subr.bf16.mxu0 %v12332_v10  ;;  %13047 = vtanh.f32 %v2120_v35  ;;  %4106 = vmatpush1.bf16.msra.mxu1 %v12351_v15  ;;  %v12336_v10 = vld [vmem:[%s18748_s2 + $0x348] ss:$16 sps:$4 sm:$0xff]  }
 0x221   : > { %v13030_v53 = vpop.eup %13029  ;;  %v1790_v3 = vpop.f32.mrb[104].mxu0  ;;  %4107 = vmatprep.subr.bf16.mxu1 %v12359_v56  ;;  %v15698_v31 = vpack.c.bf16 %v13028_v36, %v13024_v6  ;;  %v12347_v56 = vld [vmem:[%s18748_s2 + $0x36c] ss:$16 sps:$4 sm:$0xff]  }
 0x222   : > { %v13032_v46 = vpop.eup %13031  ;;  %v1791_v62 = vadd.f32 %v1790_v3, %v15592_v55  ;;  %v1792_v58 = vpop.f32.mrb[105].mxu0  ;;  %v15701_v44 = vpack.c.bf16 %v13030_v53, %v13026_v63  ;;  %v12356_v3 = vld [vmem:[%s18748_s2 + $0x38c] ss:$16 sps:$4 sm:$0xff]  }
 0x223   : > { %v13034_v8 = vpop.eup %13033  ;;  %v1793_v57 = vadd.f32 %v1792_v58, %v15601_v17  ;;  %v1794_v13 = vpop.f32.mrb[106].mxu0  ;;  %4482 = vmatpush1.bf16.msra.mxu0 %v12330_v33  ;;  %v15707_v35 = vpack.c.bf16 %v13032_v46, %v13020_v54  ;;  %v14057_v54 = vld [vmem:[%s18748_s2 + $0x4] ss:$16 sps:$4 sm:$0xff]  }
 0x224   : > { %v13036_v15 = vpop.eup %13035  ;;  %13049 = vtanh.f32 %v1791_v62  ;;  %v1795_v12 = vadd.f32 %v1794_v13, %v15592_v55  ;;  %v1796_v16 = vpop.f32.mrb[107].mxu0  ;;  %4483 = vmatprep.subr.bf16.mxu0 %v12338_v7  ;;  %4108 = vmatpush1.bf16.msra.mxu1 %v12357_v59  ;;  %v12345_v59 = vld [vmem:[%s18748_s2 + $0x368] ss:$16 sps:$4 sm:$0xff]  }
 0x225   : > { %19009 = vst [vmem:[#allocation57_spill] sm:$0xff] %v15707_v35  ;;  %v13038_v6 = vpop.eup %13037  ;;  %13051 = vtanh.f32 %v1793_v57  ;;  %v1797_v63 = vadd.f32 %v1796_v16, %v15601_v17  ;;  %3997 = vmatmul.mubr.bf16.gmra.mrb[128].mxu1 %v14918_v48  ;;  %4977 = vmatprep.subr.bf16.mxu1 %v14057_v54 }
 0x226   : > { %v13040_v33 = vpop.eup %13039  ;;  %13053 = vtanh.f32 %v1795_v12  ;;  %4006 = vmatprep.mubr.bf16.mxu1 %v14971_v14  ;;  %4353 = vmatmul.mubr.bf16.gmra.mrb[212].mxu0 %v15022_v4  ;;  %v15720_v36 = vpack.c.bf16 %v13038_v6, %v13034_v8  ;;  %v12354_v12 = vld [vmem:[%s18748_s2 + $0x388] ss:$16 sps:$4 sm:$0xff]  }
 0x227   : > { %v13042_v7 = vpop.eup %13041  ;;  %13055 = vtanh.f32 %v1797_v63  ;;  %4362 = vmatprep.mubr.bf16.mxu0 %v15058_v26  ;;  %4484 = vmatpush1.bf16.msra.mxu0 %v12336_v10  ;;  %v12362_v63 = vld [vmem:[%s18748_s2 + $0x3ac] ss:$16 sps:$4 sm:$0xff]  }
 0x228   : > { %19010 = vst [vmem:[#allocation58_spill] sm:$0xff] %v15720_v36  ;;  %v13044_v53 = vpop.eup %13043  ;;  %4485 = vmatprep.subr.bf16.mxu0 %v12347_v56 }
 0x229   : > { %v13046_v46 = vpop.eup %13045  ;;  %v1800_v62 = vpop.f32.mrb[108].mxu0  ;;  %v15729_v4 = vpack.c.bf16 %v13044_v53, %v13040_v33 }
 0x22a   : > { %v13048_v58 = vpop.eup %13047  ;;  %v1801_v8 = vadd.f32 %v1800_v62, %v15592_v55  ;;  %v1802_v57 = vpop.f32.mrb[109].mxu0  ;;  %v15732_v26 = vpack.c.bf16 %v13046_v46, %v13042_v7  ;;  %v19013_v7 = vld [vmem:[#allocation18_spill] sm:$0xff] }
 0x22b   : > { %v1803_v13 = vadd.f32 %v1802_v57, %v15601_v17  ;;  %v1804_v10 = vpop.f32.mrb[110].mxu0  ;;  %4486 = vmatpush1.bf16.msra.mxu0 %v12345_v59  ;;  %v15738_v16 = vpack.c.bf16 %v13048_v58, %v13036_v15  ;;  %v12360_v59 = vld [vmem:[%s18748_s2 + $0x3a8] ss:$16 sps:$4 sm:$0xff]  }
 0x22c   : > { %19011 = vst [vmem:[#allocation59_spill] sm:$0xff] %v15732_v26  ;;  %13057 = vtanh.f32 %v1801_v8  ;;  %v1805_v56 = vadd.f32 %v1804_v10, %v15592_v55  ;;  %v1806_v6 = vpop.f32.mrb[111].mxu0  ;;  %4487 = vmatprep.subr.bf16.mxu0 %v12356_v3  ;;  %v12365_v3 = vld [vmem:[%s18748_s2 + $0x3cc] ss:$16 sps:$4 sm:$0xff]  }
 0x22d   : > { %19012 = vst [vmem:[#allocation60_spill] sm:$0xff] %v15738_v16  ;;  %13059 = vtanh.f32 %v1803_v13  ;;  %v1807_v54 = vadd.f32 %v1806_v6, %v15601_v17  ;;  %4007 = vmatmul.mubr.bf16.gmra.mrb[132].mxu1 %v14950_v38  ;;  %v19019_v16 = vld [vmem:[#allocation12_spill] sm:$0xff] }
 0x22e   : > { %v13050_v33 = vpop.eup %13049  ;;  %13061 = vtanh.f32 %v1805_v56  ;;  %4016 = vmatprep.mubr.bf16.mxu1 %v15003_v25  ;;  %4363 = vmatmul.mubr.bf16.gmra.mrb[216].mxu0 %v15054_v39 }
 0x22f   : > { %v13052_v15 = vpop.eup %13051  ;;  %13063 = vtanh.f32 %v1807_v54  ;;  %4372 = vmatprep.mubr.bf16.mxu0 %v19013_v7  ;;  %4488 = vmatpush1.bf16.msra.mxu0 %v12354_v12  ;;  %v12363_v12 = vld [vmem:[%s18748_s2 + $0x3c8] ss:$16 sps:$4 sm:$0xff]  }
 0x230   : > { %v13054_v53 = vpop.eup %13053  ;;  %4489 = vmatprep.subr.bf16.mxu0 %v12362_v63  ;;  %v12368_v63 = vld [vmem:[%s18748_s2 + $0x3ec] ss:$16 sps:$4 sm:$0xff]  }
 0x231   : > { %v13056_v46 = vpop.eup %13055  ;;  %v1810_v62 = vpop.f32.mrb[112].mxu0  ;;  %v15755_v58 = vpack.c.bf16 %v13054_v53, %v13050_v33  ;;  %v19015_v33 = vld [vmem:[#allocation11_spill] sm:$0xff]  ;;  %v19016_v7 = vld [vmem:[#allocation13_spill] sm:$0xff] }
 0x232   : > { %v1811_v39 = vadd.f32 %v1810_v62, %v15592_v55  ;;  %v1812_v8 = vpop.f32.mrb[113].mxu0  ;;  %v15758_v57 = vpack.c.bf16 %v13056_v46, %v13052_v15  ;;  %v12371_v62 = vld [vmem:[%s18748_s2 + $0x40c] ss:$16 sps:$4 sm:$0xff]  }
 0x233   : > { %v1813_v13 = vadd.f32 %v1812_v8, %v15601_v17  ;;  %v1814_v10 = vpop.f32.mrb[114].mxu0  ;;  %4490 = vmatpush1.bf16.msra.mxu0 %v12360_v59  ;;  %v19017_v59 = vld [vmem:[#allocation17_spill] sm:$0xff] }
 0x234   : > { %19014 = vst [vmem:[#allocation18_spill] sm:$0xff] %v15758_v57  ;;  %13065 = vtanh.f32 %v1811_v39  ;;  %v1815_v56 = vadd.f32 %v1814_v10, %v15592_v55  ;;  %v1816_v6 = vpop.f32.mrb[115].mxu0  ;;  %4491 = vmatprep.subr.bf16.mxu0 %v12365_v3  ;;  %v12366_v3 = vld [vmem:[%s18748_s2 + $0x3e8] ss:$16 sps:$4 sm:$0xff]  }
 0x235   : > { %13067 = vtanh.f32 %v1813_v13  ;;  %v1817_v54 = vadd.f32 %v1816_v6, %v15601_v17  ;;  %4017 = vmatmul.mubr.bf16.gmra.mrb[136].mxu1 %v19015_v33 }
 0x236   : > { %v13058_v15 = vpop.eup %13057  ;;  %13069 = vtanh.f32 %v1815_v56  ;;  %4026 = vmatprep.mubr.bf16.mxu1 %v19016_v7  ;;  %4373 = vmatmul.mubr.bf16.gmra.mrb[220].mxu0 %v19017_v59 }
 0x237   : > { %v13060_v53 = vpop.eup %13059  ;;  %13071 = vtanh.f32 %v1817_v54  ;;  %4382 = vmatprep.mubr.bf16.mxu0 %v15128_v34  ;;  %4492 = vmatpush1.bf16.msra.mxu0 %v12363_v12 }
 0x238   : > { %v13062_v46 = vpop.eup %13061  ;;  %4493 = vmatprep.subr.bf16.mxu0 %v12368_v63 }
 0x239   : > { %v13064_v39 = vpop.eup %13063  ;;  %v1820_v8 = vpop.f32.mrb[116].mxu0  ;;  %v15779_v13 = vpack.c.bf16 %v13062_v46, %v13058_v15  ;;  %v19020_v46 = vld [vmem:[#allocation15_spill] sm:$0xff] }
 0x23a   : > { %v1821_v10 = vadd.f32 %v1820_v8, %v15592_v55  ;;  %v1822_v56 = vpop.f32.mrb[117].mxu0  ;;  %v15782_v6 = vpack.c.bf16 %v13064_v39, %v13060_v53  ;;  %v19021_v53 = vld [vmem:[#allocation21_spill] sm:$0xff] }
 0x23b   : > { %v1823_v34 = vadd.f32 %v1822_v56, %v15601_v17  ;;  %v1824_v12 = vpop.f32.mrb[118].mxu0  ;;  %4494 = vmatpush1.bf16.msra.mxu0 %v12366_v3 }
 0x23c   : > { %19018 = vst [vmem:[#allocation11_spill] sm:$0xff] %v15782_v6  ;;  %13073 = vtanh.f32 %v1821_v10  ;;  %v1825_v63 = vadd.f32 %v1824_v12, %v15592_v55  ;;  %v1826_v54 = vpop.f32.mrb[119].mxu0  ;;  %4656 = vmatprep.subr.bf16.mxu0 %v12371_v62 }
 0x23d   : > { %13075 = vtanh.f32 %v1823_v34  ;;  %v1827_v59 = vadd.f32 %v1826_v54, %v15601_v17  ;;  %4027 = vmatmul.mubr.bf16.gmra.mrb[140].mxu1 %v19019_v16 }
 0x23e   : > { %v13066_v15 = vpop.eup %13065  ;;  %13077 = vtanh.f32 %v1825_v63  ;;  %4036 = vmatprep.mubr.bf16.mxu1 %v19020_v46  ;;  %4383 = vmatmul.mubr.bf16.gmra.mrb[224].mxu0 %v19021_v53 }
 0x23f   : > { %v13068_v39 = vpop.eup %13067  ;;  %13079 = vtanh.f32 %v1827_v59  ;;  %4392 = vmatprep.mubr.bf16.mxu0 %v15148_v2  ;;  %v19023_v59 = vld [vmem:[#allocation14_spill] sm:$0xff] }
 0x240   : > { %v13070_v3 = vpop.eup %13069 }
 0x241   : > { %v13072_v8 = vpop.eup %13071  ;;  %v1830_v10 = vpop.f32.mrb[120].mxu0  ;;  %v15791_v56 = vpack.c.bf16 %v13070_v3, %v13066_v15  ;;  %v19024_v15 = vld [vmem:[#allocation19_spill] sm:$0xff]  ;;  %v19025_v3 = vld [vmem:[#allocation24_spill] sm:$0xff] }
 0x242   : > { %v1831_v62 = vadd.f32 %v1830_v10, %v15592_v55  ;;  %v1832_v34 = vpop.f32.mrb[121].mxu0  ;;  %v15794_v12 = vpack.c.bf16 %v13072_v8, %v13068_v39 }
 0x243   : > { %v1833_v63 = vadd.f32 %v1832_v34, %v15601_v17  ;;  %v1834_v54 = vpop.f32.mrb[122].mxu0 }
 0x244   : > { %19022 = vst [vmem:[#allocation17_spill] sm:$0xff] %v15794_v12  ;;  %13081 = vtanh.f32 %v1831_v62  ;;  %v1835_v53 = vadd.f32 %v1834_v54, %v15592_v55  ;;  %v1836_v35 = vpop.f32.mrb[123].mxu0 }
 0x245   : > { %13083 = vtanh.f32 %v1833_v63  ;;  %v1837_v2 = vadd.f32 %v1836_v35, %v15601_v17  ;;  %4037 = vmatmul.mubr.bf16.gmra.mrb[144].mxu1 %v19023_v59 }
 0x246   : > { %v13074_v61 = vpop.eup %13073  ;;  %13085 = vtanh.f32 %v1835_v53  ;;  %4046 = vmatprep.mubr.bf16.mxu1 %v19024_v15  ;;  %4393 = vmatmul.mubr.bf16.gmra.mrb[228].mxu0 %v19025_v3 }
 0x247   : > { %v13076_v39 = vpop.eup %13075  ;;  %13087 = vtanh.f32 %v1837_v2  ;;  %4402 = vmatprep.mubr.bf16.mxu0 %v15168_v43  ;;  %v19027_v2 = vld [vmem:[#allocation16_spill] sm:$0xff] }
 0x248   : > { %v13078_v8 = vpop.eup %13077 }
 0x249   : > { %v13080_v10 = vpop.eup %13079  ;;  %v1840_v62 = vpop.f32.mrb[124].mxu0  ;;  %v15803_v34 = vpack.c.bf16 %v13078_v8, %v13074_v61  ;;  %v19028_v61 = vld [vmem:[#allocation22_spill] sm:$0xff] }
 0x24a   : > { %v1841_v63 = vadd.f32 %v1840_v62, %v15592_v55  ;;  %v1842_v35 = vpop.f32.mrb[125].mxu0  ;;  %v15806_v54 = vpack.c.bf16 %v13080_v10, %v13076_v39  ;;  %v19029_v8 = vld [vmem:[#allocation30_spill] sm:$0xff] }
 0x24b   : > { %v1843_v53 = vadd.f32 %v1842_v35, %v15601_v17  ;;  %v1844_v36 = vpop.f32.mrb[126].mxu0 }
 0x24c   : > { %19026 = vst [vmem:[#allocation12_spill] sm:$0xff] %v15806_v54  ;;  %13089 = vtanh.f32 %v1841_v63  ;;  %v1845_v3 = vadd.f32 %v1844_v36, %v15592_v55  ;;  %v1846_v20 = vpop.f32.mrb[127].mxu0 }
 0x24d   : > { %13091 = vtanh.f32 %v1843_v53  ;;  %v1847_v43 = vadd.f32 %v1846_v20, %v15601_v17  ;;  %4047 = vmatmul.mubr.bf16.gmra.mrb[148].mxu1 %v19027_v2 }
 0x24e   : > { %v13082_v15 = vpop.eup %13081  ;;  %13093 = vtanh.f32 %v1845_v3  ;;  %4056 = vmatprep.mubr.bf16.mxu1 %v19028_v61  ;;  %4403 = vmatmul.mubr.bf16.gmra.mrb[232].mxu0 %v15164_v45 }
 0x24f   : > { %v13084_v39 = vpop.eup %13083  ;;  %13095 = vtanh.f32 %v1847_v43  ;;  %4412 = vmatprep.mubr.bf16.mxu0 %v19029_v8  ;;  %v19030_v8 = vld [vmem:[#allocation20_spill] sm:$0xff] }
 0x250   : > { %v13086_v10 = vpop.eup %13085 }
 0x251   : > { %v13088_v62 = vpop.eup %13087  ;;  %v1850_v63 = vpop.f32.mrb[128].mxu0  ;;  %v15815_v36 = vpack.c.bf16 %v13086_v10, %v13082_v15  ;;  %v19031_v15 = vld [vmem:[#allocation25_spill] sm:$0xff] }
 0x252   : > { %v1851_v35 = vadd.f32 %v1850_v63, %v15592_v55  ;;  %v1852_v20 = vpop.f32.mrb[129].mxu0  ;;  %v15818_v53 = vpack.c.bf16 %v13088_v62, %v13084_v39  ;;  %v19032_v10 = vld [vmem:[#allocation29_spill] sm:$0xff] }
 0x253   : > { %v1853_v3 = vadd.f32 %v1852_v20, %v15601_v17  ;;  %v1854_v2 = vpop.f32.mrb[130].mxu0 }
 0x254   : > { %13097 = vtanh.f32 %v1851_v35  ;;  %v1855_v45 = vadd.f32 %v1854_v2, %v15592_v55  ;;  %v1856_v61 = vpop.f32.mrb[131].mxu0 }
 0x255   : > { %13099 = vtanh.f32 %v1853_v3  ;;  %v1857_v43 = vadd.f32 %v1856_v61, %v15601_v17  ;;  %4057 = vmatmul.mubr.bf16.gmra.mrb[152].mxu1 %v19030_v8 }
 0x256   : > { %v13090_v59 = vpop.eup %13089  ;;  %13101 = vtanh.f32 %v1855_v45  ;;  %4066 = vmatprep.mubr.bf16.mxu1 %v19031_v15  ;;  %4413 = vmatmul.mubr.bf16.gmra.mrb[236].mxu0 %v19032_v10 }
 0x257   : > { %v13092_v39 = vpop.eup %13091  ;;  %13103 = vtanh.f32 %v1857_v43  ;;  %4422 = vmatprep.mubr.bf16.mxu0 %v15220_v32  ;;  %v19033_v43 = vld [vmem:[#allocation23_spill] sm:$0xff] }
 0x258   : > { %v13094_v62 = vpop.eup %13093 }
 0x259   : > { %v13096_v63 = vpop.eup %13095  ;;  %v1860_v35 = vpop.f32.mrb[132].mxu0  ;;  %v15827_v2 = vpack.c.bf16 %v13094_v62, %v13090_v59 }
 0x25a   : > { %v1861_v20 = vadd.f32 %v1860_v35, %v15592_v55  ;;  %v1862_v61 = vpop.f32.mrb[133].mxu0  ;;  %v15830_v3 = vpack.c.bf16 %v13096_v63, %v13092_v39 }
 0x25b   : > { %v1863_v45 = vadd.f32 %v1862_v61, %v15601_v17  ;;  %v1864_v8 = vpop.f32.mrb[134].mxu0 }
 0x25c   : > { %13105 = vtanh.f32 %v1861_v20  ;;  %v1865_v10 = vadd.f32 %v1864_v8, %v15592_v55  ;;  %v1866_v15 = vpop.f32.mrb[135].mxu0 }
 0x25d   : > { %13107 = vtanh.f32 %v1863_v45  ;;  %v1867_v32 = vadd.f32 %v1866_v15, %v15601_v17  ;;  %4067 = vmatmul.mubr.bf16.gmra.mrb[156].mxu1 %v19033_v43 }
 0x25e   : > { %v13098_v46 = vpop.eup %13097  ;;  %13109 = vtanh.f32 %v1865_v10  ;;  %4109 = vmatprep.mubr.bf16.mxu1 %v15701_v44  ;;  %4423 = vmatmul.mubr.bf16.gmra.mrb[240].mxu0 %v15216_v30 }
 0x25f   : > { %v13100_v59 = vpop.eup %13099  ;;  %13111 = vtanh.f32 %v1867_v32  ;;  %4432 = vmatprep.mubr.bf16.mxu0 %v15252_v40 }
 0x260   : > { %v13102_v39 = vpop.eup %13101 }
 0x261   : > { %v13104_v62 = vpop.eup %13103  ;;  %v1870_v63 = vpop.f32.mrb[136].mxu0  ;;  %v15839_v8 = vpack.c.bf16 %v13102_v39, %v13098_v46 }
 0x262   : > { %v1871_v35 = vadd.f32 %v1870_v63, %v15592_v55  ;;  %v1872_v15 = vpop.f32.mrb[137].mxu0  ;;  %v15842_v20 = vpack.c.bf16 %v13104_v62, %v13100_v59  ;;  %v14058_v59 = vld [vmem:[%s18748_s2] ss:$16 sps:$4 sm:$0xff]   ;;  %v14059_v62 = vld [vmem:[%s18748_s2 + $0x24] ss:$16 sps:$4 sm:$0xff]  }
 0x263   : > { %v1873_v61 = vadd.f32 %v1872_v15, %v15601_v17  ;;  %v1874_v45 = vpop.f32.mrb[138].mxu0 }
 0x264   : > { %19034 = vst [vmem:[#allocation21_spill] sm:$0xff] %v15842_v20  ;;  %13113 = vtanh.f32 %v1871_v35  ;;  %v1875_v30 = vadd.f32 %v1874_v45, %v15592_v55  ;;  %v1876_v10 = vpop.f32.mrb[139].mxu0 }
 0x265   : > { %13115 = vtanh.f32 %v1873_v61  ;;  %v1877_v40 = vadd.f32 %v1876_v10, %v15601_v17  ;;  %4110 = vmatmul.mubr.bf16.vlgmr.msra.gmra.mrb[96].mxu1 %v15698_v31  ;;  %v14060_v10 = vld [vmem:[%s18748_s2 + $0x20] ss:$16 sps:$4 sm:$0xff]  }
 0x266   : > { %v13106_v32 = vpop.eup %13105  ;;  %13117 = vtanh.f32 %v1875_v30  ;;  %4119 = vmatprep.mubr.bf16.mxu1 %v15732_v26  ;;  %4433 = vmatmul.mubr.bf16.gmra.mrb[244].mxu0 %v15248_v9 }
 0x267   : > { %v13108_v46 = vpop.eup %13107  ;;  %13119 = vtanh.f32 %v1877_v40  ;;  %4442 = vmatprep.mubr.bf16.mxu0 %v15284_v24  ;;  %4978 = vmatpush1.bf16.msra.mxu1 %v14058_v59 }
 0x268   : > { %v13110_v39 = vpop.eup %13109  ;;  %4979 = vmatprep.subr.bf16.mxu1 %v14059_v62 }
 0x269   : > { %v13112_v63 = vpop.eup %13111  ;;  %v1880_v35 = vpop.f32.mrb[140].mxu0  ;;  %v15857_v15 = vpack.c.bf16 %v13110_v39, %v13106_v32  ;;  %v14061_v32 = vld [vmem:[%s18748_s2 + $0x44] ss:$16 sps:$4 sm:$0xff]  }
 0x26a   : > { %v1881_v9 = vadd.f32 %v1880_v35, %v15592_v55  ;;  %v1882_v61 = vpop.f32.mrb[141].mxu0  ;;  %v15860_v45 = vpack.c.bf16 %v13112_v63, %v13108_v46  ;;  %v14062_v63 = vld [vmem:[%s18748_s2 + $0x40] ss:$16 sps:$4 sm:$0xff]  }
 0x26b   : > { %v1883_v24 = vadd.f32 %v1882_v61, %v15601_v17  ;;  %v1884_v30 = vpop.f32.mrb[142].mxu0  ;;  %4980 = vmatpush1.bf16.msra.mxu1 %v14060_v10 }
 0x26c   : > { %13121 = vtanh.f32 %v1881_v9  ;;  %v1885_v40 = vadd.f32 %v1884_v30, %v15592_v55  ;;  %v1886_v59 = vpop.f32.mrb[143].mxu0  ;;  %4981 = vmatprep.subr.bf16.mxu1 %v14061_v32  ;;  %v14063_v9 = vld [vmem:[%s18748_s2 + $0x64] ss:$16 sps:$4 sm:$0xff]   ;;  %v14064_v32 = vld [vmem:[%s18748_s2 + $0x60] ss:$16 sps:$4 sm:$0xff]  }
 0x26d   : > { %13123 = vtanh.f32 %v1883_v24  ;;  %v1887_v46 = vadd.f32 %v1886_v59, %v15601_v17  ;;  %4120 = vmatmul.mubr.bf16.gmra.mrb[100].mxu1 %v15729_v4 }
 0x26e   : > { %v13114_v39 = vpop.eup %13113  ;;  %13125 = vtanh.f32 %v1885_v40  ;;  %4129 = vmatprep.mubr.bf16.mxu1 %v15758_v57  ;;  %4443 = vmatmul.mubr.bf16.gmra.mrb[248].mxu0 %v15280_v50 }
 0x26f   : > { %v13116_v62 = vpop.eup %13115  ;;  %13127 = vtanh.f32 %v1887_v46  ;;  %4452 = vmatprep.mubr.bf16.mxu0 %v15316_v52  ;;  %4982 = vmatpush1.bf16.msra.mxu1 %v14062_v63 }
 0x270   : > { %v13118_v35 = vpop.eup %13117  ;;  %4983 = vmatprep.subr.bf16.mxu1 %v14063_v9 }
 0x271   : > { %v13120_v61 = vpop.eup %13119  ;;  %v1890_v24 = vpop.f32.mrb[144].mxu0  ;;  %v15881_v30 = vpack.c.bf16 %v13118_v35, %v13114_v39  ;;  %v14065_v39 = vld [vmem:[%s18748_s2 + $0x84] ss:$16 sps:$4 sm:$0xff]  }
 0x272   : > { %v1891_v50 = vadd.f32 %v1890_v24, %v15592_v55  ;;  %v1892_v10 = vpop.f32.mrb[145].mxu0  ;;  %v15884_v40 = vpack.c.bf16 %v13120_v61, %v13116_v62  ;;  %v14066_v61 = vld [vmem:[%s18748_s2 + $0x80] ss:$16 sps:$4 sm:$0xff]  }
 0x273   : > { %v1893_v52 = vadd.f32 %v1892_v10, %v15601_v17  ;;  %v1894_v59 = vpop.f32.mrb[146].mxu0  ;;  %4984 = vmatpush1.bf16.msra.mxu1 %v14064_v32 }
 0x274   : > { %13129 = vtanh.f32 %v1891_v50  ;;  %v1895_v46 = vadd.f32 %v1894_v59, %v15592_v55  ;;  %v1896_v63 = vpop.f32.mrb[147].mxu0  ;;  %4985 = vmatprep.subr.bf16.mxu1 %v14065_v39  ;;  %v14067_v50 = vld [vmem:[%s18748_s2 + $0xa4] ss:$16 sps:$4 sm:$0xff]  }
 0x275   : > { %13131 = vtanh.f32 %v1893_v52  ;;  %v1897_v62 = vadd.f32 %v1896_v63, %v15601_v17  ;;  %4130 = vmatmul.mubr.bf16.gmra.mrb[104].mxu1 %v15755_v58 }
 0x276   : > { %v13122_v35 = vpop.eup %13121  ;;  %13133 = vtanh.f32 %v1895_v46  ;;  %4139 = vmatprep.mubr.bf16.mxu1 %v15782_v6  ;;  %4453 = vmatmul.mubr.bf16.gmra.mrb[252].mxu0 %v15312_v41 }
 0x277   : > { %v13124_v9 = vpop.eup %13123  ;;  %13135 = vtanh.f32 %v1897_v62  ;;  %4495 = vmatprep.mubr.bf16.mxu0 %v15348_v21  ;;  %4986 = vmatpush1.bf16.msra.mxu1 %v14066_v61  ;;  %v12369_v62 = vld [vmem:[%s18748_s2 + $0x408] ss:$16 sps:$4 sm:$0xff]   ;;  %v14068_v61 = vld [vmem:[%s18748_s2 + $0xa0] ss:$16 sps:$4 sm:$0xff]  }
 0x278   : > { %v13126_v24 = vpop.eup %13125  ;;  %4987 = vmatprep.subr.bf16.mxu1 %v14067_v50  ;;  %v14069_v50 = vld [vmem:[%s18748_s2 + $0xc4] ss:$16 sps:$4 sm:$0xff]  }
 0x279   : > { %v13128_v10 = vpop.eup %13127  ;;  %v1900_v52 = vpop.f32.mrb[148].mxu0  ;;  %v15905_v59 = vpack.c.bf16 %v13126_v24, %v13122_v35 }
 0x27a   : > { %v1901_v41 = vadd.f32 %v1900_v52, %v15592_v55  ;;  %v1902_v32 = vpop.f32.mrb[149].mxu0  ;;  %v15908_v46 = vpack.c.bf16 %v13128_v10, %v13124_v9  ;;  %v12374_v9 = vld [vmem:[%s18748_s2 + $0x42c] ss:$16 sps:$4 sm:$0xff]  }
 0x27b   : > { %v1903_v63 = vadd.f32 %v1902_v32, %v15601_v17  ;;  %v1904_v39 = vpop.f32.mrb[150].mxu0  ;;  %4988 = vmatpush1.bf16.msra.mxu1 %v14068_v61  ;;  %v12372_v32 = vld [vmem:[%s18748_s2 + $0x428] ss:$16 sps:$4 sm:$0xff]   ;;  %v14070_v61 = vld [vmem:[%s18748_s2 + $0xc0] ss:$16 sps:$4 sm:$0xff]  }
 0x27c   : > { %13137 = vtanh.f32 %v1901_v41  ;;  %v1905_v35 = vadd.f32 %v1904_v39, %v15592_v55  ;;  %v1906_v24 = vpop.f32.mrb[151].mxu0  ;;  %4989 = vmatprep.subr.bf16.mxu1 %v14069_v50  ;;  %v12377_v39 = vld [vmem:[%s18748_s2 + $0x44c] ss:$16 sps:$4 sm:$0xff]  }
 0x27d   : > { %13139 = vtanh.f32 %v1903_v63  ;;  %v1907_v10 = vadd.f32 %v1906_v24, %v15601_v17  ;;  %4140 = vmatmul.mubr.bf16.gmra.mrb[108].mxu1 %v15779_v13 }
 0x27e   : > { %v13130_v52 = vpop.eup %13129  ;;  %13141 = vtanh.f32 %v1905_v35  ;;  %4149 = vmatprep.mubr.bf16.mxu1 %v15794_v12  ;;  %4496 = vmatmul.mubr.bf16.vlgmr.msra.gmra.mrb[192].mxu0 %v15344_v60 }
 0x27f   : > { %v13132_v41 = vpop.eup %13131  ;;  %13143 = vtanh.f32 %v1907_v10  ;;  %4505 = vmatprep.mubr.bf16.mxu0 %v15392_v5  ;;  %4657 = vmatpush1.bf16.msra.mxu0 %v12369_v62  ;;  %v14071_v62 = vld [vmem:[%s18748_s2 + $0xe4] ss:$16 sps:$4 sm:$0xff]  }
 0x280   : > { %v13134_v63 = vpop.eup %13133  ;;  %4658 = vmatprep.subr.bf16.mxu0 %v12374_v9  ;;  %4990 = vmatpush1.bf16.msra.mxu1 %v14070_v61  ;;  %v12375_v61 = vld [vmem:[%s18748_s2 + $0x448] ss:$16 sps:$4 sm:$0xff]  }
 0x281   : > { %v13136_v60 = vpop.eup %13135  ;;  %v1910_v35 = vpop.f32.mrb[152].mxu0  ;;  %4991 = vmatprep.subr.bf16.mxu1 %v14071_v62  ;;  %v15941_v24 = vpack.c.bf16 %v13134_v63, %v13130_v52  ;;  %v12380_v52 = vld [vmem:[%s18748_s2 + $0x46c] ss:$16 sps:$4 sm:$0xff]   ;;  %v14075_v62 = vld [vmem:[%s18748_s2 + $0x124] ss:$16 sps:$4 sm:$0xff]  }
 0x282   : > { %v1911_v9 = vadd.f32 %v1910_v35, %v15592_v55  ;;  %v1912_v50 = vpop.f32.mrb[153].mxu0  ;;  %v15944_v10 = vpack.c.bf16 %v13136_v60, %v13132_v41  ;;  %v14072_v41 = vld [vmem:[%s18748_s2 + $0xe0] ss:$16 sps:$4 sm:$0xff]   ;;  %v12383_v60 = vld [vmem:[%s18748_s2 + $0x48c] ss:$16 sps:$4 sm:$0xff]  }
 0x283   : > { %v1913_v12 = vadd.f32 %v1912_v50, %v15601_v17  ;;  %v1914_v6 = vpop.f32.mrb[154].mxu0  ;;  %4659 = vmatpush1.bf16.msra.mxu0 %v12372_v32 }
 0x284   : > { %13145 = vtanh.f32 %v1911_v9  ;;  %v1915_v57 = vadd.f32 %v1914_v6, %v15592_v55  ;;  %v1916_v26 = vpop.f32.mrb[155].mxu0  ;;  %4660 = vmatprep.subr.bf16.mxu0 %v12377_v39  ;;  %4992 = vmatpush1.bf16.msra.mxu1 %v14072_v41  ;;  %v14073_v6 = vld [vmem:[%s18748_s2 + $0x104] ss:$16 sps:$4 sm:$0xff]  }
 0x285   : > { %13147 = vtanh.f32 %v1913_v12  ;;  %v1917_v32 = vadd.f32 %v1916_v26, %v15601_v17  ;;  %4150 = vmatmul.mubr.bf16.gmra.mrb[112].mxu1 %v15791_v56  ;;  %4993 = vmatprep.subr.bf16.mxu1 %v14073_v6  ;;  %v12378_v26 = vld [vmem:[%s18748_s2 + $0x468] ss:$16 sps:$4 sm:$0xff]   ;;  %v849_v6 = vld [vmem:[#allocation6 + $0x40] sm:$0xff] }
 0x286   : > { %v13138_v63 = vpop.eup %13137  ;;  %13149 = vtanh.f32 %v1915_v57  ;;  %4159 = vmatprep.mubr.bf16.mxu1 %v15806_v54  ;;  %4506 = vmatmul.mubr.bf16.gmra.mrb[196].mxu0 %v15388_v1  ;;  %v14074_v57 = vld [vmem:[%s18748_s2 + $0x100] ss:$16 sps:$4 sm:$0xff]  }
 0x287   : > { %v13140_v39 = vpop.eup %13139  ;;  %13151 = vtanh.f32 %v1917_v32  ;;  %4515 = vmatprep.mubr.bf16.mxu0 %v15436_v49  ;;  %4661 = vmatpush1.bf16.msra.mxu0 %v12375_v61 }
 0x288   : > { %v13142_v12 = vpop.eup %13141  ;;  %4662 = vmatprep.subr.bf16.mxu0 %v12380_v52  ;;  %4994 = vmatpush1.bf16.msra.mxu1 %v14074_v57  ;;  %v12381_v57 = vld [vmem:[%s18748_s2 + $0x488] ss:$16 sps:$4 sm:$0xff]  }
 0x289   : > { %v13144_v1 = vpop.eup %13143  ;;  %v1920_v35 = vpop.f32.mrb[156].mxu0  ;;  %4995 = vmatprep.subr.bf16.mxu1 %v14075_v62  ;;  %v15977_v9 = vpack.c.bf16 %v13142_v12, %v13138_v63  ;;  %v12386_v63 = vld [vmem:[%s18748_s2 + $0x4ac] ss:$16 sps:$4 sm:$0xff]  }
 0x28a   : > { %v1921_v50 = vadd.f32 %v1920_v35, %v15592_v55  ;;  %v1922_v61 = vpop.f32.mrb[157].mxu0  ;;  %v15980_v52 = vpack.c.bf16 %v13144_v1, %v13140_v39  ;;  %v14076_v39 = vld [vmem:[%s18748_s2 + $0x120] ss:$16 sps:$4 sm:$0xff]  }
 0x28b   : > { %v1923_v41 = vadd.f32 %v1922_v61, %v15601_v17  ;;  %v1924_v32 = vpop.f32.mrb[158].mxu0  ;;  %4663 = vmatpush1.bf16.msra.mxu0 %v12378_v26 }
 0x28c   : > { %13153 = vtanh.f32 %v1921_v50  ;;  %v1925_v54 = vadd.f32 %v1924_v32, %v15592_v55  ;;  %v1926_v62 = vpop.f32.mrb[159].mxu0  ;;  %4664 = vmatprep.subr.bf16.mxu0 %v12383_v60  ;;  %4996 = vmatpush1.bf16.msra.mxu1 %v14076_v39  ;;  %v14077_v55 = vld [vmem:[%s18748_s2 + $0x144] ss:$16 sps:$4 sm:$0xff]   ;;  %v16001_v60 = vrot.slane %v849_v6, %v14835_v47 }
 0x28d   : > { %13155 = vtanh.f32 %v1923_v41  ;;  %v1927_v26 = vadd.f32 %v1926_v62, %v15601_v17  ;;  %4160 = vmatmul.mubr.bf16.gmra.mrb[116].mxu1 %v15803_v34  ;;  %4997 = vmatprep.subr.bf16.mxu1 %v14077_v55  ;;  %v12384_v17 = vld [vmem:[%s18748_s2 + $0x4a8] ss:$16 sps:$4 sm:$0xff]   ;;  %v14079_v41 = vld [vmem:[%s18748_s2 + $0x164] ss:$16 sps:$4 sm:$0xff]  }
 0x28e   : > { %v13146_v12 = vpop.eup %13145  ;;  %13157 = vtanh.f32 %v1925_v54  ;;  %4169 = vmatprep.mubr.bf16.mxu1 %v15818_v53  ;;  %4516 = vmatmul.mubr.bf16.gmra.mrb[200].mxu0 %v15432_v27  ;;  %v12389_v54 = vld [vmem:[%s18748_s2 + $0x4cc] ss:$16 sps:$4 sm:$0xff]   ;;  %v14078_v27 = vld [vmem:[%s18748_s2 + $0x140] ss:$16 sps:$4 sm:$0xff]  }
 0x28f   : > { %v13148_v1 = vpop.eup %13147  ;;  %13159 = vtanh.f32 %v1927_v26  ;;  %4525 = vmatprep.mubr.bf16.mxu0 %v15480_v37  ;;  %4665 = vmatpush1.bf16.msra.mxu0 %v12381_v57  ;;  %v12387_v26 = vld [vmem:[%s18748_s2 + $0x4c8] ss:$16 sps:$4 sm:$0xff]  }
 0x290   : > { %v13150_v35 = vpop.eup %13149  ;;  %4666 = vmatprep.subr.bf16.mxu0 %v12386_v63  ;;  %4998 = vmatpush1.bf16.msra.mxu1 %v14078_v27 }
 0x291   : > { %v13152_v50 = vpop.eup %13151  ;;  %v10543_v61 = vpop.f32.mrb[160].mxu0  ;;  %4999 = vmatprep.subr.bf16.mxu1 %v14079_v41  ;;  %v16016_v32 = vpack.c.bf16 %v13150_v35, %v13146_v12  ;;  %v12392_v12 = vld [vmem:[%s18748_s2 + $0x4ec] ss:$16 sps:$4 sm:$0xff]   ;;  %v14081_v35 = vld [vmem:[%s18748_s2 + $0x184] ss:$16 sps:$4 sm:$0xff]  }
 0x292   : > { %v2165_v6 = vadd.f32 %v10543_v61, %v16001_v60  ;;  %v2156_v57 = vpop.f32.mrb[161].mxu0  ;;  %v16019_v62 = vpack.c.bf16 %v13152_v50, %v13148_v1  ;;  %v14080_v1 = vld [vmem:[%s18748_s2 + $0x160] ss:$16 sps:$4 sm:$0xff]   ;;  %v12390_v61 = vld [vmem:[%s18748_s2 + $0x4e8] ss:$16 sps:$4 sm:$0xff]  }
 0x293   : > { %v2157_v63 = vadd.f32 %v2156_v57, %v16001_v60  ;;  %v10544_v39 = vpop.f32.mrb[162].mxu0  ;;  %4667 = vmatpush1.bf16.msra.mxu0 %v12384_v17  ;;  %v14082_v57 = vld [vmem:[%s18748_s2 + $0x180] ss:$16 sps:$4 sm:$0xff]  }
 0x294   : > { %13161 = vtanh.f32 %v2165_v6  ;;  %v2168_v55 = vadd.f32 %v10544_v39, %v16001_v60  ;;  %v2159_v27 = vpop.f32.mrb[163].mxu0  ;;  %4668 = vmatprep.subr.bf16.mxu0 %v12389_v54  ;;  %5000 = vmatpush1.bf16.msra.mxu1 %v14080_v1  ;;  %v12395_v6 = vld [vmem:[%s18748_s2 + $0x50c] ss:$16 sps:$4 sm:$0xff]   ;;  %v14083_v39 = vld [vmem:[%s18748_s2 + $0x1a4] ss:$16 sps:$4 sm:$0xff]  }
 0x295   : > { %13163 = vtanh.f32 %v2157_v63  ;;  %v2160_v17 = vadd.f32 %v2159_v27, %v16001_v60  ;;  %4170 = vmatmul.mubr.bf16.gmra.mrb[120].mxu1 %v15815_v36  ;;  %5001 = vmatprep.subr.bf16.mxu1 %v14081_v35  ;;  %v12393_v35 = vld [vmem:[%s18748_s2 + $0x508] ss:$16 sps:$4 sm:$0xff]  }
 0x296   : > { %v13154_v54 = vpop.eup %13153  ;;  %13165 = vtanh.f32 %v2168_v55  ;;  %4179 = vmatprep.mubr.bf16.mxu1 %v15830_v3  ;;  %4526 = vmatmul.mubr.bf16.gmra.mrb[204].mxu0 %v15476_v51 }
 0x297   : > { %v13156_v50 = vpop.eup %13155  ;;  %13167 = vtanh.f32 %v2160_v17  ;;  %4535 = vmatprep.mubr.bf16.mxu0 %v15524_v11  ;;  %4669 = vmatpush1.bf16.msra.mxu0 %v12387_v26 }
 0x298   : > { %v13158_v41 = vpop.eup %13157  ;;  %4670 = vmatprep.subr.bf16.mxu0 %v12392_v12  ;;  %5002 = vmatpush1.bf16.msra.mxu1 %v14082_v57 }
 0x299   : > { %v13160_v51 = vpop.eup %13159  ;;  %v10547_v63 = vpop.f32.mrb[164].mxu0  ;;  %5003 = vmatprep.subr.bf16.mxu1 %v14083_v39  ;;  %v16052_v26 = vpack.c.bf16 %v13158_v41, %v13154_v54  ;;  %v12398_v54 = vld [vmem:[%s18748_s2 + $0x52c] ss:$16 sps:$4 sm:$0xff]   ;;  %v14085_v41 = vld [vmem:[%s18748_s2 + $0x1c4] ss:$16 sps:$4 sm:$0xff]  }
 0x29a   : > { %v2181_v55 = vadd.f32 %v10547_v63, %v16001_v60  ;;  %v2172_v27 = vpop.f32.mrb[165].mxu0  ;;  %v16055_v12 = vpack.c.bf16 %v13160_v51, %v13156_v50  ;;  %v14084_v50 = vld [vmem:[%s18748_s2 + $0x1a0] ss:$16 sps:$4 sm:$0xff]   ;;  %v12401_v39 = vld [vmem:[%s18748_s2 + $0x54c] ss:$16 sps:$4 sm:$0xff]  }
 0x29b   : > { %v2173_v1 = vadd.f32 %v2172_v27, %v16001_v60  ;;  %v10548_v17 = vpop.f32.mrb[166].mxu0  ;;  %4671 = vmatpush1.bf16.msra.mxu0 %v12390_v61 }
 0x29c   : > { %13169 = vtanh.f32 %v2181_v55  ;;  %v2184_v57 = vadd.f32 %v10548_v17, %v16001_v60  ;;  %v2175_v47 = vpop.f32.mrb[167].mxu0  ;;  %4672 = vmatprep.subr.bf16.mxu0 %v12395_v6  ;;  %5004 = vmatpush1.bf16.msra.mxu1 %v14084_v50  ;;  %v14086_v55 = vld [vmem:[%s18748_s2 + $0x1c0] ss:$16 sps:$4 sm:$0xff]  }
 0x29d   : > { %13171 = vtanh.f32 %v2173_v1  ;;  %v2176_v61 = vadd.f32 %v2175_v47, %v16001_v60  ;;  %4180 = vmatmul.mubr.bf16.gmra.mrb[124].mxu1 %v15827_v2  ;;  %5005 = vmatprep.subr.bf16.mxu1 %v14085_v41  ;;  %v12396_v47 = vld [vmem:[%s18748_s2 + $0x528] ss:$16 sps:$4 sm:$0xff]   ;;  %v14087_v1 = vld [vmem:[%s18748_s2 + $0x1e4] ss:$16 sps:$4 sm:$0xff]  }
 0x29e   : > { %v13162_v6 = vpop.eup %13161  ;;  %13173 = vtanh.f32 %v2184_v57  ;;  %4189 = vmatprep.mubr.bf16.mxu1 %v15842_v20  ;;  %4536 = vmatmul.mubr.bf16.gmra.mrb[208].mxu0 %v15520_v42  ;;  %v12399_v41 = vld [vmem:[%s18748_s2 + $0x548] ss:$16 sps:$4 sm:$0xff]  }
 0x29f   : > { %v13164_v51 = vpop.eup %13163  ;;  %13175 = vtanh.f32 %v2176_v61  ;;  %4545 = vmatprep.mubr.bf16.mxu0 %v15568_v22  ;;  %4673 = vmatpush1.bf16.msra.mxu0 %v12393_v35 }
 0x2a0   : > { %v13166_v63 = vpop.eup %13165  ;;  %4674 = vmatprep.subr.bf16.mxu0 %v12398_v54  ;;  %5006 = vmatpush1.bf16.msra.mxu1 %v14086_v55 }
 0x2a1   : > { %v13168_v42 = vpop.eup %13167  ;;  %v10551_v27 = vpop.f32.mrb[168].mxu0  ;;  %5007 = vmatprep.subr.bf16.mxu1 %v14087_v1  ;;  %v16088_v17 = vpack.c.bf16 %v13166_v63, %v13162_v6  ;;  %v12404_v6 = vld [vmem:[%s18748_s2 + $0x56c] ss:$16 sps:$4 sm:$0xff]   ;;  %v14089_v63 = vld [vmem:[%s18748_s2 + $0x204] ss:$16 sps:$4 sm:$0xff]  }
 0x2a2   : > { %v2197_v35 = vadd.f32 %v10551_v27, %v16001_v60  ;;  %v2188_v57 = vpop.f32.mrb[169].mxu0  ;;  %v16091_v54 = vpack.c.bf16 %v13168_v42, %v13164_v51  ;;  %v14088_v51 = vld [vmem:[%s18748_s2 + $0x1e0] ss:$16 sps:$4 sm:$0xff]   ;;  %v12407_v1 = vld [vmem:[%s18748_s2 + $0x58c] ss:$16 sps:$4 sm:$0xff]  }
 0x2a3   : > { %19035 = vst [vmem:[#allocation24_spill] sm:$0xff] %v16088_v17  ;;  %v2189_v50 = vadd.f32 %v2188_v57, %v16001_v60  ;;  %v10552_v61 = vpop.f32.mrb[170].mxu0  ;;  %4675 = vmatpush1.bf16.msra.mxu0 %v12396_v47 }
 0x2a4   : > { %19036 = vst [vmem:[#allocation30_spill] sm:$0xff] %v16091_v54  ;;  %13177 = vtanh.f32 %v2197_v35  ;;  %v2200_v55 = vadd.f32 %v10552_v61, %v16001_v60  ;;  %v2191_v20 = vpop.f32.mrb[171].mxu0  ;;  %4676 = vmatprep.subr.bf16.mxu0 %v12401_v39  ;;  %5008 = vmatpush1.bf16.msra.mxu1 %v14088_v51 }
 0x2a5   : > { %13179 = vtanh.f32 %v2189_v50  ;;  %v2192_v47 = vadd.f32 %v2191_v20, %v16001_v60  ;;  %4190 = vmatmul.mubr.bf16.gmra.mrb[128].mxu1 %v15839_v8  ;;  %5170 = vmatprep.subr.bf16.mxu1 %v14089_v63  ;;  %v12402_v20 = vld [vmem:[%s18748_s2 + $0x568] ss:$16 sps:$4 sm:$0xff]  }
 0x2a6   : > { %v13170_v39 = vpop.eup %13169  ;;  %13181 = vtanh.f32 %v2200_v55  ;;  %4199 = vmatprep.mubr.bf16.mxu1 %v15860_v45  ;;  %4546 = vmatmul.mubr.bf16.gmra.mrb[212].mxu0 %v15564_v19 }
 0x2a7   : > { %v13172_v42 = vpop.eup %13171  ;;  %13183 = vtanh.f32 %v2192_v47  ;;  %4555 = vmatprep.mubr.bf16.mxu0 %v15618_v28  ;;  %4677 = vmatpush1.bf16.msra.mxu0 %v12399_v41 }
 0x2a8   : > { %v13174_v27 = vpop.eup %13173  ;;  %4678 = vmatprep.subr.bf16.mxu0 %v12404_v6  ;;  %v12405_v6 = vld [vmem:[%s18748_s2 + $0x588] ss:$16 sps:$4 sm:$0xff]  }
 0x2a9   : > { %v13176_v35 = vpop.eup %13175  ;;  %v10555_v57 = vpop.f32.mrb[172].mxu0  ;;  %v16118_v50 = vpack.c.bf16 %v13174_v27, %v13170_v39  ;;  %v12410_v39 = vld [vmem:[%s18748_s2 + $0x5ac] ss:$16 sps:$4 sm:$0xff]  }
 0x2aa   : > { %v2213_v19 = vadd.f32 %v10555_v57, %v16001_v60  ;;  %v2204_v61 = vpop.f32.mrb[173].mxu0  ;;  %v16121_v55 = vpack.c.bf16 %v13176_v35, %v13172_v42  ;;  %v12413_v57 = vld [vmem:[%s18748_s2 + $0x5cc] ss:$16 sps:$4 sm:$0xff]  }
 0x2ab   : > { %19037 = vst [vmem:[#allocation29_spill] sm:$0xff] %v16118_v50  ;;  %v2205_v41 = vadd.f32 %v2204_v61, %v16001_v60  ;;  %v10556_v51 = vpop.f32.mrb[174].mxu0  ;;  %4679 = vmatpush1.bf16.msra.mxu0 %v12402_v20 }
 0x2ac   : > { %19038 = vst [vmem:[#allocation23_spill] sm:$0xff] %v16121_v55  ;;  %13185 = vtanh.f32 %v2213_v19  ;;  %v2216_v47 = vadd.f32 %v10556_v51, %v16001_v60  ;;  %v2207_v63 = vpop.f32.mrb[175].mxu0  ;;  %4680 = vmatprep.subr.bf16.mxu0 %v12407_v1  ;;  %v12408_v1 = vld [vmem:[%s18748_s2 + $0x5a8] ss:$16 sps:$4 sm:$0xff]  }
 0x2ad   : > { %13187 = vtanh.f32 %v2205_v41  ;;  %v2208_v42 = vadd.f32 %v2207_v63, %v16001_v60  ;;  %4200 = vmatmul.mubr.bf16.gmra.mrb[132].mxu1 %v15857_v15 }
 0x2ae   : > { %v13178_v27 = vpop.eup %13177  ;;  %13189 = vtanh.f32 %v2216_v47  ;;  %4209 = vmatprep.mubr.bf16.mxu1 %v15884_v40  ;;  %4556 = vmatmul.mubr.bf16.gmra.mrb[216].mxu0 %v15614_v29 }
 0x2af   : > { %v13180_v20 = vpop.eup %13179  ;;  %13191 = vtanh.f32 %v2208_v42  ;;  %4565 = vmatprep.mubr.bf16.mxu0 %v15662_v23  ;;  %4681 = vmatpush1.bf16.msra.mxu0 %v12405_v6 }
 0x2b0   : > { %v13182_v35 = vpop.eup %13181  ;;  %4682 = vmatprep.subr.bf16.mxu0 %v12410_v39  ;;  %v12411_v39 = vld [vmem:[%s18748_s2 + $0x5c8] ss:$16 sps:$4 sm:$0xff]  }
 0x2b1   : > { %v13184_v19 = vpop.eup %13183  ;;  %v10559_v61 = vpop.f32.mrb[176].mxu0  ;;  %v16142_v41 = vpack.c.bf16 %v13182_v35, %v13178_v27  ;;  %v12416_v27 = vld [vmem:[%s18748_s2 + $0x5ec] ss:$16 sps:$4 sm:$0xff]  }
 0x2b2   : > { %v2229_v29 = vadd.f32 %v10559_v61, %v16001_v60  ;;  %v2220_v51 = vpop.f32.mrb[177].mxu0  ;;  %v16145_v47 = vpack.c.bf16 %v13184_v19, %v13180_v20 }
 0x2b3   : > { %19039 = vst [vmem:[#allocation61_spill] sm:$0xff] %v16142_v41  ;;  %v2221_v6 = vadd.f32 %v2220_v51, %v16001_v60  ;;  %v10560_v63 = vpop.f32.mrb[178].mxu0  ;;  %4683 = vmatpush1.bf16.msra.mxu0 %v12408_v1 }
 0x2b4   : > { %19040 = vst [vmem:[#allocation62_spill] sm:$0xff] %v16145_v47  ;;  %13193 = vtanh.f32 %v2229_v29  ;;  %v2232_v42 = vadd.f32 %v10560_v63, %v16001_v60  ;;  %v2223_v50 = vpop.f32.mrb[179].mxu0  ;;  %4684 = vmatprep.subr.bf16.mxu0 %v12413_v57  ;;  %v12414_v57 = vld [vmem:[%s18748_s2 + $0x5e8] ss:$16 sps:$4 sm:$0xff]  }
 0x2b5   : > { %13195 = vtanh.f32 %v2221_v6  ;;  %v2224_v20 = vadd.f32 %v2223_v50, %v16001_v60  ;;  %4210 = vmatmul.mubr.bf16.gmra.mrb[136].mxu1 %v15881_v30 }
 0x2b6   : > { %v13186_v35 = vpop.eup %13185  ;;  %13197 = vtanh.f32 %v2232_v42  ;;  %4219 = vmatprep.mubr.bf16.mxu1 %v15908_v46  ;;  %4566 = vmatmul.mubr.bf16.gmra.mrb[220].mxu0 %v15658_v0 }
 0x2b7   : > { %v13188_v1 = vpop.eup %13187  ;;  %13199 = vtanh.f32 %v2224_v20  ;;  %4575 = vmatprep.mubr.bf16.mxu0 %v14939_v18  ;;  %4685 = vmatpush1.bf16.msra.mxu0 %v12411_v39 }
 0x2b8   : > { %v13190_v19 = vpop.eup %13189  ;;  %4686 = vmatprep.subr.bf16.mxu0 %v12416_v27  ;;  %v14090_v27 = vld [vmem:[%s18748_s2 + $0xc] ss:$16 sps:$4 sm:$0xff]  }
 0x2b9   : > { %v13192_v50 = vpop.eup %13191  ;;  %v10563_v61 = vpop.f32.mrb[180].mxu0  ;;  %v16163_v29 = vpack.c.bf16 %v13190_v19, %v13186_v35 }
 0x2ba   : > { %v2245_v51 = vadd.f32 %v10563_v61, %v16001_v60  ;;  %v2236_v6 = vpop.f32.mrb[181].mxu0  ;;  %v16166_v63 = vpack.c.bf16 %v13192_v50, %v13188_v1 }
 0x2bb   : > { %19041 = vst [vmem:[#allocation63_spill] sm:$0xff] %v16163_v29  ;;  %v2237_v0 = vadd.f32 %v2236_v6, %v16001_v60  ;;  %v10564_v42 = vpop.f32.mrb[182].mxu0  ;;  %4687 = vmatpush1.bf16.msra.mxu0 %v12414_v57 }
 0x2bc   : > { %19042 = vst [vmem:[#allocation64_spill] sm:$0xff] %v16166_v63  ;;  %13201 = vtanh.f32 %v2245_v51  ;;  %v2248_v39 = vadd.f32 %v10564_v42, %v16001_v60  ;;  %v2239_v20 = vpop.f32.mrb[183].mxu0  ;;  %5556 = vmatprep.subr.bf16.mxu0 %v14090_v27 }
 0x2bd   : > { %13203 = vtanh.f32 %v2237_v0  ;;  %v2240_v35 = vadd.f32 %v2239_v20, %v16001_v60  ;;  %4220 = vmatmul.mubr.bf16.gmra.mrb[140].mxu1 %v15905_v59 }
 0x2be   : > { %v13194_v1 = vpop.eup %13193  ;;  %13205 = vtanh.f32 %v2248_v39  ;;  %4229 = vmatprep.mubr.bf16.mxu1 %v15944_v10  ;;  %4576 = vmatmul.mubr.bf16.gmra.mrb[224].mxu0 %v14918_v48 }
 0x2bf   : > { %v13196_v57 = vpop.eup %13195  ;;  %13207 = vtanh.f32 %v2240_v35  ;;  %4585 = vmatprep.mubr.bf16.mxu0 %v14971_v14 }
 0x2c0   : > { %v13198_v19 = vpop.eup %13197 }
 0x2c1   : > { %v13200_v50 = vpop.eup %13199  ;;  %v10567_v61 = vpop.f32.mrb[184].mxu0  ;;  %v16178_v51 = vpack.c.bf16 %v13198_v19, %v13194_v1 }
 0x2c2   : > { %v2261_v6 = vadd.f32 %v10567_v61, %v16001_v60  ;;  %v2252_v0 = vpop.f32.mrb[185].mxu0  ;;  %v16181_v42 = vpack.c.bf16 %v13200_v50, %v13196_v57 }
 0x2c3   : > { %19043 = vst [vmem:[#allocation65_spill] sm:$0xff] %v16178_v51  ;;  %v2253_v39 = vadd.f32 %v2252_v0, %v16001_v60  ;;  %v10568_v20 = vpop.f32.mrb[186].mxu0 }
 0x2c4   : > { %19044 = vst [vmem:[#allocation66_spill] sm:$0xff] %v16181_v42  ;;  %13209 = vtanh.f32 %v2261_v6  ;;  %v2264_v48 = vadd.f32 %v10568_v20, %v16001_v60  ;;  %v2255_v27 = vpop.f32.mrb[187].mxu0 }
 0x2c5   : > { %13211 = vtanh.f32 %v2253_v39  ;;  %v2256_v35 = vadd.f32 %v2255_v27, %v16001_v60  ;;  %4230 = vmatmul.mubr.bf16.gmra.mrb[144].mxu1 %v15941_v24 }
 0x2c6   : > { %v13202_v29 = vpop.eup %13201  ;;  %13213 = vtanh.f32 %v2264_v48  ;;  %4239 = vmatprep.mubr.bf16.mxu1 %v15980_v52  ;;  %4586 = vmatmul.mubr.bf16.gmra.mrb[228].mxu0 %v14950_v38 }
 0x2c7   : > { %v13204_v1 = vpop.eup %13203  ;;  %13215 = vtanh.f32 %v2256_v35  ;;  %4595 = vmatprep.mubr.bf16.mxu0 %v15003_v25 }
 0x2c8   : > { %v13206_v57 = vpop.eup %13205 }
 0x2c9   : > { %v13208_v19 = vpop.eup %13207  ;;  %v10571_v50 = vpop.f32.mrb[188].mxu0  ;;  %v16190_v61 = vpack.c.bf16 %v13206_v57, %v13202_v29 }
 0x2ca   : > { %v2277_v6 = vadd.f32 %v10571_v50, %v16001_v60  ;;  %v2268_v0 = vpop.f32.mrb[189].mxu0  ;;  %v16193_v39 = vpack.c.bf16 %v13208_v19, %v13204_v1 }
 0x2cb   : > { %19045 = vst [vmem:[#allocation67_spill] sm:$0xff] %v16190_v61  ;;  %v2269_v20 = vadd.f32 %v2268_v0, %v16001_v60  ;;  %v10572_v48 = vpop.f32.mrb[190].mxu0  ;;  %v19049_v0 = vld [vmem:[#allocation15_spill] sm:$0xff] }
 0x2cc   : > { %19046 = vst [vmem:[#allocation68_spill] sm:$0xff] %v16193_v39  ;;  %13217 = vtanh.f32 %v2277_v6  ;;  %v2280_v38 = vadd.f32 %v10572_v48, %v16001_v60  ;;  %v2271_v27 = vpop.f32.mrb[191].mxu0 }
 0x2cd   : > { %13219 = vtanh.f32 %v2269_v20  ;;  %v2272_v35 = vadd.f32 %v2271_v27, %v16001_v60  ;;  %4240 = vmatmul.mubr.bf16.gmra.mrb[148].mxu1 %v15977_v9  ;;  %v19053_v27 = vld [vmem:[#allocation19_spill] sm:$0xff] }
 0x2ce   : > { %v13210_v51 = vpop.eup %13209  ;;  %13221 = vtanh.f32 %v2280_v38  ;;  %4249 = vmatprep.mubr.bf16.mxu1 %v16019_v62  ;;  %4596 = vmatmul.mubr.bf16.gmra.mrb[232].mxu0 %v19015_v33 }
 0x2cf   : > { %v13212_v29 = vpop.eup %13211  ;;  %13223 = vtanh.f32 %v2272_v35  ;;  %4605 = vmatprep.mubr.bf16.mxu0 %v19016_v7  ;;  %v19055_v35 = vld [vmem:[#allocation22_spill] sm:$0xff] }
 0x2d0   : > { %v13214_v1 = vpop.eup %13213 }
 0x2d1   : > { %v13216_v57 = vpop.eup %13215  ;;  %v16202_v19 = vpack.c.bf16 %v13214_v1, %v13210_v51  ;;  %v19052_v51 = vld [vmem:[#allocation14_spill] sm:$0xff] }
 0x2d2   : > { %v16204_v50 = vpack.c.bf16 %v13216_v57, %v13212_v29  ;;  %v14091_v29 = vld [vmem:[%s18748_s2 + $0x200] ss:$16 sps:$4 sm:$0xff]   ;;  %v14092_v1 = vld [vmem:[%s18748_s2 + $0x224] ss:$16 sps:$4 sm:$0xff]  }
 0x2d3   : > { %19047 = vst [vmem:[#allocation69_spill] sm:$0xff] %v16202_v19  ;;  %v14093_v57 = vld [vmem:[%s18748_s2 + $0x220] ss:$16 sps:$4 sm:$0xff]  }
 0x2d4   : > { %19048 = vst [vmem:[#allocation70_spill] sm:$0xff] %v16204_v50  ;;  %v14151_v19 = vld [vmem:[#allocation6] sm:$0xff] }
 0x2d5   : > { %4250 = vmatmul.mubr.bf16.gmra.mrb[152].mxu1 %v16016_v32 }
 0x2d6   : > { %v13218_v60 = vpop.eup %13217  ;;  %4259 = vmatprep.mubr.bf16.mxu1 %v16055_v12  ;;  %4606 = vmatmul.mubr.bf16.gmra.mrb[236].mxu0 %v19019_v16  ;;  %v19054_v16 = vld [vmem:[#allocation16_spill] sm:$0xff] }
 0x2d7   : > { %v13220_v6 = vpop.eup %13219  ;;  %4615 = vmatprep.mubr.bf16.mxu0 %v19049_v0 }
 0x2d8   : > { %v13222_v33 = vpop.eup %13221 }
 0x2d9   : > { %v13224_v20 = vpop.eup %13223  ;;  %v16210_v48 = vpack.c.bf16 %v13222_v33, %v13218_v60  ;;  %v14094_v60 = vld [vmem:[%s18748_s2 + $0x244] ss:$16 sps:$4 sm:$0xff]   ;;  %v19057_v33 = vld [vmem:[#allocation25_spill] sm:$0xff] }
 0x2da   : > { %v16212_v38 = vpack.c.bf16 %v13224_v20, %v13220_v6  ;;  %v19056_v6 = vld [vmem:[#allocation20_spill] sm:$0xff] }
 0x2db   : > { %19050 = vst [vmem:[#allocation71_spill] sm:$0xff] %v16210_v48  ;;  %v14095_v20 = vld [vmem:[%s18748_s2 + $0x240] ss:$16 sps:$4 sm:$0xff]   ;;  %v14139_v48 = vld [vmem:[%s18748_s2 + $0x128] ss:$16 sps:$4 sm:$0xff]  }
 0x2dc   : > { %19051 = vst [vmem:[#allocation72_spill] sm:$0xff] %v16212_v38  ;;  %v14150_v38 = vld [vmem:[%s18748_s2 + $0x1cc] ss:$16 sps:$4 sm:$0xff]  }
 0x2dd   : > { %4260 = vmatmul.mubr.bf16.gmra.mrb[156].mxu1 %v16052_v26 }
 0x2de   : > { %4616 = vmatmul.mubr.bf16.gmra.mrb[240].mxu0 %v19052_v51  ;;  %5009 = vmatprep.mubr.bf16.mxu1 %v15698_v31  ;;  %v14096_v51 = vld [vmem:[%s18748_s2 + $0x264] ss:$16 sps:$4 sm:$0xff]  }
 0x2df   : > { %4625 = vmatprep.mubr.bf16.mxu0 %v19053_v27 }
 0x2e5   : > { %5010 = vmatmul.mubr.bf16.vlgmr.msra.gmra.mrb[160].mxu1 %v15348_v21 }
 0x2e6   : > { %4626 = vmatmul.mubr.bf16.gmra.mrb[244].mxu0 %v19054_v16  ;;  %5019 = vmatprep.mubr.bf16.mxu1 %v15729_v4  ;;  %v14097_v16 = vld [vmem:[%s18748_s2 + $0x260] ss:$16 sps:$4 sm:$0xff]  }
 0x2e7   : > { %4635 = vmatprep.mubr.bf16.mxu0 %v19055_v35  ;;  %5171 = vmatpush1.bf16.msra.mxu1 %v14091_v29  ;;  %v14098_v29 = vld [vmem:[%s18748_s2 + $0x284] ss:$16 sps:$4 sm:$0xff]  }
 0x2e8   : > { %5172 = vmatprep.subr.bf16.mxu1 %v14092_v1  ;;  %v14099_v1 = vld [vmem:[%s18748_s2 + $0x280] ss:$16 sps:$4 sm:$0xff]  }
 0x2eb   : > { %5173 = vmatpush1.bf16.msra.mxu1 %v14093_v57  ;;  %v14100_v57 = vld [vmem:[%s18748_s2 + $0x2a4] ss:$16 sps:$4 sm:$0xff]  }
 0x2ec   : > { %5174 = vmatprep.subr.bf16.mxu1 %v14094_v60  ;;  %v14101_v60 = vld [vmem:[%s18748_s2 + $0x2a0] ss:$16 sps:$4 sm:$0xff]  }
 0x2ed   : > { %5020 = vmatmul.mubr.bf16.gmra.mrb[164].mxu1 %v15392_v5 }
 0x2ee   : > { %4636 = vmatmul.mubr.bf16.gmra.mrb[248].mxu0 %v19056_v6  ;;  %5029 = vmatprep.mubr.bf16.mxu1 %v15755_v58  ;;  %v19058_v6 = vld [vmem:[#allocation59_spill] sm:$0xff] }
 0x2ef   : > { %4645 = vmatprep.mubr.bf16.mxu0 %v19057_v33  ;;  %5175 = vmatpush1.bf16.msra.mxu1 %v14095_v20  ;;  %v14103_v20 = vld [vmem:[%s18748_s2 + $0x8] ss:$16 sps:$4 sm:$0xff]  }
 0x2f0   : > { %5176 = vmatprep.subr.bf16.mxu1 %v14096_v51  ;;  %v14104_v51 = vld [vmem:[%s18748_s2 + $0x2c] ss:$16 sps:$4 sm:$0xff]  }
 0x2f3   : > { %5177 = vmatpush1.bf16.msra.mxu1 %v14097_v16  ;;  %v14105_v16 = vld [vmem:[%s18748_s2 + $0x2c0] ss:$16 sps:$4 sm:$0xff]  }
 0x2f4   : > { %5178 = vmatprep.subr.bf16.mxu1 %v14098_v29  ;;  %v14106_v29 = vld [vmem:[%s18748_s2 + $0x2e4] ss:$16 sps:$4 sm:$0xff]  }
 0x2f5   : > { %5030 = vmatmul.mubr.bf16.gmra.mrb[168].mxu1 %v15436_v49 }
 0x2f6   : > { %4646 = vmatmul.mubr.bf16.gmra.mrb[252].mxu0 %v19033_v43  ;;  %5039 = vmatprep.mubr.bf16.mxu1 %v15779_v13  ;;  %v14102_v43 = vld [vmem:[%s18748_s2 + $0x2c4] ss:$16 sps:$4 sm:$0xff]  }
 0x2f7   : > { %4688 = vmatprep.mubr.bf16.mxu0 %v15701_v44  ;;  %5179 = vmatpush1.bf16.msra.mxu1 %v14099_v1  ;;  %v14107_v1 = vld [vmem:[%s18748_s2 + $0x28] ss:$16 sps:$4 sm:$0xff]  }
 0x2f8   : > { %5180 = vmatprep.subr.bf16.mxu1 %v14100_v57  ;;  %v14108_v57 = vld [vmem:[%s18748_s2 + $0x4c] ss:$16 sps:$4 sm:$0xff]  }
 0x2fb   : > { %5181 = vmatpush1.bf16.msra.mxu1 %v14101_v60  ;;  %v14109_v60 = vld [vmem:[%s18748_s2 + $0x2e0] ss:$16 sps:$4 sm:$0xff]  }
 0x2fc   : > { %5182 = vmatprep.subr.bf16.mxu1 %v14102_v43  ;;  %v14110_v43 = vld [vmem:[%s18748_s2 + $0x304] ss:$16 sps:$4 sm:$0xff]  }
 0x2fd   : > { %5040 = vmatmul.mubr.bf16.gmra.mrb[172].mxu1 %v15480_v37 }
 0x2fe   : > { %4689 = vmatmul.mubr.bf16.vlgmr.msra.gmra.mrb[192].mxu0 %v15698_v31  ;;  %5049 = vmatprep.mubr.bf16.mxu1 %v15791_v56 }
 0x2ff   : > { %4698 = vmatprep.mubr.bf16.mxu0 %v19058_v6  ;;  %5557 = vmatpush1.bf16.msra.mxu0 %v14103_v20  ;;  %v19059_v20 = vld [vmem:[#allocation18_spill] sm:$0xff] }
 0x300   : > { %5558 = vmatprep.subr.bf16.mxu0 %v14104_v51  ;;  %5183 = vmatpush1.bf16.msra.mxu1 %v14105_v16  ;;  %v14111_v51 = vld [vmem:[%s18748_s2 + $0x48] ss:$16 sps:$4 sm:$0xff]   ;;  %v14112_v16 = vld [vmem:[%s18748_s2 + $0x6c] ss:$16 sps:$4 sm:$0xff]  }
 0x301   : > { %5184 = vmatprep.subr.bf16.mxu1 %v14106_v29  ;;  %v14113_v29 = vld [vmem:[%s18748_s2 + $0x300] ss:$16 sps:$4 sm:$0xff]  }
 0x303   : > { %5559 = vmatpush1.bf16.msra.mxu0 %v14107_v1  ;;  %v14114_v1 = vld [vmem:[%s18748_s2 + $0x324] ss:$16 sps:$4 sm:$0xff]  }
 0x304   : > { %5560 = vmatprep.subr.bf16.mxu0 %v14108_v57  ;;  %5185 = vmatpush1.bf16.msra.mxu1 %v14109_v60  ;;  %v14115_v57 = vld [vmem:[%s18748_s2 + $0x68] ss:$16 sps:$4 sm:$0xff]   ;;  %v14116_v60 = vld [vmem:[%s18748_s2 + $0x8c] ss:$16 sps:$4 sm:$0xff]  }
 0x305   : > { %5050 = vmatmul.mubr.bf16.gmra.mrb[176].mxu1 %v15524_v11  ;;  %5186 = vmatprep.subr.bf16.mxu1 %v14110_v43  ;;  %v14117_v43 = vld [vmem:[%s18748_s2 + $0x320] ss:$16 sps:$4 sm:$0xff]  }
 0x306   : > { %4699 = vmatmul.mubr.bf16.gmra.mrb[196].mxu0 %v15729_v4  ;;  %5059 = vmatprep.mubr.bf16.mxu1 %v15803_v34 }
 0x307   : > { %4708 = vmatprep.mubr.bf16.mxu0 %v19059_v20  ;;  %5561 = vmatpush1.bf16.msra.mxu0 %v14111_v51  ;;  %v14118_v51 = vld [vmem:[%s18748_s2 + $0x344] ss:$16 sps:$4 sm:$0xff]  }
 0x308   : > { %5562 = vmatprep.subr.bf16.mxu0 %v14112_v16  ;;  %5187 = vmatpush1.bf16.msra.mxu1 %v14113_v29  ;;  %v19060_v16 = vld [vmem:[#allocation11_spill] sm:$0xff] }
 0x309   : > { %5188 = vmatprep.subr.bf16.mxu1 %v14114_v1  ;;  %v14119_v29 = vld [vmem:[%s18748_s2 + $0x88] ss:$16 sps:$4 sm:$0xff]   ;;  %v14120_v1 = vld [vmem:[%s18748_s2 + $0xac] ss:$16 sps:$4 sm:$0xff]  }
 0x30b   : > { %5563 = vmatpush1.bf16.msra.mxu0 %v14115_v57  ;;  %v14121_v57 = vld [vmem:[%s18748_s2 + $0x340] ss:$16 sps:$4 sm:$0xff]  }
 0x30c   : > { %5564 = vmatprep.subr.bf16.mxu0 %v14116_v60  ;;  %5189 = vmatpush1.bf16.msra.mxu1 %v14117_v43  ;;  %v14122_v60 = vld [vmem:[%s18748_s2 + $0x364] ss:$16 sps:$4 sm:$0xff]   ;;  %v14123_v43 = vld [vmem:[%s18748_s2 + $0xa8] ss:$16 sps:$4 sm:$0xff]  }
 0x30d   : > { %5060 = vmatmul.mubr.bf16.gmra.mrb[180].mxu1 %v15568_v22  ;;  %5190 = vmatprep.subr.bf16.mxu1 %v14118_v51  ;;  %v14124_v51 = vld [vmem:[%s18748_s2 + $0xcc] ss:$16 sps:$4 sm:$0xff]  }
 0x30e   : > { %4709 = vmatmul.mubr.bf16.gmra.mrb[200].mxu0 %v15755_v58  ;;  %5069 = vmatprep.mubr.bf16.mxu1 %v15815_v36 }
 0x30f   : > { %4718 = vmatprep.mubr.bf16.mxu0 %v19060_v16  ;;  %5565 = vmatpush1.bf16.msra.mxu0 %v14119_v29  ;;  %v14125_v29 = vld [vmem:[%s18748_s2 + $0x360] ss:$16 sps:$4 sm:$0xff]  }
 0x310   : > { %5566 = vmatprep.subr.bf16.mxu0 %v14120_v1  ;;  %5191 = vmatpush1.bf16.msra.mxu1 %v14121_v57  ;;  %v14126_v1 = vld [vmem:[%s18748_s2 + $0x384] ss:$16 sps:$4 sm:$0xff]   ;;  %v19061_v57 = vld [vmem:[#allocation17_spill] sm:$0xff] }
 0x311   : > { %5192 = vmatprep.subr.bf16.mxu1 %v14122_v60  ;;  %v14127_v60 = vld [vmem:[%s18748_s2 + $0xc8] ss:$16 sps:$4 sm:$0xff]  }
 0x313   : > { %5567 = vmatpush1.bf16.msra.mxu0 %v14123_v43  ;;  %v14128_v43 = vld [vmem:[%s18748_s2 + $0xec] ss:$16 sps:$4 sm:$0xff]  }
 0x314   : > { %5568 = vmatprep.subr.bf16.mxu0 %v14124_v51  ;;  %5193 = vmatpush1.bf16.msra.mxu1 %v14125_v29  ;;  %v14129_v51 = vld [vmem:[%s18748_s2 + $0x380] ss:$16 sps:$4 sm:$0xff]   ;;  %v14130_v29 = vld [vmem:[%s18748_s2 + $0x3a4] ss:$16 sps:$4 sm:$0xff]  }
 0x315   : > { %5070 = vmatmul.mubr.bf16.gmra.mrb[184].mxu1 %v15618_v28  ;;  %5194 = vmatprep.subr.bf16.mxu1 %v14126_v1  ;;  %v14131_v1 = vld [vmem:[%s18748_s2 + $0xe8] ss:$16 sps:$4 sm:$0xff]  }
 0x316   : > { %4719 = vmatmul.mubr.bf16.gmra.mrb[204].mxu0 %v15779_v13  ;;  %5079 = vmatprep.mubr.bf16.mxu1 %v15827_v2 }
 0x317   : > { %4728 = vmatprep.mubr.bf16.mxu0 %v19061_v57  ;;  %5569 = vmatpush1.bf16.msra.mxu0 %v14127_v60  ;;  %v14132_v60 = vld [vmem:[%s18748_s2 + $0x10c] ss:$16 sps:$4 sm:$0xff]  }
 0x318   : > { %5570 = vmatprep.subr.bf16.mxu0 %v14128_v43  ;;  %5195 = vmatpush1.bf16.msra.mxu1 %v14129_v51  ;;  %v14133_v43 = vld [vmem:[%s18748_s2 + $0x3a0] ss:$16 sps:$4 sm:$0xff]   ;;  %v14134_v51 = vld [vmem:[%s18748_s2 + $0x3c4] ss:$16 sps:$4 sm:$0xff]  }
 0x319   : > { %5196 = vmatprep.subr.bf16.mxu1 %v14130_v29  ;;  %v19062_v29 = vld [vmem:[#allocation12_spill] sm:$0xff] }
 0x31b   : > { %5571 = vmatpush1.bf16.msra.mxu0 %v14131_v1  ;;  %v14135_v1 = vld [vmem:[%s18748_s2 + $0x108] ss:$16 sps:$4 sm:$0xff]  }
 0x31c   : > { %5572 = vmatprep.subr.bf16.mxu0 %v14132_v60  ;;  %5197 = vmatpush1.bf16.msra.mxu1 %v14133_v43  ;;  %v14136_v60 = vld [vmem:[%s18748_s2 + $0x12c] ss:$16 sps:$4 sm:$0xff]   ;;  %v14137_v43 = vld [vmem:[%s18748_s2 + $0x3c0] ss:$16 sps:$4 sm:$0xff]  }
 0x31d   : > { %5080 = vmatmul.mubr.bf16.gmra.mrb[188].mxu1 %v15662_v23  ;;  %5198 = vmatprep.subr.bf16.mxu1 %v14134_v51  ;;  %v14138_v51 = vld [vmem:[%s18748_s2 + $0x3e4] ss:$16 sps:$4 sm:$0xff]  }
 0x31e   : > { %4729 = vmatmul.mubr.bf16.gmra.mrb[208].mxu0 %v15791_v56  ;;  %5089 = vmatprep.mubr.bf16.mxu1 %v15839_v8 }
 0x31f   : > { %4738 = vmatprep.mubr.bf16.mxu0 %v19062_v29  ;;  %5573 = vmatpush1.bf16.msra.mxu0 %v14135_v1  ;;  %v14140_v1 = vld [vmem:[%s18748_s2 + $0x14c] ss:$16 sps:$4 sm:$0xff]  }
 0x320   : > { %5574 = vmatprep.subr.bf16.mxu0 %v14136_v60  ;;  %5199 = vmatpush1.bf16.msra.mxu1 %v14137_v43  ;;  %v14141_v60 = vld [vmem:[%s18748_s2 + $0x3e0] ss:$16 sps:$4 sm:$0xff]   ;;  %v14142_v43 = vld [vmem:[%s18748_s2 + $0x404] ss:$16 sps:$4 sm:$0xff]  }
 0x321   : > { %5200 = vmatprep.subr.bf16.mxu1 %v14138_v51  ;;  %v14144_v51 = vld [vmem:[%s18748_s2 + $0x16c] ss:$16 sps:$4 sm:$0xff]  }
 0x323   : > { %5575 = vmatpush1.bf16.msra.mxu0 %v14139_v48  ;;  %v14143_v48 = vld [vmem:[%s18748_s2 + $0x148] ss:$16 sps:$4 sm:$0xff]  }
 0x324   : > { %5576 = vmatprep.subr.bf16.mxu0 %v14140_v1  ;;  %5201 = vmatpush1.bf16.msra.mxu1 %v14141_v60  ;;  %v14145_v1 = vld [vmem:[%s18748_s2 + $0x168] ss:$16 sps:$4 sm:$0xff]   ;;  %v14146_v60 = vld [vmem:[%s18748_s2 + $0x18c] ss:$16 sps:$4 sm:$0xff]  }
 0x325   : > { %5090 = vmatmul.mubr.bf16.gmra.mrb[192].mxu1 %v14939_v18  ;;  %5363 = vmatprep.subr.bf16.mxu1 %v14142_v43  ;;  %v14147_v43 = vld [vmem:[%s18748_s2 + $0x188] ss:$16 sps:$4 sm:$0xff]  }
 0x326   : > { %4739 = vmatmul.mubr.bf16.gmra.mrb[212].mxu0 %v15803_v34  ;;  %5099 = vmatprep.mubr.bf16.mxu1 %v15857_v15 }
 0x327   : > { %4748 = vmatprep.mubr.bf16.mxu0 %v15818_v53  ;;  %5577 = vmatpush1.bf16.msra.mxu0 %v14143_v48  ;;  %v14148_v48 = vld [vmem:[%s18748_s2 + $0x1ac] ss:$16 sps:$4 sm:$0xff]  }
 0x328   : > { %5578 = vmatprep.subr.bf16.mxu0 %v14144_v51  ;;  %v19063_v51 = vld [vmem:[#allocation9_spill] sm:$0xff] }
 0x32b   : > { %5579 = vmatpush1.bf16.msra.mxu0 %v14145_v1  ;;  %v16433_v1 = vsub.s32 1, %v19063_v51 }
 0x32c   : > { %5580 = vmatprep.subr.bf16.mxu0 %v14146_v60  ;;  %v14149_v60 = vld [vmem:[%s18748_s2 + $0x1a8] ss:$16 sps:$4 sm:$0xff]  }
 0x32d   : > { %5100 = vmatmul.mubr.bf16.gmra.mrb[196].mxu1 %v14971_v14  ;;  %19064 = vst [vmem:[#allocation14_spill] sm:$0xff] %v16433_v1 }
 0x32e   : > { %4749 = vmatmul.mubr.bf16.gmra.mrb[216].mxu0 %v15815_v36  ;;  %5109 = vmatprep.mubr.bf16.mxu1 %v15881_v30 }
 0x32f   : > { %4758 = vmatprep.mubr.bf16.mxu0 %v15830_v3  ;;  %5581 = vmatpush1.bf16.msra.mxu0 %v14147_v43  ;;  %v16442_v43 = vrot.slane %v14151_v19, %v16433_v1  ;;  %v14154_v19 = vld [vmem:[%s18748_s2 + $0x1ec] ss:$16 sps:$4 sm:$0xff]  }
 0x330   : > { %5582 = vmatprep.subr.bf16.mxu0 %v14148_v48  ;;  %v14152_v48 = vld [vmem:[#allocation6 + $0x8] sm:$0xff] }
 0x331   : > { %v16446_v51 = vrot.slane %v14152_v48, %v16433_v1 }
 0x333   : > { %5583 = vmatpush1.bf16.msra.mxu0 %v14149_v60  ;;  %v19065_v60 = vld [vmem:[#allocation21_spill] sm:$0xff] }
 0x334   : > { %5584 = vmatprep.subr.bf16.mxu0 %v14150_v38  ;;  %v14153_v38 = vld [vmem:[%s18748_s2 + $0x1c8] ss:$16 sps:$4 sm:$0xff]  }
 0x335   : > { %5110 = vmatmul.mubr.bf16.gmra.mrb[200].mxu1 %v15003_v25 }
 0x336   : > { %4759 = vmatmul.mubr.bf16.gmra.mrb[220].mxu0 %v15827_v2  ;;  %5119 = vmatprep.mubr.bf16.mxu1 %v15905_v59 }
 0x337   : > { %4768 = vmatprep.mubr.bf16.mxu0 %v19065_v60  ;;  %5585 = vmatpush1.bf16.msra.mxu0 %v14153_v38  ;;  %v14155_v38 = vld [vmem:[%s18748_s2 + $0x1e8] ss:$16 sps:$4 sm:$0xff]  }
 0x338   : > { %v4111_v50 = vpop.f32.mrb[96].mxu1  ;;  %5586 = vmatprep.subr.bf16.mxu0 %v14154_v19 }
 0x339   : > { %v10733_v48 = vadd.f32 %v4111_v50, %v16442_v43  ;;  %v4113_v61 = vpop.f32.mrb[97].mxu1  ;;  %v14156_v50 = vld [vmem:[%s18748_s2 + $0x20c] ss:$16 sps:$4 sm:$0xff]  }
 0x33a   : > { %v10734_v39 = vadd.f32 %v4113_v61, %v16446_v51  ;;  %v4115_v42 = vpop.f32.mrb[98].mxu1 }
 0x33b   : > { %13225 = vtanh.f32 %v10733_v48  ;;  %v10735_v63 = vadd.f32 %v4115_v42, %v16442_v43  ;;  %v4117_v41 = vpop.f32.mrb[99].mxu1  ;;  %5587 = vmatpush1.bf16.msra.mxu0 %v14155_v38 }
 0x33c   : > { %13227 = vtanh.f32 %v10734_v39  ;;  %v10736_v47 = vadd.f32 %v4117_v41, %v16446_v51  ;;  %5749 = vmatprep.subr.bf16.mxu0 %v14156_v50 }
 0x33d   : > { %13229 = vtanh.f32 %v10735_v63  ;;  %5120 = vmatmul.mubr.bf16.gmra.mrb[204].mxu1 %v19016_v7 }
 0x33e   : > { %13231 = vtanh.f32 %v10736_v47  ;;  %4769 = vmatmul.mubr.bf16.gmra.mrb[224].mxu0 %v15839_v8  ;;  %5129 = vmatprep.mubr.bf16.mxu1 %v15941_v24 }
 0x33f   : > { %4778 = vmatprep.mubr.bf16.mxu0 %v15860_v45 }
 0x340   : > { %v4121_v42 = vpop.f32.mrb[100].mxu1 }
 0x341   : > { %v10737_v61 = vadd.f32 %v4121_v42, %v16442_v43  ;;  %v4123_v39 = vpop.f32.mrb[101].mxu1 }
 0x342   : > { %v10738_v41 = vadd.f32 %v4123_v39, %v16446_v51  ;;  %v4125_v19 = vpop.f32.mrb[102].mxu1 }
 0x343   : > { %13233 = vtanh.f32 %v10737_v61  ;;  %v10739_v48 = vadd.f32 %v4125_v19, %v16442_v43  ;;  %v4127_v63 = vpop.f32.mrb[103].mxu1 }
 0x344   : > { %13235 = vtanh.f32 %v10738_v41  ;;  %v10740_v47 = vadd.f32 %v4127_v63, %v16446_v51 }
 0x345   : > { %v16475_v38 = vpop.eup %13225  ;;  %13237 = vtanh.f32 %v10739_v48  ;;  %5130 = vmatmul.mubr.bf16.gmra.mrb[208].mxu1 %v19049_v0 }
 0x346   : > { %19066 = vst [vmem:[#allocation19_spill] sm:$0xff] %v16475_v38  ;;  %v16478_v50 = vpop.eup %13227  ;;  %13239 = vtanh.f32 %v10740_v47  ;;  %4779 = vmatmul.mubr.bf16.gmra.mrb[228].mxu0 %v15857_v15  ;;  %5139 = vmatprep.mubr.bf16.mxu1 %v15977_v9 }
 0x347   : > { %19067 = vst [vmem:[#allocation16_spill] sm:$0xff] %v16478_v50  ;;  %v16482_v42 = vpop.eup %13229  ;;  %4788 = vmatprep.mubr.bf16.mxu0 %v15884_v40 }
 0x348   : > { %19068 = vst [vmem:[#allocation22_spill] sm:$0xff] %v16482_v42  ;;  %v16485_v61 = vpop.eup %13231  ;;  %v4131_v39 = vpop.f32.mrb[104].mxu1 }
 0x349   : > { %19069 = vst [vmem:[#allocation20_spill] sm:$0xff] %v16485_v61  ;;  %v10741_v19 = vadd.f32 %v4131_v39, %v16442_v43  ;;  %v4133_v48 = vpop.f32.mrb[105].mxu1 }
 0x34a   : > { %v10742_v47 = vadd.f32 %v4133_v48, %v16446_v51  ;;  %v4135_v55 = vpop.f32.mrb[106].mxu1 }
 0x34b   : > { %13241 = vtanh.f32 %v10741_v19  ;;  %v10743_v17 = vadd.f32 %v4135_v55, %v16442_v43  ;;  %v4137_v0 = vpop.f32.mrb[107].mxu1 }
 0x34c   : > { %13243 = vtanh.f32 %v10742_v47  ;;  %v10744_v54 = vadd.f32 %v4137_v0, %v16446_v51 }
 0x34d   : > { %v16495_v7 = vpop.eup %13233  ;;  %13245 = vtanh.f32 %v10743_v17  ;;  %5140 = vmatmul.mubr.bf16.gmra.mrb[212].mxu1 %v19053_v27 }
 0x34e   : > { %19070 = vst [vmem:[#allocation25_spill] sm:$0xff] %v16495_v7  ;;  %v16498_v39 = vpop.eup %13235  ;;  %13247 = vtanh.f32 %v10744_v54  ;;  %4789 = vmatmul.mubr.bf16.gmra.mrb[232].mxu0 %v15881_v30  ;;  %5149 = vmatprep.mubr.bf16.mxu1 %v16016_v32 }
 0x34f   : > { %19071 = vst [vmem:[#allocation59_spill] sm:$0xff] %v16498_v39  ;;  %v16502_v48 = vpop.eup %13237  ;;  %4798 = vmatprep.mubr.bf16.mxu0 %v15908_v46 }
 0x350   : > { %19072 = vst [vmem:[#allocation18_spill] sm:$0xff] %v16502_v48  ;;  %v16505_v55 = vpop.eup %13239  ;;  %v4141_v19 = vpop.f32.mrb[108].mxu1 }
 0x351   : > { %19073 = vst [vmem:[#allocation11_spill] sm:$0xff] %v16505_v55  ;;  %v10745_v17 = vadd.f32 %v4141_v19, %v16442_v43  ;;  %v4143_v47 = vpop.f32.mrb[109].mxu1 }
 0x352   : > { %v10746_v41 = vadd.f32 %v4143_v47, %v16446_v51  ;;  %v4145_v63 = vpop.f32.mrb[110].mxu1 }
 0x353   : > { %13249 = vtanh.f32 %v10745_v17  ;;  %v10747_v38 = vadd.f32 %v4145_v63, %v16442_v43  ;;  %v4147_v42 = vpop.f32.mrb[111].mxu1 }
 0x354   : > { %13251 = vtanh.f32 %v10746_v41  ;;  %v10748_v50 = vadd.f32 %v4147_v42, %v16446_v51  ;;  %v19080_v42 = vld [vmem:[#allocation26_spill] sm:$0xff] }
 0x355   : > { %v16515_v61 = vpop.eup %13241  ;;  %13253 = vtanh.f32 %v10747_v38  ;;  %5150 = vmatmul.mubr.bf16.gmra.mrb[216].mxu1 %v19055_v35 }
 0x356   : > { %19074 = vst [vmem:[#allocation17_spill] sm:$0xff] %v16515_v61  ;;  %v16518_v19 = vpop.eup %13243  ;;  %13255 = vtanh.f32 %v10748_v50  ;;  %4799 = vmatmul.mubr.bf16.gmra.mrb[236].mxu0 %v15905_v59  ;;  %5159 = vmatprep.mubr.bf16.mxu1 %v16052_v26 }
 0x357   : > { %19075 = vst [vmem:[#allocation12_spill] sm:$0xff] %v16518_v19  ;;  %v16522_v47 = vpop.eup %13245  ;;  %4808 = vmatprep.mubr.bf16.mxu0 %v15944_v10 }
 0x358   : > { %19076 = vst [vmem:[#allocation21_spill] sm:$0xff] %v16522_v47  ;;  %v16525_v63 = vpop.eup %13247  ;;  %v4151_v41 = vpop.f32.mrb[112].mxu1 }
 0x359   : > { %19077 = vst [vmem:[#allocation73_spill] sm:$0xff] %v16525_v63  ;;  %v10749_v38 = vadd.f32 %v4151_v41, %v16442_v43  ;;  %v4153_v17 = vpop.f32.mrb[113].mxu1 }
 0x35a   : > { %v10750_v0 = vadd.f32 %v4153_v17, %v16446_v51  ;;  %v4155_v54 = vpop.f32.mrb[114].mxu1 }
 0x35b   : > { %13257 = vtanh.f32 %v10749_v38  ;;  %v10751_v7 = vadd.f32 %v4155_v54, %v16442_v43  ;;  %v4157_v48 = vpop.f32.mrb[115].mxu1 }
 0x35c   : > { %13259 = vtanh.f32 %v10750_v0  ;;  %v10752_v39 = vadd.f32 %v4157_v48, %v16446_v51  ;;  %v19085_v48 = vld [vmem:[#allocation28_spill] sm:$0xff] }
 0x35d   : > { %v16535_v55 = vpop.eup %13249  ;;  %13261 = vtanh.f32 %v10751_v7  ;;  %5160 = vmatmul.mubr.bf16.gmra.mrb[220].mxu1 %v19057_v33 }
 0x35e   : > { %19078 = vst [vmem:[#allocation74_spill] sm:$0xff] %v16535_v55  ;;  %v16538_v41 = vpop.eup %13251  ;;  %13263 = vtanh.f32 %v10752_v39  ;;  %4809 = vmatmul.mubr.bf16.gmra.mrb[240].mxu0 %v15941_v24  ;;  %5202 = vmatprep.mubr.bf16.mxu1 %v19080_v42 }
 0x35f   : > { %19079 = vst [vmem:[#allocation75_spill] sm:$0xff] %v16538_v41  ;;  %v16542_v17 = vpop.eup %13253  ;;  %4818 = vmatprep.mubr.bf16.mxu0 %v15980_v52 }
 0x360   : > { %19081 = vst [vmem:[#allocation76_spill] sm:$0xff] %v16542_v17  ;;  %v16545_v54 = vpop.eup %13255  ;;  %v4161_v0 = vpop.f32.mrb[116].mxu1 }
 0x361   : > { %19082 = vst [vmem:[#allocation77_spill] sm:$0xff] %v16545_v54  ;;  %v10753_v7 = vadd.f32 %v4161_v0, %v16442_v43  ;;  %v4163_v38 = vpop.f32.mrb[117].mxu1 }
 0x362   : > { %v10754_v50 = vadd.f32 %v4163_v38, %v16446_v51  ;;  %v4165_v61 = vpop.f32.mrb[118].mxu1 }
 0x363   : > { %13265 = vtanh.f32 %v10753_v7  ;;  %v10755_v47 = vadd.f32 %v4165_v61, %v16442_v43  ;;  %v4167_v19 = vpop.f32.mrb[119].mxu1  ;;  %v14157_v61 = vld [vmem:[%s18748_s2 + $0x400] ss:$16 sps:$4 sm:$0xff]  }
 0x364   : > { %13267 = vtanh.f32 %v10754_v50  ;;  %v10756_v63 = vadd.f32 %v4167_v19, %v16446_v51 }
 0x365   : > { %v16555_v42 = vpop.eup %13257  ;;  %13269 = vtanh.f32 %v10755_v47  ;;  %5203 = vmatmul.mubr.bf16.vlgmr.msra.gmra.mrb[160].mxu1 %v15701_v44 }
 0x366   : > { %19083 = vst [vmem:[#allocation78_spill] sm:$0xff] %v16555_v42  ;;  %v16558_v0 = vpop.eup %13259  ;;  %13271 = vtanh.f32 %v10756_v63  ;;  %4819 = vmatmul.mubr.bf16.gmra.mrb[244].mxu0 %v15977_v9  ;;  %5212 = vmatprep.mubr.bf16.mxu1 %v19085_v48  ;;  %v14158_v63 = vld [vmem:[%s18748_s2 + $0x424] ss:$16 sps:$4 sm:$0xff]  }
 0x367   : > { %19084 = vst [vmem:[#allocation79_spill] sm:$0xff] %v16558_v0  ;;  %v16562_v38 = vpop.eup %13261  ;;  %4828 = vmatprep.mubr.bf16.mxu0 %v16019_v62  ;;  %5364 = vmatpush1.bf16.msra.mxu1 %v14157_v61 }
 0x368   : > { %19086 = vst [vmem:[#allocation28_spill] sm:$0xff] %v16562_v38  ;;  %v16568_v19 = vpop.eup %13263  ;;  %v4171_v47 = vpop.f32.mrb[120].mxu1  ;;  %5365 = vmatprep.subr.bf16.mxu1 %v14158_v63  ;;  %v14159_v63 = vld [vmem:[%s18748_s2 + $0x420] ss:$16 sps:$4 sm:$0xff]  }
 0x369   : > { %19087 = vst [vmem:[#allocation80_spill] sm:$0xff] %v16568_v19  ;;  %v10757_v7 = vadd.f32 %v4171_v47, %v16442_v43  ;;  %v4173_v39 = vpop.f32.mrb[121].mxu1  ;;  %v14160_v47 = vld [vmem:[%s18748_s2 + $0x444] ss:$16 sps:$4 sm:$0xff]  }
 0x36a   : > { %v10758_v17 = vadd.f32 %v4173_v39, %v16446_v51  ;;  %v4175_v61 = vpop.f32.mrb[122].mxu1 }
 0x36b   : > { %13273 = vtanh.f32 %v10757_v7  ;;  %v10759_v41 = vadd.f32 %v4175_v61, %v16442_v43  ;;  %v4177_v54 = vpop.f32.mrb[123].mxu1  ;;  %5366 = vmatpush1.bf16.msra.mxu1 %v14159_v63  ;;  %v19090_v7 = vld [vmem:[#allocation32_spill] sm:$0xff] }
 0x36c   : > { %13275 = vtanh.f32 %v10758_v17  ;;  %v10760_v50 = vadd.f32 %v4177_v54, %v16446_v51  ;;  %5367 = vmatprep.subr.bf16.mxu1 %v14160_v47  ;;  %v14161_v54 = vld [vmem:[%s18748_s2 + $0x440] ss:$16 sps:$4 sm:$0xff]  }
 0x36d   : > { %v16587_v55 = vpop.eup %13265  ;;  %13277 = vtanh.f32 %v10759_v41  ;;  %5213 = vmatmul.mubr.bf16.gmra.mrb[164].mxu1 %v19058_v6 }
 0x36e   : > { %19088 = vst [vmem:[#allocation81_spill] sm:$0xff] %v16587_v55  ;;  %v16590_v39 = vpop.eup %13267  ;;  %13279 = vtanh.f32 %v10760_v50  ;;  %4829 = vmatmul.mubr.bf16.gmra.mrb[248].mxu0 %v16016_v32  ;;  %5222 = vmatprep.mubr.bf16.mxu1 %v19090_v7  ;;  %v14162_v50 = vld [vmem:[%s18748_s2 + $0x464] ss:$16 sps:$4 sm:$0xff]  }
 0x36f   : > { %19089 = vst [vmem:[#allocation82_spill] sm:$0xff] %v16590_v39  ;;  %v16594_v17 = vpop.eup %13269  ;;  %4838 = vmatprep.mubr.bf16.mxu0 %v16055_v12  ;;  %5368 = vmatpush1.bf16.msra.mxu1 %v14161_v54 }
 0x370   : > { %19091 = vst [vmem:[#allocation83_spill] sm:$0xff] %v16594_v17  ;;  %v16600_v61 = vpop.eup %13271  ;;  %v4181_v41 = vpop.f32.mrb[124].mxu1  ;;  %5369 = vmatprep.subr.bf16.mxu1 %v14162_v50  ;;  %v14163_v50 = vld [vmem:[%s18748_s2 + $0x460] ss:$16 sps:$4 sm:$0xff]  }
 0x371   : > { %19092 = vst [vmem:[#allocation84_spill] sm:$0xff] %v16600_v61  ;;  %v10761_v47 = vadd.f32 %v4181_v41, %v16442_v43  ;;  %v4183_v42 = vpop.f32.mrb[125].mxu1  ;;  %v14164_v41 = vld [vmem:[%s18748_s2 + $0x484] ss:$16 sps:$4 sm:$0xff]  }
 0x372   : > { %v10762_v0 = vadd.f32 %v4183_v42, %v16446_v51  ;;  %v4185_v54 = vpop.f32.mrb[126].mxu1 }
 0x373   : > { %13281 = vtanh.f32 %v10761_v47  ;;  %v10763_v19 = vadd.f32 %v4185_v54, %v16442_v43  ;;  %v4187_v7 = vpop.f32.mrb[127].mxu1  ;;  %5370 = vmatpush1.bf16.msra.mxu1 %v14163_v50  ;;  %v19095_v47 = vld [vmem:[#allocation34_spill] sm:$0xff] }
 0x374   : > { %13283 = vtanh.f32 %v10762_v0  ;;  %v10764_v63 = vadd.f32 %v4187_v7, %v16446_v51  ;;  %5371 = vmatprep.subr.bf16.mxu1 %v14164_v41  ;;  %v14165_v7 = vld [vmem:[%s18748_s2 + $0x480] ss:$16 sps:$4 sm:$0xff]  }
 0x375   : > { %v16619_v38 = vpop.eup %13273  ;;  %13285 = vtanh.f32 %v10763_v19  ;;  %5223 = vmatmul.mubr.bf16.gmra.mrb[168].mxu1 %v19059_v20 }
 0x376   : > { %19093 = vst [vmem:[#allocation85_spill] sm:$0xff] %v16619_v38  ;;  %v16622_v42 = vpop.eup %13275  ;;  %13287 = vtanh.f32 %v10764_v63  ;;  %4839 = vmatmul.mubr.bf16.gmra.mrb[252].mxu0 %v16052_v26  ;;  %5232 = vmatprep.mubr.bf16.mxu1 %v19095_v47  ;;  %v14166_v63 = vld [vmem:[%s18748_s2 + $0x4a4] ss:$16 sps:$4 sm:$0xff]  }
 0x377   : > { %19094 = vst [vmem:[#allocation86_spill] sm:$0xff] %v16622_v42  ;;  %v16626_v0 = vpop.eup %13277  ;;  %5588 = vmatprep.mubr.bf16.mxu0 %v15698_v31  ;;  %5372 = vmatpush1.bf16.msra.mxu1 %v14165_v7 }
 0x378   : > { %19096 = vst [vmem:[#allocation34_spill] sm:$0xff] %v16626_v0  ;;  %v16632_v54 = vpop.eup %13279  ;;  %v4191_v19 = vpop.f32.mrb[128].mxu1  ;;  %5373 = vmatprep.subr.bf16.mxu1 %v14166_v63  ;;  %v14167_v63 = vld [vmem:[%s18748_s2 + $0x4a0] ss:$16 sps:$4 sm:$0xff]  }
 0x379   : > { %v10765_v41 = vadd.f32 %v4191_v19, %v16442_v43  ;;  %v4193_v55 = vpop.f32.mrb[129].mxu1  ;;  %v14168_v19 = vld [vmem:[%s18748_s2 + $0x4c4] ss:$16 sps:$4 sm:$0xff]  }
 0x37a   : > { %v10766_v17 = vadd.f32 %v4193_v55, %v16446_v51  ;;  %v4195_v7 = vpop.f32.mrb[130].mxu1 }
 0x37b   : > { %13289 = vtanh.f32 %v10765_v41  ;;  %v10767_v39 = vadd.f32 %v4195_v7, %v16442_v43  ;;  %v4197_v61 = vpop.f32.mrb[131].mxu1  ;;  %5374 = vmatpush1.bf16.msra.mxu1 %v14167_v63  ;;  %v19098_v41 = vld [vmem:[#allocation36_spill] sm:$0xff] }
 0x37c   : > { %13291 = vtanh.f32 %v10766_v17  ;;  %v10768_v50 = vadd.f32 %v4197_v61, %v16446_v51  ;;  %5375 = vmatprep.subr.bf16.mxu1 %v14168_v19  ;;  %v14169_v61 = vld [vmem:[%s18748_s2 + $0x208] ss:$16 sps:$4 sm:$0xff]  }
 0x37d   : > { %v16651_v31 = vpop.eup %13281  ;;  %13293 = vtanh.f32 %v10767_v39  ;;  %5233 = vmatmul.mubr.bf16.gmra.mrb[172].mxu1 %v19060_v16 }
 0x37e   : > { %19097 = vst [vmem:[#allocation87_spill] sm:$0xff] %v16651_v31  ;;  %v16654_v55 = vpop.eup %13283  ;;  %13295 = vtanh.f32 %v10768_v50  ;;  %5242 = vmatprep.mubr.bf16.mxu1 %v19098_v41  ;;  %5589 = vmatmul.mubr.bf16.vlgmr.msra.gmra.mrb[0].mxu0 %v15348_v21  ;;  %v14170_v50 = vld [vmem:[%s18748_s2 + $0x22c] ss:$16 sps:$4 sm:$0xff]   ;;  %v14171_v21 = vld [vmem:[%s18748_s2 + $0x4c0] ss:$16 sps:$4 sm:$0xff]  }
 0x37f   : > { %v16658_v17 = vpop.eup %13285  ;;  %5598 = vmatprep.mubr.bf16.mxu0 %v15729_v4  ;;  %5750 = vmatpush1.bf16.msra.mxu0 %v14169_v61  ;;  %v14172_v61 = vld [vmem:[%s18748_s2 + $0x4e4] ss:$16 sps:$4 sm:$0xff]  }
 0x380   : > { %v16664_v7 = vpop.eup %13287  ;;  %v4201_v39 = vpop.f32.mrb[132].mxu1  ;;  %5751 = vmatprep.subr.bf16.mxu0 %v14170_v50  ;;  %5376 = vmatpush1.bf16.msra.mxu1 %v14171_v21 }
 0x381   : > { %v10769_v63 = vadd.f32 %v4201_v39, %v16442_v43  ;;  %v4203_v19 = vpop.f32.mrb[133].mxu1  ;;  %5377 = vmatprep.subr.bf16.mxu1 %v14172_v61  ;;  %v14173_v39 = vld [vmem:[%s18748_s2 + $0x228] ss:$16 sps:$4 sm:$0xff]   ;;  %v14174_v61 = vld [vmem:[%s18748_s2 + $0x24c] ss:$16 sps:$4 sm:$0xff]  }
 0x382   : > { %v10770_v50 = vadd.f32 %v4203_v19, %v16446_v51  ;;  %v4205_v0 = vpop.f32.mrb[134].mxu1  ;;  %v14176_v19 = vld [vmem:[%s18748_s2 + $0x504] ss:$16 sps:$4 sm:$0xff]  }
 0x383   : > { %13297 = vtanh.f32 %v10769_v63  ;;  %v10771_v21 = vadd.f32 %v4205_v0, %v16442_v43  ;;  %v4207_v42 = vpop.f32.mrb[135].mxu1  ;;  %5752 = vmatpush1.bf16.msra.mxu0 %v14173_v39  ;;  %v14175_v63 = vld [vmem:[%s18748_s2 + $0x4e0] ss:$16 sps:$4 sm:$0xff]  }
 0x384   : > { %13299 = vtanh.f32 %v10770_v50  ;;  %v10772_v4 = vadd.f32 %v4207_v42, %v16446_v51  ;;  %5753 = vmatprep.subr.bf16.mxu0 %v14174_v61  ;;  %5378 = vmatpush1.bf16.msra.mxu1 %v14175_v63  ;;  %v19101_v50 = vld [vmem:[#allocation38_spill] sm:$0xff] }
 0x385   : > { %v16692_v0 = vpop.eup %13289  ;;  %13301 = vtanh.f32 %v10771_v21  ;;  %5243 = vmatmul.mubr.bf16.gmra.mrb[176].mxu1 %v19061_v57  ;;  %5379 = vmatprep.subr.bf16.mxu1 %v14176_v19  ;;  %v14177_v21 = vld [vmem:[%s18748_s2 + $0x248] ss:$16 sps:$4 sm:$0xff]  }
 0x386   : > { %19099 = vst [vmem:[#allocation36_spill] sm:$0xff] %v16692_v0  ;;  %v16698_v42 = vpop.eup %13291  ;;  %13303 = vtanh.f32 %v10772_v4  ;;  %5252 = vmatprep.mubr.bf16.mxu1 %v19101_v50  ;;  %5599 = vmatmul.mubr.bf16.gmra.mrb[4].mxu0 %v15392_v5  ;;  %v14178_v4 = vld [vmem:[%s18748_s2 + $0x26c] ss:$16 sps:$4 sm:$0xff]   ;;  %v14179_v5 = vld [vmem:[%s18748_s2 + $0x500] ss:$16 sps:$4 sm:$0xff]  }
 0x387   : > { %19100 = vst [vmem:[#allocation88_spill] sm:$0xff] %v16698_v42  ;;  %v16702_v39 = vpop.eup %13293  ;;  %5608 = vmatprep.mubr.bf16.mxu0 %v15755_v58  ;;  %5754 = vmatpush1.bf16.msra.mxu0 %v14177_v21  ;;  %v14180_v21 = vld [vmem:[%s18748_s2 + $0x524] ss:$16 sps:$4 sm:$0xff]  }
 0x388   : > { %19102 = vst [vmem:[#allocation38_spill] sm:$0xff] %v16702_v39  ;;  %v16708_v61 = vpop.eup %13295  ;;  %v4211_v19 = vpop.f32.mrb[136].mxu1  ;;  %5755 = vmatprep.subr.bf16.mxu0 %v14178_v4  ;;  %5380 = vmatpush1.bf16.msra.mxu1 %v14179_v5 }
 0x389   : > { %v10773_v58 = vadd.f32 %v4211_v19, %v16442_v43  ;;  %v4213_v38 = vpop.f32.mrb[137].mxu1  ;;  %5381 = vmatprep.subr.bf16.mxu1 %v14180_v21  ;;  %v14181_v19 = vld [vmem:[%s18748_s2 + $0x268] ss:$16 sps:$4 sm:$0xff]   ;;  %v14182_v21 = vld [vmem:[%s18748_s2 + $0x28c] ss:$16 sps:$4 sm:$0xff]  }
 0x38a   : > { %v10774_v0 = vadd.f32 %v4213_v38, %v16446_v51  ;;  %v4215_v39 = vpop.f32.mrb[138].mxu1  ;;  %v14183_v38 = vld [vmem:[%s18748_s2 + $0x520] ss:$16 sps:$4 sm:$0xff]  }
 0x38b   : > { %13305 = vtanh.f32 %v10773_v58  ;;  %v10775_v4 = vadd.f32 %v4215_v39, %v16442_v43  ;;  %v4217_v31 = vpop.f32.mrb[139].mxu1  ;;  %5756 = vmatpush1.bf16.msra.mxu0 %v14181_v19  ;;  %v19105_v58 = vld [vmem:[#allocation40_spill] sm:$0xff] }
 0x38c   : > { %13307 = vtanh.f32 %v10774_v0  ;;  %v10776_v5 = vadd.f32 %v4217_v31, %v16446_v51  ;;  %5757 = vmatprep.subr.bf16.mxu0 %v14182_v21  ;;  %5382 = vmatpush1.bf16.msra.mxu1 %v14183_v38  ;;  %v14184_v0 = vld [vmem:[%s18748_s2 + $0x544] ss:$16 sps:$4 sm:$0xff]  }
 0x38d   : > { %v16736_v39 = vpop.eup %13297  ;;  %13309 = vtanh.f32 %v10775_v4  ;;  %5253 = vmatmul.mubr.bf16.gmra.mrb[180].mxu1 %v19062_v29  ;;  %5383 = vmatprep.subr.bf16.mxu1 %v14184_v0  ;;  %v14185_v4 = vld [vmem:[%s18748_s2 + $0x288] ss:$16 sps:$4 sm:$0xff]  }
 0x38e   : > { %19103 = vst [vmem:[#allocation89_spill] sm:$0xff] %v16736_v39  ;;  %v16742_v31 = vpop.eup %13299  ;;  %13311 = vtanh.f32 %v10776_v5  ;;  %5262 = vmatprep.mubr.bf16.mxu1 %v19105_v58  ;;  %5609 = vmatmul.mubr.bf16.gmra.mrb[8].mxu0 %v15436_v49  ;;  %v14186_v5 = vld [vmem:[%s18748_s2 + $0x2ac] ss:$16 sps:$4 sm:$0xff]   ;;  %v14187_v49 = vld [vmem:[%s18748_s2 + $0x540] ss:$16 sps:$4 sm:$0xff]  }
 0x38f   : > { %19104 = vst [vmem:[#allocation90_spill] sm:$0xff] %v16742_v31  ;;  %v16746_v19 = vpop.eup %13301  ;;  %5618 = vmatprep.mubr.bf16.mxu0 %v15779_v13  ;;  %5758 = vmatpush1.bf16.msra.mxu0 %v14185_v4  ;;  %v14188_v4 = vld [vmem:[%s18748_s2 + $0x564] ss:$16 sps:$4 sm:$0xff]  }
 0x390   : > { %19106 = vst [vmem:[#allocation40_spill] sm:$0xff] %v16746_v19  ;;  %v16752_v21 = vpop.eup %13303  ;;  %v4221_v0 = vpop.f32.mrb[140].mxu1  ;;  %5759 = vmatprep.subr.bf16.mxu0 %v14186_v5  ;;  %5384 = vmatpush1.bf16.msra.mxu1 %v14187_v49 }
 0x391   : > { %v10777_v13 = vadd.f32 %v4221_v0, %v16442_v43  ;;  %v4223_v63 = vpop.f32.mrb[141].mxu1  ;;  %5385 = vmatprep.subr.bf16.mxu1 %v14188_v4  ;;  %v14189_v0 = vld [vmem:[%s18748_s2 + $0x2a8] ss:$16 sps:$4 sm:$0xff]   ;;  %v14190_v4 = vld [vmem:[%s18748_s2 + $0x2cc] ss:$16 sps:$4 sm:$0xff]  }
 0x392   : > { %v10778_v39 = vadd.f32 %v4223_v63, %v16446_v51  ;;  %v4225_v19 = vpop.f32.mrb[142].mxu1  ;;  %v14191_v63 = vld [vmem:[%s18748_s2 + $0x560] ss:$16 sps:$4 sm:$0xff]  }
 0x393   : > { %13313 = vtanh.f32 %v10777_v13  ;;  %v10779_v5 = vadd.f32 %v4225_v19, %v16442_v43  ;;  %v4227_v42 = vpop.f32.mrb[143].mxu1  ;;  %5760 = vmatpush1.bf16.msra.mxu0 %v14189_v0  ;;  %v19109_v13 = vld [vmem:[#allocation42_spill] sm:$0xff] }
 0x394   : > { %13315 = vtanh.f32 %v10778_v39  ;;  %v10780_v49 = vadd.f32 %v4227_v42, %v16446_v51  ;;  %5761 = vmatprep.subr.bf16.mxu0 %v14190_v4  ;;  %5386 = vmatpush1.bf16.msra.mxu1 %v14191_v63  ;;  %v14192_v39 = vld [vmem:[%s18748_s2 + $0x584] ss:$16 sps:$4 sm:$0xff]  }
 0x395   : > { %v16780_v19 = vpop.eup %13305  ;;  %13317 = vtanh.f32 %v10779_v5  ;;  %5263 = vmatmul.mubr.bf16.gmra.mrb[184].mxu1 %v15818_v53  ;;  %5387 = vmatprep.subr.bf16.mxu1 %v14192_v39  ;;  %v14193_v5 = vld [vmem:[%s18748_s2 + $0x2c8] ss:$16 sps:$4 sm:$0xff]  }
 0x396   : > { %19107 = vst [vmem:[#allocation91_spill] sm:$0xff] %v16780_v19  ;;  %v16786_v42 = vpop.eup %13307  ;;  %13319 = vtanh.f32 %v10780_v49  ;;  %5272 = vmatprep.mubr.bf16.mxu1 %v19109_v13  ;;  %5619 = vmatmul.mubr.bf16.gmra.mrb[12].mxu0 %v15480_v37  ;;  %v14194_v49 = vld [vmem:[%s18748_s2 + $0x2ec] ss:$16 sps:$4 sm:$0xff]   ;;  %v14195_v37 = vld [vmem:[%s18748_s2 + $0x580] ss:$16 sps:$4 sm:$0xff]  }
 0x397   : > { %19108 = vst [vmem:[#allocation92_spill] sm:$0xff] %v16786_v42  ;;  %v16790_v0 = vpop.eup %13309  ;;  %5628 = vmatprep.mubr.bf16.mxu0 %v15791_v56  ;;  %5762 = vmatpush1.bf16.msra.mxu0 %v14193_v5  ;;  %v14196_v5 = vld [vmem:[%s18748_s2 + $0x5a4] ss:$16 sps:$4 sm:$0xff]  }
 0x398   : > { %19110 = vst [vmem:[#allocation42_spill] sm:$0xff] %v16790_v0  ;;  %v16796_v4 = vpop.eup %13311  ;;  %v4231_v39 = vpop.f32.mrb[144].mxu1  ;;  %5763 = vmatprep.subr.bf16.mxu0 %v14194_v49  ;;  %5388 = vmatpush1.bf16.msra.mxu1 %v14195_v37 }
 0x399   : > { %19111 = vst [vmem:[#allocation93_spill] sm:$0xff] %v16796_v4  ;;  %v10781_v56 = vadd.f32 %v4231_v39, %v16442_v43  ;;  %v4233_v38 = vpop.f32.mrb[145].mxu1  ;;  %5389 = vmatprep.subr.bf16.mxu1 %v14196_v5  ;;  %v14197_v39 = vld [vmem:[%s18748_s2 + $0x2e8] ss:$16 sps:$4 sm:$0xff]   ;;  %v14198_v5 = vld [vmem:[%s18748_s2 + $0x30c] ss:$16 sps:$4 sm:$0xff]  }
 0x39a   : > { %v10782_v19 = vadd.f32 %v4233_v38, %v16446_v51  ;;  %v4235_v0 = vpop.f32.mrb[146].mxu1  ;;  %v14199_v38 = vld [vmem:[%s18748_s2 + $0x5a0] ss:$16 sps:$4 sm:$0xff]  }
 0x39b   : > { %13321 = vtanh.f32 %v10781_v56  ;;  %v10783_v49 = vadd.f32 %v4235_v0, %v16442_v43  ;;  %v4237_v31 = vpop.f32.mrb[147].mxu1  ;;  %5764 = vmatpush1.bf16.msra.mxu0 %v14197_v39  ;;  %v19114_v56 = vld [vmem:[#allocation44_spill] sm:$0xff] }
 0x39c   : > { %13323 = vtanh.f32 %v10782_v19  ;;  %v10784_v37 = vadd.f32 %v4237_v31, %v16446_v51  ;;  %5765 = vmatprep.subr.bf16.mxu0 %v14198_v5  ;;  %5390 = vmatpush1.bf16.msra.mxu1 %v14199_v38  ;;  %v14200_v19 = vld [vmem:[%s18748_s2 + $0x5c4] ss:$16 sps:$4 sm:$0xff]  }
 0x39d   : > { %v16824_v0 = vpop.eup %13313  ;;  %13325 = vtanh.f32 %v10783_v49  ;;  %5273 = vmatmul.mubr.bf16.gmra.mrb[188].mxu1 %v15830_v3  ;;  %5391 = vmatprep.subr.bf16.mxu1 %v14200_v19  ;;  %v14201_v49 = vld [vmem:[%s18748_s2 + $0x308] ss:$16 sps:$4 sm:$0xff]  }
 0x39e   : > { %19112 = vst [vmem:[#allocation94_spill] sm:$0xff] %v16824_v0  ;;  %v16830_v31 = vpop.eup %13315  ;;  %13327 = vtanh.f32 %v10784_v37  ;;  %5282 = vmatprep.mubr.bf16.mxu1 %v19114_v56  ;;  %5629 = vmatmul.mubr.bf16.gmra.mrb[16].mxu0 %v15524_v11  ;;  %v14202_v37 = vld [vmem:[%s18748_s2 + $0x32c] ss:$16 sps:$4 sm:$0xff]   ;;  %v14203_v11 = vld [vmem:[%s18748_s2 + $0x5c0] ss:$16 sps:$4 sm:$0xff]  }
 0x39f   : > { %19113 = vst [vmem:[#allocation95_spill] sm:$0xff] %v16830_v31  ;;  %v16834_v39 = vpop.eup %13317  ;;  %5638 = vmatprep.mubr.bf16.mxu0 %v15803_v34  ;;  %5766 = vmatpush1.bf16.msra.mxu0 %v14201_v49  ;;  %v14204_v49 = vld [vmem:[%s18748_s2 + $0x5e4] ss:$16 sps:$4 sm:$0xff]  }
 0x3a0   : > { %19115 = vst [vmem:[#allocation44_spill] sm:$0xff] %v16834_v39  ;;  %v16840_v5 = vpop.eup %13319  ;;  %v4241_v19 = vpop.f32.mrb[148].mxu1  ;;  %5767 = vmatprep.subr.bf16.mxu0 %v14202_v37  ;;  %5392 = vmatpush1.bf16.msra.mxu1 %v14203_v11 }
 0x3a1   : > { %19116 = vst [vmem:[#allocation96_spill] sm:$0xff] %v16840_v5  ;;  %v10785_v34 = vadd.f32 %v4241_v19, %v16442_v43  ;;  %v4243_v63 = vpop.f32.mrb[149].mxu1  ;;  %5393 = vmatprep.subr.bf16.mxu1 %v14204_v49  ;;  %v14205_v19 = vld [vmem:[%s18748_s2 + $0x328] ss:$16 sps:$4 sm:$0xff]   ;;  %v14206_v49 = vld [vmem:[%s18748_s2 + $0x34c] ss:$16 sps:$4 sm:$0xff]  }
 0x3a2   : > { %v10786_v0 = vadd.f32 %v4243_v63, %v16446_v51  ;;  %v4245_v39 = vpop.f32.mrb[150].mxu1  ;;  %v14207_v63 = vld [vmem:[%s18748_s2 + $0x5e0] ss:$16 sps:$4 sm:$0xff]  }
 0x3a3   : > { %13329 = vtanh.f32 %v10785_v34  ;;  %v10787_v37 = vadd.f32 %v4245_v39, %v16442_v43  ;;  %v4247_v42 = vpop.f32.mrb[151].mxu1  ;;  %5768 = vmatpush1.bf16.msra.mxu0 %v14205_v19  ;;  %v14208_v19 = vld [vmem:[%s18748_s2 + $0x348] ss:$16 sps:$4 sm:$0xff]  }
 0x3a4   : > { %13331 = vtanh.f32 %v10786_v0  ;;  %v10788_v11 = vadd.f32 %v4247_v42, %v16446_v51  ;;  %5769 = vmatprep.subr.bf16.mxu0 %v14206_v49  ;;  %5394 = vmatpush1.bf16.msra.mxu1 %v14207_v63  ;;  %v19119_v0 = vld [vmem:[#allocation46_spill] sm:$0xff] }
 0x3a5   : > { %v16868_v39 = vpop.eup %13321  ;;  %13333 = vtanh.f32 %v10787_v37  ;;  %5283 = vmatmul.mubr.bf16.gmra.mrb[192].mxu1 %v19065_v60  ;;  %v14210_v37 = vld [vmem:[%s18748_s2 + $0x368] ss:$16 sps:$4 sm:$0xff]  }
 0x3a6   : > { %19117 = vst [vmem:[#allocation97_spill] sm:$0xff] %v16868_v39  ;;  %v16871_v34 = vpop.eup %13323  ;;  %13335 = vtanh.f32 %v10788_v11  ;;  %5292 = vmatprep.mubr.bf16.mxu1 %v19119_v0  ;;  %5639 = vmatmul.mubr.bf16.gmra.mrb[20].mxu0 %v15568_v22  ;;  %v14209_v11 = vld [vmem:[%s18748_s2 + $0x36c] ss:$16 sps:$4 sm:$0xff]  }
 0x3a7   : > { %19118 = vst [vmem:[#allocation98_spill] sm:$0xff] %v16871_v34  ;;  %v16875_v42 = vpop.eup %13325  ;;  %5648 = vmatprep.mubr.bf16.mxu0 %v15815_v36  ;;  %5770 = vmatpush1.bf16.msra.mxu0 %v14208_v19 }
 0x3a8   : > { %19120 = vst [vmem:[#allocation46_spill] sm:$0xff] %v16875_v42  ;;  %v16881_v49 = vpop.eup %13327  ;;  %v4251_v63 = vpop.f32.mrb[152].mxu1  ;;  %5771 = vmatprep.subr.bf16.mxu0 %v14209_v11 }
 0x3a9   : > { %19121 = vst [vmem:[#allocation99_spill] sm:$0xff] %v16881_v49  ;;  %v10789_v22 = vadd.f32 %v4251_v63, %v16442_v43  ;;  %v4253_v38 = vpop.f32.mrb[153].mxu1  ;;  %v14211_v63 = vld [vmem:[%s18748_s2 + $0x38c] ss:$16 sps:$4 sm:$0xff]  }
 0x3aa   : > { %v10790_v31 = vadd.f32 %v4253_v38, %v16446_v51  ;;  %v4255_v19 = vpop.f32.mrb[154].mxu1  ;;  %v19223_v49 = vld [vmem:[#allocation55_spill] sm:$0xff] }
 0x3ab   : > { %13337 = vtanh.f32 %v10789_v22  ;;  %v10791_v5 = vadd.f32 %v4255_v19, %v16442_v43  ;;  %v4257_v4 = vpop.f32.mrb[155].mxu1  ;;  %5772 = vmatpush1.bf16.msra.mxu0 %v14210_v37  ;;  %v19124_v22 = vld [vmem:[#allocation48_spill] sm:$0xff] }
 0x3ac   : > { %13339 = vtanh.f32 %v10790_v31  ;;  %v10792_v11 = vadd.f32 %v4257_v4, %v16446_v51  ;;  %5773 = vmatprep.subr.bf16.mxu0 %v14211_v63  ;;  %v14212_v4 = vld [vmem:[%s18748_s2 + $0x388] ss:$16 sps:$4 sm:$0xff]  }
 0x3ad   : > { %v16900_v36 = vpop.eup %13329  ;;  %13341 = vtanh.f32 %v10791_v5  ;;  %5293 = vmatmul.mubr.bf16.gmra.mrb[196].mxu1 %v15860_v45  ;;  %v14214_v5 = vld [vmem:[%s18748_s2 + $0x3a8] ss:$16 sps:$4 sm:$0xff]  }
 0x3ae   : > { %19122 = vst [vmem:[#allocation100_spill] sm:$0xff] %v16900_v36  ;;  %v16903_v38 = vpop.eup %13331  ;;  %13343 = vtanh.f32 %v10792_v11  ;;  %5302 = vmatprep.mubr.bf16.mxu1 %v19124_v22  ;;  %5649 = vmatmul.mubr.bf16.gmra.mrb[24].mxu0 %v15618_v28  ;;  %v14213_v11 = vld [vmem:[%s18748_s2 + $0x3ac] ss:$16 sps:$4 sm:$0xff]  }
 0x3af   : > { %19123 = vst [vmem:[#allocation101_spill] sm:$0xff] %v16903_v38  ;;  %v16907_v31 = vpop.eup %13333  ;;  %5658 = vmatprep.mubr.bf16.mxu0 %v15827_v2  ;;  %5774 = vmatpush1.bf16.msra.mxu0 %v14212_v4  ;;  %v19153_v38 = vld [vmem:[#allocation31_spill] sm:$0xff] }
 0x3b0   : > { %19125 = vst [vmem:[#allocation48_spill] sm:$0xff] %v16907_v31  ;;  %v16913_v37 = vpop.eup %13335  ;;  %v4261_v19 = vpop.f32.mrb[156].mxu1  ;;  %5775 = vmatprep.subr.bf16.mxu0 %v14213_v11 }
 0x3b1   : > { %19126 = vst [vmem:[#allocation102_spill] sm:$0xff] %v16913_v37  ;;  %v10793_v28 = vadd.f32 %v4261_v19, %v16442_v43  ;;  %v4263_v63 = vpop.f32.mrb[157].mxu1  ;;  %v14215_v19 = vld [vmem:[%s18748_s2 + $0x3cc] ss:$16 sps:$4 sm:$0xff]  }
 0x3b2   : > { %v10794_v39 = vadd.f32 %v4263_v63, %v16446_v51  ;;  %v4265_v4 = vpop.f32.mrb[158].mxu1  ;;  %v19129_v63 = vld [vmem:[#allocation50_spill] sm:$0xff]  ;;  %v19166_v37 = vld [vmem:[#allocation35_spill] sm:$0xff] }
 0x3b3   : > { %13345 = vtanh.f32 %v10793_v28  ;;  %v10795_v42 = vadd.f32 %v4265_v4, %v16442_v43  ;;  %v4267_v34 = vpop.f32.mrb[159].mxu1  ;;  %5776 = vmatpush1.bf16.msra.mxu0 %v14214_v5  ;;  %v14217_v4 = vld [vmem:[%s18748_s2 + $0x3ec] ss:$16 sps:$4 sm:$0xff]  }
 0x3b4   : > { %13347 = vtanh.f32 %v10794_v39  ;;  %v10796_v11 = vadd.f32 %v4267_v34, %v16446_v51  ;;  %5777 = vmatprep.subr.bf16.mxu0 %v14215_v19  ;;  %v14216_v34 = vld [vmem:[%s18748_s2 + $0x3c8] ss:$16 sps:$4 sm:$0xff]  }
 0x3b5   : > { %v16932_v2 = vpop.eup %13337  ;;  %13349 = vtanh.f32 %v10795_v42  ;;  %5303 = vmatmul.mubr.bf16.gmra.mrb[200].mxu1 %v15884_v40 }
 0x3b6   : > { %19127 = vst [vmem:[#allocation103_spill] sm:$0xff] %v16932_v2  ;;  %v16935_v28 = vpop.eup %13339  ;;  %13351 = vtanh.f32 %v10796_v11  ;;  %5312 = vmatprep.mubr.bf16.mxu1 %v19129_v63  ;;  %5659 = vmatmul.mubr.bf16.gmra.mrb[28].mxu0 %v15662_v23  ;;  %v14219_v11 = vld [vmem:[%s18748_s2 + $0x40c] ss:$16 sps:$4 sm:$0xff]   ;;  %v19137_v2 = vld [vmem:[#allocation54_spill] sm:$0xff] }
 0x3b7   : > { %19128 = vst [vmem:[#allocation104_spill] sm:$0xff] %v16935_v28  ;;  %v16939_v39 = vpop.eup %13341  ;;  %5668 = vmatprep.mubr.bf16.mxu0 %v15839_v8  ;;  %5778 = vmatpush1.bf16.msra.mxu0 %v14216_v34  ;;  %v14218_v8 = vld [vmem:[%s18748_s2 + $0x3e8] ss:$16 sps:$4 sm:$0xff]  }
 0x3b8   : > { %19130 = vst [vmem:[#allocation50_spill] sm:$0xff] %v16939_v39  ;;  %v16945_v5 = vpop.eup %13343  ;;  %5779 = vmatprep.subr.bf16.mxu0 %v14217_v4  ;;  %v19134_v4 = vld [vmem:[#allocation52_spill] sm:$0xff]  ;;  %v14221_v23 = vld [vmem:[#allocation6 + $0x18] sm:$0xff] }
 0x3b9   : > { %19131 = vst [vmem:[#allocation105_spill] sm:$0xff] %v16945_v5  ;;  %v19138_v39 = vld [vmem:[#allocation56_spill] sm:$0xff] }
 0x3ba   : > { %v12417_v5 = vld [vmem:[%s18749_s3 + $0x200] ss:$8 sps:$4 sm:$0xff]  }
 0x3bb   : > { %5780 = vmatpush1.bf16.msra.mxu0 %v14218_v8 }
 0x3bc   : > { %5942 = vmatprep.subr.bf16.mxu0 %v14219_v11  ;;  %v16987_v11 = vrot.slane %v14221_v23, %v16433_v1  ;;  %v19139_v23 = vld [vmem:[#allocation58_spill] sm:$0xff] }
 0x3bd   : > { %v16960_v19 = vpop.eup %13345  ;;  %5313 = vmatmul.mubr.bf16.gmra.mrb[204].mxu1 %v15908_v46 }
 0x3be   : > { %19132 = vst [vmem:[#allocation106_spill] sm:$0xff] %v16960_v19  ;;  %v16963_v34 = vpop.eup %13347  ;;  %5322 = vmatprep.mubr.bf16.mxu1 %v19134_v4  ;;  %5669 = vmatmul.mubr.bf16.gmra.mrb[32].mxu0 %v14939_v18  ;;  %v14220_v18 = vld [vmem:[#allocation6 + $0x10] sm:$0xff] }
 0x3bf   : > { %19133 = vst [vmem:[#allocation107_spill] sm:$0xff] %v16963_v34  ;;  %v16967_v42 = vpop.eup %13349  ;;  %5678 = vmatprep.mubr.bf16.mxu0 %v15857_v15  ;;  %v16982_v15 = vrot.slane %v14220_v18, %v16433_v1 }
 0x3c0   : > { %19135 = vst [vmem:[#allocation52_spill] sm:$0xff] %v16967_v42  ;;  %v16970_v8 = vpop.eup %13351 }
 0x3c1   : > { %19136 = vst [vmem:[#allocation108_spill] sm:$0xff] %v16970_v8 }
 0x3c5   : > { %5323 = vmatmul.mubr.bf16.gmra.mrb[208].mxu1 %v15944_v10 }
 0x3c6   : > { %5332 = vmatprep.mubr.bf16.mxu1 %v19137_v2  ;;  %5679 = vmatmul.mubr.bf16.gmra.mrb[36].mxu0 %v14971_v14 }
 0x3c7   : > { %5688 = vmatprep.mubr.bf16.mxu0 %v15881_v30 }
 0x3cd   : > { %5333 = vmatmul.mubr.bf16.gmra.mrb[212].mxu1 %v15980_v52 }
 0x3ce   : > { %5342 = vmatprep.mubr.bf16.mxu1 %v19138_v39  ;;  %5689 = vmatmul.mubr.bf16.gmra.mrb[40].mxu0 %v15003_v25 }
 0x3cf   : > { %5698 = vmatprep.mubr.bf16.mxu0 %v15905_v59  ;;  %v19140_v59 = vld [vmem:[#allocation13_spill] sm:$0xff] }
 0x3d1   : > { %v4690_v19 = vpop.f32.mrb[192].mxu0 }
 0x3d2   : > { %v10797_v14 = vadd.f32 %v4690_v19, %v16982_v15  ;;  %v4692_v30 = vpop.f32.mrb[193].mxu0 }
 0x3d3   : > { %v10798_v42 = vadd.f32 %v4692_v30, %v16987_v11  ;;  %v4694_v34 = vpop.f32.mrb[194].mxu0 }
 0x3d4   : > { %13353 = vtanh.f32 %v10797_v14  ;;  %v10799_v18 = vadd.f32 %v4694_v34, %v16982_v15  ;;  %v4696_v8 = vpop.f32.mrb[195].mxu0 }
 0x3d5   : > { %13355 = vtanh.f32 %v10798_v42  ;;  %v10800_v25 = vadd.f32 %v4696_v8, %v16987_v11  ;;  %5343 = vmatmul.mubr.bf16.gmra.mrb[216].mxu1 %v16019_v62 }
 0x3d6   : > { %13357 = vtanh.f32 %v10799_v18  ;;  %5352 = vmatprep.mubr.bf16.mxu1 %v19139_v23  ;;  %5699 = vmatmul.mubr.bf16.gmra.mrb[44].mxu0 %v19140_v59 }
 0x3d7   : > { %13359 = vtanh.f32 %v10800_v25  ;;  %5708 = vmatprep.mubr.bf16.mxu0 %v15941_v24  ;;  %v19142_v24 = vld [vmem:[#allocation30_spill] sm:$0xff]  ;;  %v19143_v25 = vld [vmem:[#allocation15_spill] sm:$0xff] }
 0x3d9   : > { %v4700_v19 = vpop.f32.mrb[196].mxu0 }
 0x3da   : > { %v10801_v30 = vadd.f32 %v4700_v19, %v16982_v15  ;;  %v4702_v14 = vpop.f32.mrb[197].mxu0 }
 0x3db   : > { %v10802_v34 = vadd.f32 %v4702_v14, %v16987_v11  ;;  %v4704_v1 = vpop.f32.mrb[198].mxu0 }
 0x3dc   : > { %13361 = vtanh.f32 %v10801_v30  ;;  %v10803_v42 = vadd.f32 %v4704_v1, %v16982_v15  ;;  %v4706_v8 = vpop.f32.mrb[199].mxu0  ;;  %v12419_v1 = vld [vmem:[%s18749_s3 + $0x204] ss:$8 sps:$4 sm:$0xff]  }
 0x3dd   : > { %13363 = vtanh.f32 %v10802_v34  ;;  %v10804_v18 = vadd.f32 %v4706_v8, %v16987_v11  ;;  %5353 = vmatmul.mubr.bf16.gmra.mrb[220].mxu1 %v16055_v12  ;;  %6711 = vmatprep.subr.bf16.mxu1 %v12419_v1 }
 0x3de   : > { %v17003_v59 = vpop.eup %13353  ;;  %13365 = vtanh.f32 %v10803_v42  ;;  %5395 = vmatprep.mubr.bf16.mxu1 %v19142_v24  ;;  %5709 = vmatmul.mubr.bf16.gmra.mrb[48].mxu0 %v19143_v25 }
 0x3df   : > { %19141 = vst [vmem:[#allocation54_spill] sm:$0xff] %v17003_v59  ;;  %v17007_v19 = vpop.eup %13355  ;;  %13367 = vtanh.f32 %v10804_v18  ;;  %5718 = vmatprep.mubr.bf16.mxu0 %v15977_v9  ;;  %v19147_v59 = vld [vmem:[#allocation27_spill] sm:$0xff]  ;;  %v19149_v18 = vld [vmem:[#allocation24_spill] sm:$0xff] }
 0x3e0   : > { %19144 = vst [vmem:[#allocation56_spill] sm:$0xff] %v17007_v19  ;;  %v17013_v30 = vpop.eup %13357 }
 0x3e1   : > { %19145 = vst [vmem:[#allocation58_spill] sm:$0xff] %v17013_v30  ;;  %v17015_v14 = vpop.eup %13359  ;;  %v4710_v34 = vpop.f32.mrb[200].mxu0 }
 0x3e2   : > { %19146 = vst [vmem:[#allocation13_spill] sm:$0xff] %v17015_v14  ;;  %v10805_v8 = vadd.f32 %v4710_v34, %v16982_v15  ;;  %v4712_v25 = vpop.f32.mrb[201].mxu0 }
 0x3e3   : > { %v10806_v9 = vadd.f32 %v4712_v25, %v16987_v11  ;;  %v4714_v28 = vpop.f32.mrb[202].mxu0 }
 0x3e4   : > { %13369 = vtanh.f32 %v10805_v8  ;;  %v10807_v36 = vadd.f32 %v4714_v28, %v16982_v15  ;;  %v4716_v1 = vpop.f32.mrb[203].mxu0  ;;  %v12420_v28 = vld [vmem:[%s18749_s3 + $0x210] ss:$8 sps:$4 sm:$0xff]   ;;  %v12422_v8 = vld [vmem:[%s18749_s3 + $0x214] ss:$8 sps:$4 sm:$0xff]  }
 0x3e5   : > { %13371 = vtanh.f32 %v10806_v9  ;;  %v10808_v42 = vadd.f32 %v4716_v1, %v16987_v11  ;;  %5396 = vmatmul.mubr.bf16.vlgmr.msra.gmra.mrb[160].mxu1 %v19147_v59 }
 0x3e6   : > { %v17029_v34 = vpop.eup %13361  ;;  %13373 = vtanh.f32 %v10807_v36  ;;  %5405 = vmatprep.mubr.bf16.mxu1 %v19149_v18  ;;  %5719 = vmatmul.mubr.bf16.gmra.mrb[52].mxu0 %v19053_v27 }
 0x3e7   : > { %19148 = vst [vmem:[#allocation30_spill] sm:$0xff] %v17029_v34  ;;  %v17033_v25 = vpop.eup %13363  ;;  %13375 = vtanh.f32 %v10808_v42  ;;  %5728 = vmatprep.mubr.bf16.mxu0 %v16016_v32  ;;  %6712 = vmatpush1.bf16.msra.mxu1 %v12417_v5 }
 0x3e8   : > { %19150 = vst [vmem:[#allocation15_spill] sm:$0xff] %v17033_v25  ;;  %v17042_v9 = vpop.eup %13365  ;;  %6713 = vmatprep.subr.bf16.mxu1 %v12422_v8 }
 0x3e9   : > { %19151 = vst [vmem:[#allocation27_spill] sm:$0xff] %v17042_v9  ;;  %v17044_v36 = vpop.eup %13367  ;;  %v4720_v1 = vpop.f32.mrb[204].mxu0 }
 0x3ea   : > { %19152 = vst [vmem:[#allocation24_spill] sm:$0xff] %v17044_v36  ;;  %v10809_v32 = vadd.f32 %v4720_v1, %v16982_v15  ;;  %v4722_v5 = vpop.f32.mrb[205].mxu0  ;;  %v19155_v1 = vld [vmem:[#allocation23_spill] sm:$0xff]  ;;  %v19159_v36 = vld [vmem:[#allocation33_spill] sm:$0xff] }
 0x3eb   : > { %v10810_v30 = vadd.f32 %v4722_v5, %v16987_v11  ;;  %v4724_v19 = vpop.f32.mrb[206].mxu0  ;;  %6714 = vmatpush1.bf16.msra.mxu1 %v12420_v28  ;;  %v19174_v5 = vld [vmem:[#allocation61_spill] sm:$0xff] }
 0x3ec   : > { %13377 = vtanh.f32 %v10809_v32  ;;  %v10811_v14 = vadd.f32 %v4724_v19, %v16982_v15  ;;  %v4726_v31 = vpop.f32.mrb[207].mxu0  ;;  %v12423_v19 = vld [vmem:[%s18749_s3 + $0x220] ss:$8 sps:$4 sm:$0xff]  }
 0x3ed   : > { %13379 = vtanh.f32 %v10810_v30  ;;  %v10812_v8 = vadd.f32 %v4726_v31, %v16987_v11  ;;  %5406 = vmatmul.mubr.bf16.gmra.mrb[164].mxu1 %v19153_v38  ;;  %v12425_v31 = vld [vmem:[%s18749_s3 + $0x224] ss:$8 sps:$4 sm:$0xff]  }
 0x3ee   : > { %v17055_v27 = vpop.eup %13369  ;;  %13381 = vtanh.f32 %v10811_v14  ;;  %5415 = vmatprep.mubr.bf16.mxu1 %v19155_v1  ;;  %5729 = vmatmul.mubr.bf16.gmra.mrb[56].mxu0 %v19055_v35 }
 0x3ef   : > { %19154 = vst [vmem:[#allocation31_spill] sm:$0xff] %v17055_v27  ;;  %v17059_v42 = vpop.eup %13371  ;;  %13383 = vtanh.f32 %v10812_v8  ;;  %5738 = vmatprep.mubr.bf16.mxu0 %v16052_v26  ;;  %6715 = vmatprep.subr.bf16.mxu1 %v12425_v31 }
 0x3f0   : > { %19156 = vst [vmem:[#allocation23_spill] sm:$0xff] %v17059_v42  ;;  %v17068_v30 = vpop.eup %13373  ;;  %6716 = vmatpush1.bf16.msra.mxu1 %v12423_v19 }
 0x3f1   : > { %19157 = vst [vmem:[#allocation109_spill] sm:$0xff] %v17068_v30  ;;  %v17070_v14 = vpop.eup %13375  ;;  %v4730_v28 = vpop.f32.mrb[208].mxu0 }
 0x3f2   : > { %19158 = vst [vmem:[#allocation110_spill] sm:$0xff] %v17070_v14  ;;  %v10813_v32 = vadd.f32 %v4730_v28, %v16982_v15  ;;  %v4732_v26 = vpop.f32.mrb[209].mxu0  ;;  %v19161_v28 = vld [vmem:[#allocation29_spill] sm:$0xff] }
 0x3f3   : > { %v10814_v8 = vadd.f32 %v4732_v26, %v16987_v11  ;;  %v4734_v34 = vpop.f32.mrb[210].mxu0  ;;  %v19163_v26 = vld [vmem:[#allocation26_spill] sm:$0xff] }
 0x3f4   : > { %13385 = vtanh.f32 %v10813_v32  ;;  %v10815_v9 = vadd.f32 %v4734_v34, %v16982_v15  ;;  %v4736_v25 = vpop.f32.mrb[211].mxu0  ;;  %v12426_v34 = vld [vmem:[%s18749_s3 + $0x230] ss:$8 sps:$4 sm:$0xff]  }
 0x3f5   : > { %13387 = vtanh.f32 %v10814_v8  ;;  %v10816_v31 = vadd.f32 %v4736_v25, %v16987_v11  ;;  %5416 = vmatmul.mubr.bf16.gmra.mrb[168].mxu1 %v19159_v36  ;;  %v12428_v25 = vld [vmem:[%s18749_s3 + $0x234] ss:$8 sps:$4 sm:$0xff]  }
 0x3f6   : > { %v17081_v35 = vpop.eup %13377  ;;  %13389 = vtanh.f32 %v10815_v9  ;;  %5425 = vmatprep.mubr.bf16.mxu1 %v19161_v28  ;;  %5739 = vmatmul.mubr.bf16.gmra.mrb[60].mxu0 %v19057_v33 }
 0x3f7   : > { %19160 = vst [vmem:[#allocation33_spill] sm:$0xff] %v17081_v35  ;;  %v17085_v19 = vpop.eup %13379  ;;  %13391 = vtanh.f32 %v10816_v31  ;;  %5781 = vmatprep.mubr.bf16.mxu0 %v19163_v26  ;;  %6717 = vmatprep.subr.bf16.mxu1 %v12428_v25 }
 0x3f8   : > { %19162 = vst [vmem:[#allocation29_spill] sm:$0xff] %v17085_v19  ;;  %v17094_v32 = vpop.eup %13381  ;;  %6718 = vmatpush1.bf16.msra.mxu1 %v12426_v34 }
 0x3f9   : > { %19164 = vst [vmem:[#allocation26_spill] sm:$0xff] %v17094_v32  ;;  %v17096_v9 = vpop.eup %13383  ;;  %v4740_v8 = vpop.f32.mrb[212].mxu0 }
 0x3fa   : > { %19165 = vst [vmem:[#allocation111_spill] sm:$0xff] %v17096_v9  ;;  %v10817_v31 = vadd.f32 %v4740_v8, %v16982_v15  ;;  %v4742_v26 = vpop.f32.mrb[213].mxu0  ;;  %v19168_v8 = vld [vmem:[#allocation62_spill] sm:$0xff] }
 0x3fb   : > { %v10818_v27 = vadd.f32 %v4742_v26, %v16987_v11  ;;  %v4744_v30 = vpop.f32.mrb[214].mxu0  ;;  %v19172_v26 = vld [vmem:[#allocation37_spill] sm:$0xff] }
 0x3fc   : > { %13393 = vtanh.f32 %v10817_v31  ;;  %v10819_v42 = vadd.f32 %v4744_v30, %v16982_v15  ;;  %v4746_v14 = vpop.f32.mrb[215].mxu0  ;;  %v12429_v30 = vld [vmem:[%s18749_s3 + $0x240] ss:$8 sps:$4 sm:$0xff]  }
 0x3fd   : > { %13395 = vtanh.f32 %v10818_v27  ;;  %v10820_v25 = vadd.f32 %v4746_v14, %v16987_v11  ;;  %5426 = vmatmul.mubr.bf16.gmra.mrb[172].mxu1 %v19166_v37  ;;  %v14222_v27 = vld [vmem:[%s18748_s2 + $0x408] ss:$16 sps:$4 sm:$0xff]  }
 0x3fe   : > { %v17107_v33 = vpop.eup %13385  ;;  %13397 = vtanh.f32 %v10819_v42  ;;  %5435 = vmatprep.mubr.bf16.mxu1 %v19168_v8  ;;  %5782 = vmatmul.mubr.bf16.vlgmr.msra.gmra.mrb[0].mxu0 %v15701_v44  ;;  %v12431_v42 = vld [vmem:[%s18749_s3 + $0x244] ss:$8 sps:$4 sm:$0xff]  }
 0x3ff   : > { %19167 = vst [vmem:[#allocation35_spill] sm:$0xff] %v17107_v33  ;;  %v17111_v34 = vpop.eup %13387  ;;  %13399 = vtanh.f32 %v10820_v25  ;;  %5791 = vmatprep.mubr.bf16.mxu0 %v19085_v48  ;;  %5943 = vmatpush1.bf16.msra.mxu0 %v14222_v27  ;;  %v14223_v44 = vld [vmem:[%s18748_s2 + $0x42c] ss:$16 sps:$4 sm:$0xff]  }
 0x400   : > { %19169 = vst [vmem:[#allocation62_spill] sm:$0xff] %v17111_v34  ;;  %v17123_v14 = vpop.eup %13389  ;;  %5944 = vmatprep.subr.bf16.mxu0 %v14223_v44  ;;  %6719 = vmatprep.subr.bf16.mxu1 %v12431_v42  ;;  %v14224_v44 = vld [vmem:[%s18748_s2 + $0x428] ss:$16 sps:$4 sm:$0xff]  }
 0x401   : > { %19170 = vst [vmem:[#allocation112_spill] sm:$0xff] %v17123_v14  ;;  %v17128_v48 = vpop.eup %13391  ;;  %v4750_v31 = vpop.f32.mrb[216].mxu0  ;;  %6720 = vmatpush1.bf16.msra.mxu1 %v12429_v30  ;;  %v19181_v14 = vld [vmem:[#allocation64_spill] sm:$0xff] }
 0x402   : > { %19171 = vst [vmem:[#allocation113_spill] sm:$0xff] %v17128_v48  ;;  %v10821_v25 = vadd.f32 %v4750_v31, %v16982_v15  ;;  %v4752_v27 = vpop.f32.mrb[217].mxu0  ;;  %v14225_v31 = vld [vmem:[%s18748_s2 + $0x44c] ss:$16 sps:$4 sm:$0xff]  }
 0x403   : > { %v10822_v35 = vadd.f32 %v4752_v27, %v16987_v11  ;;  %v4754_v32 = vpop.f32.mrb[218].mxu0  ;;  %5945 = vmatpush1.bf16.msra.mxu0 %v14224_v44  ;;  %v12434_v44 = vld [vmem:[%s18749_s3 + $0x254] ss:$8 sps:$4 sm:$0xff]  }
 0x404   : > { %13401 = vtanh.f32 %v10821_v25  ;;  %v10823_v42 = vadd.f32 %v4754_v32, %v16982_v15  ;;  %v4756_v19 = vpop.f32.mrb[219].mxu0  ;;  %5946 = vmatprep.subr.bf16.mxu0 %v14225_v31  ;;  %v19176_v32 = vld [vmem:[#allocation32_spill] sm:$0xff]  ;;  %6721 = vmatprep.subr.bf16.mxu1 %v12434_v44 }
 0x405   : > { %13403 = vtanh.f32 %v10822_v35  ;;  %v10824_v30 = vadd.f32 %v4756_v19, %v16987_v11  ;;  %5436 = vmatmul.mubr.bf16.gmra.mrb[176].mxu1 %v19172_v26  ;;  %v14226_v35 = vld [vmem:[%s18748_s2 + $0x448] ss:$16 sps:$4 sm:$0xff]  }
 0x406   : > { %v17145_v27 = vpop.eup %13393  ;;  %13405 = vtanh.f32 %v10823_v42  ;;  %5445 = vmatprep.mubr.bf16.mxu1 %v19174_v5  ;;  %5792 = vmatmul.mubr.bf16.gmra.mrb[4].mxu0 %v19058_v6  ;;  %v12432_v19 = vld [vmem:[%s18749_s3 + $0x250] ss:$8 sps:$4 sm:$0xff]   ;;  %v14227_v6 = vld [vmem:[%s18748_s2 + $0x46c] ss:$16 sps:$4 sm:$0xff]  }
 0x407   : > { %19173 = vst [vmem:[#allocation37_spill] sm:$0xff] %v17145_v27  ;;  %v17149_v25 = vpop.eup %13395  ;;  %13407 = vtanh.f32 %v10824_v30  ;;  %5801 = vmatprep.mubr.bf16.mxu0 %v19176_v32  ;;  %5947 = vmatpush1.bf16.msra.mxu0 %v14226_v35  ;;  %v19179_v32 = vld [vmem:[#allocation39_spill] sm:$0xff] }
 0x408   : > { %19175 = vst [vmem:[#allocation61_spill] sm:$0xff] %v17149_v25  ;;  %v17161_v42 = vpop.eup %13397  ;;  %5948 = vmatprep.subr.bf16.mxu0 %v14227_v6  ;;  %6722 = vmatpush1.bf16.msra.mxu1 %v12432_v19  ;;  %v14228_v6 = vld [vmem:[%s18748_s2 + $0x468] ss:$16 sps:$4 sm:$0xff]  }
 0x409   : > { %19177 = vst [vmem:[#allocation32_spill] sm:$0xff] %v17161_v42  ;;  %v17166_v31 = vpop.eup %13399  ;;  %v4760_v30 = vpop.f32.mrb[220].mxu0  ;;  %v19187_v27 = vld [vmem:[#allocation63_spill] sm:$0xff] }
 0x40a   : > { %19178 = vst [vmem:[#allocation114_spill] sm:$0xff] %v17166_v31  ;;  %v10825_v35 = vadd.f32 %v4760_v30, %v16982_v15  ;;  %v4762_v33 = vpop.f32.mrb[221].mxu0  ;;  %v14229_v30 = vld [vmem:[%s18748_s2 + $0x48c] ss:$16 sps:$4 sm:$0xff]  }
 0x40b   : > { %v10826_v34 = vadd.f32 %v4762_v33, %v16987_v11  ;;  %v4764_v48 = vpop.f32.mrb[222].mxu0  ;;  %5949 = vmatpush1.bf16.msra.mxu0 %v14228_v6 }
 0x40c   : > { %13409 = vtanh.f32 %v10825_v35  ;;  %v10827_v44 = vadd.f32 %v4764_v48, %v16982_v15  ;;  %v4766_v9 = vpop.f32.mrb[223].mxu0  ;;  %5950 = vmatprep.subr.bf16.mxu0 %v14229_v30  ;;  %v12437_v48 = vld [vmem:[%s18749_s3 + $0x264] ss:$8 sps:$4 sm:$0xff]  }
 0x40d   : > { %13411 = vtanh.f32 %v10826_v34  ;;  %v10828_v19 = vadd.f32 %v4766_v9, %v16987_v11  ;;  %5446 = vmatmul.mubr.bf16.gmra.mrb[180].mxu1 %v19179_v32  ;;  %v14230_v34 = vld [vmem:[%s18748_s2 + $0x488] ss:$16 sps:$4 sm:$0xff]   ;;  %6723 = vmatprep.subr.bf16.mxu1 %v12437_v48 }
 0x40e   : > { %v17183_v33 = vpop.eup %13401  ;;  %13413 = vtanh.f32 %v10827_v44  ;;  %5455 = vmatprep.mubr.bf16.mxu1 %v19181_v14  ;;  %5802 = vmatmul.mubr.bf16.gmra.mrb[8].mxu0 %v19059_v20  ;;  %v12435_v9 = vld [vmem:[%s18749_s3 + $0x260] ss:$8 sps:$4 sm:$0xff]   ;;  %v14231_v20 = vld [vmem:[%s18748_s2 + $0x4ac] ss:$16 sps:$4 sm:$0xff]  }
 0x40f   : > { %19180 = vst [vmem:[#allocation39_spill] sm:$0xff] %v17183_v33  ;;  %v17187_v35 = vpop.eup %13403  ;;  %13415 = vtanh.f32 %v10828_v19  ;;  %5811 = vmatprep.mubr.bf16.mxu0 %v19095_v47  ;;  %5951 = vmatpush1.bf16.msra.mxu0 %v14230_v34  ;;  %v19185_v30 = vld [vmem:[#allocation41_spill] sm:$0xff]  ;;  %v19193_v33 = vld [vmem:[#allocation66_spill] sm:$0xff] }
 0x410   : > { %19182 = vst [vmem:[#allocation64_spill] sm:$0xff] %v17187_v35  ;;  %v17199_v6 = vpop.eup %13405  ;;  %5952 = vmatprep.subr.bf16.mxu0 %v14231_v20  ;;  %6724 = vmatpush1.bf16.msra.mxu1 %v12435_v9  ;;  %v14232_v20 = vld [vmem:[%s18748_s2 + $0x4a8] ss:$16 sps:$4 sm:$0xff]  }
 0x411   : > { %19183 = vst [vmem:[#allocation115_spill] sm:$0xff] %v17199_v6  ;;  %v17204_v47 = vpop.eup %13407  ;;  %v4770_v44 = vpop.f32.mrb[224].mxu0 }
 0x412   : > { %19184 = vst [vmem:[#allocation116_spill] sm:$0xff] %v17204_v47  ;;  %v10829_v19 = vadd.f32 %v4770_v44, %v16982_v15  ;;  %v4772_v34 = vpop.f32.mrb[225].mxu0  ;;  %v14233_v44 = vld [vmem:[%s18748_s2 + $0x4cc] ss:$16 sps:$4 sm:$0xff]  }
 0x413   : > { %v10830_v42 = vadd.f32 %v4772_v34, %v16987_v11  ;;  %v4774_v25 = vpop.f32.mrb[226].mxu0  ;;  %5953 = vmatpush1.bf16.msra.mxu0 %v14232_v20 }
 0x414   : > { %13417 = vtanh.f32 %v10829_v19  ;;  %v10831_v48 = vadd.f32 %v4774_v25, %v16982_v15  ;;  %v4776_v31 = vpop.f32.mrb[227].mxu0  ;;  %5954 = vmatprep.subr.bf16.mxu0 %v14233_v44  ;;  %v14234_v25 = vld [vmem:[%s18748_s2 + $0x4c8] ss:$16 sps:$4 sm:$0xff]  }
 0x415   : > { %13419 = vtanh.f32 %v10830_v42  ;;  %v10832_v9 = vadd.f32 %v4776_v31, %v16987_v11  ;;  %5456 = vmatmul.mubr.bf16.gmra.mrb[184].mxu1 %v19185_v30  ;;  %v12438_v42 = vld [vmem:[%s18749_s3 + $0x270] ss:$8 sps:$4 sm:$0xff]   ;;  %v12440_v31 = vld [vmem:[%s18749_s3 + $0x274] ss:$8 sps:$4 sm:$0xff]  }
 0x416   : > { %v17221_v34 = vpop.eup %13409  ;;  %13421 = vtanh.f32 %v10831_v48  ;;  %5465 = vmatprep.mubr.bf16.mxu1 %v19187_v27  ;;  %5812 = vmatmul.mubr.bf16.gmra.mrb[12].mxu0 %v19060_v16  ;;  %v14235_v16 = vld [vmem:[%s18748_s2 + $0x4ec] ss:$16 sps:$4 sm:$0xff]  }
 0x417   : > { %19186 = vst [vmem:[#allocation41_spill] sm:$0xff] %v17221_v34  ;;  %v17225_v19 = vpop.eup %13411  ;;  %13423 = vtanh.f32 %v10832_v9  ;;  %5821 = vmatprep.mubr.bf16.mxu0 %v19098_v41  ;;  %5955 = vmatpush1.bf16.msra.mxu0 %v14234_v25  ;;  %v19191_v44 = vld [vmem:[#allocation43_spill] sm:$0xff]  ;;  %v19199_v34 = vld [vmem:[#allocation65_spill] sm:$0xff] }
 0x418   : > { %19188 = vst [vmem:[#allocation63_spill] sm:$0xff] %v17225_v19  ;;  %v17237_v20 = vpop.eup %13413  ;;  %5956 = vmatprep.subr.bf16.mxu0 %v14235_v16  ;;  %6725 = vmatprep.subr.bf16.mxu1 %v12440_v31  ;;  %v14236_v16 = vld [vmem:[%s18748_s2 + $0x4e8] ss:$16 sps:$4 sm:$0xff]  }
 0x419   : > { %19189 = vst [vmem:[#allocation117_spill] sm:$0xff] %v17237_v20  ;;  %v17242_v41 = vpop.eup %13415  ;;  %v4780_v48 = vpop.f32.mrb[228].mxu0  ;;  %6726 = vmatpush1.bf16.msra.mxu1 %v12438_v42 }
 0x41a   : > { %19190 = vst [vmem:[#allocation118_spill] sm:$0xff] %v17242_v41  ;;  %v10833_v9 = vadd.f32 %v4780_v48, %v16982_v15  ;;  %v4782_v25 = vpop.f32.mrb[229].mxu0  ;;  %v14237_v48 = vld [vmem:[%s18748_s2 + $0x50c] ss:$16 sps:$4 sm:$0xff]  }
 0x41b   : > { %v10834_v6 = vadd.f32 %v4782_v25, %v16987_v11  ;;  %v4784_v35 = vpop.f32.mrb[230].mxu0  ;;  %5957 = vmatpush1.bf16.msra.mxu0 %v14236_v16 }
 0x41c   : > { %13425 = vtanh.f32 %v10833_v9  ;;  %v10835_v31 = vadd.f32 %v4784_v35, %v16982_v15  ;;  %v4786_v47 = vpop.f32.mrb[231].mxu0  ;;  %5958 = vmatprep.subr.bf16.mxu0 %v14237_v48  ;;  %v14238_v35 = vld [vmem:[%s18748_s2 + $0x508] ss:$16 sps:$4 sm:$0xff]  }
 0x41d   : > { %13427 = vtanh.f32 %v10834_v6  ;;  %v10836_v42 = vadd.f32 %v4786_v47, %v16987_v11  ;;  %5466 = vmatmul.mubr.bf16.gmra.mrb[188].mxu1 %v19191_v44  ;;  %v12441_v6 = vld [vmem:[%s18749_s3 + $0x280] ss:$8 sps:$4 sm:$0xff]   ;;  %v12443_v47 = vld [vmem:[%s18749_s3 + $0x284] ss:$8 sps:$4 sm:$0xff]  }
 0x41e   : > { %v17259_v25 = vpop.eup %13417  ;;  %13429 = vtanh.f32 %v10835_v31  ;;  %5475 = vmatprep.mubr.bf16.mxu1 %v19193_v33  ;;  %5822 = vmatmul.mubr.bf16.gmra.mrb[16].mxu0 %v19061_v57  ;;  %v14239_v57 = vld [vmem:[%s18748_s2 + $0x52c] ss:$16 sps:$4 sm:$0xff]  }
 0x41f   : > { %19192 = vst [vmem:[#allocation43_spill] sm:$0xff] %v17259_v25  ;;  %v17263_v9 = vpop.eup %13419  ;;  %13431 = vtanh.f32 %v10836_v42  ;;  %5831 = vmatprep.mubr.bf16.mxu0 %v19101_v50  ;;  %5959 = vmatpush1.bf16.msra.mxu0 %v14238_v35 }
 0x420   : > { %19194 = vst [vmem:[#allocation66_spill] sm:$0xff] %v17263_v9  ;;  %v17275_v16 = vpop.eup %13421  ;;  %5960 = vmatprep.subr.bf16.mxu0 %v14239_v57  ;;  %6727 = vmatprep.subr.bf16.mxu1 %v12443_v47  ;;  %v14240_v57 = vld [vmem:[%s18748_s2 + $0x528] ss:$16 sps:$4 sm:$0xff]   ;;  %v14241_v47 = vld [vmem:[%s18748_s2 + $0x54c] ss:$16 sps:$4 sm:$0xff]  }
 0x421   : > { %19195 = vst [vmem:[#allocation119_spill] sm:$0xff] %v17275_v16  ;;  %v17280_v50 = vpop.eup %13423  ;;  %v4790_v48 = vpop.f32.mrb[232].mxu0  ;;  %6728 = vmatpush1.bf16.msra.mxu1 %v12441_v6  ;;  %v19205_v16 = vld [vmem:[#allocation68_spill] sm:$0xff] }
 0x422   : > { %19196 = vst [vmem:[#allocation120_spill] sm:$0xff] %v17280_v50  ;;  %v10837_v42 = vadd.f32 %v4790_v48, %v16982_v15  ;;  %v4792_v35 = vpop.f32.mrb[233].mxu0  ;;  %v19197_v48 = vld [vmem:[#allocation45_spill] sm:$0xff] }
 0x423   : > { %v10838_v20 = vadd.f32 %v4792_v35, %v16987_v11  ;;  %v4794_v19 = vpop.f32.mrb[234].mxu0  ;;  %5961 = vmatpush1.bf16.msra.mxu0 %v14240_v57 }
 0x424   : > { %13433 = vtanh.f32 %v10837_v42  ;;  %v10839_v31 = vadd.f32 %v4794_v19, %v16982_v15  ;;  %v4796_v25 = vpop.f32.mrb[235].mxu0  ;;  %5962 = vmatprep.subr.bf16.mxu0 %v14241_v47  ;;  %v14242_v19 = vld [vmem:[%s18748_s2 + $0x548] ss:$16 sps:$4 sm:$0xff]  }
 0x425   : > { %13435 = vtanh.f32 %v10838_v20  ;;  %v10840_v6 = vadd.f32 %v4796_v25, %v16987_v11  ;;  %5476 = vmatmul.mubr.bf16.gmra.mrb[192].mxu1 %v19197_v48  ;;  %v12444_v20 = vld [vmem:[%s18749_s3 + $0x290] ss:$8 sps:$4 sm:$0xff]   ;;  %v12446_v25 = vld [vmem:[%s18749_s3 + $0x294] ss:$8 sps:$4 sm:$0xff]  }
 0x426   : > { %v17297_v35 = vpop.eup %13425  ;;  %13437 = vtanh.f32 %v10839_v31  ;;  %5485 = vmatprep.mubr.bf16.mxu1 %v19199_v34  ;;  %5832 = vmatmul.mubr.bf16.gmra.mrb[20].mxu0 %v19062_v29  ;;  %v14243_v29 = vld [vmem:[%s18748_s2 + $0x56c] ss:$16 sps:$4 sm:$0xff]  }
 0x427   : > { %19198 = vst [vmem:[#allocation45_spill] sm:$0xff] %v17297_v35  ;;  %v17301_v42 = vpop.eup %13427  ;;  %13439 = vtanh.f32 %v10840_v6  ;;  %5841 = vmatprep.mubr.bf16.mxu0 %v19105_v58  ;;  %5963 = vmatpush1.bf16.msra.mxu0 %v14242_v19 }
 0x428   : > { %19200 = vst [vmem:[#allocation65_spill] sm:$0xff] %v17301_v42  ;;  %v17313_v31 = vpop.eup %13429  ;;  %5964 = vmatprep.subr.bf16.mxu0 %v14243_v29  ;;  %6729 = vmatprep.subr.bf16.mxu1 %v12446_v25  ;;  %v14244_v29 = vld [vmem:[%s18748_s2 + $0x568] ss:$16 sps:$4 sm:$0xff]   ;;  %v14245_v25 = vld [vmem:[%s18748_s2 + $0x58c] ss:$16 sps:$4 sm:$0xff]  }
 0x429   : > { %19201 = vst [vmem:[#allocation121_spill] sm:$0xff] %v17313_v31  ;;  %v17318_v58 = vpop.eup %13431  ;;  %v4800_v47 = vpop.f32.mrb[236].mxu0  ;;  %6730 = vmatpush1.bf16.msra.mxu1 %v12444_v20  ;;  %v19211_v31 = vld [vmem:[#allocation67_spill] sm:$0xff] }
 0x42a   : > { %19202 = vst [vmem:[#allocation122_spill] sm:$0xff] %v17318_v58  ;;  %v10841_v6 = vadd.f32 %v4800_v47, %v16982_v15  ;;  %v4802_v19 = vpop.f32.mrb[237].mxu0  ;;  %v19203_v47 = vld [vmem:[#allocation47_spill] sm:$0xff] }
 0x42b   : > { %v10842_v9 = vadd.f32 %v4802_v19, %v16987_v11  ;;  %v4804_v50 = vpop.f32.mrb[238].mxu0  ;;  %5965 = vmatpush1.bf16.msra.mxu0 %v14244_v29 }
 0x42c   : > { %13441 = vtanh.f32 %v10841_v6  ;;  %v10843_v57 = vadd.f32 %v4804_v50, %v16982_v15  ;;  %v4806_v35 = vpop.f32.mrb[239].mxu0  ;;  %5966 = vmatprep.subr.bf16.mxu0 %v14245_v25  ;;  %v12447_v50 = vld [vmem:[%s18749_s3 + $0x2a0] ss:$8 sps:$4 sm:$0xff]  }
 0x42d   : > { %13443 = vtanh.f32 %v10842_v9  ;;  %v10844_v20 = vadd.f32 %v4806_v35, %v16987_v11  ;;  %5486 = vmatmul.mubr.bf16.gmra.mrb[196].mxu1 %v19203_v47  ;;  %v14246_v9 = vld [vmem:[%s18748_s2 + $0x588] ss:$16 sps:$4 sm:$0xff]   ;;  %v12449_v35 = vld [vmem:[%s18749_s3 + $0x2a4] ss:$8 sps:$4 sm:$0xff]  }
 0x42e   : > { %v17335_v19 = vpop.eup %13433  ;;  %13445 = vtanh.f32 %v10843_v57  ;;  %5495 = vmatprep.mubr.bf16.mxu1 %v19205_v16  ;;  %5842 = vmatmul.mubr.bf16.gmra.mrb[24].mxu0 %v15818_v53  ;;  %v14247_v53 = vld [vmem:[%s18748_s2 + $0x5ac] ss:$16 sps:$4 sm:$0xff]  }
 0x42f   : > { %19204 = vst [vmem:[#allocation47_spill] sm:$0xff] %v17335_v19  ;;  %v17339_v6 = vpop.eup %13435  ;;  %13447 = vtanh.f32 %v10844_v20  ;;  %5851 = vmatprep.mubr.bf16.mxu0 %v19109_v13  ;;  %5967 = vmatpush1.bf16.msra.mxu0 %v14246_v9 }
 0x430   : > { %19206 = vst [vmem:[#allocation68_spill] sm:$0xff] %v17339_v6  ;;  %v17351_v57 = vpop.eup %13437  ;;  %5968 = vmatprep.subr.bf16.mxu0 %v14247_v53  ;;  %6731 = vmatprep.subr.bf16.mxu1 %v12449_v35  ;;  %v14248_v53 = vld [vmem:[%s18748_s2 + $0x5a8] ss:$16 sps:$4 sm:$0xff]   ;;  %v14249_v35 = vld [vmem:[%s18748_s2 + $0x5cc] ss:$16 sps:$4 sm:$0xff]  }
 0x431   : > { %19207 = vst [vmem:[#allocation123_spill] sm:$0xff] %v17351_v57  ;;  %v17356_v13 = vpop.eup %13439  ;;  %v4810_v25 = vpop.f32.mrb[240].mxu0  ;;  %6732 = vmatpush1.bf16.msra.mxu1 %v12447_v50  ;;  %v12455_v57 = vld [vmem:[%s18749_s3 + $0x2c4] ss:$8 sps:$4 sm:$0xff]  }
 0x432   : > { %19208 = vst [vmem:[#allocation124_spill] sm:$0xff] %v17356_v13  ;;  %v10845_v20 = vadd.f32 %v4810_v25, %v16982_v15  ;;  %v4812_v9 = vpop.f32.mrb[241].mxu0  ;;  %v19209_v25 = vld [vmem:[#allocation49_spill] sm:$0xff] }
 0x433   : > { %v10846_v42 = vadd.f32 %v4812_v9, %v16987_v11  ;;  %v4814_v58 = vpop.f32.mrb[242].mxu0  ;;  %5969 = vmatpush1.bf16.msra.mxu0 %v14248_v53  ;;  %v14252_v13 = vld [vmem:[%s18748_s2 + $0x5e8] ss:$16 sps:$4 sm:$0xff]  }
 0x434   : > { %13449 = vtanh.f32 %v10845_v20  ;;  %v10847_v29 = vadd.f32 %v4814_v58, %v16982_v15  ;;  %v4816_v19 = vpop.f32.mrb[243].mxu0  ;;  %5970 = vmatprep.subr.bf16.mxu0 %v14249_v35  ;;  %v12452_v58 = vld [vmem:[%s18749_s3 + $0x2b4] ss:$8 sps:$4 sm:$0xff]  }
 0x435   : > { %13451 = vtanh.f32 %v10846_v42  ;;  %v10848_v50 = vadd.f32 %v4816_v19, %v16987_v11  ;;  %5496 = vmatmul.mubr.bf16.gmra.mrb[200].mxu1 %v19209_v25  ;;  %v14250_v42 = vld [vmem:[%s18748_s2 + $0x5c8] ss:$16 sps:$4 sm:$0xff]   ;;  %6733 = vmatprep.subr.bf16.mxu1 %v12452_v58 }
 0x436   : > { %v17373_v9 = vpop.eup %13441  ;;  %13453 = vtanh.f32 %v10847_v29  ;;  %5505 = vmatprep.mubr.bf16.mxu1 %v19211_v31  ;;  %5852 = vmatmul.mubr.bf16.gmra.mrb[28].mxu0 %v15830_v3  ;;  %v12450_v19 = vld [vmem:[%s18749_s3 + $0x2b0] ss:$8 sps:$4 sm:$0xff]   ;;  %v14251_v3 = vld [vmem:[%s18748_s2 + $0x5ec] ss:$16 sps:$4 sm:$0xff]  }
 0x437   : > { %19210 = vst [vmem:[#allocation49_spill] sm:$0xff] %v17373_v9  ;;  %v17380_v20 = vpop.eup %13443  ;;  %13455 = vtanh.f32 %v10848_v50  ;;  %5861 = vmatprep.mubr.bf16.mxu0 %v19114_v56  ;;  %5971 = vmatpush1.bf16.msra.mxu0 %v14250_v42  ;;  %v19215_v9 = vld [vmem:[#allocation51_spill] sm:$0xff] }
 0x438   : > { %19212 = vst [vmem:[#allocation67_spill] sm:$0xff] %v17380_v20  ;;  %v17389_v29 = vpop.eup %13445  ;;  %5972 = vmatprep.subr.bf16.mxu0 %v14251_v3  ;;  %6734 = vmatpush1.bf16.msra.mxu1 %v12450_v19  ;;  %v12453_v19 = vld [vmem:[%s18749_s3 + $0x2c0] ss:$8 sps:$4 sm:$0xff]  }
 0x439   : > { %19213 = vst [vmem:[#allocation125_spill] sm:$0xff] %v17389_v29  ;;  %v17394_v53 = vpop.eup %13447  ;;  %v4820_v35 = vpop.f32.mrb[244].mxu0  ;;  %6735 = vmatprep.subr.bf16.mxu1 %v12455_v57  ;;  %v19217_v29 = vld [vmem:[#allocation70_spill] sm:$0xff] }
 0x43a   : > { %19214 = vst [vmem:[#allocation126_spill] sm:$0xff] %v17394_v53  ;;  %v10849_v50 = vadd.f32 %v4820_v35, %v16982_v15  ;;  %v4822_v42 = vpop.f32.mrb[245].mxu0  ;;  %v12456_v57 = vld [vmem:[%s18749_s3 + $0x2d0] ss:$8 sps:$4 sm:$0xff]  }
 0x43b   : > { %v10850_v3 = vadd.f32 %v4822_v42, %v16987_v11  ;;  %v4824_v58 = vpop.f32.mrb[246].mxu0  ;;  %5973 = vmatpush1.bf16.msra.mxu0 %v14252_v13  ;;  %v12458_v13 = vld [vmem:[%s18749_s3 + $0x2d4] ss:$8 sps:$4 sm:$0xff]  }
 0x43c   : > { %13457 = vtanh.f32 %v10849_v50  ;;  %v10851_v35 = vadd.f32 %v4824_v58, %v16982_v15  ;;  %v4826_v56 = vpop.f32.mrb[247].mxu0  ;;  %6736 = vmatpush1.bf16.msra.mxu1 %v12453_v19 }
 0x43d   : > { %13459 = vtanh.f32 %v10850_v3  ;;  %v10852_v6 = vadd.f32 %v4826_v56, %v16987_v11  ;;  %5506 = vmatmul.mubr.bf16.gmra.mrb[204].mxu1 %v19215_v9  ;;  %6737 = vmatprep.subr.bf16.mxu1 %v12458_v13  ;;  %v12459_v13 = vld [vmem:[%s18749_s3 + $0x2e0] ss:$8 sps:$4 sm:$0xff]  }
 0x43e   : > { %v17414_v42 = vpop.eup %13449  ;;  %13461 = vtanh.f32 %v10851_v35  ;;  %5515 = vmatprep.mubr.bf16.mxu1 %v19217_v29  ;;  %5862 = vmatmul.mubr.bf16.gmra.mrb[32].mxu0 %v19065_v60 }
 0x43f   : > { %19216 = vst [vmem:[#allocation51_spill] sm:$0xff] %v17414_v42  ;;  %v17421_v50 = vpop.eup %13451  ;;  %13463 = vtanh.f32 %v10852_v6  ;;  %5871 = vmatprep.mubr.bf16.mxu0 %v19119_v0  ;;  %v12461_v0 = vld [vmem:[%s18749_s3 + $0x2e4] ss:$8 sps:$4 sm:$0xff]  }
 0x440   : > { %19218 = vst [vmem:[#allocation70_spill] sm:$0xff] %v17421_v50  ;;  %v17427_v56 = vpop.eup %13453  ;;  %6738 = vmatpush1.bf16.msra.mxu1 %v12456_v57  ;;  %v12464_v57 = vld [vmem:[%s18749_s3 + $0x2f4] ss:$8 sps:$4 sm:$0xff]  }
 0x441   : > { %19219 = vst [vmem:[#allocation127_spill] sm:$0xff] %v17427_v56  ;;  %v17429_v3 = vpop.eup %13455  ;;  %v4830_v58 = vpop.f32.mrb[248].mxu0  ;;  %6739 = vmatprep.subr.bf16.mxu1 %v12461_v0  ;;  %v19221_v56 = vld [vmem:[#allocation53_spill] sm:$0xff] }
 0x442   : > { %19220 = vst [vmem:[#allocation128_spill] sm:$0xff] %v17429_v3  ;;  %v10853_v35 = vadd.f32 %v4830_v58, %v16982_v15  ;;  %v4832_v20 = vpop.f32.mrb[249].mxu0 }
 0x443   : > { %v10854_v19 = vadd.f32 %v4832_v20, %v16987_v11  ;;  %v4834_v53 = vpop.f32.mrb[250].mxu0  ;;  %v19222_v20 = vld [vmem:[#allocation69_spill] sm:$0xff] }
 0x444   : > { %13465 = vtanh.f32 %v10853_v35  ;;  %v10855_v60 = vadd.f32 %v4834_v53, %v16982_v15  ;;  %v4836_v58 = vpop.f32.mrb[251].mxu0  ;;  %6740 = vmatpush1.bf16.msra.mxu1 %v12459_v13  ;;  %v12462_v53 = vld [vmem:[%s18749_s3 + $0x2f0] ss:$8 sps:$4 sm:$0xff]  }
 0x445   : > { %13467 = vtanh.f32 %v10854_v19  ;;  %v10856_v42 = vadd.f32 %v4836_v58, %v16987_v11  ;;  %5516 = vmatmul.mubr.bf16.gmra.mrb[208].mxu1 %v19221_v56  ;;  %6741 = vmatprep.subr.bf16.mxu1 %v12464_v57 }
 0x446   : > { %v17446_v41 = vpop.eup %13457  ;;  %13469 = vtanh.f32 %v10855_v60  ;;  %5525 = vmatprep.mubr.bf16.mxu1 %v19222_v20  ;;  %5872 = vmatmul.mubr.bf16.gmra.mrb[36].mxu0 %v15860_v45 }
 0x447   : > { %v17453_v35 = vpop.eup %13459  ;;  %13471 = vtanh.f32 %v10856_v42  ;;  %5881 = vmatprep.mubr.bf16.mxu0 %v19124_v22 }
 0x448   : > { %v17459_v0 = vpop.eup %13461  ;;  %6742 = vmatpush1.bf16.msra.mxu1 %v12462_v53 }
 0x449   : > { %v17461_v60 = vpop.eup %13463  ;;  %v4840_v19 = vpop.f32.mrb[252].mxu0 }
 0x44a   : > { %v10857_v58 = vadd.f32 %v4840_v19, %v16982_v15  ;;  %v4842_v6 = vpop.f32.mrb[253].mxu0  ;;  %v19225_v19 = vld [vmem:[#allocation72_spill] sm:$0xff] }
 0x44b   : > { %v10858_v42 = vadd.f32 %v4842_v6, %v16987_v11  ;;  %v4844_v13 = vpop.f32.mrb[254].mxu0 }
 0x44c   : > { %13473 = vtanh.f32 %v10857_v58  ;;  %v10859_v50 = vadd.f32 %v4844_v13, %v16982_v15  ;;  %v4846_v57 = vpop.f32.mrb[255].mxu0 }
 0x44d   : > { %13475 = vtanh.f32 %v10858_v42  ;;  %v10860_v3 = vadd.f32 %v4846_v57, %v16987_v11  ;;  %5526 = vmatmul.mubr.bf16.gmra.mrb[212].mxu1 %v19223_v49 }
 0x44e   : > { %v17472_v45 = vpop.eup %13465  ;;  %13477 = vtanh.f32 %v10859_v50  ;;  %5535 = vmatprep.mubr.bf16.mxu1 %v19225_v19  ;;  %5882 = vmatmul.mubr.bf16.gmra.mrb[40].mxu0 %v15884_v40  ;;  %v19226_v50 = vld [vmem:[#allocation57_spill] sm:$0xff]  ;;  %v19227_v40 = vld [vmem:[#allocation71_spill] sm:$0xff] }
 0x44f   : > { %19224 = vst [vmem:[#allocation53_spill] sm:$0xff] %v17472_v45  ;;  %v17476_v22 = vpop.eup %13467  ;;  %13479 = vtanh.f32 %v10860_v3  ;;  %5891 = vmatprep.mubr.bf16.mxu0 %v19129_v63  ;;  %v19228_v45 = vld [vmem:[#allocation60_spill] sm:$0xff] }
 0x450   : > { %v17479_v6 = vpop.eup %13469 }
 0x451   : > { %v17481_v53 = vpop.eup %13471 }
 0x455   : > { %5536 = vmatmul.mubr.bf16.gmra.mrb[216].mxu1 %v19226_v50 }
 0x456   : > { %v17488_v13 = vpop.eup %13473  ;;  %5545 = vmatprep.mubr.bf16.mxu1 %v19227_v40  ;;  %5892 = vmatmul.mubr.bf16.gmra.mrb[44].mxu0 %v15908_v46  ;;  %v12467_v46 = vld [vmem:[%s18749_s3 + $0x304] ss:$8 sps:$4 sm:$0xff]  }
 0x457   : > { %v17492_v3 = vpop.eup %13475  ;;  %5901 = vmatprep.mubr.bf16.mxu0 %v19134_v4  ;;  %6904 = vmatprep.subr.bf16.mxu1 %v12467_v46 }
 0x458   : > { %v17495_v63 = vpop.eup %13477 }
 0x459   : > { %v17497_v57 = vpop.eup %13479  ;;  %v6325_v58 = vpack.c.bf16 %v17495_v63, %v17488_v13  ;;  %v14257_v63 = vld [vmem:[%s14564_s11 + $0x30] sm:$0xff] }
 0x45a   : > { %v6326_v42 = vpack.c.bf16 %v17497_v57, %v17492_v3  ;;  %v7945_v57 = vrot.slane %v14257_v63, 4 }
 0x45d   : > { %5546 = vmatmul.mubr.bf16.gmra.mrb[220].mxu1 %v19228_v45 }
 0x45e   : > { %5902 = vmatmul.mubr.bf16.gmra.mrb[48].mxu0 %v15944_v10 }
 0x45f   : > { %5911 = vmatprep.mubr.bf16.mxu0 %v19137_v2 }
 0x466   : > { %5912 = vmatmul.mubr.bf16.gmra.mrb[52].mxu0 %v15980_v52 }
 0x467   : > { %5921 = vmatprep.mubr.bf16.mxu0 %v19138_v39 }
 0x46e   : > { %5922 = vmatmul.mubr.bf16.gmra.mrb[56].mxu0 %v16019_v62 }
 0x46f   : > { %5931 = vmatprep.mubr.bf16.mxu0 %v19139_v23 }
 0x476   : > { %5932 = vmatmul.mubr.bf16.gmra.mrb[60].mxu0 %v16055_v12 }
 0x477   : > { %5974 = vmatprep.mubr.bf16.mxu0 %v19142_v24 }
 0x47e   : > { %5975 = vmatmul.mubr.bf16.vlgmr.msra.gmra.mrb[0].mxu0 %v19147_v59 }
 0x47f   : > { %5984 = vmatprep.mubr.bf16.mxu0 %v19149_v18 }
 0x486   : > { %5985 = vmatmul.mubr.bf16.gmra.mrb[4].mxu0 %v19153_v38 }
 0x487   : > { %5994 = vmatprep.mubr.bf16.mxu0 %v19155_v1 }
 0x48e   : > { %5995 = vmatmul.mubr.bf16.gmra.mrb[8].mxu0 %v19159_v36 }
 0x48f   : > { %6004 = vmatprep.mubr.bf16.mxu0 %v19161_v28 }
 0x496   : > { %6005 = vmatmul.mubr.bf16.gmra.mrb[12].mxu0 %v19166_v37 }
 0x497   : > { %6014 = vmatprep.mubr.bf16.mxu0 %v19168_v8 }
 0x49e   : > { %6015 = vmatmul.mubr.bf16.gmra.mrb[16].mxu0 %v19172_v26 }
 0x49f   : > { %6024 = vmatprep.mubr.bf16.mxu0 %v19174_v5 }
 0x4a6   : > { %6025 = vmatmul.mubr.bf16.gmra.mrb[20].mxu0 %v19179_v32 }
 0x4a7   : > { %6034 = vmatprep.mubr.bf16.mxu0 %v19181_v14 }
 0x4ae   : > { %6035 = vmatmul.mubr.bf16.gmra.mrb[24].mxu0 %v19185_v30 }
 0x4af   : > { %6044 = vmatprep.mubr.bf16.mxu0 %v19187_v27 }
 0x4b6   : > { %6045 = vmatmul.mubr.bf16.gmra.mrb[28].mxu0 %v19191_v44  ;;  %v12465_v44 = vld [vmem:[%s18749_s3 + $0x300] ss:$8 sps:$4 sm:$0xff]  }
 0x4b7   : > { %6054 = vmatprep.mubr.bf16.mxu0 %v19193_v33 }
 0x4b8   : > { %v5397_v10 = vpop.f32.mrb[160].mxu1 }
 0x4b9   : > { %v10861_v52 = vadd.f32 %v5397_v10, %v16442_v43  ;;  %v5399_v62 = vpop.f32.mrb[161].mxu1 }
 0x4ba   : > { %v10862_v12 = vadd.f32 %v5399_v62, %v16446_v51  ;;  %v5401_v38 = vpop.f32.mrb[162].mxu1 }
 0x4bb   : > { %13481 = vtanh.f32 %v10861_v52  ;;  %v10863_v37 = vadd.f32 %v5401_v38, %v16442_v43  ;;  %v5403_v2 = vpop.f32.mrb[163].mxu1 }
 0x4bc   : > { %13483 = vtanh.f32 %v10862_v12  ;;  %v10864_v39 = vadd.f32 %v5403_v2, %v16446_v51  ;;  %v12468_v12 = vld [vmem:[%s18749_s3 + $0x310] ss:$8 sps:$4 sm:$0xff]  }
 0x4bd   : > { %13485 = vtanh.f32 %v10863_v37  ;;  %v12473_v37 = vld [vmem:[%s18749_s3 + $0x324] ss:$8 sps:$4 sm:$0xff]  }
 0x4be   : > { %13487 = vtanh.f32 %v10864_v39  ;;  %6055 = vmatmul.mubr.bf16.gmra.mrb[32].mxu0 %v19197_v48 }
 0x4bf   : > { %6064 = vmatprep.mubr.bf16.mxu0 %v19199_v34 }
 0x4c0   : > { %v5407_v4 = vpop.f32.mrb[164].mxu1 }
 0x4c1   : > { %v10865_v23 = vadd.f32 %v5407_v4, %v16442_v43  ;;  %v5409_v59 = vpop.f32.mrb[165].mxu1 }
 0x4c2   : > { %v10866_v24 = vadd.f32 %v5409_v59, %v16446_v51  ;;  %v5411_v18 = vpop.f32.mrb[166].mxu1 }
 0x4c3   : > { %13489 = vtanh.f32 %v10865_v23  ;;  %v10867_v36 = vadd.f32 %v5411_v18, %v16442_v43  ;;  %v5413_v1 = vpop.f32.mrb[167].mxu1 }
 0x4c4   : > { %13491 = vtanh.f32 %v10866_v24  ;;  %v10868_v5 = vadd.f32 %v5413_v1, %v16446_v51 }
 0x4c5   : > { %v13482_v28 = vpop.eup %13481  ;;  %13493 = vtanh.f32 %v10867_v36 }
 0x4c6   : > { %v13484_v8 = vpop.eup %13483  ;;  %13495 = vtanh.f32 %v10868_v5  ;;  %6065 = vmatmul.mubr.bf16.gmra.mrb[36].mxu0 %v19203_v47  ;;  %v12470_v47 = vld [vmem:[%s18749_s3 + $0x314] ss:$8 sps:$4 sm:$0xff]  }
 0x4c7   : > { %v13486_v14 = vpop.eup %13485  ;;  %6074 = vmatprep.mubr.bf16.mxu0 %v19205_v16 }
 0x4c8   : > { %v13488_v26 = vpop.eup %13487  ;;  %v5417_v27 = vpop.f32.mrb[168].mxu1  ;;  %v6327_v32 = vpack.c.bf16 %v13486_v14, %v13482_v28 }
 0x4c9   : > { %v10869_v33 = vadd.f32 %v5417_v27, %v16442_v43  ;;  %v5419_v30 = vpop.f32.mrb[169].mxu1  ;;  %v6328_v34 = vpack.c.bf16 %v13488_v26, %v13484_v8  ;;  %v12474_v26 = vld [vmem:[%s18749_s3 + $0x330] ss:$8 sps:$4 sm:$0xff]  }
 0x4ca   : > { %v10870_v48 = vadd.f32 %v5419_v30, %v16446_v51  ;;  %v5421_v46 = vpop.f32.mrb[170].mxu1 }
 0x4cb   : > { %13497 = vtanh.f32 %v10869_v33  ;;  %v10871_v16 = vadd.f32 %v5421_v46, %v16442_v43  ;;  %v5423_v10 = vpop.f32.mrb[171].mxu1  ;;  %6743 = vmatprep.mubr.bf16.mxu1 %v6328_v34 }
 0x4cc   : > { %13499 = vtanh.f32 %v10870_v48  ;;  %v10872_v52 = vadd.f32 %v5423_v10, %v16446_v51  ;;  %6744 = vmatmul.mubr.bf16.vlgmr.msra.gmra.mrb[224].mxu1 %v6327_v32  ;;  %v12479_v32 = vld [vmem:[%s18749_s3 + $0x344] ss:$8 sps:$4 sm:$0xff]  }
 0x4cd   : > { %v13490_v62 = vpop.eup %13489  ;;  %13501 = vtanh.f32 %v10871_v16  ;;  %6905 = vmatpush1.bf16.msra.mxu1 %v12465_v44 }
 0x4ce   : > { %v13492_v38 = vpop.eup %13491  ;;  %13503 = vtanh.f32 %v10872_v52  ;;  %6075 = vmatmul.mubr.bf16.gmra.mrb[40].mxu0 %v19209_v25  ;;  %6906 = vmatprep.subr.bf16.mxu1 %v12470_v47  ;;  %v12471_v25 = vld [vmem:[%s18749_s3 + $0x320] ss:$8 sps:$4 sm:$0xff]  }
 0x4cf   : > { %v13494_v2 = vpop.eup %13493  ;;  %6084 = vmatprep.mubr.bf16.mxu0 %v19211_v31  ;;  %v12476_v31 = vld [vmem:[%s18749_s3 + $0x334] ss:$8 sps:$4 sm:$0xff]  }
 0x4d0   : > { %v13496_v39 = vpop.eup %13495  ;;  %v5427_v4 = vpop.f32.mrb[172].mxu1  ;;  %v6331_v23 = vpack.c.bf16 %v13494_v2, %v13490_v62 }
 0x4d1   : > { %v10873_v59 = vadd.f32 %v5427_v4, %v16442_v43  ;;  %v5429_v24 = vpop.f32.mrb[173].mxu1  ;;  %v6332_v18 = vpack.c.bf16 %v13496_v39, %v13492_v38  ;;  %6907 = vmatpush1.bf16.msra.mxu1 %v12468_v12  ;;  %v12485_v39 = vld [vmem:[%s18749_s3 + $0x364] ss:$8 sps:$4 sm:$0xff]  }
 0x4d2   : > { %v10874_v36 = vadd.f32 %v5429_v24, %v16446_v51  ;;  %v5431_v1 = vpop.f32.mrb[174].mxu1  ;;  %6908 = vmatprep.subr.bf16.mxu1 %v12473_v37  ;;  %v12480_v37 = vld [vmem:[%s18749_s3 + $0x350] ss:$8 sps:$4 sm:$0xff]  }
 0x4d3   : > { %13505 = vtanh.f32 %v10873_v59  ;;  %v10875_v5 = vadd.f32 %v5431_v1, %v16442_v43  ;;  %v5433_v28 = vpop.f32.mrb[175].mxu1  ;;  %6753 = vmatprep.mubr.bf16.mxu1 %v6332_v18 }
 0x4d4   : > { %13507 = vtanh.f32 %v10874_v36  ;;  %v10876_v8 = vadd.f32 %v5433_v28, %v16446_v51  ;;  %6754 = vmatmul.mubr.bf16.gmra.mrb[228].mxu1 %v6331_v23 }
 0x4d5   : > { %v13498_v14 = vpop.eup %13497  ;;  %13509 = vtanh.f32 %v10875_v5  ;;  %6909 = vmatpush1.bf16.msra.mxu1 %v12471_v25 }
 0x4d6   : > { %v13500_v27 = vpop.eup %13499  ;;  %13511 = vtanh.f32 %v10876_v8  ;;  %6085 = vmatmul.mubr.bf16.gmra.mrb[44].mxu0 %v19215_v9  ;;  %6910 = vmatprep.subr.bf16.mxu1 %v12476_v31  ;;  %v12477_v9 = vld [vmem:[%s18749_s3 + $0x340] ss:$8 sps:$4 sm:$0xff]  }
 0x4d7   : > { %v13502_v33 = vpop.eup %13501  ;;  %6094 = vmatprep.mubr.bf16.mxu0 %v19217_v29  ;;  %v12482_v29 = vld [vmem:[%s18749_s3 + $0x354] ss:$8 sps:$4 sm:$0xff]  }
 0x4d8   : > { %v13504_v30 = vpop.eup %13503  ;;  %v5437_v34 = vpop.f32.mrb[176].mxu1  ;;  %v6335_v44 = vpack.c.bf16 %v13502_v33, %v13498_v14 }
 0x4d9   : > { %v10877_v48 = vadd.f32 %v5437_v34, %v16442_v43  ;;  %v5439_v46 = vpop.f32.mrb[177].mxu1  ;;  %v6336_v47 = vpack.c.bf16 %v13504_v30, %v13500_v27  ;;  %6911 = vmatpush1.bf16.msra.mxu1 %v12474_v26  ;;  %v12486_v26 = vld [vmem:[%s18749_s3 + $0x370] ss:$8 sps:$4 sm:$0xff]  }
 0x4da   : > { %v10878_v16 = vadd.f32 %v5439_v46, %v16446_v51  ;;  %v5441_v10 = vpop.f32.mrb[178].mxu1  ;;  %6912 = vmatprep.subr.bf16.mxu1 %v12479_v32  ;;  %v12491_v32 = vld [vmem:[%s18749_s3 + $0x384] ss:$8 sps:$4 sm:$0xff]  }
 0x4db   : > { %13513 = vtanh.f32 %v10877_v48  ;;  %v10879_v52 = vadd.f32 %v5441_v10, %v16442_v43  ;;  %v5443_v62 = vpop.f32.mrb[179].mxu1  ;;  %6763 = vmatprep.mubr.bf16.mxu1 %v6336_v47 }
 0x4dc   : > { %13515 = vtanh.f32 %v10878_v16  ;;  %v10880_v12 = vadd.f32 %v5443_v62, %v16446_v51  ;;  %6764 = vmatmul.mubr.bf16.gmra.mrb[232].mxu1 %v6335_v44 }
 0x4dd   : > { %v13506_v38 = vpop.eup %13505  ;;  %13517 = vtanh.f32 %v10879_v52  ;;  %6913 = vmatpush1.bf16.msra.mxu1 %v12477_v9 }
 0x4de   : > { %v13508_v2 = vpop.eup %13507  ;;  %13519 = vtanh.f32 %v10880_v12  ;;  %6095 = vmatmul.mubr.bf16.gmra.mrb[48].mxu0 %v19221_v56  ;;  %6914 = vmatprep.subr.bf16.mxu1 %v12482_v29  ;;  %v12483_v56 = vld [vmem:[%s18749_s3 + $0x360] ss:$8 sps:$4 sm:$0xff]   ;;  %v12492_v12 = vld [vmem:[%s18749_s3 + $0x390] ss:$8 sps:$4 sm:$0xff]  }
 0x4df   : > { %v13510_v4 = vpop.eup %13509  ;;  %6104 = vmatprep.mubr.bf16.mxu0 %v19222_v20  ;;  %v12488_v20 = vld [vmem:[%s18749_s3 + $0x374] ss:$8 sps:$4 sm:$0xff]  }
 0x4e0   : > { %v13512_v23 = vpop.eup %13511  ;;  %v5447_v59 = vpop.f32.mrb[180].mxu1  ;;  %v6339_v24 = vpack.c.bf16 %v13510_v4, %v13506_v38 }
 0x4e1   : > { %v10881_v18 = vadd.f32 %v5447_v59, %v16442_v43  ;;  %v5449_v25 = vpop.f32.mrb[181].mxu1  ;;  %v6340_v36 = vpack.c.bf16 %v13512_v23, %v13508_v2  ;;  %6915 = vmatpush1.bf16.msra.mxu1 %v12480_v37  ;;  %v12497_v37 = vld [vmem:[%s18749_s3 + $0x3a4] ss:$8 sps:$4 sm:$0xff]  }
 0x4e2   : > { %v10882_v1 = vadd.f32 %v5449_v25, %v16446_v51  ;;  %v5451_v31 = vpop.f32.mrb[182].mxu1  ;;  %6916 = vmatprep.subr.bf16.mxu1 %v12485_v39 }
 0x4e3   : > { %13521 = vtanh.f32 %v10881_v18  ;;  %v10883_v5 = vadd.f32 %v5451_v31, %v16442_v43  ;;  %v5453_v28 = vpop.f32.mrb[183].mxu1  ;;  %6773 = vmatprep.mubr.bf16.mxu1 %v6340_v36 }
 0x4e4   : > { %13523 = vtanh.f32 %v10882_v1  ;;  %v10884_v8 = vadd.f32 %v5453_v28, %v16446_v51  ;;  %6774 = vmatmul.mubr.bf16.gmra.mrb[236].mxu1 %v6339_v24 }
 0x4e5   : > { %v13514_v14 = vpop.eup %13513  ;;  %13525 = vtanh.f32 %v10883_v5  ;;  %6917 = vmatpush1.bf16.msra.mxu1 %v12483_v56  ;;  %v12498_v5 = vld [vmem:[%s18749_s3 + $0x3b0] ss:$8 sps:$4 sm:$0xff]  }
 0x4e6   : > { %v13516_v27 = vpop.eup %13515  ;;  %13527 = vtanh.f32 %v10884_v8  ;;  %6105 = vmatmul.mubr.bf16.gmra.mrb[52].mxu0 %v19223_v49  ;;  %6918 = vmatprep.subr.bf16.mxu1 %v12488_v20  ;;  %v12489_v49 = vld [vmem:[%s18749_s3 + $0x380] ss:$8 sps:$4 sm:$0xff]   ;;  %v12503_v8 = vld [vmem:[%s18749_s3 + $0x3c4] ss:$8 sps:$4 sm:$0xff]  }
 0x4e7   : > { %v13518_v33 = vpop.eup %13517  ;;  %6114 = vmatprep.mubr.bf16.mxu0 %v19225_v19  ;;  %v12494_v19 = vld [vmem:[%s18749_s3 + $0x394] ss:$8 sps:$4 sm:$0xff]  }
 0x4e8   : > { %v13520_v30 = vpop.eup %13519  ;;  %v5457_v34 = vpop.f32.mrb[184].mxu1  ;;  %v6343_v44 = vpack.c.bf16 %v13518_v33, %v13514_v14 }
 0x4e9   : > { %v10885_v48 = vadd.f32 %v5457_v34, %v16442_v43  ;;  %v5459_v46 = vpop.f32.mrb[185].mxu1  ;;  %v6344_v47 = vpack.c.bf16 %v13520_v30, %v13516_v27  ;;  %6919 = vmatpush1.bf16.msra.mxu1 %v12486_v26 }
 0x4ea   : > { %v10886_v9 = vadd.f32 %v5459_v46, %v16446_v51  ;;  %v5461_v16 = vpop.f32.mrb[186].mxu1  ;;  %6920 = vmatprep.subr.bf16.mxu1 %v12491_v32  ;;  %v12506_v46 = vld [vmem:[%s18749_s3 + $0x3d4] ss:$8 sps:$4 sm:$0xff]  }
 0x4eb   : > { %13529 = vtanh.f32 %v10885_v48  ;;  %v10887_v10 = vadd.f32 %v5461_v16, %v16442_v43  ;;  %v5463_v29 = vpop.f32.mrb[187].mxu1  ;;  %6783 = vmatprep.mubr.bf16.mxu1 %v6344_v47 }
 0x4ec   : > { %13531 = vtanh.f32 %v10886_v9  ;;  %v10888_v52 = vadd.f32 %v5463_v29, %v16446_v51  ;;  %6784 = vmatmul.mubr.bf16.gmra.mrb[240].mxu1 %v6343_v44  ;;  %v12501_v44 = vld [vmem:[%s18749_s3 + $0x3c0] ss:$8 sps:$4 sm:$0xff]   ;;  %v12509_v29 = vld [vmem:[%s18749_s3 + $0x3e4] ss:$8 sps:$4 sm:$0xff]  }
 0x4ed   : > { %v13522_v62 = vpop.eup %13521  ;;  %13533 = vtanh.f32 %v10887_v10  ;;  %6921 = vmatpush1.bf16.msra.mxu1 %v12489_v49 }
 0x4ee   : > { %v13524_v38 = vpop.eup %13523  ;;  %13535 = vtanh.f32 %v10888_v52  ;;  %6115 = vmatmul.mubr.bf16.gmra.mrb[56].mxu0 %v19226_v50  ;;  %6922 = vmatprep.subr.bf16.mxu1 %v12494_v19  ;;  %v12495_v50 = vld [vmem:[%s18749_s3 + $0x3a0] ss:$8 sps:$4 sm:$0xff]   ;;  %v12504_v19 = vld [vmem:[%s18749_s3 + $0x3d0] ss:$8 sps:$4 sm:$0xff]  }
 0x4ef   : > { %v13526_v2 = vpop.eup %13525  ;;  %6124 = vmatprep.mubr.bf16.mxu0 %v19227_v40  ;;  %v12500_v40 = vld [vmem:[%s18749_s3 + $0x3b4] ss:$8 sps:$4 sm:$0xff]  }
 0x4f0   : > { %v13528_v39 = vpop.eup %13527  ;;  %v5467_v4 = vpop.f32.mrb[188].mxu1  ;;  %v6347_v23 = vpack.c.bf16 %v13526_v2, %v13522_v62 }
 0x4f1   : > { %v10889_v59 = vadd.f32 %v5467_v4, %v16442_v43  ;;  %v5469_v24 = vpop.f32.mrb[189].mxu1  ;;  %v6348_v18 = vpack.c.bf16 %v13528_v39, %v13524_v38  ;;  %6923 = vmatpush1.bf16.msra.mxu1 %v12492_v12  ;;  %v12507_v4 = vld [vmem:[%s18749_s3 + $0x3e0] ss:$8 sps:$4 sm:$0xff]  }
 0x4f2   : > { %v10890_v25 = vadd.f32 %v5469_v24, %v16446_v51  ;;  %v5471_v36 = vpop.f32.mrb[190].mxu1  ;;  %6924 = vmatprep.subr.bf16.mxu1 %v12497_v37  ;;  %v12512_v24 = vld [vmem:[%s18749_s3 + $0x3f4] ss:$8 sps:$4 sm:$0xff]  }
 0x4f3   : > { %13537 = vtanh.f32 %v10889_v59  ;;  %v10891_v56 = vadd.f32 %v5471_v36, %v16442_v43  ;;  %v5473_v1 = vpop.f32.mrb[191].mxu1  ;;  %6793 = vmatprep.mubr.bf16.mxu1 %v6348_v18 }
 0x4f4   : > { %13539 = vtanh.f32 %v10890_v25  ;;  %v10892_v31 = vadd.f32 %v5473_v1, %v16446_v51  ;;  %6794 = vmatmul.mubr.bf16.gmra.mrb[244].mxu1 %v6347_v23  ;;  %v12515_v1 = vld [vmem:[%s18749_s3 + $0x4] ss:$8 sps:$4 sm:$0xff]  }
 0x4f5   : > { %v13530_v20 = vpop.eup %13529  ;;  %13541 = vtanh.f32 %v10891_v56  ;;  %6925 = vmatpush1.bf16.msra.mxu1 %v12495_v50 }
 0x4f6   : > { %v13532_v28 = vpop.eup %13531  ;;  %13543 = vtanh.f32 %v10892_v31  ;;  %6125 = vmatmul.mubr.bf16.gmra.mrb[60].mxu0 %v19228_v45  ;;  %6926 = vmatprep.subr.bf16.mxu1 %v12500_v40  ;;  %v12510_v40 = vld [vmem:[%s18749_s3 + $0x3f0] ss:$8 sps:$4 sm:$0xff]  }
 0x4f7   : > { %v13534_v14 = vpop.eup %13533 }
 0x4f8   : > { %v13536_v26 = vpop.eup %13535  ;;  %v5477_v27 = vpop.f32.mrb[192].mxu1  ;;  %v6351_v32 = vpack.c.bf16 %v13534_v14, %v13530_v20 }
 0x4f9   : > { %v10893_v33 = vadd.f32 %v5477_v27, %v16442_v43  ;;  %v5479_v30 = vpop.f32.mrb[193].mxu1  ;;  %v6352_v34 = vpack.c.bf16 %v13536_v26, %v13532_v28  ;;  %6927 = vmatpush1.bf16.msra.mxu1 %v12498_v5 }
 0x4fa   : > { %v10894_v45 = vadd.f32 %v5479_v30, %v16446_v51  ;;  %v5481_v48 = vpop.f32.mrb[194].mxu1  ;;  %6928 = vmatprep.subr.bf16.mxu1 %v12503_v8 }
 0x4fb   : > { %13545 = vtanh.f32 %v10893_v33  ;;  %v10895_v47 = vadd.f32 %v5481_v48, %v16442_v43  ;;  %v5483_v49 = vpop.f32.mrb[195].mxu1  ;;  %6803 = vmatprep.mubr.bf16.mxu1 %v6352_v34 }
 0x4fc   : > { %13547 = vtanh.f32 %v10894_v45  ;;  %v10896_v9 = vadd.f32 %v5483_v49, %v16446_v51  ;;  %6804 = vmatmul.mubr.bf16.gmra.mrb[248].mxu1 %v6351_v32 }
 0x4fd   : > { %v13538_v16 = vpop.eup %13537  ;;  %13549 = vtanh.f32 %v10895_v47  ;;  %6929 = vmatpush1.bf16.msra.mxu1 %v12501_v44 }
 0x4fe   : > { %v13540_v10 = vpop.eup %13539  ;;  %13551 = vtanh.f32 %v10896_v9  ;;  %6930 = vmatprep.subr.bf16.mxu1 %v12506_v46 }
 0x4ff   : > { %v13542_v52 = vpop.eup %13541 }
 0x500   : > { %v13544_v62 = vpop.eup %13543  ;;  %v5487_v12 = vpop.f32.mrb[196].mxu1  ;;  %v6355_v38 = vpack.c.bf16 %v13542_v52, %v13538_v16 }
 0x501   : > { %v10897_v37 = vadd.f32 %v5487_v12, %v16442_v43  ;;  %v5489_v2 = vpop.f32.mrb[197].mxu1  ;;  %v6356_v39 = vpack.c.bf16 %v13544_v62, %v13540_v10  ;;  %6931 = vmatpush1.bf16.msra.mxu1 %v12504_v19 }
 0x502   : > { %v10898_v23 = vadd.f32 %v5489_v2, %v16446_v51  ;;  %v5491_v59 = vpop.f32.mrb[198].mxu1  ;;  %6932 = vmatprep.subr.bf16.mxu1 %v12509_v29 }
 0x503   : > { %13553 = vtanh.f32 %v10897_v37  ;;  %v10899_v18 = vadd.f32 %v5491_v59, %v16442_v43  ;;  %v5493_v50 = vpop.f32.mrb[199].mxu1  ;;  %6813 = vmatprep.mubr.bf16.mxu1 %v6356_v39 }
 0x504   : > { %13555 = vtanh.f32 %v10898_v23  ;;  %v10900_v25 = vadd.f32 %v5493_v50, %v16446_v51  ;;  %6814 = vmatmul.mubr.bf16.gmra.mrb[252].mxu1 %v6355_v38 }
 0x505   : > { %v13546_v36 = vpop.eup %13545  ;;  %13557 = vtanh.f32 %v10899_v18  ;;  %6933 = vmatpush1.bf16.msra.mxu1 %v12507_v4 }
 0x506   : > { %v13548_v56 = vpop.eup %13547  ;;  %13559 = vtanh.f32 %v10900_v25  ;;  %6934 = vmatprep.subr.bf16.mxu1 %v12512_v24 }
 0x507   : > { %v13550_v31 = vpop.eup %13549 }
 0x508   : > { %v13552_v20 = vpop.eup %13551  ;;  %v6359_v5 = vpack.c.bf16 %v13550_v31, %v13546_v36  ;;  %v5497_v28 = vpop.f32.mrb[200].mxu1 }
 0x509   : > { %v10901_v8 = vadd.f32 %v5497_v28, %v16442_v43  ;;  %v5499_v14 = vpop.f32.mrb[201].mxu1  ;;  %v6360_v26 = vpack.c.bf16 %v13552_v20, %v13548_v56  ;;  %6935 = vmatpush1.bf16.msra.mxu1 %v12510_v40 }
 0x50a   : > { %v10902_v27 = vadd.f32 %v5499_v14, %v16446_v51  ;;  %v5501_v32 = vpop.f32.mrb[202].mxu1  ;;  %7417 = vmatprep.subr.bf16.mxu1 %v12515_v1 }
 0x50b   : > { %13561 = vtanh.f32 %v10901_v8  ;;  %v10903_v33 = vadd.f32 %v5501_v32, %v16442_v43  ;;  %v5503_v30 = vpop.f32.mrb[203].mxu1  ;;  %6823 = vmatprep.mubr.bf16.mxu1 %v6360_v26 }
 0x50c   : > { %13563 = vtanh.f32 %v10902_v27  ;;  %v10904_v34 = vadd.f32 %v5503_v30, %v16446_v51  ;;  %6824 = vmatmul.mubr.bf16.gmra.mrb[0].mxu1 %v6359_v5 }
 0x50d   : > { %v13554_v44 = vpop.eup %13553  ;;  %13565 = vtanh.f32 %v10903_v33 }
 0x50e   : > { %v13556_v45 = vpop.eup %13555  ;;  %13567 = vtanh.f32 %v10904_v34 }
 0x50f   : > { %v13558_v48 = vpop.eup %13557 }
 0x510   : > { %v13560_v46 = vpop.eup %13559  ;;  %v6363_v47 = vpack.c.bf16 %v13558_v48, %v13554_v44  ;;  %v5507_v49 = vpop.f32.mrb[204].mxu1 }
 0x511   : > { %v10905_v9 = vadd.f32 %v5507_v49, %v16442_v43  ;;  %v5509_v16 = vpop.f32.mrb[205].mxu1  ;;  %v6364_v19 = vpack.c.bf16 %v13560_v46, %v13556_v45 }
 0x512   : > { %v10906_v10 = vadd.f32 %v5509_v16, %v16446_v51  ;;  %v5511_v29 = vpop.f32.mrb[206].mxu1 }
 0x513   : > { %13569 = vtanh.f32 %v10905_v9  ;;  %v10907_v52 = vadd.f32 %v5511_v29, %v16442_v43  ;;  %v5513_v62 = vpop.f32.mrb[207].mxu1  ;;  %6833 = vmatprep.mubr.bf16.mxu1 %v6364_v19 }
 0x514   : > { %13571 = vtanh.f32 %v10906_v10  ;;  %v10908_v12 = vadd.f32 %v5513_v62, %v16446_v51  ;;  %6834 = vmatmul.mubr.bf16.gmra.mrb[4].mxu1 %v6363_v47 }
 0x515   : > { %v13562_v38 = vpop.eup %13561  ;;  %13573 = vtanh.f32 %v10907_v52 }
 0x516   : > { %v13564_v37 = vpop.eup %13563  ;;  %13575 = vtanh.f32 %v10908_v12 }
 0x517   : > { %v13566_v2 = vpop.eup %13565 }
 0x518   : > { %v13568_v39 = vpop.eup %13567  ;;  %v6367_v4 = vpack.c.bf16 %v13566_v2, %v13562_v38  ;;  %v5517_v23 = vpop.f32.mrb[208].mxu1 }
 0x519   : > { %v10909_v59 = vadd.f32 %v5517_v23, %v16442_v43  ;;  %v5519_v24 = vpop.f32.mrb[209].mxu1  ;;  %v6368_v18 = vpack.c.bf16 %v13568_v39, %v13564_v37 }
 0x51a   : > { %v10910_v50 = vadd.f32 %v5519_v24, %v16446_v51  ;;  %v5521_v25 = vpop.f32.mrb[210].mxu1 }
 0x51b   : > { %13577 = vtanh.f32 %v10909_v59  ;;  %v10911_v36 = vadd.f32 %v5521_v25, %v16442_v43  ;;  %v5523_v40 = vpop.f32.mrb[211].mxu1  ;;  %6843 = vmatprep.mubr.bf16.mxu1 %v6368_v18 }
 0x51c   : > { %13579 = vtanh.f32 %v10910_v50  ;;  %v10912_v56 = vadd.f32 %v5523_v40, %v16446_v51  ;;  %6844 = vmatmul.mubr.bf16.gmra.mrb[8].mxu1 %v6367_v4 }
 0x51d   : > { %v13570_v1 = vpop.eup %13569  ;;  %13581 = vtanh.f32 %v10911_v36 }
 0x51e   : > { %v13572_v31 = vpop.eup %13571  ;;  %13583 = vtanh.f32 %v10912_v56 }
 0x51f   : > { %v13574_v20 = vpop.eup %13573 }
 0x520   : > { %v13576_v5 = vpop.eup %13575  ;;  %v6371_v28 = vpack.c.bf16 %v13574_v20, %v13570_v1  ;;  %v5527_v8 = vpop.f32.mrb[212].mxu1 }
 0x521   : > { %v10913_v14 = vadd.f32 %v5527_v8, %v16442_v43  ;;  %v5529_v26 = vpop.f32.mrb[213].mxu1  ;;  %v6372_v27 = vpack.c.bf16 %v13576_v5, %v13572_v31 }
 0x522   : > { %v10914_v32 = vadd.f32 %v5529_v26, %v16446_v51  ;;  %v5531_v33 = vpop.f32.mrb[214].mxu1 }
 0x523   : > { %13585 = vtanh.f32 %v10913_v14  ;;  %v10915_v30 = vadd.f32 %v5531_v33, %v16442_v43  ;;  %v5533_v34 = vpop.f32.mrb[215].mxu1  ;;  %6853 = vmatprep.mubr.bf16.mxu1 %v6372_v27 }
 0x524   : > { %13587 = vtanh.f32 %v10914_v32  ;;  %v10916_v44 = vadd.f32 %v5533_v34, %v16446_v51  ;;  %6854 = vmatmul.mubr.bf16.gmra.mrb[12].mxu1 %v6371_v28 }
 0x525   : > { %v13578_v45 = vpop.eup %13577  ;;  %13589 = vtanh.f32 %v10915_v30 }
 0x526   : > { %v13580_v48 = vpop.eup %13579  ;;  %13591 = vtanh.f32 %v10916_v44 }
 0x527   : > { %v13582_v46 = vpop.eup %13581 }
 0x528   : > { %v13584_v47 = vpop.eup %13583  ;;  %v6375_v49 = vpack.c.bf16 %v13582_v46, %v13578_v45  ;;  %v5537_v9 = vpop.f32.mrb[216].mxu1 }
 0x529   : > { %v10917_v16 = vadd.f32 %v5537_v9, %v16442_v43  ;;  %v5539_v19 = vpop.f32.mrb[217].mxu1  ;;  %v6376_v10 = vpack.c.bf16 %v13584_v47, %v13580_v48 }
 0x52a   : > { %v10918_v29 = vadd.f32 %v5539_v19, %v16446_v51  ;;  %v5541_v52 = vpop.f32.mrb[218].mxu1 }
 0x52b   : > { %13593 = vtanh.f32 %v10917_v16  ;;  %v10919_v62 = vadd.f32 %v5541_v52, %v16442_v43  ;;  %v5543_v12 = vpop.f32.mrb[219].mxu1  ;;  %6863 = vmatprep.mubr.bf16.mxu1 %v6376_v10 }
 0x52c   : > { %13595 = vtanh.f32 %v10918_v29  ;;  %v10920_v38 = vadd.f32 %v5543_v12, %v16446_v51  ;;  %6864 = vmatmul.mubr.bf16.gmra.mrb[16].mxu1 %v6375_v49 }
 0x52d   : > { %v13586_v37 = vpop.eup %13585  ;;  %13597 = vtanh.f32 %v10919_v62 }
 0x52e   : > { %v13588_v2 = vpop.eup %13587  ;;  %13599 = vtanh.f32 %v10920_v38 }
 0x52f   : > { %v13590_v39 = vpop.eup %13589 }
 0x530   : > { %v13592_v4 = vpop.eup %13591  ;;  %v6379_v23 = vpack.c.bf16 %v13590_v39, %v13586_v37  ;;  %v5547_v59 = vpop.f32.mrb[220].mxu1 }
 0x531   : > { %v10921_v24 = vadd.f32 %v5547_v59, %v16442_v43  ;;  %v5549_v18 = vpop.f32.mrb[221].mxu1  ;;  %v6380_v50 = vpack.c.bf16 %v13592_v4, %v13588_v2 }
 0x532   : > { %v10922_v25 = vadd.f32 %v5549_v18, %v16446_v51  ;;  %v5551_v36 = vpop.f32.mrb[222].mxu1 }
 0x533   : > { %13601 = vtanh.f32 %v10921_v24  ;;  %v10923_v40 = vadd.f32 %v5551_v36, %v16442_v43  ;;  %v5553_v56 = vpop.f32.mrb[223].mxu1  ;;  %6873 = vmatprep.mubr.bf16.mxu1 %v6380_v50  ;;  %v12513_v50 = vld [vmem:[%s18749_s3] ss:$8 sps:$4 sm:$0xff]  }
 0x534   : > { %13603 = vtanh.f32 %v10922_v25  ;;  %v10924_v1 = vadd.f32 %v5553_v56, %v16446_v51  ;;  %6874 = vmatmul.mubr.bf16.gmra.mrb[20].mxu1 %v6379_v23 }
 0x535   : > { %v13594_v31 = vpop.eup %13593  ;;  %13605 = vtanh.f32 %v10923_v40  ;;  %v12518_v40 = vld [vmem:[%s18749_s3 + $0x14] ss:$8 sps:$4 sm:$0xff]  }
 0x536   : > { %v13596_v20 = vpop.eup %13595  ;;  %13607 = vtanh.f32 %v10924_v1 }
 0x537   : > { %v13598_v5 = vpop.eup %13597 }
 0x538   : > { %v13600_v28 = vpop.eup %13599  ;;  %v6383_v8 = vpack.c.bf16 %v13598_v5, %v13594_v31  ;;  %v12516_v5 = vld [vmem:[%s18749_s3 + $0x10] ss:$8 sps:$4 sm:$0xff]  }
 0x539   : > { %v6384_v14 = vpack.c.bf16 %v13600_v28, %v13596_v20 }
 0x53b   : > { %6883 = vmatprep.mubr.bf16.mxu1 %v6384_v14 }
 0x53c   : > { %6884 = vmatmul.mubr.bf16.gmra.mrb[24].mxu1 %v6383_v8  ;;  %v12521_v8 = vld [vmem:[%s18749_s3 + $0x24] ss:$8 sps:$4 sm:$0xff]  }
 0x53d   : > { %v13602_v26 = vpop.eup %13601 }
 0x53e   : > { %v13604_v27 = vpop.eup %13603 }
 0x53f   : > { %v13606_v32 = vpop.eup %13605 }
 0x540   : > { %v13608_v43 = vpop.eup %13607  ;;  %v6387_v33 = vpack.c.bf16 %v13606_v32, %v13602_v26 }
 0x541   : > { %v6388_v30 = vpack.c.bf16 %v13608_v43, %v13604_v27 }
 0x543   : > { %6893 = vmatprep.mubr.bf16.mxu1 %v6388_v30 }
 0x544   : > { %6894 = vmatmul.mubr.bf16.gmra.mrb[28].mxu1 %v6387_v33 }
 0x551   : > { %v5976_v51 = vpop.f32.mrb[0].mxu0 }
 0x552   : > { %v10925_v34 = vadd.f32 %v5976_v51, %v16982_v15  ;;  %v5978_v44 = vpop.f32.mrb[1].mxu0  ;;  %v12519_v51 = vld [vmem:[%s18749_s3 + $0x20] ss:$8 sps:$4 sm:$0xff]  }
 0x553   : > { %v10926_v45 = vadd.f32 %v5978_v44, %v16987_v11  ;;  %v5980_v48 = vpop.f32.mrb[2].mxu0 }
 0x554   : > { %13609 = vtanh.f32 %v10925_v34  ;;  %v10927_v46 = vadd.f32 %v5980_v48, %v16982_v15  ;;  %v5982_v47 = vpop.f32.mrb[3].mxu0 }
 0x555   : > { %13611 = vtanh.f32 %v10926_v45  ;;  %v10928_v49 = vadd.f32 %v5982_v47, %v16987_v11  ;;  %v12524_v45 = vld [vmem:[%s18749_s3 + $0x34] ss:$8 sps:$4 sm:$0xff]  }
 0x556   : > { %13613 = vtanh.f32 %v10927_v46 }
 0x557   : > { %13615 = vtanh.f32 %v10928_v49 }
 0x559   : > { %v5986_v9 = vpop.f32.mrb[4].mxu0 }
 0x55a   : > { %v10929_v16 = vadd.f32 %v5986_v9, %v16982_v15  ;;  %v5988_v19 = vpop.f32.mrb[5].mxu0  ;;  %v12522_v9 = vld [vmem:[%s18749_s3 + $0x30] ss:$8 sps:$4 sm:$0xff]  }
 0x55b   : > { %v10930_v10 = vadd.f32 %v5988_v19, %v16987_v11  ;;  %v5990_v29 = vpop.f32.mrb[6].mxu0  ;;  %v12527_v19 = vld [vmem:[%s18749_s3 + $0x44] ss:$8 sps:$4 sm:$0xff]  }
 0x55c   : > { %13617 = vtanh.f32 %v10929_v16  ;;  %v10931_v52 = vadd.f32 %v5990_v29, %v16982_v15  ;;  %v5992_v62 = vpop.f32.mrb[7].mxu0 }
 0x55d   : > { %13619 = vtanh.f32 %v10930_v10  ;;  %v10932_v12 = vadd.f32 %v5992_v62, %v16987_v11 }
 0x55e   : > { %v13610_v38 = vpop.eup %13609  ;;  %13621 = vtanh.f32 %v10931_v52 }
 0x55f   : > { %v13612_v37 = vpop.eup %13611  ;;  %13623 = vtanh.f32 %v10932_v12 }
 0x560   : > { %v13614_v2 = vpop.eup %13613 }
 0x561   : > { %v13616_v39 = vpop.eup %13615  ;;  %v5996_v4 = vpop.f32.mrb[8].mxu0  ;;  %v6329_v23 = vpack.c.bf16 %v13614_v2, %v13610_v38  ;;  %v12525_v2 = vld [vmem:[%s18749_s3 + $0x40] ss:$8 sps:$4 sm:$0xff]  }
 0x562   : > { %v10933_v59 = vadd.f32 %v5996_v4, %v16982_v15  ;;  %v5998_v24 = vpop.f32.mrb[9].mxu0  ;;  %v6330_v18 = vpack.c.bf16 %v13616_v39, %v13612_v37 }
 0x563   : > { %v10934_v25 = vadd.f32 %v5998_v24, %v16987_v11  ;;  %v6000_v36 = vpop.f32.mrb[10].mxu0 }
 0x564   : > { %13625 = vtanh.f32 %v10933_v59  ;;  %v10935_v56 = vadd.f32 %v6000_v36, %v16982_v15  ;;  %v6002_v1 = vpop.f32.mrb[11].mxu0  ;;  %6936 = vmatprep.mubr.bf16.mxu1 %v6330_v18 }
 0x565   : > { %13627 = vtanh.f32 %v10934_v25  ;;  %v10936_v31 = vadd.f32 %v6002_v1, %v16987_v11  ;;  %6937 = vmatmul.mubr.bf16.vlgmr.msra.gmra.mrb[224].mxu1 %v6329_v23  ;;  %v12530_v23 = vld [vmem:[%s18749_s3 + $0x54] ss:$8 sps:$4 sm:$0xff]   ;;  %v12528_v25 = vld [vmem:[%s18749_s3 + $0x50] ss:$8 sps:$4 sm:$0xff]  }
 0x566   : > { %v13618_v20 = vpop.eup %13617  ;;  %13629 = vtanh.f32 %v10935_v56  ;;  %7418 = vmatpush1.bf16.msra.mxu1 %v12513_v50 }
 0x567   : > { %v13620_v28 = vpop.eup %13619  ;;  %13631 = vtanh.f32 %v10936_v31  ;;  %7419 = vmatprep.subr.bf16.mxu1 %v12518_v40  ;;  %v12533_v40 = vld [vmem:[%s18749_s3 + $0x64] ss:$8 sps:$4 sm:$0xff]  }
 0x568   : > { %v13622_v14 = vpop.eup %13621 }
 0x569   : > { %v13624_v26 = vpop.eup %13623  ;;  %v6006_v27 = vpop.f32.mrb[12].mxu0  ;;  %v6333_v32 = vpack.c.bf16 %v13622_v14, %v13618_v20  ;;  %v12531_v14 = vld [vmem:[%s18749_s3 + $0x60] ss:$8 sps:$4 sm:$0xff]  }
 0x56a   : > { %v10937_v43 = vadd.f32 %v6006_v27, %v16982_v15  ;;  %v6008_v33 = vpop.f32.mrb[13].mxu0  ;;  %v6334_v30 = vpack.c.bf16 %v13624_v26, %v13620_v28  ;;  %7420 = vmatpush1.bf16.msra.mxu1 %v12516_v5 }
 0x56b   : > { %v10938_v34 = vadd.f32 %v6008_v33, %v16987_v11  ;;  %v6010_v44 = vpop.f32.mrb[14].mxu0  ;;  %7421 = vmatprep.subr.bf16.mxu1 %v12521_v8 }
 0x56c   : > { %13633 = vtanh.f32 %v10937_v43  ;;  %v10939_v48 = vadd.f32 %v6010_v44, %v16982_v15  ;;  %v6012_v46 = vpop.f32.mrb[15].mxu0  ;;  %6946 = vmatprep.mubr.bf16.mxu1 %v6334_v30 }
 0x56d   : > { %13635 = vtanh.f32 %v10938_v34  ;;  %v10940_v47 = vadd.f32 %v6012_v46, %v16987_v11  ;;  %6947 = vmatmul.mubr.bf16.gmra.mrb[228].mxu1 %v6333_v32  ;;  %v12536_v32 = vld [vmem:[%s18749_s3 + $0x74] ss:$8 sps:$4 sm:$0xff]   ;;  %v12534_v34 = vld [vmem:[%s18749_s3 + $0x70] ss:$8 sps:$4 sm:$0xff]  }
 0x56e   : > { %v13626_v49 = vpop.eup %13625  ;;  %13637 = vtanh.f32 %v10939_v48  ;;  %7422 = vmatpush1.bf16.msra.mxu1 %v12519_v51 }
 0x56f   : > { %v13628_v16 = vpop.eup %13627  ;;  %13639 = vtanh.f32 %v10940_v47  ;;  %7423 = vmatprep.subr.bf16.mxu1 %v12524_v45  ;;  %v12539_v45 = vld [vmem:[%s18749_s3 + $0x84] ss:$8 sps:$4 sm:$0xff]  }
 0x570   : > { %v13630_v10 = vpop.eup %13629 }
 0x571   : > { %v13632_v29 = vpop.eup %13631  ;;  %v6016_v52 = vpop.f32.mrb[16].mxu0  ;;  %v6337_v62 = vpack.c.bf16 %v13630_v10, %v13626_v49  ;;  %v12537_v10 = vld [vmem:[%s18749_s3 + $0x80] ss:$8 sps:$4 sm:$0xff]  }
 0x572   : > { %v10941_v12 = vadd.f32 %v6016_v52, %v16982_v15  ;;  %v6018_v38 = vpop.f32.mrb[17].mxu0  ;;  %v6338_v37 = vpack.c.bf16 %v13632_v29, %v13628_v16  ;;  %7424 = vmatpush1.bf16.msra.mxu1 %v12522_v9 }
 0x573   : > { %v10942_v39 = vadd.f32 %v6018_v38, %v16987_v11  ;;  %v6020_v4 = vpop.f32.mrb[18].mxu0  ;;  %7425 = vmatprep.subr.bf16.mxu1 %v12527_v19 }
 0x574   : > { %13641 = vtanh.f32 %v10941_v12  ;;  %v10943_v59 = vadd.f32 %v6020_v4, %v16982_v15  ;;  %v6022_v24 = vpop.f32.mrb[19].mxu0  ;;  %6956 = vmatprep.mubr.bf16.mxu1 %v6338_v37 }
 0x575   : > { %13643 = vtanh.f32 %v10942_v39  ;;  %v10944_v18 = vadd.f32 %v6022_v24, %v16987_v11  ;;  %6957 = vmatmul.mubr.bf16.gmra.mrb[232].mxu1 %v6337_v62  ;;  %v12542_v62 = vld [vmem:[%s18749_s3 + $0x94] ss:$8 sps:$4 sm:$0xff]   ;;  %v12540_v39 = vld [vmem:[%s18749_s3 + $0x90] ss:$8 sps:$4 sm:$0xff]  }
 0x576   : > { %v13634_v50 = vpop.eup %13633  ;;  %13645 = vtanh.f32 %v10943_v59  ;;  %7426 = vmatpush1.bf16.msra.mxu1 %v12525_v2 }
 0x577   : > { %v13636_v36 = vpop.eup %13635  ;;  %13647 = vtanh.f32 %v10944_v18  ;;  %7427 = vmatprep.subr.bf16.mxu1 %v12530_v23  ;;  %v12545_v23 = vld [vmem:[%s18749_s3 + $0xa4] ss:$8 sps:$4 sm:$0xff]  }
 0x578   : > { %v13638_v56 = vpop.eup %13637 }
 0x579   : > { %v13640_v1 = vpop.eup %13639  ;;  %v6026_v31 = vpop.f32.mrb[20].mxu0  ;;  %v6341_v20 = vpack.c.bf16 %v13638_v56, %v13634_v50  ;;  %v12543_v56 = vld [vmem:[%s18749_s3 + $0xa0] ss:$8 sps:$4 sm:$0xff]  }
 0x57a   : > { %v10945_v5 = vadd.f32 %v6026_v31, %v16982_v15  ;;  %v6028_v28 = vpop.f32.mrb[21].mxu0  ;;  %v6342_v8 = vpack.c.bf16 %v13640_v1, %v13636_v36  ;;  %7428 = vmatpush1.bf16.msra.mxu1 %v12528_v25 }
 0x57b   : > { %v10946_v26 = vadd.f32 %v6028_v28, %v16987_v11  ;;  %v6030_v27 = vpop.f32.mrb[22].mxu0  ;;  %7429 = vmatprep.subr.bf16.mxu1 %v12533_v40 }
 0x57c   : > { %13649 = vtanh.f32 %v10945_v5  ;;  %v10947_v43 = vadd.f32 %v6030_v27, %v16982_v15  ;;  %v6032_v33 = vpop.f32.mrb[23].mxu0  ;;  %6966 = vmatprep.mubr.bf16.mxu1 %v6342_v8 }
 0x57d   : > { %13651 = vtanh.f32 %v10946_v26  ;;  %v10948_v30 = vadd.f32 %v6032_v33, %v16987_v11  ;;  %6967 = vmatmul.mubr.bf16.gmra.mrb[236].mxu1 %v6341_v20  ;;  %v12548_v20 = vld [vmem:[%s18749_s3 + $0xb4] ss:$8 sps:$4 sm:$0xff]   ;;  %v12546_v26 = vld [vmem:[%s18749_s3 + $0xb0] ss:$8 sps:$4 sm:$0xff]  }
 0x57e   : > { %v13642_v51 = vpop.eup %13641  ;;  %13653 = vtanh.f32 %v10947_v43  ;;  %7430 = vmatpush1.bf16.msra.mxu1 %v12531_v14 }
 0x57f   : > { %v13644_v44 = vpop.eup %13643  ;;  %13655 = vtanh.f32 %v10948_v30  ;;  %7431 = vmatprep.subr.bf16.mxu1 %v12536_v32  ;;  %v12551_v32 = vld [vmem:[%s18749_s3 + $0xc4] ss:$8 sps:$4 sm:$0xff]  }
 0x580   : > { %v13646_v48 = vpop.eup %13645 }
 0x581   : > { %v13648_v46 = vpop.eup %13647  ;;  %v6036_v47 = vpop.f32.mrb[24].mxu0  ;;  %v6345_v49 = vpack.c.bf16 %v13646_v48, %v13642_v51  ;;  %v12549_v48 = vld [vmem:[%s18749_s3 + $0xc0] ss:$8 sps:$4 sm:$0xff]  }
 0x582   : > { %v10949_v9 = vadd.f32 %v6036_v47, %v16982_v15  ;;  %v6038_v16 = vpop.f32.mrb[25].mxu0  ;;  %v6346_v19 = vpack.c.bf16 %v13648_v46, %v13644_v44  ;;  %7432 = vmatpush1.bf16.msra.mxu1 %v12534_v34 }
 0x583   : > { %v10950_v29 = vadd.f32 %v6038_v16, %v16987_v11  ;;  %v6040_v52 = vpop.f32.mrb[26].mxu0  ;;  %7433 = vmatprep.subr.bf16.mxu1 %v12539_v45 }
 0x584   : > { %13657 = vtanh.f32 %v10949_v9  ;;  %v10951_v12 = vadd.f32 %v6040_v52, %v16982_v15  ;;  %v6042_v38 = vpop.f32.mrb[27].mxu0  ;;  %6976 = vmatprep.mubr.bf16.mxu1 %v6346_v19 }
 0x585   : > { %13659 = vtanh.f32 %v10950_v29  ;;  %v10952_v37 = vadd.f32 %v6042_v38, %v16987_v11  ;;  %6977 = vmatmul.mubr.bf16.gmra.mrb[240].mxu1 %v6345_v49  ;;  %v12554_v49 = vld [vmem:[%s18749_s3 + $0xd4] ss:$8 sps:$4 sm:$0xff]   ;;  %v12552_v29 = vld [vmem:[%s18749_s3 + $0xd0] ss:$8 sps:$4 sm:$0xff]  }
 0x586   : > { %v13650_v2 = vpop.eup %13649  ;;  %13661 = vtanh.f32 %v10951_v12  ;;  %7434 = vmatpush1.bf16.msra.mxu1 %v12537_v10 }
 0x587   : > { %v13652_v4 = vpop.eup %13651  ;;  %13663 = vtanh.f32 %v10952_v37  ;;  %7435 = vmatprep.subr.bf16.mxu1 %v12542_v62  ;;  %v12557_v62 = vld [vmem:[%s18749_s3 + $0xe4] ss:$8 sps:$4 sm:$0xff]  }
 0x588   : > { %v13654_v59 = vpop.eup %13653 }
 0x589   : > { %v13656_v24 = vpop.eup %13655  ;;  %v6046_v18 = vpop.f32.mrb[28].mxu0  ;;  %v6349_v50 = vpack.c.bf16 %v13654_v59, %v13650_v2  ;;  %v12555_v59 = vld [vmem:[%s18749_s3 + $0xe0] ss:$8 sps:$4 sm:$0xff]  }
 0x58a   : > { %v10953_v25 = vadd.f32 %v6046_v18, %v16982_v15  ;;  %v6048_v36 = vpop.f32.mrb[29].mxu0  ;;  %v6350_v40 = vpack.c.bf16 %v13656_v24, %v13652_v4  ;;  %7436 = vmatpush1.bf16.msra.mxu1 %v12540_v39 }
 0x58b   : > { %v10954_v1 = vadd.f32 %v6048_v36, %v16987_v11  ;;  %v6050_v31 = vpop.f32.mrb[30].mxu0  ;;  %7437 = vmatprep.subr.bf16.mxu1 %v12545_v23 }
 0x58c   : > { %13665 = vtanh.f32 %v10953_v25  ;;  %v10955_v5 = vadd.f32 %v6050_v31, %v16982_v15  ;;  %v6052_v28 = vpop.f32.mrb[31].mxu0  ;;  %6986 = vmatprep.mubr.bf16.mxu1 %v6350_v40 }
 0x58d   : > { %13667 = vtanh.f32 %v10954_v1  ;;  %v10956_v8 = vadd.f32 %v6052_v28, %v16987_v11  ;;  %6987 = vmatmul.mubr.bf16.gmra.mrb[244].mxu1 %v6349_v50  ;;  %v12560_v50 = vld [vmem:[%s18749_s3 + $0xf4] ss:$8 sps:$4 sm:$0xff]   ;;  %v12558_v1 = vld [vmem:[%s18749_s3 + $0xf0] ss:$8 sps:$4 sm:$0xff]  }
 0x58e   : > { %v13658_v14 = vpop.eup %13657  ;;  %13669 = vtanh.f32 %v10955_v5  ;;  %7438 = vmatpush1.bf16.msra.mxu1 %v12543_v56 }
 0x58f   : > { %v13660_v27 = vpop.eup %13659  ;;  %13671 = vtanh.f32 %v10956_v8  ;;  %7439 = vmatprep.subr.bf16.mxu1 %v12548_v20  ;;  %v12563_v20 = vld [vmem:[%s18749_s3 + $0x104] ss:$8 sps:$4 sm:$0xff]  }
 0x590   : > { %v13662_v43 = vpop.eup %13661 }
 0x591   : > { %v13664_v33 = vpop.eup %13663  ;;  %v6056_v30 = vpop.f32.mrb[32].mxu0  ;;  %v6353_v51 = vpack.c.bf16 %v13662_v43, %v13658_v14 }
 0x592   : > { %v10957_v34 = vadd.f32 %v6056_v30, %v16982_v15  ;;  %v6058_v44 = vpop.f32.mrb[33].mxu0  ;;  %v6354_v45 = vpack.c.bf16 %v13664_v33, %v13660_v27  ;;  %7440 = vmatpush1.bf16.msra.mxu1 %v12546_v26 }
 0x593   : > { %v10958_v46 = vadd.f32 %v6058_v44, %v16987_v11  ;;  %v6060_v47 = vpop.f32.mrb[34].mxu0  ;;  %7441 = vmatprep.subr.bf16.mxu1 %v12551_v32 }
 0x594   : > { %13673 = vtanh.f32 %v10957_v34  ;;  %v10959_v9 = vadd.f32 %v6060_v47, %v16982_v15  ;;  %v6062_v16 = vpop.f32.mrb[35].mxu0  ;;  %6996 = vmatprep.mubr.bf16.mxu1 %v6354_v45 }
 0x595   : > { %13675 = vtanh.f32 %v10958_v46  ;;  %v10960_v19 = vadd.f32 %v6062_v16, %v16987_v11  ;;  %6997 = vmatmul.mubr.bf16.gmra.mrb[248].mxu1 %v6353_v51 }
 0x596   : > { %v13666_v10 = vpop.eup %13665  ;;  %13677 = vtanh.f32 %v10959_v9  ;;  %7442 = vmatpush1.bf16.msra.mxu1 %v12549_v48 }
 0x597   : > { %v13668_v52 = vpop.eup %13667  ;;  %13679 = vtanh.f32 %v10960_v19  ;;  %7443 = vmatprep.subr.bf16.mxu1 %v12554_v49 }
 0x598   : > { %v13670_v12 = vpop.eup %13669 }
 0x599   : > { %v13672_v38 = vpop.eup %13671  ;;  %v6066_v37 = vpop.f32.mrb[36].mxu0  ;;  %v6357_v2 = vpack.c.bf16 %v13670_v12, %v13666_v10 }
 0x59a   : > { %v10961_v39 = vadd.f32 %v6066_v37, %v16982_v15  ;;  %v6068_v4 = vpop.f32.mrb[37].mxu0  ;;  %v6358_v23 = vpack.c.bf16 %v13672_v38, %v13668_v52  ;;  %7444 = vmatpush1.bf16.msra.mxu1 %v12552_v29 }
 0x59b   : > { %v10962_v24 = vadd.f32 %v6068_v4, %v16987_v11  ;;  %v6070_v18 = vpop.f32.mrb[38].mxu0  ;;  %7445 = vmatprep.subr.bf16.mxu1 %v12557_v62 }
 0x59c   : > { %13681 = vtanh.f32 %v10961_v39  ;;  %v10963_v25 = vadd.f32 %v6070_v18, %v16982_v15  ;;  %v6072_v36 = vpop.f32.mrb[39].mxu0  ;;  %7006 = vmatprep.mubr.bf16.mxu1 %v6358_v23 }
 0x59d   : > { %13683 = vtanh.f32 %v10962_v24  ;;  %v10964_v40 = vadd.f32 %v6072_v36, %v16987_v11  ;;  %7007 = vmatmul.mubr.bf16.gmra.mrb[252].mxu1 %v6357_v2 }
 0x59e   : > { %v13674_v56 = vpop.eup %13673  ;;  %13685 = vtanh.f32 %v10963_v25  ;;  %7446 = vmatpush1.bf16.msra.mxu1 %v12555_v59 }
 0x59f   : > { %v13676_v31 = vpop.eup %13675  ;;  %13687 = vtanh.f32 %v10964_v40  ;;  %7447 = vmatprep.subr.bf16.mxu1 %v12560_v50 }
 0x5a0   : > { %v13678_v5 = vpop.eup %13677 }
 0x5a1   : > { %v13680_v28 = vpop.eup %13679  ;;  %v6361_v8 = vpack.c.bf16 %v13678_v5, %v13674_v56  ;;  %v6076_v14 = vpop.f32.mrb[40].mxu0 }
 0x5a2   : > { %v10965_v26 = vadd.f32 %v6076_v14, %v16982_v15  ;;  %v6078_v27 = vpop.f32.mrb[41].mxu0  ;;  %v6362_v32 = vpack.c.bf16 %v13680_v28, %v13676_v31  ;;  %7448 = vmatpush1.bf16.msra.mxu1 %v12558_v1 }
 0x5a3   : > { %v10966_v43 = vadd.f32 %v6078_v27, %v16987_v11  ;;  %v6080_v33 = vpop.f32.mrb[42].mxu0  ;;  %7610 = vmatprep.subr.bf16.mxu1 %v12563_v20 }
 0x5a4   : > { %13689 = vtanh.f32 %v10965_v26  ;;  %v10967_v30 = vadd.f32 %v6080_v33, %v16982_v15  ;;  %v6082_v51 = vpop.f32.mrb[43].mxu0  ;;  %7016 = vmatprep.mubr.bf16.mxu1 %v6362_v32 }
 0x5a5   : > { %13691 = vtanh.f32 %v10966_v43  ;;  %v10968_v34 = vadd.f32 %v6082_v51, %v16987_v11  ;;  %7017 = vmatmul.mubr.bf16.gmra.mrb[0].mxu1 %v6361_v8 }
 0x5a6   : > { %v13682_v44 = vpop.eup %13681  ;;  %13693 = vtanh.f32 %v10967_v30 }
 0x5a7   : > { %v13684_v45 = vpop.eup %13683  ;;  %13695 = vtanh.f32 %v10968_v34 }
 0x5a8   : > { %v13686_v48 = vpop.eup %13685 }
 0x5a9   : > { %v13688_v46 = vpop.eup %13687  ;;  %v6365_v47 = vpack.c.bf16 %v13686_v48, %v13682_v44  ;;  %v6086_v49 = vpop.f32.mrb[44].mxu0 }
 0x5aa   : > { %v10969_v9 = vadd.f32 %v6086_v49, %v16982_v15  ;;  %v6088_v16 = vpop.f32.mrb[45].mxu0  ;;  %v6366_v19 = vpack.c.bf16 %v13688_v46, %v13684_v45 }
 0x5ab   : > { %v10970_v10 = vadd.f32 %v6088_v16, %v16987_v11  ;;  %v6090_v29 = vpop.f32.mrb[46].mxu0 }
 0x5ac   : > { %13697 = vtanh.f32 %v10969_v9  ;;  %v10971_v52 = vadd.f32 %v6090_v29, %v16982_v15  ;;  %v6092_v62 = vpop.f32.mrb[47].mxu0  ;;  %7026 = vmatprep.mubr.bf16.mxu1 %v6366_v19 }
 0x5ad   : > { %13699 = vtanh.f32 %v10970_v10  ;;  %v10972_v12 = vadd.f32 %v6092_v62, %v16987_v11  ;;  %7027 = vmatmul.mubr.bf16.gmra.mrb[4].mxu1 %v6365_v47 }
 0x5ae   : > { %v13690_v38 = vpop.eup %13689  ;;  %13701 = vtanh.f32 %v10971_v52 }
 0x5af   : > { %v13692_v37 = vpop.eup %13691  ;;  %13703 = vtanh.f32 %v10972_v12 }
 0x5b0   : > { %v13694_v2 = vpop.eup %13693 }
 0x5b1   : > { %v13696_v39 = vpop.eup %13695  ;;  %v6369_v4 = vpack.c.bf16 %v13694_v2, %v13690_v38  ;;  %v6096_v23 = vpop.f32.mrb[48].mxu0 }
 0x5b2   : > { %v10973_v59 = vadd.f32 %v6096_v23, %v16982_v15  ;;  %v6098_v24 = vpop.f32.mrb[49].mxu0  ;;  %v6370_v18 = vpack.c.bf16 %v13696_v39, %v13692_v37 }
 0x5b3   : > { %v10974_v50 = vadd.f32 %v6098_v24, %v16987_v11  ;;  %v6100_v25 = vpop.f32.mrb[50].mxu0 }
 0x5b4   : > { %13705 = vtanh.f32 %v10973_v59  ;;  %v10975_v36 = vadd.f32 %v6100_v25, %v16982_v15  ;;  %v6102_v40 = vpop.f32.mrb[51].mxu0  ;;  %7036 = vmatprep.mubr.bf16.mxu1 %v6370_v18 }
 0x5b5   : > { %13707 = vtanh.f32 %v10974_v50  ;;  %v10976_v56 = vadd.f32 %v6102_v40, %v16987_v11  ;;  %7037 = vmatmul.mubr.bf16.gmra.mrb[8].mxu1 %v6369_v4 }
 0x5b6   : > { %v13698_v1 = vpop.eup %13697  ;;  %13709 = vtanh.f32 %v10975_v36 }
 0x5b7   : > { %v13700_v31 = vpop.eup %13699  ;;  %13711 = vtanh.f32 %v10976_v56 }
 0x5b8   : > { %v13702_v20 = vpop.eup %13701 }
 0x5b9   : > { %v13704_v5 = vpop.eup %13703  ;;  %v6373_v28 = vpack.c.bf16 %v13702_v20, %v13698_v1  ;;  %v6106_v8 = vpop.f32.mrb[52].mxu0 }
 0x5ba   : > { %v10977_v14 = vadd.f32 %v6106_v8, %v16982_v15  ;;  %v6108_v26 = vpop.f32.mrb[53].mxu0  ;;  %v6374_v27 = vpack.c.bf16 %v13704_v5, %v13700_v31 }
 0x5bb   : > { %v10978_v32 = vadd.f32 %v6108_v26, %v16987_v11  ;;  %v6110_v43 = vpop.f32.mrb[54].mxu0 }
 0x5bc   : > { %13713 = vtanh.f32 %v10977_v14  ;;  %v10979_v33 = vadd.f32 %v6110_v43, %v16982_v15  ;;  %v6112_v30 = vpop.f32.mrb[55].mxu0  ;;  %7046 = vmatprep.mubr.bf16.mxu1 %v6374_v27  ;;  %v19230_v43 = vld [vmem:[#allocation16_spill] sm:$0xff] }
 0x5bd   : > { %13715 = vtanh.f32 %v10978_v32  ;;  %v10980_v51 = vadd.f32 %v6112_v30, %v16987_v11  ;;  %7047 = vmatmul.mubr.bf16.gmra.mrb[12].mxu1 %v6373_v28  ;;  %v12561_v30 = vld [vmem:[%s18749_s3 + $0x100] ss:$8 sps:$4 sm:$0xff]  }
 0x5be   : > { %v13706_v34 = vpop.eup %13705  ;;  %13717 = vtanh.f32 %v10979_v33 }
 0x5bf   : > { %v13708_v44 = vpop.eup %13707  ;;  %13719 = vtanh.f32 %v10980_v51  ;;  %v12566_v51 = vld [vmem:[%s18749_s3 + $0x114] ss:$8 sps:$4 sm:$0xff]  }
 0x5c0   : > { %v13710_v45 = vpop.eup %13709 }
 0x5c1   : > { %v13712_v48 = vpop.eup %13711  ;;  %v6377_v46 = vpack.c.bf16 %v13710_v45, %v13706_v34  ;;  %v6116_v47 = vpop.f32.mrb[56].mxu0  ;;  %v19232_v34 = vld [vmem:[#allocation22_spill] sm:$0xff] }
 0x5c2   : > { %v10981_v49 = vadd.f32 %v6116_v47, %v16982_v15  ;;  %v6118_v9 = vpop.f32.mrb[57].mxu0  ;;  %v6378_v16 = vpack.c.bf16 %v13712_v48, %v13708_v44  ;;  %v19233_v44 = vld [vmem:[#allocation19_spill] sm:$0xff] }
 0x5c3   : > { %v10982_v19 = vadd.f32 %v6118_v9, %v16987_v11  ;;  %v6120_v10 = vpop.f32.mrb[58].mxu0  ;;  %v19234_v45 = vpack.c.bf16 %v19232_v34, %v19233_v44  ;;  %v19235_v48 = vld [vmem:[#allocation11_spill] sm:$0xff]  ;;  %v12569_v9 = vld [vmem:[%s18749_s3 + $0x124] ss:$8 sps:$4 sm:$0xff]  }
 0x5c4   : > { %13721 = vtanh.f32 %v10981_v49  ;;  %v10983_v29 = vadd.f32 %v6120_v10, %v16982_v15  ;;  %v6122_v52 = vpop.f32.mrb[59].mxu0  ;;  %7056 = vmatprep.mubr.bf16.mxu1 %v6378_v16  ;;  %v12564_v49 = vld [vmem:[%s18749_s3 + $0x110] ss:$8 sps:$4 sm:$0xff]   ;;  %v12567_v16 = vld [vmem:[%s18749_s3 + $0x120] ss:$8 sps:$4 sm:$0xff]  }
 0x5c5   : > { %13723 = vtanh.f32 %v10982_v19  ;;  %v10984_v62 = vadd.f32 %v6122_v52, %v16987_v11  ;;  %7057 = vmatmul.mubr.bf16.gmra.mrb[16].mxu1 %v6377_v46  ;;  %v19236_v46 = vld [vmem:[#allocation59_spill] sm:$0xff]  ;;  %v19238_v10 = vld [vmem:[#allocation18_spill] sm:$0xff] }
 0x5c6   : > { %v13714_v12 = vpop.eup %13713  ;;  %13725 = vtanh.f32 %v10983_v29  ;;  %v19237_v47 = vpack.c.bf16 %v19235_v48, %v19236_v46  ;;  %v12572_v19 = vld [vmem:[%s18749_s3 + $0x134] ss:$8 sps:$4 sm:$0xff]   ;;  %v19239_v29 = vld [vmem:[#allocation25_spill] sm:$0xff]  ;;  %v12588_v44 = vld [vmem:[%s18749_s3 + $0x190] ss:$8 sps:$4 sm:$0xff]  }
 0x5c7   : > { %v13716_v38 = vpop.eup %13715  ;;  %13727 = vtanh.f32 %v10984_v62  ;;  %v19240_v52 = vpack.c.bf16 %v19238_v10, %v19239_v29  ;;  %v19241_v62 = vld [vmem:[#allocation73_spill] sm:$0xff]  ;;  %v12596_v46 = vld [vmem:[%s18749_s3 + $0x1b4] ss:$8 sps:$4 sm:$0xff]   ;;  %v12594_v10 = vld [vmem:[%s18749_s3 + $0x1b0] ss:$8 sps:$4 sm:$0xff]  }
 0x5c8   : > { %v13718_v37 = vpop.eup %13717  ;;  %v12591_v48 = vld [vmem:[%s18749_s3 + $0x1a0] ss:$8 sps:$4 sm:$0xff]   ;;  %v12599_v29 = vld [vmem:[%s18749_s3 + $0x1c4] ss:$8 sps:$4 sm:$0xff]  }
 0x5c9   : > { %v13720_v2 = vpop.eup %13719  ;;  %v6381_v39 = vpack.c.bf16 %v13718_v37, %v13714_v12  ;;  %v6126_v4 = vpop.f32.mrb[60].mxu0  ;;  %v19242_v12 = vld [vmem:[#allocation12_spill] sm:$0xff]  ;;  %v12570_v37 = vld [vmem:[%s18749_s3 + $0x130] ss:$8 sps:$4 sm:$0xff]  }
 0x5ca   : > { %v10985_v23 = vadd.f32 %v6126_v4, %v16982_v15  ;;  %v6128_v59 = vpop.f32.mrb[61].mxu0  ;;  %v6382_v24 = vpack.c.bf16 %v13720_v2, %v13716_v38  ;;  %v19243_v38 = vpack.c.bf16 %v19241_v62, %v19242_v12  ;;  %v12575_v2 = vld [vmem:[%s18749_s3 + $0x144] ss:$8 sps:$4 sm:$0xff]   ;;  %v12578_v4 = vld [vmem:[%s18749_s3 + $0x154] ss:$8 sps:$4 sm:$0xff]  }
 0x5cb   : > { %v10986_v18 = vadd.f32 %v6128_v59, %v16987_v11  ;;  %v6130_v50 = vpop.f32.mrb[62].mxu0  ;;  %v19245_v59 = vld [vmem:[#allocation17_spill] sm:$0xff]  ;;  %v19267_v62 = vld [vmem:[#allocation34_spill] sm:$0xff] }
 0x5cc   : > { %13729 = vtanh.f32 %v10985_v23  ;;  %v10987_v25 = vadd.f32 %v6130_v50, %v16982_v15  ;;  %v6132_v36 = vpop.f32.mrb[63].mxu0  ;;  %7066 = vmatprep.mubr.bf16.mxu1 %v6382_v24  ;;  %v19244_v23 = vld [vmem:[#allocation21_spill] sm:$0xff]  ;;  %v19248_v50 = vld [vmem:[#allocation75_spill] sm:$0xff] }
 0x5cd   : > { %13731 = vtanh.f32 %v10986_v18  ;;  %v10988_v40 = vadd.f32 %v6132_v36, %v16987_v11  ;;  %7067 = vmatmul.mubr.bf16.gmra.mrb[20].mxu1 %v6381_v39  ;;  %v19229_v11 = vld [vmem:[#allocation20_spill] sm:$0xff]  ;;  %v19246_v24 = vpack.c.bf16 %v19244_v23, %v19245_v59  ;;  %v19247_v18 = vld [vmem:[#allocation77_spill] sm:$0xff]  ;;  %v12576_v36 = vld [vmem:[%s18749_s3 + $0x150] ss:$8 sps:$4 sm:$0xff]  }
 0x5ce   : > { %v13722_v56 = vpop.eup %13721  ;;  %13733 = vtanh.f32 %v10987_v25  ;;  %v19231_v33 = vpack.c.bf16 %v19229_v11, %v19230_v43  ;;  %v12573_v39 = vld [vmem:[%s18749_s3 + $0x140] ss:$8 sps:$4 sm:$0xff]   ;;  %v19249_v25 = vpack.c.bf16 %v19247_v18, %v19248_v50  ;;  %v19257_v43 = vld [vmem:[#allocation78_spill] sm:$0xff] }
 0x5cf   : > { %v13724_v1 = vpop.eup %13723  ;;  %13735 = vtanh.f32 %v10988_v40  ;;  %v12581_v40 = vld [vmem:[%s18749_s3 + $0x164] ss:$8 sps:$4 sm:$0xff]   ;;  %v12606_v18 = vld [vmem:[%s18749_s3 + $0x1f0] ss:$8 sps:$4 sm:$0xff]  }
 0x5d0   : > { %v13726_v31 = vpop.eup %13725  ;;  %v19256_v11 = vld [vmem:[#allocation28_spill] sm:$0xff]  ;;  %v19268_v12 = vld [vmem:[#allocation85_spill] sm:$0xff]  ;;  %v19275_v50 = vld [vmem:[#allocation38_spill] sm:$0xff] }
 0x5d1   : > { %v13728_v20 = vpop.eup %13727  ;;  %v6385_v5 = vpack.c.bf16 %v13726_v31, %v13722_v56  ;;  %v12579_v56 = vld [vmem:[%s18749_s3 + $0x160] ss:$8 sps:$4 sm:$0xff]  }
 0x5d2   : > { %v6386_v28 = vpack.c.bf16 %v13728_v20, %v13724_v1  ;;  %v12584_v1 = vld [vmem:[%s18749_s3 + $0x174] ss:$8 sps:$4 sm:$0xff]   ;;  %v19250_v31 = vld [vmem:[#allocation76_spill] sm:$0xff] }
 0x5d3   : > { %v19251_v20 = vld [vmem:[#allocation74_spill] sm:$0xff]  ;;  %v19273_v59 = vld [vmem:[#allocation88_spill] sm:$0xff] }
 0x5d4   : > { %7076 = vmatprep.mubr.bf16.mxu1 %v6386_v28  ;;  %v19253_v28 = vld [vmem:[#allocation80_spill] sm:$0xff] }
 0x5d5   : > { %7077 = vmatmul.mubr.bf16.gmra.mrb[24].mxu1 %v6385_v5  ;;  %v19252_v5 = vpack.c.bf16 %v19250_v31, %v19251_v20  ;;  %v19284_v20 = vld [vmem:[#allocation92_spill] sm:$0xff] }
 0x5d6   : > { %v13730_v8 = vpop.eup %13729 }
 0x5d7   : > { %v13732_v14 = vpop.eup %13731 }
 0x5d8   : > { %v13734_v26 = vpop.eup %13733 }
 0x5d9   : > { %v13736_v15 = vpop.eup %13735  ;;  %v6389_v27 = vpack.c.bf16 %v13734_v26, %v13730_v8  ;;  %v19254_v8 = vld [vmem:[#allocation79_spill] sm:$0xff] }
 0x5da   : > { %v6390_v32 = vpack.c.bf16 %v13736_v15, %v13732_v14  ;;  %v19255_v14 = vpack.c.bf16 %v19253_v28, %v19254_v8  ;;  %v12582_v26 = vld [vmem:[%s18749_s3 + $0x170] ss:$8 sps:$4 sm:$0xff]   ;;  %v12587_v15 = vld [vmem:[%s18749_s3 + $0x184] ss:$8 sps:$4 sm:$0xff]  }
 0x5db   : > { %v19286_v28 = vld [vmem:[#allocation42_spill] sm:$0xff]  ;;  %v19287_v8 = vld [vmem:[#allocation91_spill] sm:$0xff] }
 0x5dc   : > { %7086 = vmatprep.mubr.bf16.mxu1 %v6390_v32  ;;  %v12590_v32 = vld [vmem:[%s18749_s3 + $0x194] ss:$8 sps:$4 sm:$0xff]  }
 0x5dd   : > { %7087 = vmatmul.mubr.bf16.gmra.mrb[28].mxu1 %v6389_v27  ;;  %v12585_v27 = vld [vmem:[%s18749_s3 + $0x180] ss:$8 sps:$4 sm:$0xff]  }
 0x5de   : > { %7449 = vmatprep.mubr.bf16.mxu1 %v19231_v33  ;;  %v19258_v33 = vpack.c.bf16 %v19256_v11, %v19257_v43  ;;  %v19293_v11 = vld [vmem:[#allocation94_spill] sm:$0xff]  ;;  %v19295_v43 = vld [vmem:[#allocation99_spill] sm:$0xff] }
 0x5e5   : > { %7450 = vmatmul.mubr.bf16.vlgmr.msra.gmra.mrb[224].mxu1 %v19234_v45  ;;  %v12593_v45 = vld [vmem:[%s18749_s3 + $0x1a4] ss:$8 sps:$4 sm:$0xff]  }
 0x5e6   : > { %7459 = vmatprep.mubr.bf16.mxu1 %v19237_v47  ;;  %7611 = vmatpush1.bf16.msra.mxu1 %v12561_v30  ;;  %v19259_v30 = vld [vmem:[#allocation84_spill] sm:$0xff]  ;;  %v19262_v47 = vld [vmem:[#allocation83_spill] sm:$0xff] }
 0x5e7   : > { %7612 = vmatprep.subr.bf16.mxu1 %v12566_v51  ;;  %v19260_v51 = vld [vmem:[#allocation82_spill] sm:$0xff] }
 0x5e8   : > { %v19261_v34 = vpack.c.bf16 %v19259_v30, %v19260_v51  ;;  %v19298_v51 = vld [vmem:[#allocation46_spill] sm:$0xff] }
 0x5ea   : > { %7613 = vmatpush1.bf16.msra.mxu1 %v12564_v49  ;;  %v19263_v49 = vld [vmem:[#allocation81_spill] sm:$0xff] }
 0x5eb   : > { %7614 = vmatprep.subr.bf16.mxu1 %v12569_v9  ;;  %v19264_v9 = vpack.c.bf16 %v19262_v47, %v19263_v49  ;;  %v12609_v47 = vld [vmem:[#allocation4 + $0x40] sm:$0xff]  }
 0x5ec   : > { %10341 = vmatprep.subr.bf16.mxu0 %v12609_v47  ;;  %v19304_v49 = vld [vmem:[#allocation48_spill] sm:$0xff]  ;;  %v19341_v47 = vld [vmem:[#allocation33_spill] sm:$0xff] }
 0x5ed   : > { %7460 = vmatmul.mubr.bf16.gmra.mrb[228].mxu1 %v19240_v52  ;;  %v12597_v52 = vld [vmem:[%s18749_s3 + $0x1c0] ss:$8 sps:$4 sm:$0xff]  }
 0x5ee   : > { %7469 = vmatprep.mubr.bf16.mxu1 %v19243_v38  ;;  %7615 = vmatpush1.bf16.msra.mxu1 %v12567_v16  ;;  %v19265_v16 = vld [vmem:[#allocation86_spill] sm:$0xff]  ;;  %v19269_v38 = vpack.c.bf16 %v19267_v62, %v19268_v12  ;;  %v19311_v62 = vld [vmem:[#allocation103_spill] sm:$0xff] }
 0x5ef   : > { %7616 = vmatprep.subr.bf16.mxu1 %v12572_v19  ;;  %v19266_v19 = vpack.c.bf16 %v16632_v54, %v19265_v16  ;;  %v12602_v54 = vld [vmem:[%s18749_s3 + $0x1d4] ss:$8 sps:$4 sm:$0xff]  }
 0x5f2   : > { %7617 = vmatpush1.bf16.msra.mxu1 %v12570_v37  ;;  %v19270_v37 = vpack.c.bf16 %v16664_v7, %v16654_v55  ;;  %v12608_v55 = vld [vmem:[%s18749_s3 + $0x1f4] ss:$8 sps:$4 sm:$0xff]  }
 0x5f3   : > { %7618 = vmatprep.subr.bf16.mxu1 %v12575_v2  ;;  %v12600_v2 = vld [vmem:[%s18749_s3 + $0x1d0] ss:$8 sps:$4 sm:$0xff]  }
 0x5f4   : > { %v19271_v7 = vld [vmem:[#allocation87_spill] sm:$0xff] }
 0x5f5   : > { %7470 = vmatmul.mubr.bf16.gmra.mrb[232].mxu1 %v19246_v24  ;;  %v19272_v23 = vpack.c.bf16 %v16658_v17, %v19271_v7  ;;  %v19274_v24 = vpack.c.bf16 %v16708_v61, %v19273_v59  ;;  %v19280_v17 = vld [vmem:[#allocation40_spill] sm:$0xff]  ;;  %v19283_v61 = vld [vmem:[#allocation93_spill] sm:$0xff]  ;;  %v12613_v59 = vld [vmem:[#allocation4 + $0x50] sm:$0xff]  }
 0x5f6   : > { %7479 = vmatprep.mubr.bf16.mxu1 %v19249_v25  ;;  %7619 = vmatpush1.bf16.msra.mxu1 %v12573_v39  ;;  %v12605_v39 = vld [vmem:[%s18749_s3 + $0x1e4] ss:$8 sps:$4 sm:$0xff]  }
 0x5f7   : > { %7620 = vmatprep.subr.bf16.mxu1 %v12578_v4  ;;  %v12603_v4 = vld [vmem:[%s18749_s3 + $0x1e0] ss:$8 sps:$4 sm:$0xff]  }
 0x5f8   : > { %v19276_v25 = vld [vmem:[#allocation36_spill] sm:$0xff] }
 0x5fa   : > { %7621 = vmatpush1.bf16.msra.mxu1 %v12576_v36  ;;  %v19277_v36 = vpack.c.bf16 %v19275_v50, %v19276_v25  ;;  %v12614_v25 = vld [vmem:[#allocation4 + $0x10] sm:$0xff]  }
 0x5fb   : > { %7622 = vmatprep.subr.bf16.mxu1 %v12581_v40  ;;  %v19278_v40 = vld [vmem:[#allocation90_spill] sm:$0xff] }
 0x5fd   : > { %7480 = vmatmul.mubr.bf16.gmra.mrb[236].mxu1 %v19252_v5  ;;  %v19285_v5 = vpack.c.bf16 %v19283_v61, %v19284_v20  ;;  %v19325_v61 = vld [vmem:[#allocation24_spill] sm:$0xff]  ;;  %v19326_v20 = vld [vmem:[#allocation15_spill] sm:$0xff] }
 0x5fe   : > { %7489 = vmatprep.mubr.bf16.mxu1 %v19255_v14  ;;  %7623 = vmatpush1.bf16.msra.mxu1 %v12579_v56  ;;  %v19279_v56 = vpack.c.bf16 %v16752_v21, %v19278_v40  ;;  %v19288_v14 = vpack.c.bf16 %v19286_v28, %v19287_v8  ;;  %v12616_v40 = vld [vmem:[#allocation4 + $0x18] sm:$0xff]   ;;  %v12618_v28 = vld [vmem:[#allocation4 + $0x20] sm:$0xff]   ;;  %v12619_v8 = vld [vmem:[#allocation4 + $0x68] sm:$0xff]  }
 0x5ff   : > { %7624 = vmatprep.subr.bf16.mxu1 %v12584_v1  ;;  %v19281_v1 = vld [vmem:[#allocation89_spill] sm:$0xff] }
 0x600   : > { %v19282_v31 = vpack.c.bf16 %v19280_v17, %v19281_v1  ;;  %v19322_v17 = vld [vmem:[#allocation58_spill] sm:$0xff] }
 0x601   : > { %v19323_v1 = vld [vmem:[#allocation54_spill] sm:$0xff] }
 0x602   : > { %7625 = vmatpush1.bf16.msra.mxu1 %v12582_v26  ;;  %v19289_v26 = vld [vmem:[#allocation96_spill] sm:$0xff] }
 0x603   : > { %7626 = vmatprep.subr.bf16.mxu1 %v12587_v15  ;;  %v19290_v15 = vld [vmem:[#allocation95_spill] sm:$0xff] }
 0x605   : > { %7490 = vmatmul.mubr.bf16.gmra.mrb[240].mxu1 %v19258_v33  ;;  %v19296_v33 = vld [vmem:[#allocation98_spill] sm:$0xff] }
 0x606   : > { %7499 = vmatprep.mubr.bf16.mxu1 %v19261_v34  ;;  %7627 = vmatpush1.bf16.msra.mxu1 %v12585_v27  ;;  %v19291_v27 = vpack.c.bf16 %v19289_v26, %v19290_v15  ;;  %v19297_v30 = vpack.c.bf16 %v19295_v43, %v19296_v33  ;;  %v19299_v34 = vld [vmem:[#allocation97_spill] sm:$0xff]  ;;  %v12621_v26 = vld [vmem:[#allocation4 + $0x70] sm:$0xff]   ;;  %v19328_v15 = vld [vmem:[#allocation27_spill] sm:$0xff] }
 0x607   : > { %7628 = vmatprep.subr.bf16.mxu1 %v12590_v32  ;;  %v19292_v32 = vld [vmem:[#allocation44_spill] sm:$0xff]  ;;  %v12622_v33 = vld [vmem:[#allocation4 + $0x30] sm:$0xff]  }
 0x608   : > { %v19294_v21 = vpack.c.bf16 %v19292_v32, %v19293_v11  ;;  %v19331_v11 = vld [vmem:[#allocation110_spill] sm:$0xff] }
 0x60a   : > { %7629 = vmatpush1.bf16.msra.mxu1 %v12588_v44  ;;  %v19300_v44 = vpack.c.bf16 %v19298_v51, %v19299_v34  ;;  %v19335_v51 = vld [vmem:[#allocation31_spill] sm:$0xff] }
 0x60b   : > { %7630 = vmatprep.subr.bf16.mxu1 %v12593_v45  ;;  %v19301_v45 = vld [vmem:[#allocation102_spill] sm:$0xff] }
 0x60d   : > { %7500 = vmatmul.mubr.bf16.gmra.mrb[244].mxu1 %v19264_v9  ;;  %v19305_v9 = vld [vmem:[#allocation100_spill] sm:$0xff] }
 0x60e   : > { %7509 = vmatprep.mubr.bf16.mxu1 %v19266_v19  ;;  %7631 = vmatpush1.bf16.msra.mxu1 %v12591_v48  ;;  %v19302_v48 = vld [vmem:[#allocation101_spill] sm:$0xff]  ;;  %v19306_v16 = vpack.c.bf16 %v19304_v49, %v19305_v9  ;;  %v12610_v19 = vld [vmem:[#allocation4] sm:$0xff]  }
 0x60f   : > { %7632 = vmatprep.subr.bf16.mxu1 %v12596_v46  ;;  %v19303_v46 = vpack.c.bf16 %v19301_v45, %v19302_v48  ;;  %10342 = vmatpush3.bf16.msra.mxu0 %v12610_v19  ;;  %v19338_v45 = vld [vmem:[#allocation29_spill] sm:$0xff] }
 0x610   : > { %v19343_v9 = vld [vmem:[#allocation113_spill] sm:$0xff] }
 0x612   : > { %7633 = vmatpush1.bf16.msra.mxu1 %v12594_v10  ;;  %v19307_v10 = vld [vmem:[#allocation105_spill] sm:$0xff] }
 0x613   : > { %7634 = vmatprep.subr.bf16.mxu1 %v12599_v29  ;;  %v19308_v29 = vld [vmem:[#allocation104_spill] sm:$0xff] }
 0x615   : > { %7510 = vmatmul.mubr.bf16.gmra.mrb[248].mxu1 %v19269_v38  ;;  %v19313_v38 = vld [vmem:[#allocation108_spill] sm:$0xff] }
 0x616   : > { %7519 = vmatprep.mubr.bf16.mxu1 %v19270_v37  ;;  %7635 = vmatpush1.bf16.msra.mxu1 %v12597_v52  ;;  %v19309_v52 = vpack.c.bf16 %v19307_v10, %v19308_v29  ;;  %v19314_v37 = vld [vmem:[#allocation107_spill] sm:$0xff]  ;;  %v19346_v10 = vld [vmem:[#allocation112_spill] sm:$0xff] }
 0x617   : > { %7636 = vmatprep.subr.bf16.mxu1 %v12602_v54  ;;  %v19310_v54 = vld [vmem:[#allocation50_spill] sm:$0xff]  ;;  %v19347_v29 = vld [vmem:[#allocation35_spill] sm:$0xff] }
 0x618   : > { %v19312_v12 = vpack.c.bf16 %v19310_v54, %v19311_v62  ;;  %v19349_v54 = vld [vmem:[#allocation114_spill] sm:$0xff]  ;;  %v19350_v62 = vld [vmem:[#allocation61_spill] sm:$0xff] }
 0x61a   : > { %7637 = vmatpush1.bf16.msra.mxu1 %v12600_v2  ;;  %v19315_v2 = vpack.c.bf16 %v19313_v38, %v19314_v37  ;;  %v19352_v38 = vld [vmem:[#allocation32_spill] sm:$0xff]  ;;  %v19353_v37 = vld [vmem:[#allocation37_spill] sm:$0xff] }
 0x61b   : > { %7638 = vmatprep.subr.bf16.mxu1 %v12605_v39  ;;  %v12611_v39 = vld [vmem:[#allocation4 + $0x48] sm:$0xff]  }
 0x61c   : > { %10343 = vmatprep.subr.bf16.mxu0 %v12611_v39  ;;  %v19355_v39 = vld [vmem:[#allocation116_spill] sm:$0xff] }
 0x61d   : > { %7520 = vmatmul.mubr.bf16.gmra.mrb[252].mxu1 %v19272_v23  ;;  %v12612_v23 = vld [vmem:[#allocation4 + $0x8] sm:$0xff]  }
 0x61e   : > { %7529 = vmatprep.mubr.bf16.mxu1 %v19274_v24  ;;  %7639 = vmatpush1.bf16.msra.mxu1 %v12603_v4  ;;  %v19316_v4 = vld [vmem:[#allocation52_spill] sm:$0xff]  ;;  %v19319_v24 = vld [vmem:[#allocation13_spill] sm:$0xff] }
 0x61f   : > { %7640 = vmatprep.subr.bf16.mxu1 %v12608_v55  ;;  %v19317_v55 = vld [vmem:[#allocation106_spill] sm:$0xff]  ;;  %10344 = vmatpush3.bf16.msra.mxu0 %v12612_v23  ;;  %v19359_v23 = vld [vmem:[#allocation39_spill] sm:$0xff] }
 0x620   : > { %v19318_v7 = vpack.c.bf16 %v19316_v4, %v19317_v55  ;;  %10345 = vmatprep.subr.bf16.mxu0 %v12613_v59  ;;  %v19356_v4 = vld [vmem:[#allocation64_spill] sm:$0xff] }
 0x621   : > { %v19357_v55 = vpack.c.bf16 %v19355_v39, %v19356_v4 }
 0x622   : > { %7641 = vmatpush1.bf16.msra.mxu1 %v12606_v18  ;;  %v19320_v18 = vld [vmem:[#allocation56_spill] sm:$0xff] }
 0x623   : > { %v19321_v50 = vpack.c.bf16 %v19319_v24, %v19320_v18  ;;  %10346 = vmatpush3.bf16.msra.mxu0 %v12614_v25  ;;  %v19361_v24 = vld [vmem:[#allocation118_spill] sm:$0xff]  ;;  %v19362_v18 = vld [vmem:[#allocation63_spill] sm:$0xff]  ;;  %v19364_v25 = vld [vmem:[#allocation117_spill] sm:$0xff] }
 0x625   : > { %7530 = vmatmul.mubr.bf16.gmra.mrb[0].mxu1 %v19277_v36  ;;  %v12615_v36 = vld [vmem:[#allocation4 + $0x58] sm:$0xff]  }
 0x626   : > { %7539 = vmatprep.mubr.bf16.mxu1 %v19279_v56  ;;  %10347 = vmatprep.subr.bf16.mxu0 %v12615_v36  ;;  %v12617_v56 = vld [vmem:[#allocation4 + $0x60] sm:$0xff]   ;;  %v19365_v36 = vld [vmem:[#allocation41_spill] sm:$0xff] }
 0x627   : > { %10348 = vmatpush3.bf16.msra.mxu0 %v12616_v40  ;;  %v19366_v40 = vpack.c.bf16 %v19364_v25, %v19365_v36  ;;  %v8009_v25 = vunpack.c.l.bf16 %v7945_v57 }
 0x628   : > { %10349 = vmatprep.subr.bf16.mxu0 %v12617_v56  ;;  %v19367_v56 = vld [vmem:[#allocation120_spill] sm:$0xff] }
 0x62b   : > { %10350 = vmatpush3.bf16.msra.mxu0 %v12618_v28  ;;  %v19374_v28 = vld [vmem:[#allocation65_spill] sm:$0xff] }
 0x62c   : > { %10351 = vmatprep.subr.bf16.mxu0 %v12619_v8 }
 0x62d   : > { %7540 = vmatmul.mubr.bf16.gmra.mrb[4].mxu1 %v19282_v31  ;;  %v19324_v31 = vpack.c.bf16 %v19322_v17, %v19323_v1  ;;  %v19368_v17 = vld [vmem:[#allocation66_spill] sm:$0xff] }
 0x62e   : > { %7549 = vmatprep.mubr.bf16.mxu1 %v19285_v5  ;;  %v19327_v5 = vpack.c.bf16 %v19325_v61, %v19326_v20  ;;  %v19369_v1 = vpack.c.bf16 %v19367_v56, %v19368_v17  ;;  %v19371_v61 = vld [vmem:[#allocation43_spill] sm:$0xff]  ;;  %v14261_v17 = vld [vmem:[%s14564_s11 + $0x50] sm:$0xff] }
 0x635   : > { %7550 = vmatmul.mubr.bf16.gmra.mrb[8].mxu1 %v19288_v14  ;;  %v12620_v14 = vld [vmem:[#allocation4 + $0x28] sm:$0xff]  }
 0x636   : > { %7559 = vmatprep.mubr.bf16.mxu1 %v19291_v27  ;;  %v19329_v27 = vld [vmem:[#allocation30_spill] sm:$0xff]  ;;  %10352 = vmatpush3.bf16.msra.mxu0 %v12620_v14  ;;  %v19376_v14 = vld [vmem:[#allocation121_spill] sm:$0xff] }
 0x637   : > { %v19330_v32 = vpack.c.bf16 %v19328_v15, %v19329_v27  ;;  %10353 = vmatprep.subr.bf16.mxu0 %v12621_v26  ;;  %v19377_v26 = vld [vmem:[#allocation45_spill] sm:$0xff]  ;;  %v19379_v27 = vld [vmem:[#allocation124_spill] sm:$0xff] }
 0x638   : > { %v19378_v15 = vpack.c.bf16 %v19376_v14, %v19377_v26 }
 0x63a   : > { %10354 = vmatpush3.bf16.msra.mxu0 %v12622_v33 }
 0x63d   : > { %7560 = vmatmul.mubr.bf16.gmra.mrb[12].mxu1 %v19294_v21  ;;  %v19332_v21 = vld [vmem:[#allocation23_spill] sm:$0xff] }
 0x63e   : > { %7569 = vmatprep.mubr.bf16.mxu1 %v19297_v30  ;;  %v19333_v43 = vpack.c.bf16 %v19331_v11, %v19332_v21  ;;  %v19334_v30 = vld [vmem:[#allocation109_spill] sm:$0xff]  ;;  %v19382_v21 = vld [vmem:[#allocation123_spill] sm:$0xff] }
 0x63f   : > { %v19336_v34 = vpack.c.bf16 %v19334_v30, %v19335_v51  ;;  %v19385_v30 = vld [vmem:[#allocation126_spill] sm:$0xff]  ;;  %v19386_v51 = vld [vmem:[#allocation67_spill] sm:$0xff] }
 0x645   : > { %7570 = vmatmul.mubr.bf16.gmra.mrb[16].mxu1 %v19300_v44  ;;  %v19337_v44 = vld [vmem:[#allocation111_spill] sm:$0xff] }
 0x646   : > { %7579 = vmatprep.mubr.bf16.mxu1 %v19303_v46  ;;  %v19339_v48 = vpack.c.bf16 %v19337_v44, %v19338_v45  ;;  %v19340_v46 = vld [vmem:[#allocation26_spill] sm:$0xff]  ;;  %v19388_v44 = vld [vmem:[#allocation125_spill] sm:$0xff] }
 0x647   : > { %v19342_v49 = vpack.c.bf16 %v19340_v46, %v19341_v47  ;;  %v19389_v45 = vld [vmem:[#allocation49_spill] sm:$0xff]  ;;  %v19391_v46 = vld [vmem:[#allocation128_spill] sm:$0xff]  ;;  %v19392_v47 = vld [vmem:[#allocation70_spill] sm:$0xff] }
 0x64d   : > { %7580 = vmatmul.mubr.bf16.gmra.mrb[20].mxu1 %v19306_v16  ;;  %v19344_v16 = vld [vmem:[#allocation62_spill] sm:$0xff] }
 0x64e   : > { %7589 = vmatprep.mubr.bf16.mxu1 %v19309_v52  ;;  %v19345_v19 = vpack.c.bf16 %v19343_v9, %v19344_v16  ;;  %v19348_v52 = vpack.c.bf16 %v19346_v10, %v19347_v29  ;;  %v19394_v9 = vld [vmem:[#allocation127_spill] sm:$0xff]  ;;  %v19397_v10 = vpack.c.bf16 %v17461_v60, %v17453_v35  ;;  %v14253_v35 = vld [vmem:[%s14564_s11 + $0x10] sm:$0xff] }
 0x64f   : > { %v19395_v16 = vld [vmem:[#allocation51_spill] sm:$0xff]  ;;  %v7941_v60 = vrot.slane %v14253_v35, 4 }
 0x650   : > { %v12623_v29 = vld [vmem:[#allocation4 + $0x78] sm:$0xff]  }
 0x651   : > { %10355 = vmatprep.subr.bf16.mxu0 %v12623_v29 }
 0x655   : > { %7590 = vmatmul.mubr.bf16.gmra.mrb[24].mxu1 %v19312_v12  ;;  %v19351_v12 = vpack.c.bf16 %v19349_v54, %v19350_v62  ;;  %v19398_v54 = vpack.c.bf16 %v17459_v0, %v17446_v41  ;;  %v19399_v62 = vpack.c.bf16 %v17481_v53, %v17476_v22  ;;  %v14254_v41 = vld [vmem:[%s14564_s11 + $0x18] sm:$0xff] }
 0x656   : > { %7599 = vmatprep.mubr.bf16.mxu1 %v19315_v2  ;;  %v19354_v2 = vpack.c.bf16 %v19352_v38, %v19353_v37  ;;  %v7942_v0 = vrot.slane %v14254_v41, 4  ;;  %v8005_v37 = vunpack.c.l.bf16 %v7941_v60  ;;  %v18185_v60 = vld [vmem:[#allocation6] sm:$0xff] }
 0x658   : > { %v8006_v22 = vunpack.c.l.bf16 %v7942_v0  ;;  %v14272_v0 = vld [vmem:[#allocation6 + $0x8] sm:$0xff] }
 0x65a   : > { %v11746_v53 = vpack.i.bf16 %v8006_v22, %v8005_v37 }
 0x65c   : > { %11747 = vperm.xlu1 %11745, %v11746_v53  }
 0x65d   : > { %7600 = vmatmul.mubr.bf16.gmra.mrb[28].mxu1 %v19318_v7  ;;  %v19358_v7 = vld [vmem:[#allocation115_spill] sm:$0xff] }
 0x65e   : > { %7642 = vmatprep.mubr.bf16.mxu1 %v19321_v50  ;;  %v19360_v59 = vpack.c.bf16 %v19358_v7, %v19359_v23  ;;  %v19363_v50 = vpack.c.bf16 %v19361_v24, %v19362_v18  ;;  %v14258_v7 = vld [vmem:[%s14564_s11 + $0x38] sm:$0xff]  ;;  %v14260_v18 = vld [vmem:[%s14564_s11 + $0x28] sm:$0xff] }
 0x65f   : > { %v7946_v23 = vrot.slane %v14258_v7, 4 }
 0x661   : > { %v8010_v36 = vunpack.c.l.bf16 %v7946_v23 }
 0x665   : > { %7643 = vmatmul.mubr.bf16.vlgmr.msra.gmra.mrb[224].mxu1 %v19324_v31  ;;  %v19370_v31 = vld [vmem:[#allocation119_spill] sm:$0xff] }
 0x666   : > { %7652 = vmatprep.mubr.bf16.mxu1 %v19327_v5  ;;  %v19372_v20 = vpack.c.bf16 %v19370_v31, %v19371_v61  ;;  %v19373_v5 = vld [vmem:[#allocation122_spill] sm:$0xff]  ;;  %v14262_v31 = vld [vmem:[%s14564_s11 + $0x58] sm:$0xff] }
 0x667   : > { %v19375_v8 = vpack.c.bf16 %v19373_v5, %v19374_v28  ;;  %v7950_v61 = vrot.slane %v14262_v31, 4  ;;  %v19402_v28 = vmov 0  }
 0x669   : > { %v8014_v14 = vunpack.c.l.bf16 %v7950_v61 }
 0x66d   : > { %7653 = vmatmul.mubr.bf16.gmra.mrb[228].mxu1 %v19330_v32  ;;  %v19380_v32 = vld [vmem:[#allocation68_spill] sm:$0xff] }
 0x66e   : > { %7662 = vmatprep.mubr.bf16.mxu1 %v19333_v43  ;;  %v19381_v11 = vpack.c.bf16 %v19379_v27, %v19380_v32  ;;  %v19383_v43 = vld [vmem:[#allocation47_spill] sm:$0xff]  ;;  %v14264_v32 = vld [vmem:[%s14564_s11 + $0x48] sm:$0xff] }
 0x66f   : > { %v19384_v33 = vpack.c.bf16 %v19382_v21, %v19383_v43 }
 0x675   : > { %7663 = vmatmul.mubr.bf16.gmra.mrb[232].mxu1 %v19336_v34  ;;  %v19387_v34 = vpack.c.bf16 %v19385_v30, %v19386_v51  ;;  %v14265_v30 = vld [vmem:[%s14564_s11 + $0x60] sm:$0xff] }
 0x676   : > { %7672 = vmatprep.mubr.bf16.mxu1 %v19339_v48  ;;  %v19390_v48 = vpack.c.bf16 %v19388_v44, %v19389_v45  ;;  %v7951_v51 = vrot.slane %v14265_v30, 4  ;;  %v14277_v30 = vld [vmem:[%s14564_s11 + $0xd0] sm:$0xff] }
 0x678   : > { %v8015_v45 = vunpack.c.l.bf16 %v7951_v51  ;;  %v7965_v51 = vrot.slane %v14277_v30, 4 }
 0x67d   : > { %7673 = vmatmul.mubr.bf16.gmra.mrb[236].mxu1 %v19342_v49  ;;  %v19393_v49 = vpack.c.bf16 %v19391_v46, %v19392_v47  ;;  %v14267_v47 = vld [vmem:[%s14564_s11 + $0x70] sm:$0xff] }
 0x67e   : > { %7682 = vmatprep.mubr.bf16.mxu1 %v19345_v19  ;;  %v19396_v19 = vpack.c.bf16 %v19394_v9, %v19395_v16  ;;  %v14268_v9 = vld [vmem:[%s14564_s11 + $0x78] sm:$0xff] }
 0x67f   : > { %v7954_v16 = vrot.slane %v14268_v9, 4  ;;  %v14280_v9 = vld [vmem:[%s14564_s11 + $0xd8] sm:$0xff] }
 0x685   : > { %7683 = vmatmul.mubr.bf16.gmra.mrb[240].mxu1 %v19348_v52  ;;  %v12624_v52 = vld [vmem:[#allocation4 + $0x38] sm:$0xff]  }
 0x686   : > { %7692 = vmatprep.mubr.bf16.mxu1 %v19351_v12  ;;  %10356 = vmatpush3.bf16.msra.mxu0 %v12624_v52  ;;  %v19400_v12 = vld [vmem:[#allocation53_spill] sm:$0xff]  ;;  %v8018_v52 = vunpack.c.l.bf16 %v7954_v16  ;;  %v7966_v16 = vrot.slane %v14280_v9, 4 }
 0x687   : > { %v19401_v38 = vpack.c.bf16 %v17479_v6, %v19400_v12  ;;  %v14256_v6 = vld [vmem:[%s14564_s11 + $0x8] sm:$0xff] }
 0x688   : > { %v7940_v4 = vrot.slane %v14256_v6, 4  ;;  %v14273_v6 = vld [vmem:[%s14564_s11 + $0xb0] sm:$0xff] }
 0x68a   : > { %v8004_v3 = vunpack.c.l.bf16 %v7940_v4  ;;  %v7961_v4 = vrot.slane %v14273_v6, 4 }
 0x68c   : > { %v8025_v23 = vunpack.c.l.bf16 %v7961_v4 }
 0x68d   : > { %7693 = vmatmul.mubr.bf16.gmra.mrb[244].mxu1 %v19354_v2  ;;  %v14255_v2 = vld [vmem:[%s14564_s11] sm:$0xff] }
 0x68e   : > { %7702 = vmatprep.mubr.bf16.mxu1 %v19357_v55  ;;  %v7939_v39 = vrot.slane %v14255_v2, 4  ;;  %v14397_v55 = vmov 2  }
 0x695   : > { %7703 = vmatmul.mubr.bf16.gmra.mrb[248].mxu1 %v19360_v59  ;;  %v14259_v59 = vld [vmem:[%s14564_s11 + $0x20] sm:$0xff] }
 0x696   : > { %7712 = vmatprep.mubr.bf16.mxu1 %v19363_v50  ;;  %v7943_v24 = vrot.slane %v14259_v59, 4  ;;  %v7944_v50 = vrot.slane %v14260_v18, 4 }
 0x698   : > { %v8008_v56 = vunpack.c.l.bf16 %v7944_v50 }
 0x69d   : > { %7713 = vmatmul.mubr.bf16.gmra.mrb[252].mxu1 %v19366_v40  ;;  %v8007_v40 = vunpack.c.l.bf16 %v7943_v24  ;;  %v14275_v24 = vld [vmem:[%s14564_s11 + $0x80] sm:$0xff] }
 0x69e   : > { %7722 = vmatprep.mubr.bf16.mxu1 %v19369_v1  ;;  %v7949_v1 = vrot.slane %v14261_v17, 4  ;;  %v7955_v18 = vrot.slane %v14275_v24, 4  ;;  %v14281_v24 = vld [vmem:[%s14564_s11 + $0xf0] sm:$0xff] }
 0x69f   : > { %v11770_v5 = vpack.i.bf16 %v8008_v56, %v8007_v40 }
 0x6a5   : > { %7723 = vmatmul.mubr.bf16.gmra.mrb[0].mxu1 %v19372_v20  ;;  %v11792_v20 = vpack.i.bf16 %v8010_v36, %v8009_v25  ;;  %v14276_v36 = vld [vmem:[%s14564_s11 + $0x88] sm:$0xff] }
 0x6a6   : > { %7732 = vmatprep.mubr.bf16.mxu1 %v19375_v8  ;;  %v8013_v8 = vunpack.c.l.bf16 %v7949_v1  ;;  %v7956_v40 = vrot.slane %v14276_v36, 4  ;;  %v8019_v1 = vunpack.c.l.bf16 %v7955_v18  ;;  %v7969_v18 = vrot.slane %v14281_v24, 4 }
 0x6a8   : > { %v11820_v26 = vpack.i.bf16 %v8014_v14, %v8013_v8  ;;  %v8020_v31 = vunpack.c.l.bf16 %v7956_v40 }
 0x6aa   : > { %v18210_v61 = vpack.i.bf16 %v8020_v31, %v8019_v1 }
 0x6ad   : > { %7733 = vmatmul.mubr.bf16.gmra.mrb[4].mxu1 %v19378_v15  ;;  %v14263_v15 = vld [vmem:[%s14564_s11 + $0x40] sm:$0xff] }
 0x6ae   : > { %7742 = vmatprep.mubr.bf16.mxu1 %v19381_v11  ;;  %v7947_v27 = vrot.slane %v14263_v15, 4  ;;  %v7948_v11 = vrot.slane %v14264_v32, 4 }
 0x6b0   : > { %v8011_v21 = vunpack.c.l.bf16 %v7947_v27  ;;  %v8012_v43 = vunpack.c.l.bf16 %v7948_v11  ;;  %v12625_v11 = vld [vmem:[#allocation4 + $0x80] sm:$0xff]  }
 0x6b1   : > { %10573 = vmatprep.subr.bf16.mxu0 %v12625_v11 }
 0x6b5   : > { %7743 = vmatmul.mubr.bf16.gmra.mrb[8].mxu1 %v19384_v33  ;;  %v11798_v33 = vpack.i.bf16 %v8012_v43, %v8011_v21 }
 0x6b6   : > { %7752 = vmatprep.mubr.bf16.mxu1 %v19387_v34  ;;  %v14266_v34 = vld [vmem:[%s14564_s11 + $0x68] sm:$0xff] }
 0x6b7   : > { %v7952_v44 = vrot.slane %v14266_v34, 4 }
 0x6bd   : > { %7753 = vmatmul.mubr.bf16.gmra.mrb[12].mxu1 %v19390_v48  ;;  %v8016_v48 = vunpack.c.l.bf16 %v7952_v44 }
 0x6be   : > { %7762 = vmatprep.mubr.bf16.mxu1 %v19393_v49  ;;  %v7953_v49 = vrot.slane %v14267_v47, 4  ;;  %v14279_v47 = vld [vmem:[%s14564_s11 + $0xa8] sm:$0xff] }
 0x6bf   : > { %v11842_v46 = vpack.i.bf16 %v8016_v48, %v8015_v45  ;;  %v14278_v48 = vld [vmem:[%s14564_s11 + $0xa0] sm:$0xff] }
 0x6c0   : > { %v8017_v29 = vunpack.c.l.bf16 %v7953_v49  ;;  %v7960_v49 = vrot.slane %v14279_v47, 4 }
 0x6c2   : > { %v8024_v4 = vunpack.c.l.bf16 %v7960_v49  ;;  %v14284_v49 = vld [vmem:[%s14564_s11 + $0xc8] sm:$0xff] }
 0x6c3   : > { %v7964_v9 = vrot.slane %v14284_v49, 4 }
 0x6c5   : > { %7763 = vmatmul.mubr.bf16.gmra.mrb[16].mxu1 %v19396_v19  ;;  %v19403_v19 = vld [vmem:[#allocation9_spill] sm:$0xff] }
 0x6c6   : > { %7772 = vmatprep.mubr.bf16.mxu1 %v19397_v10  ;;  %v18180_v10 = vsub.s32 2, %v19403_v19 }
 0x6c8   : > { %v18189_v41 = vrot.slane %v18185_v60, %v18180_v10  ;;  %v18192_v37 = vrot.slane %v14272_v0, %v18180_v10 }
 0x6cd   : > { %7773 = vmatmul.mubr.bf16.gmra.mrb[20].mxu1 %v19398_v54  ;;  %v11858_v54 = vpack.i.bf16 %v8018_v52, %v8017_v29 }
 0x6ce   : > { %7782 = vmatprep.mubr.bf16.mxu1 %v19399_v62  ;;  %v14269_v62 = vld [vmem:[%s14564_s11 + $0x90] sm:$0xff] }
 0x6cf   : > { %v7957_v12 = vrot.slane %v14269_v62, 4 }
 0x6d1   : > { %v8021_v22 = vunpack.c.l.bf16 %v7957_v12 }
 0x6d5   : > { %7783 = vmatmul.mubr.bf16.gmra.mrb[24].mxu1 %v19401_v38  ;;  %v14270_v38 = vld [vmem:[%s14564_s11 + $0x98] sm:$0xff] }
 0x6d6   : > { %7792 = vmatprep.mubr.bf16.mxu1 %v6326_v42  ;;  %v8003_v42 = vunpack.c.l.bf16 %v7939_v39  ;;  %v7958_v35 = vrot.slane %v14270_v38, 4  ;;  %v8029_v38 = vunpack.c.l.bf16 %v7965_v51 }
 0x6d8   : > { %v11740_v13 = vpack.i.bf16 %v8004_v3, %v8003_v42  ;;  %v14274_v42 = vld [vmem:[%s14564_s11 + $0xb8] sm:$0xff] }
 0x6d9   : > { %v7962_v3 = vrot.slane %v14274_v42, 4 }
 0x6db   : > { %v8026_v59 = vunpack.c.l.bf16 %v7962_v3 }
 0x6dd   : > { %7793 = vmatmul.mubr.bf16.gmra.mrb[28].mxu1 %v6325_v58  ;;  %v14396_v58 = vmov 1   ;;  %v18206_v17 = vpack.i.bf16 %v8026_v59, %v8025_v23 }
 0x6de   : > { %11739 = vset.pattern.permute.xlu0 %v14396_v58  ;;  %11751 = vset.pattern.permute.xlu1 %v14396_v58 }
 0x6df   : > { %11753 = vperm.xlu1 %11751, %v11746_v53   ;;  %11741 = vperm.xlu0 %11739, %v11740_v13  }
 0x6e3   : > { %11757 = vset.pattern.permute.xlu1 %v14397_v55  ;;  %11763 = vset.pattern.permute.xlu0 %v14397_v55 }
 0x6e4   : > { %11759 = vperm.xlu1 %11757, %v11740_v13   ;;  %11765 = vperm.xlu0 %11763, %v11746_v53   ;;  %v8022_v53 = vunpack.c.l.bf16 %v7958_v35  ;;  %v12626_v35 = vld [vmem:[#allocation4 + $0x88] sm:$0xff]  }
 0x6e6   : > { %v18194_v39 = vpack.i.bf16 %v8022_v53, %v8021_v22  ;;  %v8030_v53 = vunpack.c.l.bf16 %v7966_v16 }
 0x6e8   : > { %11769 = vset.pattern.permute.xlu1 %v19402_v28  ;;  %11793 = vperm.xlu0 %11763, %v11792_v20  }
 0x6e9   : > { %11771 = vperm.xlu1 %11769, %v11770_v5  }
 0x6ec   : > { %11821 = vperm.xlu0 %11763, %v11820_v26  }
 0x6ed   : > { %11775 = vset.pattern.permute.xlu1 %v14396_v58 }
 0x6ee   : > { %11777 = vperm.xlu1 %11775, %v11770_v5  }
 0x6f0   : > { %11825 = vset.pattern.permute.xlu0 %v19402_v28 }
 0x6f1   : > { %11827 = vperm.xlu0 %11825, %v11740_v13  }
 0x6f2   : > { %11782 = vperm.xlu1 %11775, %v11792_v20  }
 0x6f5   : > { %11832 = vperm.xlu0 %11825, %v11792_v20  }
 0x6f6   : > { %11786 = vset.pattern.permute.xlu1 %v14397_v55 }
 0x6f7   : > { %11788 = vperm.xlu1 %11786, %v11770_v5  }
 0x6f9   : > { %11837 = vperm.xlu0 %11825, %v11820_v26  }
 0x6fb   : > { %11797 = vset.pattern.permute.xlu1 %v19402_v28 }
 0x6fc   : > { %11799 = vperm.xlu1 %11797, %v11798_v33  }
 0x6fd   : > { %11854 = vperm.xlu0 %11825, %v11858_v54  }
 0x700   : > { %11803 = vset.pattern.permute.xlu1 %v14396_v58 }
 0x701   : > { %11805 = vperm.xlu1 %11803, %v11798_v33   ;;  %11882 = vperm.xlu0 %11825, %v18194_v39  }
 0x705   : > { %11810 = vperm.xlu1 %11803, %v11820_v26   ;;  %11910 = vperm.xlu0 %11825, %v18206_v17  }
 0x709   : > { %11814 = vset.pattern.permute.xlu1 %v14397_v55  ;;  %11914 = vset.pattern.permute.xlu0 %v14397_v55 }
 0x70a   : > { %11816 = vperm.xlu1 %11814, %v11798_v33   ;;  %11916 = vperm.xlu0 %11914, %v11858_v54  }
 0x70e   : > { %11841 = vset.pattern.permute.xlu1 %v19402_v28  ;;  %11921 = vperm.xlu0 %11914, %v18194_v39  }
 0x70f   : > { %11843 = vperm.xlu1 %11841, %v11842_v46  }
 0x712   : > { %11937 = vperm.xlu0 %11914, %v18206_v17  }
 0x713   : > { %11847 = vset.pattern.permute.xlu1 %v14396_v58 }
 0x714   : > { %11849 = vperm.xlu1 %11847, %v11842_v46  }
 0x718   : > { %11859 = vperm.xlu1 %11847, %v11858_v54  }
 0x71c   : > { %11863 = vset.pattern.permute.xlu1 %v14397_v55 }
 0x71d   : > { %11865 = vperm.xlu1 %11863, %v11842_v46   ;;  %v7959_v46 = vrot.slane %v14278_v48, 4 }
 0x71f   : > { %v8023_v6 = vunpack.c.l.bf16 %v7959_v46 }
 0x721   : > { %11869 = vset.pattern.permute.xlu1 %v19402_v28  ;;  %v18236_v59 = vpack.i.bf16 %v8024_v4, %v8023_v6 }
 0x722   : > { %11871 = vperm.xlu1 %11869, %v18210_v61  }
 0x726   : > { %11875 = vset.pattern.permute.xlu1 %v14396_v58 }
 0x727   : > { %11877 = vperm.xlu1 %11875, %v18210_v61  }
 0x72b   : > { %11887 = vperm.xlu1 %11875, %v18194_v39   ;;  %v18231_v39 = vpack.i.bf16 %v8030_v53, %v8029_v38 }
 0x72d   : > { %11965 = vperm.xlu0 %11914, %v18231_v39  }
 0x72f   : > { %11891 = vset.pattern.permute.xlu1 %v14397_v55 }
 0x730   : > { %11893 = vperm.xlu1 %11891, %v18210_v61  }
 0x731   : > { %11969 = vset.pattern.permute.xlu0 %v19402_v28 }
 0x732   : > { %11971 = vperm.xlu0 %11969, %v18231_v39  }
 0x734   : > { %11897 = vset.pattern.permute.xlu1 %v19402_v28 }
 0x735   : > { %11899 = vperm.xlu1 %11897, %v18236_v59  }
 0x738   : > { %v7644_v2 = vpop.f32.mrb[224].mxu1 }
 0x739   : > { %v7811_v13 = vadd.f32 %v18189_v41, %v7644_v2  ;;  %v7646_v63 = vpop.f32.mrb[225].mxu1  ;;  %11903 = vset.pattern.permute.xlu1 %v14396_v58 }
 0x73a   : > { %v7812_v57 = vadd.f32 %v18192_v37, %v7646_v63  ;;  %v7648_v7 = vpop.f32.mrb[226].mxu1  ;;  %11905 = vperm.xlu1 %11903, %v18236_v59  }
 0x73b   : > { %13737 = vtanh.f32 %v7811_v13  ;;  %v7813_v50 = vadd.f32 %v18189_v41, %v7648_v7  ;;  %v7650_v25 = vpop.f32.mrb[227].mxu1  ;;  %v12627_v13 = vld [vmem:[#allocation4 + $0x90] sm:$0xff]  }
 0x73c   : > { %13739 = vtanh.f32 %v7812_v57  ;;  %v7814_v56 = vadd.f32 %v18192_v37, %v7650_v25 }
 0x73d   : > { %13741 = vtanh.f32 %v7813_v50  ;;  %v14282_v50 = vld [vmem:[%s14564_s11 + $0xf8] sm:$0xff] }
 0x73e   : > { %13743 = vtanh.f32 %v7814_v56  ;;  %v7970_v25 = vrot.slane %v14282_v50, 4  ;;  %11926 = vperm.xlu1 %11903, %v18206_v17  }
 0x740   : > { %v7654_v20 = vpop.f32.mrb[228].mxu1 }
 0x741   : > { %v7815_v5 = vadd.f32 %v18189_v41, %v7654_v20  ;;  %v7656_v8 = vpop.f32.mrb[229].mxu1 }
 0x742   : > { %v7816_v14 = vadd.f32 %v18192_v37, %v7656_v8  ;;  %v7658_v26 = vpop.f32.mrb[230].mxu1  ;;  %v8033_v8 = vunpack.c.l.bf16 %v7969_v18  ;;  %11930 = vset.pattern.permute.xlu1 %v14397_v55 }
 0x743   : > { %13745 = vtanh.f32 %v7815_v5  ;;  %v7817_v15 = vadd.f32 %v18189_v41, %v7658_v26  ;;  %v7660_v27 = vpop.f32.mrb[231].mxu1  ;;  %11932 = vperm.xlu1 %11930, %v18236_v59  }
 0x744   : > { %13747 = vtanh.f32 %v7816_v14  ;;  %v7818_v32 = vadd.f32 %v18192_v37, %v7660_v27  ;;  %v8034_v14 = vunpack.c.l.bf16 %v7970_v25 }
 0x745   : > { %v13738_v21 = vpop.eup %13737  ;;  %13749 = vtanh.f32 %v7817_v15 }
 0x746   : > { %v13740_v43 = vpop.eup %13739  ;;  %13751 = vtanh.f32 %v7818_v32  ;;  %v18248_v27 = vpack.i.bf16 %v8034_v14, %v8033_v8  ;;  %v14286_v14 = vld [vmem:[%s14564_s11 + $0xe8] sm:$0xff] }
 0x747   : > { %v13742_v33 = vpop.eup %13741  ;;  %11941 = vset.pattern.permute.xlu1 %v19402_v28 }
 0x748   : > { %v13744_v34 = vpop.eup %13743  ;;  %v8623_v44 = vpack.c.bf16 %v13742_v33, %v13738_v21  ;;  %v7664_v45 = vpop.f32.mrb[232].mxu1  ;;  %11988 = vperm.xlu0 %11969, %v18248_v27  }
 0x749   : > { %v7819_v29 = vadd.f32 %v18189_v41, %v7664_v45  ;;  %v7666_v52 = vpop.f32.mrb[233].mxu1  ;;  %v8624_v54 = vpack.c.bf16 %v13744_v34, %v13740_v43  ;;  %v14283_v45 = vld [vmem:[%s14564_s11 + $0xc0] sm:$0xff] }
 0x74a   : > { %v7820_v62 = vadd.f32 %v18192_v37, %v7666_v52  ;;  %v7668_v12 = vpop.f32.mrb[234].mxu1  ;;  %v7963_v48 = vrot.slane %v14283_v45, 4 }
 0x74b   : > { %13753 = vtanh.f32 %v7819_v29  ;;  %v7821_v0 = vadd.f32 %v18189_v41, %v7668_v12  ;;  %v7670_v22 = vpop.f32.mrb[235].mxu1  ;;  %8783 = vmatprep.mubr.bf16.mxu0 %v8624_v54  ;;  %v8028_v12 = vunpack.c.l.bf16 %v7964_v9 }
 0x74c   : > { %13755 = vtanh.f32 %v7820_v62  ;;  %v7822_v2 = vadd.f32 %v18192_v37, %v7670_v22  ;;  %8784 = vmatmul.mubr.bf16.vlgmr.msra.gmra.mrb[64].mxu0 %v8623_v44  ;;  %12003 = vset.pattern.permute.xlu0 %v14397_v55  ;;  %v8027_v62 = vunpack.c.l.bf16 %v7963_v48 }
 0x74d   : > { %v13746_v42 = vpop.eup %13745  ;;  %13757 = vtanh.f32 %v7821_v0  ;;  %10574 = vmatpush3.bf16.msra.mxu0 %v12625_v11  ;;  %12005 = vperm.xlu0 %12003, %v18248_v27  }
 0x74e   : > { %v13748_v3 = vpop.eup %13747  ;;  %13759 = vtanh.f32 %v7822_v2  ;;  %10575 = vmatprep.subr.bf16.mxu0 %v12626_v35 }
 0x74f   : > { %v13750_v63 = vpop.eup %13749 }
 0x750   : > { %v13752_v57 = vpop.eup %13751  ;;  %v8625_v7 = vpack.c.bf16 %v13750_v63, %v13746_v42  ;;  %v7674_v23 = vpop.f32.mrb[236].mxu1 }
 0x751   : > { %v7823_v36 = vadd.f32 %v18189_v41, %v7674_v23  ;;  %v7676_v40 = vpop.f32.mrb[237].mxu1  ;;  %v8626_v56 = vpack.c.bf16 %v13752_v57, %v13748_v3  ;;  %10576 = vmatpush3.bf16.msra.mxu0 %v12626_v35  ;;  %v11942_v3 = vpack.i.bf16 %v8028_v12, %v8027_v62 }
 0x752   : > { %v7824_v1 = vadd.f32 %v18192_v37, %v7676_v40  ;;  %v7678_v31 = vpop.f32.mrb[238].mxu1  ;;  %10577 = vmatprep.subr.bf16.mxu0 %v12627_v13 }
 0x753   : > { %13761 = vtanh.f32 %v7823_v36  ;;  %v7825_v61 = vadd.f32 %v18189_v41, %v7678_v31  ;;  %v7680_v20 = vpop.f32.mrb[239].mxu1  ;;  %8791 = vmatprep.mubr.bf16.mxu0 %v8626_v56  ;;  %11943 = vperm.xlu1 %11941, %v11942_v3  }
 0x754   : > { %13763 = vtanh.f32 %v7824_v1  ;;  %v7826_v5 = vadd.f32 %v18192_v37, %v7680_v20  ;;  %8792 = vmatmul.mubr.bf16.gmra.mrb[68].mxu0 %v8625_v7 }
 0x755   : > { %v13754_v26 = vpop.eup %13753  ;;  %13765 = vtanh.f32 %v7825_v61  ;;  %10578 = vmatpush3.bf16.msra.mxu0 %v12627_v13 }
 0x756   : > { %v13756_v15 = vpop.eup %13755  ;;  %13767 = vtanh.f32 %v7826_v5  ;;  %v14285_v5 = vld [vmem:[%s14564_s11 + $0xe0] sm:$0xff] }
 0x757   : > { %v13758_v32 = vpop.eup %13757  ;;  %11947 = vset.pattern.permute.xlu1 %v14396_v58  ;;  %v7967_v8 = vrot.slane %v14285_v5, 4 }
 0x758   : > { %v13760_v11 = vpop.eup %13759  ;;  %v8627_v21 = vpack.c.bf16 %v13758_v32, %v13754_v26  ;;  %v7684_v43 = vpop.f32.mrb[240].mxu1  ;;  %11949 = vperm.xlu1 %11947, %v11942_v3   ;;  %v7968_v26 = vrot.slane %v14286_v14, 4 }
 0x759   : > { %v7827_v33 = vadd.f32 %v18189_v41, %v7684_v43  ;;  %v7686_v30 = vpop.f32.mrb[241].mxu1  ;;  %v8628_v51 = vpack.c.bf16 %v13760_v11, %v13756_v15 }
 0x75a   : > { %v7828_v34 = vadd.f32 %v18192_v37, %v7686_v30  ;;  %v7688_v44 = vpop.f32.mrb[242].mxu1  ;;  %v8032_v45 = vunpack.c.l.bf16 %v7968_v26 }
 0x75b   : > { %13769 = vtanh.f32 %v7827_v33  ;;  %v7829_v46 = vadd.f32 %v18189_v41, %v7688_v44  ;;  %v7690_v47 = vpop.f32.mrb[243].mxu1  ;;  %8799 = vmatprep.mubr.bf16.mxu0 %v8628_v51  ;;  %v8031_v44 = vunpack.c.l.bf16 %v7967_v8 }
 0x75c   : > { %13771 = vtanh.f32 %v7828_v34  ;;  %v7830_v16 = vadd.f32 %v18192_v37, %v7690_v47  ;;  %8800 = vmatmul.mubr.bf16.gmra.mrb[72].mxu0 %v8627_v21  ;;  %11954 = vperm.xlu1 %11947, %v18231_v39  }
 0x75d   : > { %v13762_v29 = vpop.eup %13761  ;;  %13773 = vtanh.f32 %v7829_v46  ;;  %v11976_v9 = vpack.i.bf16 %v8032_v45, %v8031_v44 }
 0x75e   : > { %v13764_v52 = vpop.eup %13763  ;;  %13775 = vtanh.f32 %v7830_v16 }
 0x75f   : > { %v13766_v54 = vpop.eup %13765 }
 0x760   : > { %v13768_v38 = vpop.eup %13767  ;;  %v8629_v35 = vpack.c.bf16 %v13766_v54, %v13762_v29  ;;  %v7694_v0 = vpop.f32.mrb[244].mxu1  ;;  %11958 = vset.pattern.permute.xlu1 %v14397_v55 }
 0x761   : > { %v7831_v22 = vadd.f32 %v18189_v41, %v7694_v0  ;;  %v7696_v53 = vpop.f32.mrb[245].mxu1  ;;  %v8630_v2 = vpack.c.bf16 %v13768_v38, %v13764_v52  ;;  %11960 = vperm.xlu1 %11958, %v11942_v3  }
 0x762   : > { %v7832_v17 = vadd.f32 %v18192_v37, %v7696_v53  ;;  %v7698_v6 = vpop.f32.mrb[246].mxu1 }
 0x763   : > { %13777 = vtanh.f32 %v7831_v22  ;;  %v7833_v4 = vadd.f32 %v18189_v41, %v7698_v6  ;;  %v7700_v42 = vpop.f32.mrb[247].mxu1  ;;  %8807 = vmatprep.mubr.bf16.mxu0 %v8630_v2 }
 0x764   : > { %13779 = vtanh.f32 %v7832_v17  ;;  %v7834_v13 = vadd.f32 %v18192_v37, %v7700_v42  ;;  %8808 = vmatmul.mubr.bf16.gmra.mrb[76].mxu0 %v8629_v35 }
 0x765   : > { %v13770_v63 = vpop.eup %13769  ;;  %13781 = vtanh.f32 %v7833_v4  ;;  %11975 = vset.pattern.permute.xlu1 %v19402_v28 }
 0x766   : > { %v13772_v57 = vpop.eup %13771  ;;  %13783 = vtanh.f32 %v7834_v13  ;;  %11977 = vperm.xlu1 %11975, %v11976_v9  }
 0x767   : > { %v13774_v7 = vpop.eup %13773 }
 0x768   : > { %v13776_v23 = vpop.eup %13775  ;;  %v8631_v59 = vpack.c.bf16 %v13774_v7, %v13770_v63  ;;  %v7704_v24 = vpop.f32.mrb[248].mxu1 }
 0x769   : > { %v7835_v18 = vadd.f32 %v18189_v41, %v7704_v24  ;;  %v7706_v50 = vpop.f32.mrb[249].mxu1  ;;  %v8632_v25 = vpack.c.bf16 %v13776_v23, %v13772_v57 }
 0x76a   : > { %v7836_v36 = vadd.f32 %v18192_v37, %v7706_v50  ;;  %v7708_v40 = vpop.f32.mrb[250].mxu1  ;;  %11981 = vset.pattern.permute.xlu1 %v14396_v58 }
 0x76b   : > { %13785 = vtanh.f32 %v7835_v18  ;;  %v7837_v56 = vadd.f32 %v18189_v41, %v7708_v40  ;;  %v7710_v1 = vpop.f32.mrb[251].mxu1  ;;  %8815 = vmatprep.mubr.bf16.mxu0 %v8632_v25  ;;  %11983 = vperm.xlu1 %11981, %v11976_v9  }
 0x76c   : > { %13787 = vtanh.f32 %v7836_v36  ;;  %v7838_v31 = vadd.f32 %v18192_v37, %v7710_v1  ;;  %8816 = vmatmul.mubr.bf16.gmra.mrb[80].mxu0 %v8631_v59 }
 0x76d   : > { %v13778_v61 = vpop.eup %13777  ;;  %13789 = vtanh.f32 %v7837_v56 }
 0x76e   : > { %v13780_v20 = vpop.eup %13779  ;;  %13791 = vtanh.f32 %v7838_v31 }
 0x76f   : > { %v13782_v15 = vpop.eup %13781  ;;  %11993 = vperm.xlu1 %11981, %v18248_v27  }
 0x770   : > { %v13784_v32 = vpop.eup %13783  ;;  %v8633_v11 = vpack.c.bf16 %v13782_v15, %v13778_v61  ;;  %v7714_v21 = vpop.f32.mrb[252].mxu1 }
 0x771   : > { %v7839_v43 = vadd.f32 %v18189_v41, %v7714_v21  ;;  %v7716_v33 = vpop.f32.mrb[253].mxu1  ;;  %v8634_v30 = vpack.c.bf16 %v13784_v32, %v13780_v20 }
 0x772   : > { %v7840_v51 = vadd.f32 %v18192_v37, %v7716_v33  ;;  %v7718_v34 = vpop.f32.mrb[254].mxu1 }
 0x773   : > { %13793 = vtanh.f32 %v7839_v43  ;;  %v7841_v48 = vadd.f32 %v18189_v41, %v7718_v34  ;;  %v7720_v46 = vpop.f32.mrb[255].mxu1  ;;  %8823 = vmatprep.mubr.bf16.mxu0 %v8634_v30  ;;  %11997 = vset.pattern.permute.xlu1 %v14397_v55 }
 0x774   : > { %13795 = vtanh.f32 %v7840_v51  ;;  %v7842_v47 = vadd.f32 %v18192_v37, %v7720_v46  ;;  %8824 = vmatmul.mubr.bf16.gmra.mrb[84].mxu0 %v8633_v11  ;;  %11999 = vperm.xlu1 %11997, %v11976_v9  }
 0x775   : > { %v13786_v39 = vpop.eup %13785  ;;  %13797 = vtanh.f32 %v7841_v48 }
 0x776   : > { %v13788_v49 = vpop.eup %13787  ;;  %13799 = vtanh.f32 %v7842_v47 }
 0x777   : > { %v13790_v16 = vpop.eup %13789 }
 0x778   : > { %v13792_v29 = vpop.eup %13791  ;;  %v8635_v52 = vpack.c.bf16 %v13790_v16, %v13786_v39  ;;  %v7724_v54 = vpop.f32.mrb[0].mxu1 }
 0x779   : > { %v7843_v62 = vadd.f32 %v18189_v41, %v7724_v54  ;;  %v7726_v12 = vpop.f32.mrb[1].mxu1  ;;  %v8636_v38 = vpack.c.bf16 %v13792_v29, %v13788_v49 }
 0x77a   : > { %v7844_v35 = vadd.f32 %v18192_v37, %v7726_v12  ;;  %v7728_v0 = vpop.f32.mrb[2].mxu1 }
 0x77b   : > { %13801 = vtanh.f32 %v7843_v62  ;;  %v7845_v22 = vadd.f32 %v18189_v41, %v7728_v0  ;;  %v7730_v53 = vpop.f32.mrb[3].mxu1  ;;  %8831 = vmatprep.mubr.bf16.mxu0 %v8636_v38 }
 0x77c   : > { %13803 = vtanh.f32 %v7844_v35  ;;  %v7846_v2 = vadd.f32 %v18192_v37, %v7730_v53  ;;  %8832 = vmatmul.mubr.bf16.gmra.mrb[88].mxu0 %v8635_v52 }
 0x77d   : > { %v13794_v17 = vpop.eup %13793  ;;  %13805 = vtanh.f32 %v7845_v22 }
 0x77e   : > { %v13796_v6 = vpop.eup %13795  ;;  %13807 = vtanh.f32 %v7846_v2 }
 0x77f   : > { %v13798_v28 = vpop.eup %13797 }
 0x780   : > { %v13800_v4 = vpop.eup %13799  ;;  %v8637_v42 = vpack.c.bf16 %v13798_v28, %v13794_v17  ;;  %v7734_v3 = vpop.f32.mrb[4].mxu1 }
 0x781   : > { %v7847_v13 = vadd.f32 %v18189_v41, %v7734_v3  ;;  %v7736_v63 = vpop.f32.mrb[5].mxu1  ;;  %v8638_v57 = vpack.c.bf16 %v13800_v4, %v13796_v6 }
 0x782   : > { %v7848_v7 = vadd.f32 %v18192_v37, %v7736_v63  ;;  %v7738_v23 = vpop.f32.mrb[6].mxu1 }
 0x783   : > { %13809 = vtanh.f32 %v7847_v13  ;;  %v7849_v59 = vadd.f32 %v18189_v41, %v7738_v23  ;;  %v7740_v24 = vpop.f32.mrb[7].mxu1  ;;  %8839 = vmatprep.mubr.bf16.mxu0 %v8638_v57 }
 0x784   : > { %13811 = vtanh.f32 %v7848_v7  ;;  %v7850_v58 = vadd.f32 %v18192_v37, %v7740_v24  ;;  %8840 = vmatmul.mubr.bf16.gmra.mrb[92].mxu0 %v8637_v42 }
 0x785   : > { %v13802_v18 = vpop.eup %13801  ;;  %13813 = vtanh.f32 %v7849_v59 }
 0x786   : > { %v13804_v50 = vpop.eup %13803  ;;  %13815 = vtanh.f32 %v7850_v58 }
 0x787   : > { %v13806_v25 = vpop.eup %13805 }
 0x788   : > { %v13808_v36 = vpop.eup %13807  ;;  %v8639_v40 = vpack.c.bf16 %v13806_v25, %v13802_v18  ;;  %v7744_v56 = vpop.f32.mrb[8].mxu1 }
 0x789   : > { %v7851_v1 = vadd.f32 %v18189_v41, %v7744_v56  ;;  %v7746_v31 = vpop.f32.mrb[9].mxu1  ;;  %v8640_v61 = vpack.c.bf16 %v13808_v36, %v13804_v50  ;;  %v12628_v36 = vld [vmem:[#allocation4 + $0x98] sm:$0xff]  }
 0x78a   : > { %v7852_v27 = vadd.f32 %v18192_v37, %v7746_v31  ;;  %v7748_v20 = vpop.f32.mrb[10].mxu1  ;;  %10579 = vmatprep.subr.bf16.mxu0 %v12628_v36 }
 0x78b   : > { %13817 = vtanh.f32 %v7851_v1  ;;  %v7853_v5 = vadd.f32 %v18189_v41, %v7748_v20  ;;  %v7750_v8 = vpop.f32.mrb[11].mxu1  ;;  %8847 = vmatprep.mubr.bf16.mxu0 %v8640_v61  ;;  %10580 = vmatpush3.bf16.msra.mxu0 %v12628_v36 }
 0x78c   : > { %13819 = vtanh.f32 %v7852_v27  ;;  %v7854_v14 = vadd.f32 %v18192_v37, %v7750_v8  ;;  %8848 = vmatmul.mubr.bf16.gmra.mrb[96].mxu0 %v8639_v40  ;;  %v12629_v8 = vld [vmem:[#allocation4 + $0xa0] sm:$0xff]  }
 0x78d   : > { %v13810_v55 = vpop.eup %13809  ;;  %13821 = vtanh.f32 %v7853_v5  ;;  %10581 = vmatprep.subr.bf16.mxu0 %v12629_v8 }
 0x78e   : > { %v13812_v26 = vpop.eup %13811  ;;  %13823 = vtanh.f32 %v7854_v14 }
 0x78f   : > { %v13814_v15 = vpop.eup %13813  ;;  %10582 = vmatpush3.bf16.msra.mxu0 %v12629_v8 }
 0x790   : > { %v13816_v32 = vpop.eup %13815  ;;  %v8641_v11 = vpack.c.bf16 %v13814_v15, %v13810_v55  ;;  %v7754_v21 = vpop.f32.mrb[12].mxu1 }
 0x791   : > { %v7855_v43 = vadd.f32 %v18189_v41, %v7754_v21  ;;  %v7756_v33 = vpop.f32.mrb[13].mxu1  ;;  %v8642_v30 = vpack.c.bf16 %v13816_v32, %v13812_v26  ;;  %v12630_v21 = vld [vmem:[#allocation4 + $0xa8] sm:$0xff]  }
 0x792   : > { %v7856_v51 = vadd.f32 %v18192_v37, %v7756_v33  ;;  %v7758_v34 = vpop.f32.mrb[14].mxu1  ;;  %10583 = vmatprep.subr.bf16.mxu0 %v12630_v21 }
 0x793   : > { %13825 = vtanh.f32 %v7855_v43  ;;  %v7857_v44 = vadd.f32 %v18189_v41, %v7758_v34  ;;  %v7760_v45 = vpop.f32.mrb[15].mxu1  ;;  %8855 = vmatprep.mubr.bf16.mxu0 %v8642_v30  ;;  %10584 = vmatpush3.bf16.msra.mxu0 %v12630_v21 }
 0x794   : > { %13827 = vtanh.f32 %v7856_v51  ;;  %v7858_v48 = vadd.f32 %v18192_v37, %v7760_v45  ;;  %8856 = vmatmul.mubr.bf16.gmra.mrb[100].mxu0 %v8641_v11 }
 0x795   : > { %v13818_v46 = vpop.eup %13817  ;;  %13829 = vtanh.f32 %v7857_v44 }
 0x796   : > { %v13820_v47 = vpop.eup %13819  ;;  %13831 = vtanh.f32 %v7858_v48 }
 0x797   : > { %v13822_v39 = vpop.eup %13821 }
 0x798   : > { %v13824_v49 = vpop.eup %13823  ;;  %v8643_v9 = vpack.c.bf16 %v13822_v39, %v13818_v46  ;;  %v7764_v16 = vpop.f32.mrb[16].mxu1  ;;  %v12631_v46 = vld [vmem:[#allocation4 + $0xb0] sm:$0xff]  }
 0x799   : > { %v7859_v29 = vadd.f32 %v18189_v41, %v7764_v16  ;;  %v7766_v52 = vpop.f32.mrb[17].mxu1  ;;  %v8644_v54 = vpack.c.bf16 %v13824_v49, %v13820_v47  ;;  %10585 = vmatprep.subr.bf16.mxu0 %v12631_v46 }
 0x79a   : > { %v7860_v62 = vadd.f32 %v18192_v37, %v7766_v52  ;;  %v7768_v12 = vpop.f32.mrb[18].mxu1  ;;  %10586 = vmatpush3.bf16.msra.mxu0 %v12631_v46 }
 0x79b   : > { %13833 = vtanh.f32 %v7859_v29  ;;  %v7861_v38 = vadd.f32 %v18189_v41, %v7768_v12  ;;  %v7770_v35 = vpop.f32.mrb[19].mxu1  ;;  %8863 = vmatprep.mubr.bf16.mxu0 %v8644_v54  ;;  %v12632_v29 = vld [vmem:[#allocation4 + $0xb8] sm:$0xff]  }
 0x79c   : > { %13835 = vtanh.f32 %v7860_v62  ;;  %v7862_v0 = vadd.f32 %v18192_v37, %v7770_v35  ;;  %8864 = vmatmul.mubr.bf16.gmra.mrb[104].mxu0 %v8643_v9  ;;  %10587 = vmatprep.subr.bf16.mxu0 %v12632_v29  ;;  %v11748_v35 = vpop.permute.xlu1 %11747 }
 0x79d   : > { %v13826_v22 = vpop.eup %13825  ;;  %13837 = vtanh.f32 %v7861_v38  ;;  %v11750_v21 = vunpack.i.h.bf16 %v11748_v35 }
 0x79e   : > { %v13828_v53 = vpop.eup %13827  ;;  %13839 = vtanh.f32 %v7862_v0  ;;  %10588 = vmatpush3.bf16.msra.mxu0 %v12632_v29 }
 0x79f   : > { %v13830_v2 = vpop.eup %13829 }
 0x7a0   : > { %v13832_v17 = vpop.eup %13831  ;;  %v8645_v6 = vpack.c.bf16 %v13830_v2, %v13826_v22  ;;  %v7774_v28 = vpop.f32.mrb[20].mxu1 }
 0x7a1   : > { %v7863_v4 = vadd.f32 %v18189_v41, %v7774_v28  ;;  %v7776_v42 = vpop.f32.mrb[21].mxu1  ;;  %v8646_v3 = vpack.c.bf16 %v13832_v17, %v13828_v53  ;;  %v11754_v0 = vpop.permute.xlu1 %11753 }
 0x7a2   : > { %v7864_v13 = vadd.f32 %v18192_v37, %v7776_v42  ;;  %v7778_v63 = vpop.f32.mrb[22].mxu1  ;;  %v11742_v17 = vpop.permute.xlu0 %11741 }
 0x7a3   : > { %13841 = vtanh.f32 %v7863_v4  ;;  %v7865_v57 = vadd.f32 %v18189_v41, %v7778_v63  ;;  %v7780_v7 = vpop.f32.mrb[23].mxu1  ;;  %8871 = vmatprep.mubr.bf16.mxu0 %v8646_v3 }
 0x7a4   : > { %13843 = vtanh.f32 %v7864_v13  ;;  %v7866_v23 = vadd.f32 %v18192_v37, %v7780_v7  ;;  %8872 = vmatmul.mubr.bf16.gmra.mrb[108].mxu0 %v8645_v6 }
 0x7a5   : > { %v13834_v59 = vpop.eup %13833  ;;  %13845 = vtanh.f32 %v7865_v57  ;;  %v11760_v22 = vpop.permute.xlu1 %11759 }
 0x7a6   : > { %v13836_v24 = vpop.eup %13835  ;;  %13847 = vtanh.f32 %v7866_v23  ;;  %v11766_v28 = vpop.permute.xlu0 %11765  ;;  %v840_v23 = vld [vmem:[%s18751_s5] sm:$0xff] }
 0x7a7   : > { %v13838_v58 = vpop.eup %13837 }
 0x7a8   : > { %v13840_v18 = vpop.eup %13839  ;;  %v8647_v50 = vpack.c.bf16 %v13838_v58, %v13834_v59  ;;  %v7784_v25 = vpop.f32.mrb[24].mxu1  ;;  %v11743_v59 = vunpack.i.l.bf16 %v11742_v17  ;;  %v19404_v58 = vld [vmem:[#allocation14_spill] sm:$0xff] }
 0x7a9   : > { %v7867_v40 = vadd.f32 %v18189_v41, %v7784_v25  ;;  %v7786_v56 = vpop.f32.mrb[25].mxu1  ;;  %v8648_v1 = vpack.c.bf16 %v13840_v18, %v13836_v24  ;;  %v18318_v53 = vpop.permute.xlu1 %11771  ;;  %v18340_v18 = vrot.slane %v840_v23, %v19404_v58  ;;  %v19405_v25 = vld [vmem:[#allocation10_spill] sm:$0xff] }
 0x7aa   : > { %v7868_v31 = vadd.f32 %v18192_v37, %v7786_v56  ;;  %v7788_v61 = vpop.f32.mrb[26].mxu1  ;;  %v18326_v42 = vpop.permute.xlu0 %11793  ;;  %v18343_v36 = vrot.slane %v840_v23, %v19405_v25 }
 0x7ab   : > { %13849 = vtanh.f32 %v7867_v40  ;;  %v7869_v27 = vadd.f32 %v18189_v41, %v7788_v61  ;;  %v7790_v20 = vpop.f32.mrb[27].mxu1  ;;  %8879 = vmatprep.mubr.bf16.mxu0 %v8648_v1  ;;  %v8363_v1 = vmul.f32 %v11743_v59, %v18340_v18 }
 0x7ac   : > { %13851 = vtanh.f32 %v7868_v31  ;;  %v7870_v5 = vadd.f32 %v18192_v37, %v7790_v20  ;;  %8880 = vmatmul.mubr.bf16.gmra.mrb[112].mxu0 %v8647_v50  ;;  %v11744_v50 = vunpack.i.h.bf16 %v11742_v17  ;;  %v11761_v31 = vunpack.i.l.bf16 %v11760_v22 }
 0x7ad   : > { %v13842_v14 = vpop.eup %13841  ;;  %13853 = vtanh.f32 %v7869_v27  ;;  %v18320_v2 = vpop.permute.xlu1 %11777  ;;  %v18351_v20 = vrot.slane %v840_v23, %v18180_v10 }
 0x7ae   : > { %v13844_v55 = vpop.eup %13843  ;;  %13855 = vtanh.f32 %v7870_v5  ;;  %v18330_v13 = vpop.permute.xlu0 %11821  ;;  %v8364_v27 = vmul.f32 %v11744_v50, %v18340_v18  ;;  %v11762_v5 = vunpack.i.h.bf16 %v11760_v22  ;;  %v11774_v22 = vunpack.i.h.bf16 %v18318_v53 }
 0x7af   : > { %v13846_v26 = vpop.eup %13845  ;;  %v11780_v17 = vunpack.i.h.bf16 %v18320_v2 }
 0x7b0   : > { %v13848_v15 = vpop.eup %13847  ;;  %v8649_v32 = vpack.c.bf16 %v13846_v26, %v13842_v14  ;;  %v7794_v11 = vpop.f32.mrb[28].mxu1  ;;  %v11749_v14 = vunpack.i.l.bf16 %v11748_v35 }
 0x7b1   : > { %v7871_v43 = vadd.f32 %v18189_v41, %v7794_v11  ;;  %v7796_v33 = vpop.f32.mrb[29].mxu1  ;;  %v8650_v30 = vpack.c.bf16 %v13848_v15, %v13844_v55  ;;  %v18322_v6 = vpop.permute.xlu1 %11782  ;;  %v11755_v55 = vunpack.i.l.bf16 %v11754_v0  ;;  %v8559_v15 = vmul.f32 %v11761_v31, %v18351_v20 }
 0x7b2   : > { %v7872_v51 = vadd.f32 %v18192_v37, %v7796_v33  ;;  %v7798_v34 = vpop.f32.mrb[30].mxu1  ;;  %v11828_v57 = vpop.permute.xlu0 %11827  ;;  %v8914_v11 = vsub.s32 3, %v19403_v19  ;;  %v8560_v33 = vmul.f32 %v11762_v5, %v18351_v20  ;;  %v8201_v10 = vmul.f32 %v11749_v14, %v18343_v36 }
 0x7b3   : > { %13857 = vtanh.f32 %v7871_v43  ;;  %v7873_v44 = vadd.f32 %v18189_v41, %v7798_v34  ;;  %v7800_v45 = vpop.f32.mrb[31].mxu1  ;;  %8887 = vmatprep.mubr.bf16.mxu0 %v8650_v30  ;;  %v11829_v24 = vunpack.i.l.bf16 %v11828_v57  ;;  %v11830_v40 = vunpack.i.h.bf16 %v11828_v57 }
 0x7b4   : > { %13859 = vtanh.f32 %v7872_v51  ;;  %v7874_v48 = vadd.f32 %v18192_v37, %v7800_v45  ;;  %8888 = vmatmul.mubr.bf16.gmra.mrb[116].mxu0 %v8649_v32  ;;  %v11756_v43 = vunpack.i.h.bf16 %v11754_v0  ;;  %v11767_v34 = vunpack.i.l.bf16 %v11766_v28 }
 0x7b5   : > { %v13850_v47 = vpop.eup %13849  ;;  %13861 = vtanh.f32 %v7873_v44  ;;  %v18324_v4 = vpop.permute.xlu1 %11788  ;;  %v8199_v61 = vmul.f32 %v11829_v24, %v18343_v36  ;;  %v8200_v8 = vmul.f32 %v11830_v40, %v18343_v36  ;;  %v8365_v44 = vmul.f32 %v11755_v55, %v18340_v18 }
 0x7b6   : > { %v13852_v39 = vpop.eup %13851  ;;  %13863 = vtanh.f32 %v7874_v48 }
 0x7b7   : > { %v13854_v49 = vpop.eup %13853  ;;  %v8395_v32 = vadd.f32 %v8363_v1, %v8199_v61  ;;  %v8396_v30 = vadd.f32 %v8364_v27, %v8200_v8  ;;  %v11790_v1 = vunpack.i.l.bf16 %v18324_v4  ;;  %v8204_v61 = vmul.f32 %v11774_v22, %v18343_v36 }
 0x7b8   : > { %v13856_v9 = vpop.eup %13855  ;;  %v8651_v16 = vpack.c.bf16 %v13854_v49, %v13850_v47  ;;  %v18362_v47 = vrot.slane %v18185_v60, %v8914_v11  ;;  %v8202_v49 = vmul.f32 %v11750_v21, %v18343_v36  ;;  %v11779_v60 = vunpack.i.l.bf16 %v18320_v2 }
 0x7b9   : > { %v8652_v52 = vpack.c.bf16 %v13856_v9, %v13852_v39  ;;  %v18328_v3 = vpop.permute.xlu1 %11799  ;;  %v8591_v48 = vadd.f32 %v8559_v15, %v8395_v32  ;;  %v8366_v9 = vmul.f32 %v11756_v43, %v18340_v18  ;;  %v8368_v27 = vmul.f32 %v11780_v17, %v18340_v18 }
 0x7ba   : > { %v8367_v40 = vmul.f32 %v11779_v60, %v18340_v18  ;;  %v11791_v8 = vunpack.i.h.bf16 %v18324_v4  ;;  %v11784_v32 = vunpack.i.l.bf16 %v18322_v6  ;;  %v8563_v43 = vmul.f32 %v11790_v1, %v18351_v20 }
 0x7bb   : > { %8895 = vmatprep.mubr.bf16.mxu0 %v8652_v52  ;;  %v11768_v52 = vunpack.i.h.bf16 %v11766_v28  ;;  %v8398_v28 = vadd.f32 %v8366_v9, %v8202_v49  ;;  %v8400_v4 = vadd.f32 %v8368_v27, %v8204_v61  ;;  %v11802_v1 = vunpack.i.h.bf16 %v18328_v3 }
 0x7bc   : > { %8896 = vmatmul.mubr.bf16.gmra.mrb[120].mxu0 %v8651_v16  ;;  %v8369_v49 = vmul.f32 %v11784_v32, %v18340_v18 }
 0x7bd   : > { %v13858_v41 = vpop.eup %13857  ;;  %v18332_v63 = vpop.permute.xlu1 %11805  ;;  %v8562_v57 = vmul.f32 %v11768_v52, %v18351_v20 }
 0x7be   : > { %v13860_v54 = vpop.eup %13859 }
 0x7bf   : > { %v13862_v37 = vpop.eup %13861  ;;  %v8594_v55 = vadd.f32 %v8562_v57, %v8398_v28 }
 0x7c0   : > { %v13864_v62 = vpop.eup %13863  ;;  %v8653_v12 = vpack.c.bf16 %v13862_v37, %v13858_v41 }
 0x7c1   : > { %v8654_v38 = vpack.c.bf16 %v13864_v62, %v13860_v54  ;;  %v18334_v7 = vpop.permute.xlu1 %11810  ;;  %v8592_v54 = vadd.f32 %v8560_v33, %v8396_v30  ;;  %v8561_v62 = vmul.f32 %v11767_v34, %v18351_v20 }
 0x7c3   : > { %8903 = vmatprep.mubr.bf16.mxu0 %v8654_v38  ;;  %v11773_v38 = vunpack.i.l.bf16 %v18318_v53  ;;  %v11833_v53 = vpop.permute.xlu0 %11832 }
 0x7c4   : > { %8904 = vmatmul.mubr.bf16.gmra.mrb[124].mxu0 %v8653_v12  ;;  %v8397_v12 = vadd.f32 %v8365_v44, %v8201_v10  ;;  %v11834_v11 = vunpack.i.l.bf16 %v11833_v53  ;;  %v11835_v10 = vunpack.i.h.bf16 %v11833_v53  ;;  %v18390_v44 = vld [vmem:[#allocation4 + $0xc0] sm:$0xff]   ;;  %v11808_v53 = vunpack.i.h.bf16 %v18332_v63 }
 0x7c5   : > { %v18345_v56 = vpop.permute.xlu1 %11816  ;;  %v8203_v24 = vmul.f32 %v11773_v38, %v18343_v36  ;;  %10621 = vmatprep.subr.bf16.mxu0 %v18390_v44 }
 0x7c6   : > { %v8593_v58 = vadd.f32 %v8561_v62, %v8397_v12  ;;  %v8205_v9 = vmul.f32 %v11834_v11, %v18343_v36  ;;  %v8206_v12 = vmul.f32 %v11835_v10, %v18343_v36 }
 0x7c7   : > { %v8399_v21 = vadd.f32 %v8367_v40, %v8203_v24  ;;  %v11807_v24 = vunpack.i.l.bf16 %v18332_v63  ;;  %v8208_v63 = vmul.f32 %v11802_v1, %v18343_v36 }
 0x7c8   : > { %v8401_v28 = vadd.f32 %v8369_v49, %v8205_v9  ;;  %v12634_v49 = vld [vmem:[#allocation4 + $0xc8] sm:$0xff]  }
 0x7c9   : > { %v18354_v26 = vpop.permute.xlu1 %11843 }
 0x7cd   : > { %v18366_v29 = vpop.permute.xlu1 %11849 }
 0x7d1   : > { %v18377_v25 = vpop.permute.xlu1 %11859 }
 0x7d5   : > { %v18388_v34 = vpop.permute.xlu1 %11865 }
 0x7d9   : > { %v18401_v60 = vpop.permute.xlu1 %11871 }
 0x81f   : > { %v10357_v51 = vpop.f32.mrb[64].mxu0 }
 0x820   : > { %v10358_v45 = vpop.f32.mrb[65].mxu0 }
 0x821   : > { %v10359_v46 = vadd.f32 %v10358_v45, %v10357_v51  ;;  %v10360_v39 = vpop.f32.mrb[66].mxu0  ;;  %v11785_v51 = vunpack.i.h.bf16 %v18322_v6  ;;  %v8564_v45 = vmul.f32 %v11791_v8, %v18351_v20  ;;  %v8595_v6 = vadd.f32 %v8563_v43, %v8399_v21 }
 0x822   : > { %v10361_v16 = vpop.f32.mrb[67].mxu0 }
 0x823   : > { %v8786_v41 = vadd.f32 %v10359_v46, %v8591_v48  ;;  %v10362_v37 = vadd.f32 %v10361_v16, %v10360_v39  ;;  %v11795_v39 = vunpack.i.l.bf16 %v18326_v42  ;;  %v8370_v62 = vmul.f32 %v11785_v51, %v18340_v18 }
 0x824   : > { %v8596_v22 = vadd.f32 %v8564_v45, %v8400_v4  ;;  %v11819_v51 = vunpack.i.h.bf16 %v18345_v56 }
 0x825   : > { %v8916_v35 = vadd.f32 %v18362_v47, %v8786_v41  ;;  %v8789_v0 = vadd.f32 %v10362_v37, %v8592_v54  ;;  %v11796_v37 = vunpack.i.h.bf16 %v18326_v42  ;;  %v8565_v57 = vmul.f32 %v11795_v39, %v18351_v20 }
 0x826   : > { %v8402_v40 = vadd.f32 %v8370_v62, %v8206_v12  ;;  %v8568_v62 = vmul.f32 %v11819_v51, %v18351_v20 }
 0x827   : > { %v8917_v23 = vadd.f32 %v18362_v47, %v8789_v0  ;;  %v10363_v59 = vpop.f32.mrb[68].mxu0  ;;  %13865 = vtanh.f32 %v8916_v35 }
 0x828   : > { %v10364_v50 = vpop.f32.mrb[69].mxu0 }
 0x829   : > { %13867 = vtanh.f32 %v8917_v23  ;;  %v10365_v2 = vadd.f32 %v10364_v50, %v10363_v59  ;;  %v10366_v31 = vpop.f32.mrb[70].mxu0  ;;  %v11801_v23 = vunpack.i.l.bf16 %v18328_v3  ;;  %v8566_v50 = vmul.f32 %v11796_v37, %v18351_v20 }
 0x82a   : > { %v10367_v5 = vpop.f32.mrb[71].mxu0 }
 0x82b   : > { %v8794_v14 = vadd.f32 %v10365_v2, %v8593_v58  ;;  %v10368_v15 = vadd.f32 %v10367_v5, %v10366_v31  ;;  %v11838_v2 = vpop.permute.xlu0 %11837  ;;  %v8207_v27 = vmul.f32 %v11801_v23, %v18343_v36  ;;  %v8597_v5 = vadd.f32 %v8565_v57, %v8401_v28 }
 0x82c   : > { %v8598_v21 = vadd.f32 %v8566_v50, %v8402_v40  ;;  %v11839_v39 = vunpack.i.l.bf16 %v11838_v2 }
 0x82d   : > { %v8918_v33 = vadd.f32 %v18362_v47, %v8794_v14  ;;  %v8797_v30 = vadd.f32 %v10368_v15, %v8594_v55  ;;  %v18412_v14 = vpop.permute.xlu1 %11877  ;;  %v8371_v55 = vmul.f32 %v11807_v24, %v18340_v18  ;;  %v11818_v15 = vunpack.i.l.bf16 %v18345_v56 }
 0x82f   : > { %v8919_v48 = vadd.f32 %v18362_v47, %v8797_v30  ;;  %v10369_v46 = vpop.f32.mrb[72].mxu0  ;;  %13869 = vtanh.f32 %v8918_v33  ;;  %v8372_v30 = vmul.f32 %v11808_v53, %v18340_v18  ;;  %v18419_v10 = vpop.permute.xlu0 %11854  ;;  %v8403_v9 = vadd.f32 %v8371_v55, %v8207_v27 }
 0x830   : > { %v10370_v16 = vpop.f32.mrb[73].mxu0  ;;  %v11845_v27 = vunpack.i.l.bf16 %v18354_v26 }
 0x831   : > { %13871 = vtanh.f32 %v8919_v48  ;;  %v10371_v52 = vadd.f32 %v10370_v16, %v10369_v46  ;;  %v10372_v41 = vpop.f32.mrb[74].mxu0  ;;  %v13866_v54 = vpop.eup %13865  ;;  %v11812_v48 = vunpack.i.l.bf16 %v18334_v7  ;;  %v8567_v16 = vmul.f32 %v11818_v15, %v18351_v20 }
 0x832   : > { %v10373_v38 = vpop.f32.mrb[75].mxu0  ;;  %v18425_v56 = vpop.permute.xlu1 %11887  ;;  %v8404_v37 = vadd.f32 %v8372_v30, %v8208_v63  ;;  %v11852_v63 = vunpack.i.h.bf16 %v18366_v29  ;;  %v8211_v30 = vmul.f32 %v11845_v27, %v18343_v36 }
 0x833   : > { %v13868_v35 = vpop.eup %13867  ;;  %v8802_v0 = vadd.f32 %v10371_v52, %v8595_v6  ;;  %v10374_v17 = vadd.f32 %v10373_v38, %v10372_v41  ;;  %v11813_v41 = vunpack.i.h.bf16 %v18334_v7  ;;  %v18433_v57 = vpop.permute.xlu0 %11882  ;;  %v8599_v28 = vadd.f32 %v8567_v16, %v8403_v9 }
 0x834   : > { %v8980_v59 = vpack.c.bf16 %v13868_v35, %v13866_v54  ;;  %v11840_v54 = vunpack.i.h.bf16 %v11838_v2  ;;  %v11823_v35 = vunpack.i.l.bf16 %v18330_v13  ;;  %v8600_v53 = vadd.f32 %v8568_v62, %v8404_v37 }
 0x835   : > { %v8920_v42 = vadd.f32 %v18362_v47, %v8802_v0  ;;  %v8805_v58 = vadd.f32 %v10374_v17, %v8596_v22  ;;  %v8373_v0 = vmul.f32 %v11812_v48, %v18340_v18  ;;  %v8209_v22 = vmul.f32 %v11839_v39, %v18343_v36  ;;  %v12635_v17 = vld [vmem:[#allocation4 + $0xd0] sm:$0xff]  }
 0x836   : > { %10589 = vmatprep.mubr.bf16.mxu0 %v8980_v59  ;;  %v11867_v48 = vunpack.i.l.bf16 %v18388_v34  ;;  %v11856_v62 = vunpack.i.l.bf16 %v18419_v10 }
 0x837   : > { %v8921_v31 = vadd.f32 %v18362_v47, %v8805_v58  ;;  %v10375_v61 = vpop.f32.mrb[76].mxu0  ;;  %13873 = vtanh.f32 %v8920_v42  ;;  %v11824_v42 = vunpack.i.h.bf16 %v18330_v13  ;;  %v8210_v58 = vmul.f32 %v11840_v54, %v18343_v36 }
 0x838   : > { %v10376_v8 = vpop.f32.mrb[77].mxu0  ;;  %v11851_v13 = vunpack.i.l.bf16 %v18366_v29 }
 0x839   : > { %13875 = vtanh.f32 %v8921_v31  ;;  %v10377_v3 = vadd.f32 %v10376_v8, %v10375_v61  ;;  %v10378_v32 = vpop.f32.mrb[78].mxu0  ;;  %v13870_v11 = vpop.eup %13869  ;;  %v8569_v31 = vmul.f32 %v11823_v35, %v18351_v20  ;;  %v8405_v61 = vadd.f32 %v8373_v0, %v8209_v22 }
 0x83a   : > { %v10379_v43 = vpop.f32.mrb[79].mxu0  ;;  %v18440_v8 = vpop.permute.xlu1 %11893  ;;  %v8571_v0 = vmul.f32 %v11867_v48, %v18351_v20  ;;  %v11874_v48 = vunpack.i.h.bf16 %v18401_v60 }
 0x83b   : > { %v13872_v33 = vpop.eup %13871  ;;  %v8810_v4 = vadd.f32 %v10377_v3, %v8597_v5  ;;  %v10380_v45 = vadd.f32 %v10379_v43, %v10378_v32  ;;  %v8570_v3 = vmul.f32 %v11824_v42, %v18351_v20  ;;  %v8601_v51 = vadd.f32 %v8569_v31, %v8405_v61 }
 0x83c   : > { %v8981_v46 = vpack.c.bf16 %v13872_v33, %v13870_v11  ;;  %v11846_v11 = vunpack.i.h.bf16 %v18354_v26 }
 0x83d   : > { %v8922_v6 = vadd.f32 %v18362_v47, %v8810_v4  ;;  %v8813_v52 = vadd.f32 %v10380_v45, %v8598_v21  ;;  %v18447_v21 = vpop.permute.xlu0 %11910  ;;  %v8375_v45 = vmul.f32 %v11851_v13, %v18340_v18 }
 0x83e   : > { %10590 = vmatmul.mubr.bf16.vlgmr.msra.gmra.mrb[128].mxu0 %v8981_v46  ;;  %v8212_v29 = vmul.f32 %v11846_v11, %v18343_v36  ;;  %v18454_v16 = vpop.permute.xlu1 %11899 }
 0x83f   : > { %v8923_v12 = vadd.f32 %v18362_v47, %v8813_v52  ;;  %v10381_v38 = vpop.f32.mrb[80].mxu0  ;;  %10622 = vmatpush3.bf16.msra.mxu0 %v18390_v44  ;;  %13877 = vtanh.f32 %v8922_v6  ;;  %v8374_v44 = vmul.f32 %v11813_v41, %v18340_v18  ;;  %v8376_v52 = vmul.f32 %v11852_v63, %v18340_v18 }
 0x840   : > { %v10382_v7 = vpop.f32.mrb[81].mxu0  ;;  %10623 = vmatprep.subr.bf16.mxu0 %v12634_v49  ;;  %v11868_v41 = vunpack.i.h.bf16 %v18388_v34  ;;  %v8407_v35 = vadd.f32 %v8375_v45, %v8211_v30  ;;  %v11873_v63 = vunpack.i.l.bf16 %v18401_v60 }
 0x841   : > { %13879 = vtanh.f32 %v8923_v12  ;;  %v10383_v23 = vadd.f32 %v10382_v7, %v10381_v38  ;;  %v10384_v59 = vpop.f32.mrb[82].mxu0  ;;  %v13874_v24 = vpop.eup %13873  ;;  %v8406_v32 = vadd.f32 %v8374_v44, %v8210_v58  ;;  %v11861_v12 = vunpack.i.l.bf16 %v18377_v25 }
 0x842   : > { %v10385_v50 = vpop.f32.mrb[83].mxu0  ;;  %v11917_v22 = vpop.permute.xlu0 %11916  ;;  %v8408_v34 = vadd.f32 %v8376_v52, %v8212_v29  ;;  %v8213_v44 = vmul.f32 %v11856_v62, %v18343_v36  ;;  %v8216_v62 = vmul.f32 %v11874_v48, %v18343_v36 }
 0x843   : > { %v13876_v40 = vpop.eup %13875  ;;  %v8818_v1 = vadd.f32 %v10383_v23, %v8599_v28  ;;  %v10386_v2 = vadd.f32 %v10385_v50, %v10384_v59  ;;  %10624 = vmatpush3.bf16.msra.mxu0 %v12634_v49  ;;  %v8602_v49 = vadd.f32 %v8570_v3, %v8406_v32  ;;  %v11857_v28 = vunpack.i.h.bf16 %v18419_v10 }
 0x844   : > { %v8982_v5 = vpack.c.bf16 %v13876_v40, %v13874_v24  ;;  %10625 = vmatprep.subr.bf16.mxu0 %v12635_v17  ;;  %v11862_v23 = vunpack.i.h.bf16 %v18377_v25  ;;  %v8572_v59 = vmul.f32 %v11868_v41, %v18351_v20  ;;  %v8377_v58 = vmul.f32 %v11861_v12, %v18340_v18 }
 0x845   : > { %v8924_v55 = vadd.f32 %v18362_v47, %v8818_v1  ;;  %v8821_v15 = vadd.f32 %v10386_v2, %v8600_v53  ;;  %v11918_v50 = vunpack.i.l.bf16 %v11917_v22  ;;  %v18468_v1 = vpop.permute.xlu1 %11905  ;;  %v8603_v10 = vadd.f32 %v8571_v0, %v8407_v35 }
 0x846   : > { %10593 = vmatprep.mubr.bf16.mxu0 %v8982_v5  ;;  %v8214_v31 = vmul.f32 %v11857_v28, %v18343_v36  ;;  %v8378_v61 = vmul.f32 %v11862_v23, %v18340_v18  ;;  %v11919_v27 = vunpack.i.h.bf16 %v11917_v22  ;;  %v8409_v32 = vadd.f32 %v8377_v58, %v8213_v44 }
 0x847   : > { %v8925_v43 = vadd.f32 %v18362_v47, %v8821_v15  ;;  %v10387_v33 = vpop.f32.mrb[84].mxu0  ;;  %10626 = vmatpush3.bf16.msra.mxu0 %v12635_v17  ;;  %13881 = vtanh.f32 %v8924_v55  ;;  %v8604_v15 = vadd.f32 %v8572_v59, %v8408_v34  ;;  %v8573_v11 = vmul.f32 %v11918_v50, %v18351_v20 }
 0x848   : > { %v10388_v4 = vpop.f32.mrb[85].mxu0  ;;  %v8574_v45 = vmul.f32 %v11919_v27, %v18351_v20  ;;  %v11895_v41 = vunpack.i.l.bf16 %v18440_v8  ;;  %v11896_v22 = vunpack.i.h.bf16 %v18440_v8  ;;  %v11884_v28 = vunpack.i.l.bf16 %v18433_v57 }
 0x849   : > { %13883 = vtanh.f32 %v8925_v43  ;;  %v10389_v26 = vadd.f32 %v10388_v4, %v10387_v33  ;;  %v10390_v46 = vpop.f32.mrb[86].mxu0  ;;  %v13878_v39 = vpop.eup %13877  ;;  %v11879_v33 = vunpack.i.l.bf16 %v18412_v14  ;;  %v8410_v4 = vadd.f32 %v8378_v61, %v8214_v31 }
 0x84a   : > { %v10391_v9 = vpop.f32.mrb[87].mxu0  ;;  %v11889_v34 = vunpack.i.l.bf16 %v18425_v56  ;;  %v11885_v50 = vunpack.i.h.bf16 %v18433_v57  ;;  %v8217_v31 = vmul.f32 %v11884_v28, %v18343_v36 }
 0x84b   : > { %v13880_v6 = vpop.eup %13879  ;;  %v8826_v54 = vadd.f32 %v10389_v26, %v8601_v51  ;;  %v10392_v37 = vadd.f32 %v10391_v9, %v10390_v46  ;;  %v18478_v26 = vpop.permute.xlu1 %11926  ;;  %v11880_v46 = vunpack.i.h.bf16 %v18412_v14  ;;  %v8605_v9 = vadd.f32 %v8573_v11, %v8409_v32 }
 0x84c   : > { %v8983_v38 = vpack.c.bf16 %v13880_v6, %v13878_v39  ;;  %v8379_v52 = vmul.f32 %v11879_v33, %v18340_v18  ;;  %v8606_v12 = vadd.f32 %v8574_v45, %v8410_v4  ;;  %v8381_v61 = vmul.f32 %v11889_v34, %v18340_v18 }
 0x84d   : > { %v8926_v7 = vadd.f32 %v18362_v47, %v8826_v54  ;;  %v8829_v17 = vadd.f32 %v10392_v37, %v8602_v49  ;;  %v8215_v49 = vmul.f32 %v11873_v63, %v18343_v36  ;;  %v8380_v0 = vmul.f32 %v11880_v46, %v18340_v18 }
 0x84e   : > { %10594 = vmatmul.mubr.bf16.gmra.mrb[132].mxu0 %v8983_v38  ;;  %v11901_v4 = vunpack.i.l.bf16 %v18454_v16 }
 0x84f   : > { %v8927_v24 = vadd.f32 %v18362_v47, %v8829_v17  ;;  %v10393_v42 = vpop.f32.mrb[88].mxu0  ;;  %13885 = vtanh.f32 %v8926_v7  ;;  %v18486_v38 = vpop.permute.xlu1 %11932  ;;  %v8411_v59 = vadd.f32 %v8379_v52, %v8215_v49 }
 0x850   : > { %v10394_v40 = vpop.f32.mrb[89].mxu0 }
 0x851   : > { %13887 = vtanh.f32 %v8927_v24  ;;  %v10395_v53 = vadd.f32 %v10394_v40, %v10393_v42  ;;  %v10396_v25 = vpop.f32.mrb[90].mxu0  ;;  %v13882_v2 = vpop.eup %13881  ;;  %v8575_v24 = vmul.f32 %v11895_v41, %v18351_v20  ;;  %v11890_v40 = vunpack.i.h.bf16 %v18425_v56 }
 0x852   : > { %v10397_v5 = vpop.f32.mrb[91].mxu0  ;;  %v11922_v42 = vpop.permute.xlu0 %11921  ;;  %v11908_v41 = vunpack.i.h.bf16 %v18468_v1 }
 0x853   : > { %v13884_v13 = vpop.eup %13883  ;;  %v8834_v55 = vadd.f32 %v10395_v53, %v8603_v10  ;;  %v10398_v3 = vadd.f32 %v10397_v5, %v10396_v25  ;;  %v18496_v8 = vpop.permute.xlu1 %11943  ;;  %v8412_v10 = vadd.f32 %v8380_v0, %v8216_v62  ;;  %v8576_v53 = vmul.f32 %v11896_v22, %v18351_v20 }
 0x854   : > { %v8984_v43 = vpack.c.bf16 %v13884_v13, %v13882_v2  ;;  %v11923_v27 = vunpack.i.l.bf16 %v11922_v42  ;;  %v8607_v57 = vadd.f32 %v8575_v24, %v8411_v59  ;;  %v11924_v32 = vunpack.i.h.bf16 %v11922_v42 }
 0x855   : > { %v8928_v30 = vadd.f32 %v18362_v47, %v8834_v55  ;;  %v8837_v51 = vadd.f32 %v10398_v3, %v8604_v15  ;;  %v8218_v15 = vmul.f32 %v11885_v50, %v18343_v36  ;;  %v8382_v3 = vmul.f32 %v11890_v40, %v18340_v18 }
 0x856   : > { %10597 = vmatprep.mubr.bf16.mxu0 %v8984_v43  ;;  %v8608_v33 = vadd.f32 %v8576_v53, %v8412_v10  ;;  %v8577_v45 = vmul.f32 %v11923_v27, %v18351_v20  ;;  %v8578_v52 = vmul.f32 %v11924_v32, %v18351_v20  ;;  %v8384_v34 = vmul.f32 %v11908_v41, %v18340_v18  ;;  %v11938_v10 = vpop.permute.xlu0 %11937 }
 0x857   : > { %v8929_v39 = vadd.f32 %v18362_v47, %v8837_v51  ;;  %v10399_v29 = vpop.f32.mrb[92].mxu0  ;;  %13889 = vtanh.f32 %v8928_v30  ;;  %v8413_v51 = vadd.f32 %v8381_v61, %v8217_v31  ;;  %v18506_v46 = vpop.permute.xlu1 %11949  ;;  %v11935_v59 = vunpack.i.h.bf16 %v18486_v38 }
 0x858   : > { %v10400_v6 = vpop.f32.mrb[93].mxu0  ;;  %v11928_v50 = vunpack.i.l.bf16 %v18478_v26  ;;  %v11913_v31 = vunpack.i.h.bf16 %v18447_v21  ;;  %v11929_v61 = vunpack.i.h.bf16 %v18478_v26  ;;  %v11951_v41 = vunpack.i.l.bf16 %v18506_v46 }
 0x859   : > { %13891 = vtanh.f32 %v8929_v39  ;;  %v10401_v54 = vadd.f32 %v10400_v6, %v10399_v29  ;;  %v10402_v60 = vpop.f32.mrb[94].mxu0  ;;  %v13886_v37 = vpop.eup %13885  ;;  %v11907_v39 = vunpack.i.l.bf16 %v18468_v1  ;;  %v11902_v6 = vunpack.i.h.bf16 %v18454_v16 }
 0x85a   : > { %v10403_v14 = vpop.f32.mrb[95].mxu0  ;;  %v8609_v62 = vadd.f32 %v8577_v45, %v8413_v51  ;;  %v8580_v27 = vmul.f32 %v11935_v59, %v18351_v20  ;;  %v18534_v45 = vpop.permute.xlu0 %11965 }
 0x85b   : > { %v13888_v35 = vpop.eup %13887  ;;  %v8842_v7 = vadd.f32 %v10401_v54, %v8605_v9  ;;  %v10404_v17 = vadd.f32 %v10403_v14, %v10402_v60  ;;  %v8414_v9 = vadd.f32 %v8382_v3, %v8218_v15  ;;  %v8383_v14 = vmul.f32 %v11907_v39, %v18340_v18  ;;  %v18518_v28 = vpop.permute.xlu1 %11954 }
 0x85c   : > { %v8985_v23 = vpack.c.bf16 %v13888_v35, %v13886_v37  ;;  %v8219_v37 = vmul.f32 %v11901_v4, %v18343_v36  ;;  %v11934_v35 = vunpack.i.l.bf16 %v18486_v38 }
 0x85d   : > { %v8930_v44 = vadd.f32 %v18362_v47, %v8842_v7  ;;  %v8845_v58 = vadd.f32 %v10404_v17, %v8606_v12  ;;  %v8220_v7 = vmul.f32 %v11902_v6, %v18343_v36  ;;  %v8610_v17 = vadd.f32 %v8578_v52, %v8414_v9 }
 0x85e   : > { %10598 = vmatmul.mubr.bf16.gmra.mrb[136].mxu0 %v8985_v23  ;;  %v8415_v40 = vadd.f32 %v8383_v14, %v8219_v37  ;;  %v8579_v53 = vmul.f32 %v11934_v35, %v18351_v20  ;;  %v11945_v9 = vunpack.i.l.bf16 %v18496_v8  ;;  %v11952_v14 = vunpack.i.h.bf16 %v18506_v46 }
 0x85f   : > { %v8931_v25 = vadd.f32 %v18362_v47, %v8845_v58  ;;  %v10405_v2 = vpop.f32.mrb[96].mxu0  ;;  %13893 = vtanh.f32 %v8930_v44  ;;  %v11912_v44 = vunpack.i.l.bf16 %v18447_v21  ;;  %v8416_v38 = vadd.f32 %v8384_v34, %v8220_v7  ;;  %v11961_v3 = vpop.permute.xlu1 %11960 }
 0x860   : > { %v10406_v5 = vpop.f32.mrb[97].mxu0  ;;  %v8611_v32 = vadd.f32 %v8579_v53, %v8415_v40  ;;  %v11963_v40 = vunpack.i.h.bf16 %v11961_v3 }
 0x861   : > { %13895 = vtanh.f32 %v8931_v25  ;;  %v10407_v13 = vadd.f32 %v10406_v5, %v10405_v2  ;;  %v10408_v56 = vpop.f32.mrb[98].mxu0  ;;  %v13890_v55 = vpop.eup %13889 }
 0x862   : > { %v10409_v11 = vpop.f32.mrb[99].mxu0 }
 0x863   : > { %v13892_v63 = vpop.eup %13891  ;;  %v8850_v43 = vadd.f32 %v10407_v13, %v8607_v57  ;;  %v10410_v30 = vadd.f32 %v10409_v11, %v10408_v56  ;;  %v8221_v13 = vmul.f32 %v11912_v44, %v18343_v36  ;;  %v8385_v56 = vmul.f32 %v11928_v50, %v18340_v18  ;;  %v18538_v52 = vpop.permute.xlu1 %11977 }
 0x864   : > { %v8986_v48 = vpack.c.bf16 %v13892_v63, %v13890_v55  ;;  %v11939_v55 = vunpack.i.l.bf16 %v11938_v10  ;;  %v8222_v63 = vmul.f32 %v11913_v31, %v18343_v36  ;;  %v8388_v50 = vmul.f32 %v11952_v14, %v18340_v18 }
 0x865   : > { %v8932_v29 = vadd.f32 %v18362_v47, %v8850_v43  ;;  %v8853_v49 = vadd.f32 %v10410_v30, %v8608_v33  ;;  %v8386_v43 = vmul.f32 %v11929_v61, %v18340_v18  ;;  %v11940_v33 = vunpack.i.h.bf16 %v11938_v10 }
 0x866   : > { %10601 = vmatprep.mubr.bf16.mxu0 %v8986_v48  ;;  %v8612_v48 = vadd.f32 %v8580_v27, %v8416_v38 }
 0x867   : > { %v8933_v54 = vadd.f32 %v18362_v47, %v8853_v49  ;;  %v10411_v60 = vpop.f32.mrb[100].mxu0  ;;  %13897 = vtanh.f32 %v8932_v29  ;;  %v8417_v29 = vadd.f32 %v8385_v56, %v8221_v13  ;;  %v8581_v49 = vmul.f32 %v11939_v55, %v18351_v20  ;;  %v18549_v44 = vpop.permute.xlu1 %11983 }
 0x868   : > { %v10412_v12 = vpop.f32.mrb[101].mxu0  ;;  %v8418_v37 = vadd.f32 %v8386_v43, %v8222_v63  ;;  %v8584_v55 = vmul.f32 %v11963_v40, %v18351_v20 }
 0x869   : > { %13899 = vtanh.f32 %v8933_v54  ;;  %v10413_v0 = vadd.f32 %v10412_v12, %v10411_v60  ;;  %v10414_v16 = vpop.f32.mrb[102].mxu0  ;;  %v13894_v22 = vpop.eup %13893  ;;  %v11946_v12 = vunpack.i.h.bf16 %v18496_v8 }
 0x86a   : > { %v10415_v1 = vpop.f32.mrb[103].mxu0 }
 0x86b   : > { %v13896_v23 = vpop.eup %13895  ;;  %v8858_v24 = vadd.f32 %v10413_v0, %v8609_v62  ;;  %v10416_v42 = vadd.f32 %v10415_v1, %v10414_v16  ;;  %v8582_v62 = vmul.f32 %v11940_v33, %v18351_v20  ;;  %v8223_v16 = vmul.f32 %v11945_v9, %v18343_v36  ;;  %v11972_v1 = vpop.permute.xlu0 %11971 }
 0x86c   : > { %v8987_v58 = vpack.c.bf16 %v13896_v23, %v13894_v22  ;;  %v8613_v22 = vadd.f32 %v8581_v49, %v8417_v29  ;;  %v11962_v23 = vunpack.i.l.bf16 %v11961_v3  ;;  %v8224_v8 = vmul.f32 %v11946_v12, %v18343_v36  ;;  %v18561_v63 = vpop.permute.xlu1 %11993 }
 0x86d   : > { %v8934_v25 = vadd.f32 %v18362_v47, %v8858_v24  ;;  %v8861_v2 = vadd.f32 %v10416_v42, %v8610_v17  ;;  %v8387_v17 = vmul.f32 %v11951_v41, %v18340_v18  ;;  %v8614_v42 = vadd.f32 %v8582_v62, %v8418_v37 }
 0x86e   : > { %10602 = vmatmul.mubr.bf16.gmra.mrb[140].mxu0 %v8987_v58  ;;  %v11973_v31 = vunpack.i.l.bf16 %v11972_v1  ;;  %v8583_v38 = vmul.f32 %v11962_v23, %v18351_v20  ;;  %v11974_v13 = vunpack.i.h.bf16 %v11972_v1  ;;  %v8420_v56 = vadd.f32 %v8388_v50, %v8224_v8 }
 0x86f   : > { %v8935_v5 = vadd.f32 %v18362_v47, %v8861_v2  ;;  %v10417_v57 = vpop.f32.mrb[104].mxu0  ;;  %13901 = vtanh.f32 %v8934_v25  ;;  %v11956_v2 = vunpack.i.l.bf16 %v18518_v28  ;;  %v8419_v61 = vadd.f32 %v8387_v17, %v8223_v16 }
 0x870   : > { %v10418_v15 = vpop.f32.mrb[105].mxu0  ;;  %v8616_v9 = vadd.f32 %v8584_v55, %v8420_v56  ;;  %v11985_v12 = vunpack.i.l.bf16 %v18549_v44  ;;  %v12000_v16 = vpop.permute.xlu1 %11999  ;;  %v11996_v56 = vunpack.i.h.bf16 %v18561_v63 }
 0x871   : > { %13903 = vtanh.f32 %v8935_v5  ;;  %v10419_v21 = vadd.f32 %v10418_v15, %v10417_v57  ;;  %v10420_v11 = vpop.f32.mrb[106].mxu0  ;;  %v13898_v26 = vpop.eup %13897  ;;  %v11957_v57 = vunpack.i.h.bf16 %v18518_v28  ;;  %v8615_v28 = vadd.f32 %v8583_v38, %v8419_v61 }
 0x872   : > { %v10421_v30 = vpop.f32.mrb[107].mxu0  ;;  %v11995_v61 = vunpack.i.l.bf16 %v18561_v63 }
 0x873   : > { %v13900_v51 = vpop.eup %13899  ;;  %v8866_v4 = vadd.f32 %v10419_v21, %v8611_v32  ;;  %v10422_v39 = vadd.f32 %v10421_v30, %v10420_v11  ;;  %v11967_v32 = vunpack.i.l.bf16 %v18534_v45  ;;  %v8389_v21 = vmul.f32 %v11956_v2, %v18340_v18 }
 0x874   : > { %v8988_v6 = vpack.c.bf16 %v13900_v51, %v13898_v26  ;;  %v8225_v11 = vmul.f32 %v11973_v31, %v18343_v36  ;;  %v11968_v51 = vunpack.i.h.bf16 %v18534_v45 }
 0x875   : > { %v8936_v54 = vadd.f32 %v18362_v47, %v8866_v4  ;;  %v8869_v60 = vadd.f32 %v10422_v39, %v8612_v48  ;;  %v8390_v4 = vmul.f32 %v11957_v57, %v18340_v18  ;;  %v8226_v48 = vmul.f32 %v11974_v13, %v18343_v36 }
 0x876   : > { %10605 = vmatprep.mubr.bf16.mxu0 %v8988_v6  ;;  %v8585_v41 = vmul.f32 %v11967_v32, %v18351_v20  ;;  %v8586_v14 = vmul.f32 %v11968_v51, %v18351_v20 }
 0x877   : > { %v8937_v35 = vadd.f32 %v18362_v47, %v8869_v60  ;;  %v10423_v0 = vpop.f32.mrb[108].mxu0  ;;  %13905 = vtanh.f32 %v8936_v54  ;;  %v8421_v54 = vadd.f32 %v8389_v21, %v8225_v11  ;;  %v11979_v60 = vunpack.i.l.bf16 %v18538_v52 }
 0x878   : > { %v10424_v7 = vpop.f32.mrb[109].mxu0 }
 0x879   : > { %13907 = vtanh.f32 %v8937_v35  ;;  %v10425_v34 = vadd.f32 %v10424_v7, %v10423_v0  ;;  %v10426_v59 = vpop.f32.mrb[110].mxu0  ;;  %v13902_v24 = vpop.eup %13901  ;;  %v8422_v35 = vadd.f32 %v8390_v4, %v8226_v48  ;;  %v11980_v0 = vunpack.i.h.bf16 %v18538_v52 }
 0x87a   : > { %v10427_v46 = vpop.f32.mrb[111].mxu0  ;;  %v8227_v1 = vmul.f32 %v11979_v60, %v18343_v36  ;;  %v8617_v23 = vadd.f32 %v8585_v41, %v8421_v54 }
 0x87b   : > { %v13904_v58 = vpop.eup %13903  ;;  %v8874_v10 = vadd.f32 %v10425_v34, %v8613_v22  ;;  %v10428_v53 = vadd.f32 %v10427_v46, %v10426_v59  ;;  %v11986_v22 = vunpack.i.h.bf16 %v18549_v44  ;;  %v11989_v59 = vpop.permute.xlu0 %11988  ;;  %v12001_v46 = vunpack.i.l.bf16 %v12000_v16 }
 0x87c   : > { %v8989_v25 = vpack.c.bf16 %v13904_v58, %v13902_v24  ;;  %v8391_v24 = vmul.f32 %v11985_v12, %v18340_v18  ;;  %v8228_v58 = vmul.f32 %v11980_v0, %v18343_v36  ;;  %v8618_v50 = vadd.f32 %v8586_v14, %v8422_v35 }
 0x87d   : > { %v8938_v27 = vadd.f32 %v18362_v47, %v8874_v10  ;;  %v8877_v5 = vadd.f32 %v10428_v53, %v8614_v42  ;;  %v8392_v10 = vmul.f32 %v11986_v22, %v18340_v18  ;;  %v11990_v38 = vunpack.i.l.bf16 %v11989_v59  ;;  %v12638_v22 = vld [vmem:[#allocation4 + $0xe8] sm:$0xff]  }
 0x87e   : > { %10606 = vmatmul.mubr.bf16.gmra.mrb[144].mxu0 %v8989_v25  ;;  %v12002_v25 = vunpack.i.h.bf16 %v12000_v16  ;;  %v8587_v57 = vmul.f32 %v12001_v46, %v18351_v20  ;;  %v11991_v55 = vunpack.i.h.bf16 %v11989_v59 }
 0x87f   : > { %v8939_v15 = vadd.f32 %v18362_v47, %v8877_v5  ;;  %v10429_v3 = vpop.f32.mrb[112].mxu0  ;;  %13909 = vtanh.f32 %v8938_v27  ;;  %v8423_v27 = vadd.f32 %v8391_v24, %v8227_v1 }
 0x880   : > { %v10430_v26 = vpop.f32.mrb[113].mxu0  ;;  %v8588_v32 = vmul.f32 %v12002_v25, %v18351_v20 }
 0x881   : > { %13911 = vtanh.f32 %v8939_v15  ;;  %v10431_v43 = vadd.f32 %v10430_v26, %v10429_v3  ;;  %v10432_v33 = vpop.f32.mrb[114].mxu0  ;;  %v13906_v30 = vpop.eup %13905  ;;  %v8424_v3 = vadd.f32 %v8392_v10, %v8228_v58  ;;  %v12636_v26 = vld [vmem:[#allocation4 + $0xd8] sm:$0xff]   ;;  %v8619_v51 = vadd.f32 %v8587_v57, %v8423_v27  ;;  %v18595_v27 = vld [vmem:[#allocation6] sm:$0xff] }
 0x882   : > { %v10433_v39 = vpop.f32.mrb[115].mxu0  ;;  %v12006_v15 = vpop.permute.xlu0 %12005  ;;  %10627 = vmatprep.subr.bf16.mxu0 %v12636_v26 }
 0x883   : > { %v13908_v29 = vpop.eup %13907  ;;  %v8882_v49 = vadd.f32 %v10431_v43, %v8615_v28  ;;  %v10434_v6 = vadd.f32 %v10433_v39, %v10432_v33  ;;  %v8393_v28 = vmul.f32 %v11995_v61, %v18340_v18  ;;  %v8229_v43 = vmul.f32 %v11990_v38, %v18343_v36  ;;  %10628 = vmatpush3.bf16.msra.mxu0 %v12636_v26 }
 0x884   : > { %v8990_v37 = vpack.c.bf16 %v13908_v29, %v13906_v30  ;;  %v12007_v30 = vunpack.i.l.bf16 %v12006_v15  ;;  %v8394_v39 = vmul.f32 %v11996_v56, %v18340_v18  ;;  %v8230_v29 = vmul.f32 %v11991_v55, %v18343_v36 }
 0x885   : > { %v8940_v62 = vadd.f32 %v18362_v47, %v8882_v49  ;;  %v8885_v45 = vadd.f32 %v10434_v6, %v8616_v9  ;;  %v12008_v6 = vunpack.i.h.bf16 %v12006_v15  ;;  %v8620_v54 = vadd.f32 %v8588_v32, %v8424_v3 }
 0x886   : > { %10609 = vmatprep.mubr.bf16.mxu0 %v8990_v37  ;;  %v12637_v37 = vld [vmem:[#allocation4 + $0xe0] sm:$0xff]   ;;  %v8425_v12 = vadd.f32 %v8393_v28, %v8229_v43  ;;  %v8426_v18 = vadd.f32 %v8394_v39, %v8230_v29  ;;  %v8998_v38 = vsub.s32 4, %v19403_v19  ;;  %v12642_v29 = vld [vmem:[#allocation4 + $0x108] sm:$0xff]  }
 0x887   : > { %v8941_v7 = vadd.f32 %v18362_v47, %v8885_v45  ;;  %v10435_v17 = vpop.f32.mrb[116].mxu0  ;;  %13913 = vtanh.f32 %v8940_v62  ;;  %v8589_v45 = vmul.f32 %v12007_v30, %v18351_v20  ;;  %10629 = vmatprep.subr.bf16.mxu0 %v12637_v37  ;;  %v8590_v36 = vmul.f32 %v12008_v6, %v18351_v20 }
 0x888   : > { %v10436_v34 = vpop.f32.mrb[117].mxu0  ;;  %10630 = vmatpush3.bf16.msra.mxu0 %v12637_v37 }
 0x889   : > { %13915 = vtanh.f32 %v8941_v7  ;;  %v10437_v8 = vadd.f32 %v10436_v34, %v10435_v17  ;;  %v10438_v42 = vpop.f32.mrb[118].mxu0  ;;  %v13910_v52 = vpop.eup %13909  ;;  %v8621_v17 = vadd.f32 %v8589_v45, %v8425_v12  ;;  %10631 = vmatprep.subr.bf16.mxu0 %v12638_v22 }
 0x88a   : > { %v10439_v44 = vpop.f32.mrb[119].mxu0 }
 0x88b   : > { %v13912_v40 = vpop.eup %13911  ;;  %v8890_v53 = vadd.f32 %v10437_v8, %v8617_v23  ;;  %v10440_v2 = vadd.f32 %v10439_v44, %v10438_v42  ;;  %v8622_v42 = vadd.f32 %v8590_v36, %v8426_v18 }
 0x88c   : > { %v8991_v31 = vpack.c.bf16 %v13912_v40, %v13910_v52  ;;  %10632 = vmatpush3.bf16.msra.mxu0 %v12638_v22  ;;  %v12639_v52 = vld [vmem:[#allocation4 + $0xf0] sm:$0xff]   ;;  %v12640_v40 = vld [vmem:[#allocation4 + $0xf8] sm:$0xff]  }
 0x88d   : > { %v8942_v5 = vadd.f32 %v18362_v47, %v8890_v53  ;;  %v8893_v13 = vadd.f32 %v10440_v2, %v8618_v50  ;;  %10633 = vmatprep.subr.bf16.mxu0 %v12639_v52 }
 0x88e   : > { %10610 = vmatmul.mubr.bf16.gmra.mrb[148].mxu0 %v8991_v31 }
 0x88f   : > { %v8943_v21 = vadd.f32 %v18362_v47, %v8893_v13  ;;  %v10441_v11 = vpop.f32.mrb[120].mxu0  ;;  %13917 = vtanh.f32 %v8942_v5 }
 0x890   : > { %v10442_v33 = vpop.f32.mrb[121].mxu0  ;;  %10634 = vmatpush3.bf16.msra.mxu0 %v12639_v52 }
 0x891   : > { %13919 = vtanh.f32 %v8943_v21  ;;  %v10443_v63 = vadd.f32 %v10442_v33, %v10441_v11  ;;  %v10444_v4 = vpop.f32.mrb[122].mxu0  ;;  %v13914_v48 = vpop.eup %13913  ;;  %10635 = vmatprep.subr.bf16.mxu0 %v12640_v40  ;;  %v12641_v21 = vld [vmem:[#allocation4 + $0x100] sm:$0xff]  }
 0x892   : > { %v10445_v49 = vpop.f32.mrb[123].mxu0 }
 0x893   : > { %v13916_v9 = vpop.eup %13915  ;;  %v8898_v41 = vadd.f32 %v10443_v63, %v8619_v51  ;;  %v10446_v60 = vadd.f32 %v10445_v49, %v10444_v4 }
 0x894   : > { %v8992_v62 = vpack.c.bf16 %v13916_v9, %v13914_v48  ;;  %10636 = vmatpush3.bf16.msra.mxu0 %v12640_v40 }
 0x895   : > { %v8944_v14 = vadd.f32 %v18362_v47, %v8898_v41  ;;  %v8901_v35 = vadd.f32 %v10446_v60, %v8620_v54  ;;  %10669 = vmatprep.subr.bf16.mxu0 %v12641_v21  ;;  %v12643_v41 = vld [vmem:[#allocation4 + $0x110] sm:$0xff]  }
 0x896   : > { %10613 = vmatprep.mubr.bf16.mxu0 %v8992_v62 }
 0x897   : > { %v8945_v0 = vadd.f32 %v18362_v47, %v8901_v35  ;;  %v10447_v16 = vpop.f32.mrb[124].mxu0  ;;  %13921 = vtanh.f32 %v8944_v14 }
 0x898   : > { %v10448_v7 = vpop.f32.mrb[125].mxu0 }
 0x899   : > { %13923 = vtanh.f32 %v8945_v0  ;;  %v10449_v1 = vadd.f32 %v10448_v7, %v10447_v16  ;;  %v10450_v23 = vpop.f32.mrb[126].mxu0  ;;  %v13918_v34 = vpop.eup %13917 }
 0x89a   : > { %v10451_v59 = vpop.f32.mrb[127].mxu0 }
 0x89b   : > { %v13920_v24 = vpop.eup %13919  ;;  %v8906_v8 = vadd.f32 %v10449_v1, %v8621_v17  ;;  %v10452_v46 = vadd.f32 %v10451_v59, %v10450_v23 }
 0x89c   : > { %v8993_v20 = vpack.c.bf16 %v13920_v24, %v13918_v34 }
 0x89d   : > { %v8946_v58 = vadd.f32 %v18362_v47, %v8906_v8  ;;  %v8909_v50 = vadd.f32 %v10452_v46, %v8622_v42 }
 0x89e   : > { %10614 = vmatmul.mubr.bf16.gmra.mrb[152].mxu0 %v8993_v20 }
 0x89f   : > { %v8947_v44 = vadd.f32 %v18362_v47, %v8909_v50  ;;  %13925 = vtanh.f32 %v8946_v58  ;;  %v18598_v47 = vrot.slane %v18595_v27, %v8998_v38 }
 0x8a1   : > { %13927 = vtanh.f32 %v8947_v44  ;;  %v13922_v10 = vpop.eup %13921 }
 0x8a3   : > { %v13924_v53 = vpop.eup %13923 }
 0x8a4   : > { %v8994_v25 = vpack.c.bf16 %v13924_v53, %v13922_v10 }
 0x8a6   : > { %10617 = vmatprep.mubr.bf16.mxu0 %v8994_v25 }
 0x8a9   : > { %v13926_v2 = vpop.eup %13925 }
 0x8ab   : > { %v13928_v31 = vpop.eup %13927 }
 0x8ac   : > { %v8995_v61 = vpack.c.bf16 %v13928_v31, %v13926_v2 }
 0x8ae   : > { %10618 = vmatmul.mubr.bf16.gmra.mrb[156].mxu0 %v8995_v61 }
 0x911   : > { %v10591_v5 = vpop.f32.mrb[128].mxu0 }
 0x912   : > { %v9091_v57 = vadd.f32 %v10591_v5, %v18598_v47  ;;  %v9082_v13 = vpop.f32.mrb[129].mxu0 }
 0x913   : > { %v9083_v56 = vadd.f32 %v9082_v13, %v18598_v47  ;;  %v10592_v55 = vpop.f32.mrb[130].mxu0 }
 0x914   : > { %13929 = vtanh.f32 %v9091_v57  ;;  %v9094_v15 = vadd.f32 %v10592_v55, %v18598_v47  ;;  %v9085_v3 = vpop.f32.mrb[131].mxu0 }
 0x915   : > { %13931 = vtanh.f32 %v9083_v56  ;;  %v9086_v32 = vadd.f32 %v9085_v3, %v18598_v47 }
 0x916   : > { %13933 = vtanh.f32 %v9094_v15 }
 0x917   : > { %13935 = vtanh.f32 %v9086_v32 }
 0x91e   : > { %v13930_v11 = vpop.eup %13929 }
 0x91f   : > { %v13932_v26 = vpop.eup %13931 }
 0x920   : > { %v13934_v28 = vpop.eup %13933 }
 0x921   : > { %v13936_v43 = vpop.eup %13935  ;;  %v9242_v33 = vpack.c.bf16 %v13934_v28, %v13930_v11  ;;  %v10595_v30 = vpop.f32.mrb[132].mxu0 }
 0x922   : > { %v9107_v51 = vadd.f32 %v10595_v30, %v18598_v47  ;;  %v9098_v63 = vpop.f32.mrb[133].mxu0  ;;  %v9241_v4 = vpack.c.bf16 %v13936_v43, %v13932_v26 }
 0x923   : > { %v9099_v48 = vadd.f32 %v9098_v63, %v18598_v47  ;;  %v10596_v39 = vpop.f32.mrb[134].mxu0 }
 0x924   : > { %13937 = vtanh.f32 %v9107_v51  ;;  %v9110_v49 = vadd.f32 %v10596_v39, %v18598_v47  ;;  %v9101_v9 = vpop.f32.mrb[135].mxu0  ;;  %10637 = vmatprep.mubr.bf16.mxu0 %v9241_v4 }
 0x925   : > { %13939 = vtanh.f32 %v9099_v48  ;;  %v9102_v6 = vadd.f32 %v9101_v9, %v18598_v47  ;;  %10638 = vmatmul.mubr.bf16.vlgmr.msra.gmra.mrb[160].mxu0 %v9242_v33 }
 0x926   : > { %13941 = vtanh.f32 %v9110_v49  ;;  %10670 = vmatpush3.bf16.msra.mxu0 %v12641_v21 }
 0x927   : > { %13943 = vtanh.f32 %v9102_v6  ;;  %10671 = vmatprep.subr.bf16.mxu0 %v12642_v29 }
 0x92a   : > { %10672 = vmatpush3.bf16.msra.mxu0 %v12642_v29 }
 0x92b   : > { %10673 = vmatprep.subr.bf16.mxu0 %v12643_v41 }
 0x92e   : > { %v13938_v54 = vpop.eup %13937  ;;  %10674 = vmatpush3.bf16.msra.mxu0 %v12643_v41 }
 0x92f   : > { %v13940_v60 = vpop.eup %13939 }
 0x930   : > { %v13942_v37 = vpop.eup %13941 }
 0x931   : > { %v13944_v62 = vpop.eup %13943  ;;  %v9244_v12 = vpack.c.bf16 %v13942_v37, %v13938_v54  ;;  %v10599_v45 = vpop.f32.mrb[136].mxu0 }
 0x932   : > { %v9123_v14 = vadd.f32 %v10599_v45, %v18598_v47  ;;  %v9114_v35 = vpop.f32.mrb[137].mxu0  ;;  %v9243_v18 = vpack.c.bf16 %v13944_v62, %v13940_v60 }
 0x933   : > { %v9115_v36 = vadd.f32 %v9114_v35, %v18598_v47  ;;  %v10600_v0 = vpop.f32.mrb[138].mxu0 }
 0x934   : > { %13945 = vtanh.f32 %v9123_v14  ;;  %v9126_v16 = vadd.f32 %v10600_v0, %v18598_v47  ;;  %v9117_v22 = vpop.f32.mrb[139].mxu0  ;;  %10641 = vmatprep.mubr.bf16.mxu0 %v9243_v18  ;;  %v12645_v0 = vld [vmem:[#allocation4 + $0x120] sm:$0xff]  }
 0x935   : > { %13947 = vtanh.f32 %v9115_v36  ;;  %v9118_v7 = vadd.f32 %v9117_v22, %v18598_v47  ;;  %10642 = vmatmul.mubr.bf16.gmra.mrb[164].mxu0 %v9244_v12  ;;  %v12644_v36 = vld [vmem:[#allocation4 + $0x118] sm:$0xff]   ;;  %v12646_v22 = vld [vmem:[#allocation4 + $0x128] sm:$0xff]  }
 0x936   : > { %13949 = vtanh.f32 %v9126_v16  ;;  %10675 = vmatprep.subr.bf16.mxu0 %v12644_v36 }
 0x937   : > { %13951 = vtanh.f32 %v9118_v7  ;;  %10676 = vmatpush3.bf16.msra.mxu0 %v12644_v36 }
 0x938   : > { %10677 = vmatprep.subr.bf16.mxu0 %v12645_v0 }
 0x93b   : > { %10678 = vmatpush3.bf16.msra.mxu0 %v12645_v0 }
 0x93c   : > { %10679 = vmatprep.subr.bf16.mxu0 %v12646_v22 }
 0x93e   : > { %v13946_v17 = vpop.eup %13945 }
 0x93f   : > { %v13948_v1 = vpop.eup %13947  ;;  %10680 = vmatpush3.bf16.msra.mxu0 %v12646_v22 }
 0x940   : > { %v13950_v23 = vpop.eup %13949 }
 0x941   : > { %v13952_v34 = vpop.eup %13951  ;;  %v9246_v59 = vpack.c.bf16 %v13950_v23, %v13946_v17  ;;  %v10603_v24 = vpop.f32.mrb[140].mxu0 }
 0x942   : > { %v9139_v8 = vadd.f32 %v10603_v24, %v18598_v47  ;;  %v9130_v42 = vpop.f32.mrb[141].mxu0  ;;  %v9245_v46 = vpack.c.bf16 %v13952_v34, %v13948_v1 }
 0x943   : > { %v9131_v52 = vadd.f32 %v9130_v42, %v18598_v47  ;;  %v10604_v20 = vpop.f32.mrb[142].mxu0  ;;  %v12647_v42 = vld [vmem:[#allocation4 + $0x130] sm:$0xff]  }
 0x944   : > { %13953 = vtanh.f32 %v9139_v8  ;;  %v9142_v58 = vadd.f32 %v10604_v20, %v18598_v47  ;;  %v9133_v50 = vpop.f32.mrb[143].mxu0  ;;  %10645 = vmatprep.mubr.bf16.mxu0 %v9245_v46  ;;  %10681 = vmatprep.subr.bf16.mxu0 %v12647_v42 }
 0x945   : > { %13955 = vtanh.f32 %v9131_v52  ;;  %v9134_v44 = vadd.f32 %v9133_v50, %v18598_v47  ;;  %10646 = vmatmul.mubr.bf16.gmra.mrb[168].mxu0 %v9246_v59 }
 0x946   : > { %13957 = vtanh.f32 %v9142_v58  ;;  %10682 = vmatpush3.bf16.msra.mxu0 %v12647_v42 }
 0x947   : > { %13959 = vtanh.f32 %v9134_v44  ;;  %v12648_v44 = vld [vmem:[#allocation4 + $0x138] sm:$0xff]  }
 0x948   : > { %10683 = vmatprep.subr.bf16.mxu0 %v12648_v44 }
 0x94a   : > { %10684 = vmatpush3.bf16.msra.mxu0 %v12648_v44 }
 0x94e   : > { %v13954_v40 = vpop.eup %13953 }
 0x94f   : > { %v13956_v10 = vpop.eup %13955 }
 0x950   : > { %v13958_v53 = vpop.eup %13957 }
 0x951   : > { %v13960_v25 = vpop.eup %13959  ;;  %v9248_v2 = vpack.c.bf16 %v13958_v53, %v13954_v40  ;;  %v10607_v31 = vpop.f32.mrb[144].mxu0 }
 0x952   : > { %v9155_v61 = vadd.f32 %v10607_v31, %v18598_v47  ;;  %v9146_v38 = vpop.f32.mrb[145].mxu0  ;;  %v9247_v5 = vpack.c.bf16 %v13960_v25, %v13956_v10 }
 0x953   : > { %v9147_v57 = vadd.f32 %v9146_v38, %v18598_v47  ;;  %v10608_v13 = vpop.f32.mrb[146].mxu0 }
 0x954   : > { %13961 = vtanh.f32 %v9155_v61  ;;  %v9158_v56 = vadd.f32 %v10608_v13, %v18598_v47  ;;  %v9149_v55 = vpop.f32.mrb[147].mxu0  ;;  %10649 = vmatprep.mubr.bf16.mxu0 %v9247_v5  ;;  %v9259_v61 = vsub.s32 5, %v19403_v19 }
 0x955   : > { %13963 = vtanh.f32 %v9147_v57  ;;  %v9150_v15 = vadd.f32 %v9149_v55, %v18598_v47  ;;  %10650 = vmatmul.mubr.bf16.gmra.mrb[172].mxu0 %v9248_v2 }
 0x956   : > { %13965 = vtanh.f32 %v9158_v56  ;;  %v18634_v38 = vrot.slane %v18595_v27, %v9259_v61 }
 0x957   : > { %13967 = vtanh.f32 %v9150_v15 }
 0x95e   : > { %v13962_v3 = vpop.eup %13961 }
 0x95f   : > { %v13964_v32 = vpop.eup %13963 }
 0x960   : > { %v13966_v21 = vpop.eup %13965 }
 0x961   : > { %v13968_v11 = vpop.eup %13967  ;;  %v9250_v26 = vpack.c.bf16 %v13966_v21, %v13962_v3  ;;  %v10611_v28 = vpop.f32.mrb[148].mxu0 }
 0x962   : > { %v9171_v43 = vadd.f32 %v10611_v28, %v18598_v47  ;;  %v9162_v33 = vpop.f32.mrb[149].mxu0  ;;  %v9249_v30 = vpack.c.bf16 %v13968_v11, %v13964_v32 }
 0x963   : > { %v9163_v51 = vadd.f32 %v9162_v33, %v18598_v47  ;;  %v10612_v63 = vpop.f32.mrb[150].mxu0 }
 0x964   : > { %13969 = vtanh.f32 %v9171_v43  ;;  %v9174_v4 = vadd.f32 %v10612_v63, %v18598_v47  ;;  %v9165_v48 = vpop.f32.mrb[151].mxu0  ;;  %10653 = vmatprep.mubr.bf16.mxu0 %v9249_v30 }
 0x965   : > { %13971 = vtanh.f32 %v9163_v51  ;;  %v9166_v39 = vadd.f32 %v9165_v48, %v18598_v47  ;;  %10654 = vmatmul.mubr.bf16.gmra.mrb[176].mxu0 %v9250_v26 }
 0x966   : > { %13973 = vtanh.f32 %v9174_v4 }
 0x967   : > { %13975 = vtanh.f32 %v9166_v39 }
 0x96e   : > { %v13970_v29 = vpop.eup %13969 }
 0x96f   : > { %v13972_v49 = vpop.eup %13971 }
 0x970   : > { %v13974_v9 = vpop.eup %13973 }
 0x971   : > { %v13976_v6 = vpop.eup %13975  ;;  %v9252_v41 = vpack.c.bf16 %v13974_v9, %v13970_v29  ;;  %v10615_v54 = vpop.f32.mrb[152].mxu0 }
 0x972   : > { %v9187_v60 = vadd.f32 %v10615_v54, %v18598_v47  ;;  %v9178_v37 = vpop.f32.mrb[153].mxu0  ;;  %v9251_v62 = vpack.c.bf16 %v13976_v6, %v13972_v49 }
 0x973   : > { %v9179_v12 = vadd.f32 %v9178_v37, %v18598_v47  ;;  %v10616_v45 = vpop.f32.mrb[154].mxu0 }
 0x974   : > { %13977 = vtanh.f32 %v9187_v60  ;;  %v9190_v14 = vadd.f32 %v10616_v45, %v18598_v47  ;;  %v9181_v35 = vpop.f32.mrb[155].mxu0  ;;  %10657 = vmatprep.mubr.bf16.mxu0 %v9251_v62 }
 0x975   : > { %13979 = vtanh.f32 %v9179_v12  ;;  %v9182_v18 = vadd.f32 %v9181_v35, %v18598_v47  ;;  %10658 = vmatmul.mubr.bf16.gmra.mrb[180].mxu0 %v9252_v41 }
 0x976   : > { %13981 = vtanh.f32 %v9190_v14 }
 0x977   : > { %13983 = vtanh.f32 %v9182_v18 }
 0x97e   : > { %v13978_v16 = vpop.eup %13977 }
 0x97f   : > { %v13980_v7 = vpop.eup %13979 }
 0x980   : > { %v13982_v17 = vpop.eup %13981 }
 0x981   : > { %v13984_v1 = vpop.eup %13983  ;;  %v9254_v23 = vpack.c.bf16 %v13982_v17, %v13978_v16  ;;  %v10619_v34 = vpop.f32.mrb[156].mxu0 }
 0x982   : > { %v9203_v59 = vadd.f32 %v10619_v34, %v18598_v47  ;;  %v9194_v24 = vpop.f32.mrb[157].mxu0  ;;  %v9253_v8 = vpack.c.bf16 %v13984_v1, %v13980_v7 }
 0x983   : > { %v9195_v46 = vadd.f32 %v9194_v24, %v18598_v47  ;;  %v10620_v52 = vpop.f32.mrb[158].mxu0 }
 0x984   : > { %13985 = vtanh.f32 %v9203_v59  ;;  %v9206_v20 = vadd.f32 %v10620_v52, %v18598_v47  ;;  %v9197_v58 = vpop.f32.mrb[159].mxu0  ;;  %10661 = vmatprep.mubr.bf16.mxu0 %v9253_v8 }
 0x985   : > { %13987 = vtanh.f32 %v9195_v46  ;;  %v9198_v50 = vadd.f32 %v9197_v58, %v18598_v47  ;;  %10662 = vmatmul.mubr.bf16.gmra.mrb[184].mxu0 %v9254_v23 }
 0x986   : > { %13989 = vtanh.f32 %v9206_v20 }
 0x987   : > { %13991 = vtanh.f32 %v9198_v50 }
 0x98e   : > { %v13986_v40 = vpop.eup %13985 }
 0x98f   : > { %v13988_v10 = vpop.eup %13987 }
 0x990   : > { %v13990_v53 = vpop.eup %13989 }
 0x991   : > { %v13992_v25 = vpop.eup %13991  ;;  %v9256_v2 = vpack.c.bf16 %v13990_v53, %v13986_v40 }
 0x992   : > { %v9255_v31 = vpack.c.bf16 %v13992_v25, %v13988_v10 }
 0x994   : > { %10665 = vmatprep.mubr.bf16.mxu0 %v9255_v31 }
 0x995   : > { %10666 = vmatmul.mubr.bf16.gmra.mrb[188].mxu0 %v9256_v2 }
 0x9f8   : > { %v10639_v47 = vpop.f32.mrb[160].mxu0 }
 0x9f9   : > { %v9352_v5 = vadd.f32 %v10639_v47, %v18634_v38  ;;  %v9343_v57 = vpop.f32.mrb[161].mxu0 }
 0x9fa   : > { %v9344_v13 = vadd.f32 %v9343_v57, %v18634_v38  ;;  %v10640_v56 = vpop.f32.mrb[162].mxu0 }
 0x9fb   : > { %13993 = vtanh.f32 %v9352_v5  ;;  %v9355_v55 = vadd.f32 %v10640_v56, %v18634_v38  ;;  %v9346_v15 = vpop.f32.mrb[163].mxu0 }
 0x9fc   : > { %13995 = vtanh.f32 %v9344_v13  ;;  %v9347_v3 = vadd.f32 %v9346_v15, %v18634_v38 }
 0x9fd   : > { %13997 = vtanh.f32 %v9355_v55 }
 0x9fe   : > { %13999 = vtanh.f32 %v9347_v3 }
 0xa05   : > { %v13994_v32 = vpop.eup %13993 }
 0xa06   : > { %v13996_v21 = vpop.eup %13995 }
 0xa07   : > { %v13998_v11 = vpop.eup %13997 }
 0xa08   : > { %v14000_v26 = vpop.eup %13999  ;;  %v9503_v28 = vpack.c.bf16 %v13998_v11, %v13994_v32  ;;  %v10643_v43 = vpop.f32.mrb[164].mxu0 }
 0xa09   : > { %v9368_v33 = vadd.f32 %v10643_v43, %v18634_v38  ;;  %v9359_v30 = vpop.f32.mrb[165].mxu0  ;;  %v9502_v51 = vpack.c.bf16 %v14000_v26, %v13996_v21 }
 0xa0a   : > { %v9360_v63 = vadd.f32 %v9359_v30, %v18634_v38  ;;  %v10644_v4 = vpop.f32.mrb[166].mxu0 }
 0xa0b   : > { %14001 = vtanh.f32 %v9368_v33  ;;  %v9371_v48 = vadd.f32 %v10644_v4, %v18634_v38  ;;  %v9362_v39 = vpop.f32.mrb[167].mxu0  ;;  %10685 = vmatprep.mubr.bf16.mxu0 %v9502_v51 }
 0xa0c   : > { %14003 = vtanh.f32 %v9360_v63  ;;  %v9363_v29 = vadd.f32 %v9362_v39, %v18634_v38  ;;  %10686 = vmatmul.mubr.bf16.vlgmr.msra.gmra.mrb[192].mxu0 %v9503_v28 }
 0xa0d   : > { %14005 = vtanh.f32 %v9371_v48 }
 0xa0e   : > { %14007 = vtanh.f32 %v9363_v29 }
 0xa15   : > { %v14002_v49 = vpop.eup %14001 }
 0xa16   : > { %v14004_v9 = vpop.eup %14003 }
 0xa17   : > { %v14006_v6 = vpop.eup %14005 }
 0xa18   : > { %v14008_v41 = vpop.eup %14007  ;;  %v9505_v54 = vpack.c.bf16 %v14006_v6, %v14002_v49  ;;  %v10647_v60 = vpop.f32.mrb[168].mxu0 }
 0xa19   : > { %v9384_v37 = vadd.f32 %v10647_v60, %v18634_v38  ;;  %v9375_v62 = vpop.f32.mrb[169].mxu0  ;;  %v9504_v12 = vpack.c.bf16 %v14008_v41, %v14004_v9 }
 0xa1a   : > { %v9376_v45 = vadd.f32 %v9375_v62, %v18634_v38  ;;  %v10648_v14 = vpop.f32.mrb[170].mxu0 }
 0xa1b   : > { %14009 = vtanh.f32 %v9384_v37  ;;  %v9387_v35 = vadd.f32 %v10648_v14, %v18634_v38  ;;  %v9378_v18 = vpop.f32.mrb[171].mxu0  ;;  %10689 = vmatprep.mubr.bf16.mxu0 %v9504_v12 }
 0xa1c   : > { %14011 = vtanh.f32 %v9376_v45  ;;  %v9379_v36 = vadd.f32 %v9378_v18, %v18634_v38  ;;  %10690 = vmatmul.mubr.bf16.gmra.mrb[196].mxu0 %v9505_v54 }
 0xa1d   : > { %14013 = vtanh.f32 %v9387_v35 }
 0xa1e   : > { %14015 = vtanh.f32 %v9379_v36 }
 0xa25   : > { %v14010_v0 = vpop.eup %14009 }
 0xa26   : > { %v14012_v16 = vpop.eup %14011 }
 0xa27   : > { %v14014_v22 = vpop.eup %14013 }
 0xa28   : > { %v14016_v7 = vpop.eup %14015  ;;  %v9507_v17 = vpack.c.bf16 %v14014_v22, %v14010_v0  ;;  %v10651_v1 = vpop.f32.mrb[172].mxu0 }
 0xa29   : > { %v9400_v23 = vadd.f32 %v10651_v1, %v18634_v38  ;;  %v9391_v34 = vpop.f32.mrb[173].mxu0  ;;  %v9506_v59 = vpack.c.bf16 %v14016_v7, %v14012_v16 }
 0xa2a   : > { %v9392_v24 = vadd.f32 %v9391_v34, %v18634_v38  ;;  %v10652_v8 = vpop.f32.mrb[174].mxu0 }
 0xa2b   : > { %14017 = vtanh.f32 %v9400_v23  ;;  %v9403_v42 = vadd.f32 %v10652_v8, %v18634_v38  ;;  %v9394_v46 = vpop.f32.mrb[175].mxu0  ;;  %10693 = vmatprep.mubr.bf16.mxu0 %v9506_v59 }
 0xa2c   : > { %14019 = vtanh.f32 %v9392_v24  ;;  %v9395_v52 = vadd.f32 %v9394_v46, %v18634_v38  ;;  %10694 = vmatmul.mubr.bf16.gmra.mrb[200].mxu0 %v9507_v17 }
 0xa2d   : > { %14021 = vtanh.f32 %v9403_v42 }
 0xa2e   : > { %14023 = vtanh.f32 %v9395_v52 }
 0xa35   : > { %v14018_v20 = vpop.eup %14017 }
 0xa36   : > { %v14020_v58 = vpop.eup %14019 }
 0xa37   : > { %v14022_v50 = vpop.eup %14021 }
 0xa38   : > { %v14024_v44 = vpop.eup %14023  ;;  %v9509_v40 = vpack.c.bf16 %v14022_v50, %v14018_v20  ;;  %v10655_v10 = vpop.f32.mrb[176].mxu0 }
 0xa39   : > { %v9416_v53 = vadd.f32 %v10655_v10, %v18634_v38  ;;  %v9407_v25 = vpop.f32.mrb[177].mxu0  ;;  %v9508_v2 = vpack.c.bf16 %v14024_v44, %v14020_v58  ;;  %v9520_v58 = vsub.s32 6, %v19403_v19 }
 0xa3a   : > { %v9408_v31 = vadd.f32 %v9407_v25, %v18634_v38  ;;  %v10656_v61 = vpop.f32.mrb[178].mxu0 }
 0xa3b   : > { %14025 = vtanh.f32 %v9416_v53  ;;  %v9419_v47 = vadd.f32 %v10656_v61, %v18634_v38  ;;  %v9410_v5 = vpop.f32.mrb[179].mxu0  ;;  %10697 = vmatprep.mubr.bf16.mxu0 %v9508_v2  ;;  %v18670_v50 = vrot.slane %v18595_v27, %v9520_v58 }
 0xa3c   : > { %14027 = vtanh.f32 %v9408_v31  ;;  %v9411_v57 = vadd.f32 %v9410_v5, %v18634_v38  ;;  %10698 = vmatmul.mubr.bf16.gmra.mrb[204].mxu0 %v9509_v40 }
 0xa3d   : > { %14029 = vtanh.f32 %v9419_v47 }
 0xa3e   : > { %14031 = vtanh.f32 %v9411_v57 }
 0xa45   : > { %v14026_v13 = vpop.eup %14025 }
 0xa46   : > { %v14028_v56 = vpop.eup %14027 }
 0xa47   : > { %v14030_v55 = vpop.eup %14029 }
 0xa48   : > { %v14032_v15 = vpop.eup %14031  ;;  %v9511_v3 = vpack.c.bf16 %v14030_v55, %v14026_v13  ;;  %v10659_v32 = vpop.f32.mrb[180].mxu0 }
 0xa49   : > { %v9432_v21 = vadd.f32 %v10659_v32, %v18634_v38  ;;  %v9423_v11 = vpop.f32.mrb[181].mxu0  ;;  %v9510_v26 = vpack.c.bf16 %v14032_v15, %v14028_v56 }
 0xa4a   : > { %v9424_v28 = vadd.f32 %v9423_v11, %v18634_v38  ;;  %v10660_v43 = vpop.f32.mrb[182].mxu0 }
 0xa4b   : > { %14033 = vtanh.f32 %v9432_v21  ;;  %v9435_v33 = vadd.f32 %v10660_v43, %v18634_v38  ;;  %v9426_v30 = vpop.f32.mrb[183].mxu0  ;;  %10701 = vmatprep.mubr.bf16.mxu0 %v9510_v26 }
 0xa4c   : > { %14035 = vtanh.f32 %v9424_v28  ;;  %v9427_v51 = vadd.f32 %v9426_v30, %v18634_v38  ;;  %10702 = vmatmul.mubr.bf16.gmra.mrb[208].mxu0 %v9511_v3 }
 0xa4d   : > { %14037 = vtanh.f32 %v9435_v33 }
 0xa4e   : > { %14039 = vtanh.f32 %v9427_v51 }
 0xa55   : > { %v14034_v63 = vpop.eup %14033 }
 0xa56   : > { %v14036_v4 = vpop.eup %14035 }
 0xa57   : > { %v14038_v48 = vpop.eup %14037 }
 0xa58   : > { %v14040_v39 = vpop.eup %14039  ;;  %v9513_v29 = vpack.c.bf16 %v14038_v48, %v14034_v63  ;;  %v10663_v49 = vpop.f32.mrb[184].mxu0 }
 0xa59   : > { %v9448_v9 = vadd.f32 %v10663_v49, %v18634_v38  ;;  %v9439_v6 = vpop.f32.mrb[185].mxu0  ;;  %v9512_v41 = vpack.c.bf16 %v14040_v39, %v14036_v4 }
 0xa5a   : > { %v9440_v54 = vadd.f32 %v9439_v6, %v18634_v38  ;;  %v10664_v60 = vpop.f32.mrb[186].mxu0 }
 0xa5b   : > { %14041 = vtanh.f32 %v9448_v9  ;;  %v9451_v37 = vadd.f32 %v10664_v60, %v18634_v38  ;;  %v9442_v62 = vpop.f32.mrb[187].mxu0  ;;  %10705 = vmatprep.mubr.bf16.mxu0 %v9512_v41 }
 0xa5c   : > { %14043 = vtanh.f32 %v9440_v54  ;;  %v9443_v12 = vadd.f32 %v9442_v62, %v18634_v38  ;;  %10706 = vmatmul.mubr.bf16.gmra.mrb[212].mxu0 %v9513_v29 }
 0xa5d   : > { %14045 = vtanh.f32 %v9451_v37 }
 0xa5e   : > { %14047 = vtanh.f32 %v9443_v12 }
 0xa65   : > { %v14042_v45 = vpop.eup %14041 }
 0xa66   : > { %v14044_v14 = vpop.eup %14043 }
 0xa67   : > { %v14046_v35 = vpop.eup %14045 }
 0xa68   : > { %v14048_v18 = vpop.eup %14047  ;;  %v9515_v36 = vpack.c.bf16 %v14046_v35, %v14042_v45  ;;  %v10667_v0 = vpop.f32.mrb[188].mxu0 }
 0xa69   : > { %v9464_v16 = vadd.f32 %v10667_v0, %v18634_v38  ;;  %v9455_v22 = vpop.f32.mrb[189].mxu0  ;;  %v9514_v7 = vpack.c.bf16 %v14048_v18, %v14044_v14 }
 0xa6a   : > { %v9456_v17 = vadd.f32 %v9455_v22, %v18634_v38  ;;  %v10668_v1 = vpop.f32.mrb[190].mxu0 }
 0xa6b   : > { %14049 = vtanh.f32 %v9464_v16  ;;  %v9467_v23 = vadd.f32 %v10668_v1, %v18634_v38  ;;  %v9458_v34 = vpop.f32.mrb[191].mxu0  ;;  %10709 = vmatprep.mubr.bf16.mxu0 %v9514_v7 }
 0xa6c   : > { %14051 = vtanh.f32 %v9456_v17  ;;  %v9459_v59 = vadd.f32 %v9458_v34, %v18634_v38  ;;  %10710 = vmatmul.mubr.bf16.gmra.mrb[216].mxu0 %v9515_v36 }
 0xa6d   : > { %14053 = vtanh.f32 %v9467_v23 }
 0xa6e   : > { %14055 = vtanh.f32 %v9459_v59 }
 0xa75   : > { %v14050_v24 = vpop.eup %14049 }
 0xa76   : > { %v14052_v8 = vpop.eup %14051 }
 0xa77   : > { %v14054_v42 = vpop.eup %14053 }
 0xa78   : > { %v14056_v46 = vpop.eup %14055  ;;  %v9517_v52 = vpack.c.bf16 %v14054_v42, %v14050_v24 }
 0xa79   : > { %v9516_v20 = vpack.c.bf16 %v14056_v46, %v14052_v8 }
 0xa7b   : > { %10713 = vmatprep.mubr.bf16.mxu0 %v9516_v20 }
 0xa7c   : > { %10714 = vmatmul.mubr.bf16.gmra.mrb[220].mxu0 %v9517_v52 }
 0xadf   : > { %v10687_v38 = vpop.f32.mrb[192].mxu0 }
 0xae0   : > { %v9613_v44 = vadd.f32 %v10687_v38, %v18670_v50  ;;  %v9604_v40 = vpop.f32.mrb[193].mxu0 }
 0xae1   : > { %v9605_v19 = vadd.f32 %v9604_v40, %v18670_v50  ;;  %v10688_v10 = vpop.f32.mrb[194].mxu0 }
 0xae2   : > { %9733 = vst [vmem:[%s18677_s16 + $0x10] sm:$0xff] %v9613_v44  ;;  %v9616_v27 = vadd.f32 %v10688_v10, %v18670_v50  ;;  %v9607_v53 = vpop.f32.mrb[195].mxu0 }
 0xae3   : > { %9731 = vst [vmem:[%s18677_s16] sm:$0xff] %v9605_v19  ;;  %v9608_v25 = vadd.f32 %v9607_v53, %v18670_v50 }
 0xae4   : > { %9734 = vst [vmem:[%s18677_s16 + $0x18] sm:$0xff] %v9616_v27 }
 0xae5   : > { %9732 = vst [vmem:[%s18677_s16 + $0x8] sm:$0xff] %v9608_v25 }
 0xaef   : > { %v10691_v2 = vpop.f32.mrb[196].mxu0 }
 0xaf0   : > { %v9629_v31 = vadd.f32 %v10691_v2, %v18670_v50  ;;  %v9620_v61 = vpop.f32.mrb[197].mxu0 }
 0xaf1   : > { %v9621_v47 = vadd.f32 %v9620_v61, %v18670_v50  ;;  %v10692_v5 = vpop.f32.mrb[198].mxu0 }
 0xaf2   : > { %9737 = vst [vmem:[%s18677_s16 + $0x30] sm:$0xff] %v9629_v31  ;;  %v9632_v57 = vadd.f32 %v10692_v5, %v18670_v50  ;;  %v9623_v13 = vpop.f32.mrb[199].mxu0 }
 0xaf3   : > { %9735 = vst [vmem:[%s18677_s16 + $0x20] sm:$0xff] %v9621_v47  ;;  %v9624_v56 = vadd.f32 %v9623_v13, %v18670_v50 }
 0xaf4   : > { %9738 = vst [vmem:[%s18677_s16 + $0x38] sm:$0xff] %v9632_v57 }
 0xaf5   : > { %9736 = vst [vmem:[%s18677_s16 + $0x28] sm:$0xff] %v9624_v56 }
 0xaff   : > { %v10695_v55 = vpop.f32.mrb[200].mxu0 }
 0xb00   : > { %v9645_v15 = vadd.f32 %v10695_v55, %v18670_v50  ;;  %v9636_v3 = vpop.f32.mrb[201].mxu0 }
 0xb01   : > { %v9637_v32 = vadd.f32 %v9636_v3, %v18670_v50  ;;  %v10696_v21 = vpop.f32.mrb[202].mxu0 }
 0xb02   : > { %9741 = vst [vmem:[%s18677_s16 + $0x50] sm:$0xff] %v9645_v15  ;;  %v9648_v11 = vadd.f32 %v10696_v21, %v18670_v50  ;;  %v9639_v26 = vpop.f32.mrb[203].mxu0 }
 0xb03   : > { %9739 = vst [vmem:[%s18677_s16 + $0x40] sm:$0xff] %v9637_v32  ;;  %v9640_v28 = vadd.f32 %v9639_v26, %v18670_v50 }
 0xb04   : > { %9742 = vst [vmem:[%s18677_s16 + $0x58] sm:$0xff] %v9648_v11 }
 0xb05   : > { %9740 = vst [vmem:[%s18677_s16 + $0x48] sm:$0xff] %v9640_v28 }
 0xb0f   : > { %v10699_v43 = vpop.f32.mrb[204].mxu0 }
 0xb10   : > { %v9661_v33 = vadd.f32 %v10699_v43, %v18670_v50  ;;  %v9652_v30 = vpop.f32.mrb[205].mxu0 }
 0xb11   : > { %v9653_v51 = vadd.f32 %v9652_v30, %v18670_v50  ;;  %v10700_v63 = vpop.f32.mrb[206].mxu0 }
 0xb12   : > { %9745 = vst [vmem:[%s18677_s16 + $0x70] sm:$0xff] %v9661_v33  ;;  %v9664_v4 = vadd.f32 %v10700_v63, %v18670_v50  ;;  %v9655_v48 = vpop.f32.mrb[207].mxu0 }
 0xb13   : > { %9743 = vst [vmem:[%s18677_s16 + $0x60] sm:$0xff] %v9653_v51  ;;  %v9656_v39 = vadd.f32 %v9655_v48, %v18670_v50 }
 0xb14   : > { %9746 = vst [vmem:[%s18677_s16 + $0x78] sm:$0xff] %v9664_v4 }
 0xb15   : > { %9744 = vst [vmem:[%s18677_s16 + $0x68] sm:$0xff] %v9656_v39 }
 0xb1f   : > { %v10703_v29 = vpop.f32.mrb[208].mxu0 }
 0xb20   : > { %v9677_v49 = vadd.f32 %v10703_v29, %v18670_v50  ;;  %v9668_v9 = vpop.f32.mrb[209].mxu0 }
 0xb21   : > { %v9669_v6 = vadd.f32 %v9668_v9, %v18670_v50  ;;  %v10704_v41 = vpop.f32.mrb[210].mxu0 }
 0xb22   : > { %9749 = vst [vmem:[%s18677_s16 + $0x90] sm:$0xff] %v9677_v49  ;;  %v9680_v54 = vadd.f32 %v10704_v41, %v18670_v50  ;;  %v9671_v60 = vpop.f32.mrb[211].mxu0 }
 0xb23   : > { %9747 = vst [vmem:[%s18677_s16 + $0x80] sm:$0xff] %v9669_v6  ;;  %v9672_v37 = vadd.f32 %v9671_v60, %v18670_v50 }
 0xb24   : > { %9750 = vst [vmem:[%s18677_s16 + $0x98] sm:$0xff] %v9680_v54 }
 0xb25   : > { %9748 = vst [vmem:[%s18677_s16 + $0x88] sm:$0xff] %v9672_v37 }
 0xb2f   : > { %v10707_v62 = vpop.f32.mrb[212].mxu0 }
 0xb30   : > { %v9693_v12 = vadd.f32 %v10707_v62, %v18670_v50  ;;  %v9684_v45 = vpop.f32.mrb[213].mxu0 }
 0xb31   : > { %v9685_v14 = vadd.f32 %v9684_v45, %v18670_v50  ;;  %v10708_v35 = vpop.f32.mrb[214].mxu0 }
 0xb32   : > { %9753 = vst [vmem:[%s18677_s16 + $0xb0] sm:$0xff] %v9693_v12  ;;  %v9696_v18 = vadd.f32 %v10708_v35, %v18670_v50  ;;  %v9687_v36 = vpop.f32.mrb[215].mxu0 }
 0xb33   : > { %9751 = vst [vmem:[%s18677_s16 + $0xa0] sm:$0xff] %v9685_v14  ;;  %v9688_v0 = vadd.f32 %v9687_v36, %v18670_v50 }
 0xb34   : > { %9754 = vst [vmem:[%s18677_s16 + $0xb8] sm:$0xff] %v9696_v18 }
 0xb35   : > { %9752 = vst [vmem:[%s18677_s16 + $0xa8] sm:$0xff] %v9688_v0 }
 0xb3f   : > { %v10711_v16 = vpop.f32.mrb[216].mxu0 }
 0xb40   : > { %v9709_v22 = vadd.f32 %v10711_v16, %v18670_v50  ;;  %v9700_v7 = vpop.f32.mrb[217].mxu0 }
 0xb41   : > { %v9701_v17 = vadd.f32 %v9700_v7, %v18670_v50  ;;  %v10712_v1 = vpop.f32.mrb[218].mxu0 }
 0xb42   : > { %9757 = vst [vmem:[%s18677_s16 + $0xd0] sm:$0xff] %v9709_v22  ;;  %v9712_v23 = vadd.f32 %v10712_v1, %v18670_v50  ;;  %v9703_v34 = vpop.f32.mrb[219].mxu0 }
 0xb43   : > { %9755 = vst [vmem:[%s18677_s16 + $0xc0] sm:$0xff] %v9701_v17  ;;  %v9704_v59 = vadd.f32 %v9703_v34, %v18670_v50 }
 0xb44   : > { %9758 = vst [vmem:[%s18677_s16 + $0xd8] sm:$0xff] %v9712_v23 }
 0xb45   : > { %9756 = vst [vmem:[%s18677_s16 + $0xc8] sm:$0xff] %v9704_v59 }
 0xb4f   : > { %v10715_v24 = vpop.f32.mrb[220].mxu0 }
 0xb50   : > { %v9725_v8 = vadd.f32 %v10715_v24, %v18670_v50  ;;  %v9716_v42 = vpop.f32.mrb[221].mxu0 }
 0xb51   : > { %v9717_v46 = vadd.f32 %v9716_v42, %v18670_v50  ;;  %v10716_v52 = vpop.f32.mrb[222].mxu0 }
 0xb52   : > { %9761 = vst [vmem:[%s18677_s16 + $0xf0] sm:$0xff] %v9725_v8  ;;  %v9728_v20 = vadd.f32 %v10716_v52, %v18670_v50  ;;  %v9719_v58 = vpop.f32.mrb[223].mxu0 }
 0xb53   : > { %9759 = vst [vmem:[%s18677_s16 + $0xe0] sm:$0xff] %v9717_v46  ;;  %v9720_v38 = vadd.f32 %v9719_v58, %v18670_v50 }
 0xb54   : > { %9762 = vst [vmem:[%s18677_s16 + $0xf8] sm:$0xff] %v9728_v20 }
 0xb55   : > { %9760 = vst [vmem:[%s18677_s16 + $0xe8] sm:$0xff] %v9720_v38 }
 0xb56 PF: > { %s19_s24 = sadd.s32 1, %s14386_s24  }
 0xb57   : > { %p16_p3 = scmp.ge.s32.totalorder %s19_s24, 4  }
 0xb59   :  { %18 = sbr.rel (!%p16_p3) target bundleno = 2 (0x2), region = 91 }
 0xb60   :  { %9785 = vsyncpa [#allocation3], 1 }
 0xb61   :  { %9787 = vsyncpa [#allocation3 + $0x1], 1 }
 0xb62   :  { %9788 = vsyncpa [#allocation5], 1 }

</bundles_post_ra>
